<compile_context>
chip_gen: v7x
topology: tpu7x:2x2x1
jax: 0.10.0
libtpu: 0.0.40
codegen_flags: <defaults>
</compile_context>

<pallas_src>
import functools
import math

import jax
import jax.numpy as jnp
import numpy as np
from jax.experimental import pallas as pl
from jax.experimental.pallas import tpu as pltpu

NUM_GROUP = 8
GN_EPS = 1e-5


def _round_up(x, m):
    return (x + m - 1) // m * m


# ---------------------------------------------------------------------------
# Pallas kernels
# ---------------------------------------------------------------------------
def _matmul_kernel(*refs, has_residual):
    """Tiled (M,N,K)-gridded matmul: out = A @ W + bias (+ residual), f32 accumulate."""
    if has_residual:
        a_ref, w_ref, b_ref, res_ref, o_ref, acc_ref = refs
    else:
        a_ref, w_ref, b_ref, o_ref, acc_ref = refs
        res_ref = None
    k = pl.program_id(2)

    @pl.when(k == 0)
    def _():
        acc_ref[...] = jnp.zeros_like(acc_ref)

    acc_ref[...] += jnp.dot(a_ref[...], w_ref[...],
                            preferred_element_type=jnp.float32)

    @pl.when(k == pl.num_programs(2) - 1)
    def _():
        y = acc_ref[...] + b_ref[...]          # bias added exactly once
        if res_ref is not None:
            y = y + res_ref[...]               # fused residual add
        o_ref[...] = y.astype(o_ref.dtype)


def _conv3x3_tap_kernel(*refs, has_residual):
    """3x3 conv as a 3-step reduction over row-taps (grid axis 3)."""
    if has_residual:
        a_ref, w_ref, b_ref, res_ref, o_ref, acc_ref = refs
    else:
        a_ref, w_ref, b_ref, o_ref, acc_ref = refs
        res_ref = None
    ki = pl.program_id(3)

    @pl.when(ki == 0)
    def _():
        acc_ref[...] = jnp.zeros_like(acc_ref)

    acc_ref[...] += jnp.dot(a_ref[0], w_ref[0],
                            preferred_element_type=jnp.float32)

    @pl.when(ki == pl.num_programs(3) - 1)
    def _():
        y = acc_ref[...] + b_ref[...]
        if res_ref is not None:
            y = y + res_ref[0]
        o_ref[0] = y.astype(o_ref.dtype)


def _group_norm_kernel(x_ref, gamma_ref, beta_ref, m_ref, mt_ref, o_ref, *,
                       n_elems, eps, apply_silu):
    # x: (1, HW, C) f32; m: (C, G) one-hot group membership; mt = m.T
    x = x_ref[0]                                                    # (L, C)
    L = x.shape[0]
    ones = jnp.ones((1, L), jnp.float32)
    # channel sums on the MXU (otherwise-idle unit) instead of XLU axis-0 reductions
    ch_sum = jnp.dot(ones, x, preferred_element_type=jnp.float32)        # (1, C)
    ch_sq = jnp.dot(ones, x * x, preferred_element_type=jnp.float32)     # (1, C)
    g_sum = jnp.dot(ch_sum, m_ref[...], preferred_element_type=jnp.float32)   # (1, G)
    g_sq = jnp.dot(ch_sq, m_ref[...], preferred_element_type=jnp.float32)     # (1, G)
    mean_g = g_sum / n_elems
    var_g = g_sq / n_elems - mean_g * mean_g          # biased var (PyTorch GN), f32
    mean_c = jnp.dot(mean_g, mt_ref[...], preferred_element_type=jnp.float32)  # (1, C)
    var_c = jnp.dot(var_g, mt_ref[...], preferred_element_type=jnp.float32)    # (1, C)
    inv = jax.lax.rsqrt(var_c + eps)
    y = (x - mean_c) * (inv * gamma_ref[...]) + beta_ref[...]
    if apply_silu:
        y = y * jax.nn.sigmoid(y)
    o_ref[0] = y.astype(o_ref.dtype)


def _attention_kernel(q_ref, k_ref, v_ref, o_ref):
    # q/k/v: (1, L, C) bf16 (scale already folded into q) -> o: (1, L, C) f32
    q = q_ref[0]
    k = k_ref[0]
    v = v_ref[0]
    s = jax.lax.dot_general(q, k, (((1,), (1,)), ((), ())),
                            preferred_element_type=jnp.float32)      # (L, L) f32
    s_max = jnp.max(s, axis=-1, keepdims=True)
    p = jnp.exp(s - s_max)
    denom = jnp.sum(p, axis=-1, keepdims=True)
    w = p * pl.reciprocal(denom, approx=True)
    o_ref[0] = jnp.dot(w.astype(jnp.bfloat16), v,
                       preferred_element_type=jnp.float32).astype(o_ref.dtype)


# ---------------------------------------------------------------------------
# Matmul / conv wrappers
# ---------------------------------------------------------------------------
def matmul_bias(a, w, b, residual=None, out_cols=None):
    """a:(M,K) @ w:(K,Np) + b (+ residual), tiled & pipelined. w/b pre-padded to Np."""
    M, K = a.shape
    Np = w.shape[1]
    out_cols = Np if out_cols is None else out_cols

    tm = 256
    Mp = _round_up(M, tm)
    tn = 256 if Np % 256 == 0 else 128
    if K % 128 == 0:
        tk = 256 if K % 256 == 0 else 128
    else:
        tk = K                       # small channel counts: single full-K step

    a_p = a.astype(jnp.bfloat16)
    if Mp != M:
        a_p = jnp.pad(a_p, ((0, Mp - M), (0, 0)))

    inputs = [a_p, w, b]
    in_specs = [
        pl.BlockSpec((tm, tk), lambda i, j, k: (i, k)),
        pl.BlockSpec((tk, tn), lambda i, j, k: (k, j)),
        pl.BlockSpec((1, tn), lambda i, j, k: (0, j)),
    ]
    has_res = residual is not None
    if has_res:
        r = residual.astype(jnp.float32)
        r = jnp.pad(r, ((0, Mp - r.shape[0]), (0, Np - r.shape[1])))
        inputs.append(r)
        in_specs.append(pl.BlockSpec((tm, tn), lambda i, j, k: (i, j)))

    kernel = functools.partial(_matmul_kernel, has_residual=has_res)
    out = pl.pallas_call(
        kernel,
        out_shape=jax.ShapeDtypeStruct((Mp, Np), jnp.float32),
        grid=(Mp // tm, Np // tn, K // tk),
        in_specs=in_specs,
        out_specs=pl.BlockSpec((tm, tn), lambda i, j, k: (i, j)),
        scratch_shapes=[pltpu.VMEM((tm, tn), jnp.float32)],
        compiler_params=pltpu.CompilerParams(
            dimension_semantics=("parallel", "parallel", "arbitrary")),
    )(*inputs)
    return out[:M, :out_cols]


def conv1x1(x_nhwc, p, residual=None):
    B, H, W, Cin = x_nhwc.shape
    a = x_nhwc.reshape(B * H * W, Cin)
    res = None
    if residual is not None:
        res = residual.reshape(B * H * W, residual.shape[-1])
    out = matmul_bias(a, p["w"], p["b"], residual=res, out_cols=p["cout"])
    return out.reshape(B, H, W, p["cout"])


def conv3x3(x_nhwc, p, residual=None):
    """Conv2d(k=3, stride=1, padding=1) as a 3-row-tap reduction through a tiled matmul.

    Width im2col (3x duplication only) is done in JAX; the 3 height taps are handled
    by the grid's K axis: the A-operand index_map walks height-shifted windows of the
    padded tensor. Bias and the optional residual add are fused into the epilogue.
    """
    B, H, W, Cin = x_nhwc.shape
    w3, b = p["w"], p["b"]                      # (3, 3*Cin, Np) bf16, (1, Np) f32
    Np = w3.shape[-1]
    Cout = p["cout"]
    K3 = 3 * Cin

    xb = x_nhwc.astype(jnp.bfloat16)
    xw = jnp.pad(xb, ((0, 0), (0, 0), (1, 1), (0, 0)))
    xw = jnp.concatenate([xw[:, :, j:j + W, :] for j in range(3)], axis=-1)  # (B,H,W,3Cin)
    xh = jnp.pad(xw, ((0, 0), (1, 1), (0, 0), (0, 0)))                       # (B,H+2,W,3Cin)

    res_f = None
    if residual is not None:
        res_f = residual.reshape(B, H * W, residual.shape[-1]).astype(jnp.float32)
        res_f = jnp.pad(res_f, ((0, 0), (0, 0), (0, Np - res_f.shape[-1])))

    tm = next((t for t in (256, 128, 64, 32, 16, 8) if W % t == 0), None)
    if tm is None:
        # TODO(synk): W not divisible by 8 -> fall back to dense im2col through the
        # generic tiled matmul (still pipelined, just more HBM traffic).
        a = jnp.concatenate([xh[:, ki:ki + H] for ki in range(3)], axis=-1)
        a = a.reshape(B * H * W, 3 * K3)
        res2 = None if res_f is None else res_f.reshape(B * H * W, Np)
        out = matmul_bias(a, w3.reshape(3 * K3, Np), b, residual=res2, out_cols=Cout)
        return out.reshape(B, H, W, Cout)

    a = xh.reshape(B, (H + 2) * W, K3)
    tn = 256 if Np % 256 == 0 else 128
    shift_blk = W // tm                        # one row-tap shift = W rows of A

    in_specs = [
        pl.BlockSpec((1, tm, K3), lambda bb, i, j, ki: (bb, i + ki * shift_blk, 0)),
        pl.BlockSpec((1, K3, tn), lambda bb, i, j, ki: (ki, 0, j)),
        pl.BlockSpec((1, tn), lambda bb, i, j, ki: (0, j)),
    ]
    inputs = [a, w3, b]
    if res_f is not None:
        in_specs.append(pl.BlockSpec((1, tm, tn), lambda bb, i, j, ki: (bb, i, j)))
        inputs.append(res_f)

    kernel = functools.partial(_conv3x3_tap_kernel, has_residual=res_f is not None)
    out = pl.pallas_call(
        kernel,
        out_shape=jax.ShapeDtypeStruct((B, H * W, Np), jnp.float32),
        grid=(B, (H * W) // tm, Np // tn, 3),
        in_specs=in_specs,
        out_specs=pl.BlockSpec((1, tm, tn), lambda bb, i, j, ki: (bb, i, j)),
        scratch_shapes=[pltpu.VMEM((tm, tn), jnp.float32)],
        compiler_params=pltpu.CompilerParams(
            dimension_semantics=("parallel", "parallel", "parallel", "arbitrary")),
    )(*inputs)
    return out[..., :Cout].reshape(B, H, W, Cout)


def group_norm(x_nhwc, p, *, apply_silu):
    B, H, W, C = x_nhwc.shape
    L = H * W
    G = p["m"].shape[1]
    cpg = C // G
    xf = x_nhwc.reshape(B, L, C)
    kernel = functools.partial(_group_norm_kernel, n_elems=float(L * cpg),
                               eps=GN_EPS, apply_silu=apply_silu)
    out = pl.pallas_call(
        kernel,
        out_shape=jax.ShapeDtypeStruct((B, L, C), jnp.float32),
        grid=(B,),
        in_specs=[
            pl.BlockSpec((1, L, C), lambda b: (b, 0, 0)),
            pl.BlockSpec((1, C), lambda b: (0, 0)),
            pl.BlockSpec((1, C), lambda b: (0, 0)),
            pl.BlockSpec((C, G), lambda b: (0, 0)),
            pl.BlockSpec((G, C), lambda b: (0, 0)),
        ],
        out_specs=pl.BlockSpec((1, L, C), lambda b: (b, 0, 0)),
        compiler_params=pltpu.CompilerParams(dimension_semantics=("parallel",)),
    )(xf, p["gamma"], p["beta"], p["m"], p["mt"])
    return out.reshape(B, H, W, C)


def attention(q, k, v):
    """Fused per-batch attention; scale already folded into q."""
    # TODO(synk): for large L (>~1k) this should be flash-tiled over KV (online
    # softmax) to fit the 64 MiB v7x VMEM; whole-sequence blocks are fine at L=256.
    B, L, C = q.shape
    spec = pl.BlockSpec((1, L, C), lambda b: (b, 0, 0))
    return pl.pallas_call(
        _attention_kernel,
        out_shape=jax.ShapeDtypeStruct((B, L, C), jnp.float32),
        grid=(B,),
        in_specs=[spec, spec, spec],
        out_specs=spec,
        compiler_params=pltpu.CompilerParams(dimension_semantics=("parallel",)),
    )(q.astype(jnp.bfloat16), k.astype(jnp.bfloat16), v.astype(jnp.bfloat16))


# ---------------------------------------------------------------------------
# Parameters (xavier-uniform like the PyTorch init; weights pre-laid-out for matmul)
# ---------------------------------------------------------------------------
def xavier_uniform(key, shape, gain=1.0):
    if len(shape) > 2:
        recep = int(np.prod(shape[2:]))
        fan_in, fan_out = shape[1] * recep, shape[0] * recep
    else:
        fan_in, fan_out = shape[1], shape[0]
    bound = gain * math.sqrt(6.0 / (fan_in + fan_out))
    return jax.random.uniform(key, shape, jnp.float32, -bound, bound)


def conv3x3_params(key, cin, cout, gain=1.0):
    w = xavier_uniform(key, (cout, cin, 3, 3), gain)                 # PyTorch layout
    cout_p = _round_up(cout, 128)                                    # lane-dense N
    wm = jnp.transpose(w, (2, 3, 1, 0)).reshape(3, 3 * cin, cout)    # (ki, kj*cin+c, cout)
    wm = jnp.pad(wm, ((0, 0), (0, 0), (0, cout_p - cout))).astype(jnp.bfloat16)
    return {"w": wm, "b": jnp.zeros((1, cout_p), jnp.float32), "cin": cin, "cout": cout}


def conv1x1_params(key, cin, cout, gain=1.0):
    w = xavier_uniform(key, (cout, cin, 1, 1), gain)
    cout_p = _round_up(cout, 128)
    wm = jnp.pad(w.reshape(cout, cin).T, ((0, 0), (0, cout_p - cout))).astype(jnp.bfloat16)
    return {"w": wm, "b": jnp.zeros((1, cout_p), jnp.float32), "cin": cin, "cout": cout}


def qkv_params(keys, c):
    """q/k/v 1x1 convs fused into a single (C, 3C) matmul."""
    ws = [xavier_uniform(k, (c, c, 1, 1)).reshape(c, c).T for k in keys]  # (Cin, Cout) each
    wqkv = jnp.concatenate(ws, axis=1)                                    # (C, 3C)
    np_ = _round_up(3 * c, 128)
    wqkv = jnp.pad(wqkv, ((0, 0), (0, np_ - 3 * c))).astype(jnp.bfloat16)
    return {"w": wqkv, "b": jnp.zeros((1, np_), jnp.float32), "cin": c, "cout": 3 * c}


def gn_params(c, num_groups=NUM_GROUP):
    cpg = c // num_groups
    m = (jnp.arange(c)[:, None] // cpg == jnp.arange(num_groups)[None, :]).astype(jnp.float32)
    return {"gamma": jnp.ones((1, c), jnp.float32),
            "beta": jnp.zeros((1, c), jnp.float32),
            "m": m, "mt": m.T}


def resblock_params(key, in_ch, out_ch, attn):
    ks = jax.random.split(key, 8)
    p = {"gn1": gn_params(in_ch),
         "conv1": conv3x3_params(ks[0], in_ch, out_ch),
         "gn2": gn_params(out_ch),
         "conv2": conv3x3_params(ks[1], out_ch, out_ch, gain=1e-5),
         "shortcut": conv1x1_params(ks[2], in_ch, out_ch) if in_ch != out_ch else None,
         "attn": None}
    if attn:
        p["attn"] = {"gn": gn_params(out_ch),
                     "qkv": qkv_params([ks[3], ks[4], ks[5]], out_ch),
                     "proj": conv1x1_params(ks[6], out_ch, out_ch, gain=1e-5)}
    return p


# ---------------------------------------------------------------------------
# Forward pass (mirrors the PyTorch module)
# ---------------------------------------------------------------------------
def attn_block_forward(p, x):
    B, H, W, C = x.shape
    L = H * W
    h = group_norm(x, p["gn"], apply_silu=False)
    qkv = matmul_bias(h.reshape(B * L, C), p["qkv"]["w"], p["qkv"]["b"],
                      out_cols=3 * C)                                   # fused q/k/v
    scale = float(C) ** (-0.5)
    q = (qkv[:, :C] * scale).reshape(B, L, C)       # fold 1/sqrt(C) into q
    k = qkv[:, C:2 * C].reshape(B, L, C)
    v = qkv[:, 2 * C:3 * C].reshape(B, L, C)
    h = attention(q, k, v).reshape(B, H, W, C)
    return conv1x1(h, p["proj"], residual=x)        # "x + proj(h)" fused in epilogue


def resblock_forward(p, x_nhwc, temb=None):
    # TODO(synk): temb_proj path (tdim > 0) not implemented; module is used with tdim=0.
    h = group_norm(x_nhwc, p["gn1"], apply_silu=True)
    h = conv3x3(h, p["conv1"])
    h = group_norm(h, p["gn2"], apply_silu=True)
    # TODO(synk): nn.Dropout is an identity at inference -> skipped.
    sc = conv1x1(x_nhwc, p["shortcut"]) if p["shortcut"] is not None else x_nhwc
    h = conv3x3(h, p["conv2"], residual=sc)         # conv2 + bias + shortcut fused
    if p["attn"] is not None:
        h = attn_block_forward(p["attn"], h)
    return h


def resblock_apply(params, x_nchw, temb=None):
    x = jnp.transpose(x_nchw, (0, 2, 3, 1)).astype(jnp.float32)   # NCHW -> NHWC
    h = resblock_forward(params, x, temb)
    return jnp.transpose(h, (0, 3, 1, 2))                         # back to NCHW


# ---------------------------------------------------------------------------
if __name__ == "__main__":
    key = jax.random.PRNGKey(0)
    k_param, k_x = jax.random.split(key)

    B, Cin, Cout, H, W = 2, 32, 64, 16, 16
    params = resblock_params(k_param, Cin, Cout, attn=True)
    x = jax.random.normal(k_x, (B, Cin, H, W), jnp.float32)       # NCHW like PyTorch

    fwd = jax.jit(functools.partial(resblock_apply, params))
    out = jax.block_until_ready(fwd(x))
    assert out.shape == (B, Cout, H, W), out.shape
    print("KERNEL_OK")
</pallas_src>

<mosaic_0001>
module attributes {stable_mosaic.version = 11 : i64} {
  func.func @_matmul_kernel(%arg0: i32, %arg1: i32, %arg2: i32, %arg3: memref<256x32xbf16, #tpu.memory_space<vmem>>, %arg4: memref<32x128xbf16, #tpu.memory_space<vmem>>, %arg5: memref<1x128xf32, #tpu.memory_space<vmem>>, %arg6: memref<256x128xf32, #tpu.memory_space<vmem>>, %arg7: memref<256x128xf32, #tpu.memory_space<vmem>>) attributes {dimension_semantics = [#tpu.dimension_semantics<parallel>, #tpu.dimension_semantics<parallel>, #tpu.dimension_semantics<arbitrary>], iteration_bounds = array<i64: 2, 1, 1>, scalar_prefetch = 0 : i64, scratch_operands = 1 : i64, tpu.core_type = #tpu.core_type<tc>, window_params = [{transform_indices = @transform_0, window_bounds = array<i64: 256, 32>}, {transform_indices = @transform_1, window_bounds = array<i64: 32, 128>}, {transform_indices = @transform_2, window_bounds = array<i64: 1, 128>}, {transform_indices = @transform_3, window_bounds = array<i64: 256, 128>}]} {
    %c0_i32 = arith.constant 0 : i32
    %0 = arith.cmpi eq, %arg2, %c0_i32 : i32
    %1 = arith.extui %0 : i1 to i32
    %c0_i32_0 = arith.constant 0 : i32
    %2 = arith.cmpi ne, %1, %c0_i32_0 : i32
    scf.if %2 {
      %cst_10 = arith.constant 0.000000e+00 : f32
      %12 = vector.broadcast %cst_10 : f32 to vector<256x128xf32>
      %c0_11 = arith.constant 0 : index
      %c0_12 = arith.constant 0 : index
      %13 = vector.load %arg7[%c0_11, %c0_12] : memref<256x128xf32, #tpu.memory_space<vmem>>, vector<256x128xf32>
      tpu.vector_store %arg7[%c0_11, %c0_12], %12 {strides = array<i32>} : memref<256x128xf32, #tpu.memory_space<vmem>>, vector<256x128xf32>,
    } else {
    }
    %c0 = arith.constant 0 : index
    %c0_1 = arith.constant 0 : index
    %3 = vector.load %arg7[%c0, %c0_1] : memref<256x128xf32, #tpu.memory_space<vmem>>, vector<256x128xf32>
    %c0_2 = arith.constant 0 : index
    %c0_3 = arith.constant 0 : index
    %4 = vector.load %arg3[%c0_2, %c0_3] : memref<256x32xbf16, #tpu.memory_space<vmem>>, vector<256x32xbf16>
    %c0_4 = arith.constant 0 : index
    %c0_5 = arith.constant 0 : index
    %5 = vector.load %arg4[%c0_4, %c0_5] : memref<32x128xbf16, #tpu.memory_space<vmem>>, vector<32x128xbf16>
    %cst = arith.constant dense<0.000000e+00> : vector<256x128xf32>
    %6 = tpu.matmul %4, %5, %cst {dimension_numbers = #tpu.dot_dimension_numbers<[1], [0], [0], [1], [0, 0, 1, 1], [], []>} : vector<256x32xbf16>, vector<32x128xbf16>, vector<256x128xf32> -> vector<256x128xf32>
    %7 = arith.addf %3, %6 : vector<256x128xf32>
    %c0_6 = arith.constant 0 : index
    %c0_7 = arith.constant 0 : index
    %8 = vector.load %arg7[%c0_6, %c0_7] : memref<256x128xf32, #tpu.memory_space<vmem>>, vector<256x128xf32>
    tpu.vector_store %arg7[%c0_6, %c0_7], %7 {strides = array<i32>} : memref<256x128xf32, #tpu.memory_space<vmem>>, vector<256x128xf32>,
    %c0_i32_8 = arith.constant 0 : i32
    %9 = arith.cmpi eq, %arg2, %c0_i32_8 : i32
    %10 = arith.extui %9 : i1 to i32
    %c0_i32_9 = arith.constant 0 : i32
    %11 = arith.cmpi ne, %10, %c0_i32_9 : i32
    scf.if %11 {
      %c0_10 = arith.constant 0 : index
      %c0_11 = arith.constant 0 : index
      %12 = vector.load %arg7[%c0_10, %c0_11] : memref<256x128xf32, #tpu.memory_space<vmem>>, vector<256x128xf32>
      %c0_12 = arith.constant 0 : index
      %c0_13 = arith.constant 0 : index
      %13 = vector.load %arg5[%c0_12, %c0_13] : memref<1x128xf32, #tpu.memory_space<vmem>>, vector<1x128xf32>
      %14 = vector.broadcast %13 : vector<1x128xf32> to vector<256x128xf32>
      %15 = arith.addf %12, %14 : vector<256x128xf32>
      %c0_14 = arith.constant 0 : index
      %c0_15 = arith.constant 0 : index
      %16 = vector.load %arg6[%c0_14, %c0_15] : memref<256x128xf32, #tpu.memory_space<vmem>>, vector<256x128xf32>
      tpu.vector_store %arg6[%c0_14, %c0_15], %15 {strides = array<i32>} : memref<256x128xf32, #tpu.memory_space<vmem>>, vector<256x128xf32>,
    } else {
    }
    return
  }
  func.func @transform_0(%arg0: i32, %arg1: i32, %arg2: i32) -> (i32, i32) {
    %c0_i32 = arith.constant 0 : i32
    return %arg0, %arg2 : i32, i32
  }
  func.func @transform_1(%arg0: i32, %arg1: i32, %arg2: i32) -> (i32, i32) {
    %c0_i32 = arith.constant 0 : i32
    return %arg2, %arg1 : i32, i32
  }
  func.func @transform_2(%arg0: i32, %arg1: i32, %arg2: i32) -> (i32, i32) {
    %c0_i32 = arith.constant 0 : i32
    %c0_i32_0 = arith.constant 0 : i32
    return %c0_i32, %arg1 : i32, i32
  }
  func.func @transform_3(%arg0: i32, %arg1: i32, %arg2: i32) -> (i32, i32) {
    %c0_i32 = arith.constant 0 : i32
    return %arg0, %arg1 : i32, i32
  }
}

module attributes {stable_mosaic.version = 11 : i64} {
  func.func @_group_norm_kernel(%arg0: i32, %arg1: memref<1x256x32xf32, #tpu.memory_space<vmem>>, %arg2: memref<1x32xf32, #tpu.memory_space<vmem>>, %arg3: memref<1x32xf32, #tpu.memory_space<vmem>>, %arg4: memref<32x8xf32, #tpu.memory_space<vmem>>, %arg5: memref<8x32xf32, #tpu.memory_space<vmem>>, %arg6: memref<1x256x32xf32, #tpu.memory_space<vmem>>) attributes {dimension_semantics = [#tpu.dimension_semantics<parallel>], iteration_bounds = array<i64: 2>, scalar_prefetch = 0 : i64, scratch_operands = 0 : i64, tpu.core_type = #tpu.core_type<tc>, window_params = [{transform_indices = @transform_0, window_bounds = array<i64: 1, 256, 32>}, {pipeline_mode = #tpu.pipeline_mode<synchronous>, transform_indices = @transform_1, window_bounds = array<i64: 1, 32>}, {pipeline_mode = #tpu.pipeline_mode<synchronous>, transform_indices = @transform_2, window_bounds = array<i64: 1, 32>}, {pipeline_mode = #tpu.pipeline_mode<synchronous>, transform_indices = @transform_3, window_bounds = array<i64: 32, 8>}, {pipeline_mode = #tpu.pipeline_mode<synchronous>, transform_indices = @transform_4, window_bounds = array<i64: 8, 32>}, {transform_indices = @transform_5, window_bounds = array<i64: 1, 256, 32>}]} {
    %c0 = arith.constant 0 : index
    %c0_0 = arith.constant 0 : index
    %c0_1 = arith.constant 0 : index
    %0 = vector.load %arg1[%c0, %c0_0, %c0_1] : memref<1x256x32xf32, #tpu.memory_space<vmem>>, vector<1x256x32xf32>
    %1 = vector.shape_cast %0 : vector<1x256x32xf32> to vector<256x32xf32>
    %cst = arith.constant 1.000000e+00 : f32
    %2 = vector.broadcast %cst : f32 to vector<1x256xf32>
    %cst_2 = arith.constant dense<0.000000e+00> : vector<1x32xf32>
    %3 = tpu.matmul %2, %1, %cst_2 {dimension_numbers = #tpu.dot_dimension_numbers<[1], [0], [0], [1], [0, 0, 1, 1], [], []>} : vector<1x256xf32>, vector<256x32xf32>, vector<1x32xf32> -> vector<1x32xf32>
    %4 = arith.mulf %1, %1 : vector<256x32xf32>
    %cst_3 = arith.constant dense<0.000000e+00> : vector<1x32xf32>
    %5 = tpu.matmul %2, %4, %cst_3 {dimension_numbers = #tpu.dot_dimension_numbers<[1], [0], [0], [1], [0, 0, 1, 1], [], []>} : vector<1x256xf32>, vector<256x32xf32>, vector<1x32xf32> -> vector<1x32xf32>
    %c0_4 = arith.constant 0 : index
    %c0_5 = arith.constant 0 : index
    %6 = vector.load %arg4[%c0_4, %c0_5] : memref<32x8xf32, #tpu.memory_space<vmem>>, vector<32x8xf32>
    %cst_6 = arith.constant dense<0.000000e+00> : vector<1x8xf32>
    %7 = tpu.matmul %3, %6, %cst_6 {dimension_numbers = #tpu.dot_dimension_numbers<[1], [0], [0], [1], [0, 0, 1, 1], [], []>} : vector<1x32xf32>, vector<32x8xf32>, vector<1x8xf32> -> vector<1x8xf32>
    %c0_7 = arith.constant 0 : index
    %c0_8 = arith.constant 0 : index
    %8 = vector.load %arg4[%c0_7, %c0_8] : memref<32x8xf32, #tpu.memory_space<vmem>>, vector<32x8xf32>
    %cst_9 = arith.constant dense<0.000000e+00> : vector<1x8xf32>
    %9 = tpu.matmul %5, %8, %cst_9 {dimension_numbers = #tpu.dot_dimension_numbers<[1], [0], [0], [1], [0, 0, 1, 1], [], []>} : vector<1x32xf32>, vector<32x8xf32>, vector<1x8xf32> -> vector<1x8xf32>
    %cst_10 = arith.constant 1.024000e+03 : f32
    %10 = vector.broadcast %cst_10 : f32 to vector<1x8xf32>
    %11 = arith.divf %7, %10 : vector<1x8xf32>
    %cst_11 = arith.constant 1.024000e+03 : f32
    %12 = vector.broadcast %cst_11 : f32 to vector<1x8xf32>
    %13 = arith.divf %9, %12 : vector<1x8xf32>
    %14 = arith.mulf %11, %11 : vector<1x8xf32>
    %15 = arith.subf %13, %14 : vector<1x8xf32>
    %c0_12 = arith.constant 0 : index
    %c0_13 = arith.constant 0 : index
    %16 = vector.load %arg5[%c0_12, %c0_13] : memref<8x32xf32, #tpu.memory_space<vmem>>, vector<8x32xf32>
    %cst_14 = arith.constant dense<0.000000e+00> : vector<1x32xf32>
    %17 = tpu.matmul %11, %16, %cst_14 {dimension_numbers = #tpu.dot_dimension_numbers<[1], [0], [0], [1], [0, 0, 1, 1], [], []>} : vector<1x8xf32>, vector<8x32xf32>, vector<1x32xf32> -> vector<1x32xf32>
    %c0_15 = arith.constant 0 : index
    %c0_16 = arith.constant 0 : index
    %18 = vector.load %arg5[%c0_15, %c0_16] : memref<8x32xf32, #tpu.memory_space<vmem>>, vector<8x32xf32>
    %cst_17 = arith.constant dense<0.000000e+00> : vector<1x32xf32>
    %19 = tpu.matmul %15, %18, %cst_17 {dimension_numbers = #tpu.dot_dimension_numbers<[1], [0], [0], [1], [0, 0, 1, 1], [], []>} : vector<1x8xf32>, vector<8x32xf32>, vector<1x32xf32> -> vector<1x32xf32>
    %cst_18 = arith.constant 9.99999974E-6 : f32
    %20 = vector.broadcast %cst_18 : f32 to vector<1x32xf32>
    %21 = arith.addf %19, %20 : vector<1x32xf32>
    %22 = math.rsqrt %21 : vector<1x32xf32>
    %23 = vector.broadcast %17 : vector<1x32xf32> to vector<256x32xf32>
    %24 = arith.subf %1, %23 : vector<256x32xf32>
    %c0_19 = arith.constant 0 : index
    %c0_20 = arith.constant 0 : index
    %25 = vector.load %arg2[%c0_19, %c0_20] : memref<1x32xf32, #tpu.memory_space<vmem>>, vector<1x32xf32>
    %26 = arith.mulf %22, %25 : vector<1x32xf32>
    %27 = vector.broadcast %26 : vector<1x32xf32> to vector<256x32xf32>
    %28 = arith.mulf %24, %27 : vector<256x32xf32>
    %c0_21 = arith.constant 0 : index
    %c0_22 = arith.constant 0 : index
    %29 = vector.load %arg3[%c0_21, %c0_22] : memref<1x32xf32, #tpu.memory_space<vmem>>, vector<1x32xf32>
    %30 = vector.broadcast %29 : vector<1x32xf32> to vector<256x32xf32>
    %31 = arith.addf %28, %30 : vector<256x32xf32>
    %32 = arith.negf %31 : vector<256x32xf32>
    %33 = math.exp %32 : vector<256x32xf32>
    %cst_23 = arith.constant 1.000000e+00 : f32
    %34 = vector.broadcast %cst_23 : f32 to vector<256x32xf32>
    %35 = arith.addf %34, %33 : vector<256x32xf32>
    %36 = arith.divf %34, %35 : vector<256x32xf32>
    %37 = arith.mulf %31, %36 : vector<256x32xf32>
    %c0_24 = arith.constant 0 : index
    %c0_25 = arith.constant 0 : index
    %c0_26 = arith.constant 0 : index
    %38 = vector.load %arg6[%c0_24, %c0_25, %c0_26] : memref<1x256x32xf32, #tpu.memory_space<vmem>>, vector<1x256x32xf32>
    %39 = vector.shape_cast %38 : vector<1x256x32xf32> to vector<256x32xf32>
    %40 = vector.shape_cast %37 : vector<256x32xf32> to vector<1x256x32xf32>
    tpu.vector_store %arg6[%c0_24, %c0_25, %c0_26], %40 {strides = array<i32>} : memref<1x256x32xf32, #tpu.memory_space<vmem>>, vector<1x256x32xf32>,
    return
  }
  func.func @transform_0(%arg0: i32) -> (i32, i32, i32) {
    %c0_i32 = arith.constant 0 : i32
    %c0_i32_0 = arith.constant 0 : i32
    %c0_i32_1 = arith.constant 0 : i32
    return %arg0, %c0_i32, %c0_i32_0 : i32, i32, i32
  }
  func.func @transform_1(%arg0: i32) -> (i32, i32) {
    %c0_i32 = arith.constant 0 : i32
    %c0_i32_0 = arith.constant 0 : i32
    %c0_i32_1 = arith.constant 0 : i32
    return %c0_i32, %c0_i32_0 : i32, i32
  }
  func.func @transform_2(%arg0: i32) -> (i32, i32) {
    %c0_i32 = arith.constant 0 : i32
    %c0_i32_0 = arith.constant 0 : i32
    %c0_i32_1 = arith.constant 0 : i32
    return %c0_i32, %c0_i32_0 : i32, i32
  }
  func.func @transform_3(%arg0: i32) -> (i32, i32) {
    %c0_i32 = arith.constant 0 : i32
    %c0_i32_0 = arith.constant 0 : i32
    %c0_i32_1 = arith.constant 0 : i32
    return %c0_i32, %c0_i32_0 : i32, i32
  }
  func.func @transform_4(%arg0: i32) -> (i32, i32) {
    %c0_i32 = arith.constant 0 : i32
    %c0_i32_0 = arith.constant 0 : i32
    %c0_i32_1 = arith.constant 0 : i32
    return %c0_i32, %c0_i32_0 : i32, i32
  }
  func.func @transform_5(%arg0: i32) -> (i32, i32, i32) {
    %c0_i32 = arith.constant 0 : i32
    %c0_i32_0 = arith.constant 0 : i32
    %c0_i32_1 = arith.constant 0 : i32
    return %arg0, %c0_i32, %c0_i32_0 : i32, i32, i32
  }
}

module attributes {stable_mosaic.version = 11 : i64} {
  func.func @_conv3x3_tap_kernel(%arg0: i32, %arg1: i32, %arg2: i32, %arg3: i32, %arg4: memref<1x16x96xbf16, #tpu.memory_space<vmem>>, %arg5: memref<1x96x128xbf16, #tpu.memory_space<vmem>>, %arg6: memref<1x128xf32, #tpu.memory_space<vmem>>, %arg7: memref<1x16x128xf32, #tpu.memory_space<vmem>>, %arg8: memref<16x128xf32, #tpu.memory_space<vmem>>) attributes {dimension_semantics = [#tpu.dimension_semantics<parallel>, #tpu.dimension_semantics<parallel>, #tpu.dimension_semantics<parallel>, #tpu.dimension_semantics<arbitrary>], iteration_bounds = array<i64: 2, 16, 1, 3>, scalar_prefetch = 0 : i64, scratch_operands = 1 : i64, tpu.core_type = #tpu.core_type<tc>, window_params = [{transform_indices = @transform_0, window_bounds = array<i64: 1, 16, 96>}, {transform_indices = @transform_1, window_bounds = array<i64: 1, 96, 128>}, {transform_indices = @transform_2, window_bounds = array<i64: 1, 128>}, {transform_indices = @transform_3, window_bounds = array<i64: 1, 16, 128>}]} {
    %c0_i32 = arith.constant 0 : i32
    %0 = arith.cmpi eq, %arg3, %c0_i32 : i32
    %1 = arith.extui %0 : i1 to i32
    %c0_i32_0 = arith.constant 0 : i32
    %2 = arith.cmpi ne, %1, %c0_i32_0 : i32
    scf.if %2 {
      %cst_11 = arith.constant 0.000000e+00 : f32
      %14 = vector.broadcast %cst_11 : f32 to vector<16x128xf32>
      %c0_12 = arith.constant 0 : index
      %c0_13 = arith.constant 0 : index
      %15 = vector.load %arg8[%c0_12, %c0_13] : memref<16x128xf32, #tpu.memory_space<vmem>>, vector<16x128xf32>
      tpu.vector_store %arg8[%c0_12, %c0_13], %14 {strides = array<i32>} : memref<16x128xf32, #tpu.memory_space<vmem>>, vector<16x128xf32>,
    } else {
    }
    %c0 = arith.constant 0 : index
    %c0_1 = arith.constant 0 : index
    %3 = vector.load %arg8[%c0, %c0_1] : memref<16x128xf32, #tpu.memory_space<vmem>>, vector<16x128xf32>
    %c0_2 = arith.constant 0 : index
    %c0_3 = arith.constant 0 : index
    %c0_4 = arith.constant 0 : index
    %4 = vector.load %arg4[%c0_2, %c0_3, %c0_4] : memref<1x16x96xbf16, #tpu.memory_space<vmem>>, vector<1x16x96xbf16>
    %5 = vector.shape_cast %4 : vector<1x16x96xbf16> to vector<16x96xbf16>
    %c0_5 = arith.constant 0 : index
    %c0_6 = arith.constant 0 : index
    %c0_7 = arith.constant 0 : index
    %6 = vector.load %arg5[%c0_5, %c0_6, %c0_7] : memref<1x96x128xbf16, #tpu.memory_space<vmem>>, vector<1x96x128xbf16>
    %7 = vector.shape_cast %6 : vector<1x96x128xbf16> to vector<96x128xbf16>
    %cst = arith.constant dense<0.000000e+00> : vector<16x128xf32>
    %8 = tpu.matmul %5, %7, %cst {dimension_numbers = #tpu.dot_dimension_numbers<[1], [0], [0], [1], [0, 0, 1, 1], [], []>} : vector<16x96xbf16>, vector<96x128xbf16>, vector<16x128xf32> -> vector<16x128xf32>
    %9 = arith.addf %3, %8 : vector<16x128xf32>
    %c0_8 = arith.constant 0 : index
    %c0_9 = arith.constant 0 : index
    %10 = vector.load %arg8[%c0_8, %c0_9] : memref<16x128xf32, #tpu.memory_space<vmem>>, vector<16x128xf32>
    tpu.vector_store %arg8[%c0_8, %c0_9], %9 {strides = array<i32>} : memref<16x128xf32, #tpu.memory_space<vmem>>, vector<16x128xf32>,
    %c2_i32 = arith.constant 2 : i32
    %11 = arith.cmpi eq, %arg3, %c2_i32 : i32
    %12 = arith.extui %11 : i1 to i32
    %c0_i32_10 = arith.constant 0 : i32
    %13 = arith.cmpi ne, %12, %c0_i32_10 : i32
    scf.if %13 {
      %c0_11 = arith.constant 0 : index
      %c0_12 = arith.constant 0 : index
      %14 = vector.load %arg8[%c0_11, %c0_12] : memref<16x128xf32, #tpu.memory_space<vmem>>, vector<16x128xf32>
      %c0_13 = arith.constant 0 : index
      %c0_14 = arith.constant 0 : index
      %15 = vector.load %arg6[%c0_13, %c0_14] : memref<1x128xf32, #tpu.memory_space<vmem>>, vector<1x128xf32>
      %16 = vector.broadcast %15 : vector<1x128xf32> to vector<16x128xf32>
      %17 = arith.addf %14, %16 : vector<16x128xf32>
      %c0_15 = arith.constant 0 : index
      %c0_16 = arith.constant 0 : index
      %c0_17 = arith.constant 0 : index
      %18 = vector.load %arg7[%c0_15, %c0_16, %c0_17] : memref<1x16x128xf32, #tpu.memory_space<vmem>>, vector<1x16x128xf32>
      %19 = vector.shape_cast %18 : vector<1x16x128xf32> to vector<16x128xf32>
      %20 = vector.shape_cast %17 : vector<16x128xf32> to vector<1x16x128xf32>
      tpu.vector_store %arg7[%c0_15, %c0_16, %c0_17], %20 {strides = array<i32>} : memref<1x16x128xf32, #tpu.memory_space<vmem>>, vector<1x16x128xf32>,
    } else {
    }
    return
  }
  func.func @transform_0(%arg0: i32, %arg1: i32, %arg2: i32, %arg3: i32) -> (i32, i32, i32) {
    %c1_i32 = arith.constant 1 : i32
    %0 = arith.muli %arg3, %c1_i32 : i32
    %1 = arith.addi %arg1, %0 : i32
    %c0_i32 = arith.constant 0 : i32
    %c0_i32_0 = arith.constant 0 : i32
    return %arg0, %1, %c0_i32 : i32, i32, i32
  }
  func.func @transform_1(%arg0: i32, %arg1: i32, %arg2: i32, %arg3: i32) -> (i32, i32, i32) {
    %c0_i32 = arith.constant 0 : i32
    %c0_i32_0 = arith.constant 0 : i32
    return %arg3, %c0_i32, %arg2 : i32, i32, i32
  }
  func.func @transform_2(%arg0: i32, %arg1: i32, %arg2: i32, %arg3: i32) -> (i32, i32) {
    %c0_i32 = arith.constant 0 : i32
    %c0_i32_0 = arith.constant 0 : i32
    return %c0_i32, %arg2 : i32, i32
  }
  func.func @transform_3(%arg0: i32, %arg1: i32, %arg2: i32, %arg3: i32) -> (i32, i32, i32) {
    %c0_i32 = arith.constant 0 : i32
    return %arg0, %arg1, %arg2 : i32, i32, i32
  }
}

module attributes {stable_mosaic.version = 11 : i64} {
  func.func @_group_norm_kernel(%arg0: i32, %arg1: memref<1x256x64xf32, #tpu.memory_space<vmem>>, %arg2: memref<1x64xf32, #tpu.memory_space<vmem>>, %arg3: memref<1x64xf32, #tpu.memory_space<vmem>>, %arg4: memref<64x8xf32, #tpu.memory_space<vmem>>, %arg5: memref<8x64xf32, #tpu.memory_space<vmem>>, %arg6: memref<1x256x64xf32, #tpu.memory_space<vmem>>) attributes {dimension_semantics = [#tpu.dimension_semantics<parallel>], iteration_bounds = array<i64: 2>, scalar_prefetch = 0 : i64, scratch_operands = 0 : i64, tpu.core_type = #tpu.core_type<tc>, window_params = [{transform_indices = @transform_0, window_bounds = array<i64: 1, 256, 64>}, {pipeline_mode = #tpu.pipeline_mode<synchronous>, transform_indices = @transform_1, window_bounds = array<i64: 1, 64>}, {pipeline_mode = #tpu.pipeline_mode<synchronous>, transform_indices = @transform_2, window_bounds = array<i64: 1, 64>}, {pipeline_mode = #tpu.pipeline_mode<synchronous>, transform_indices = @transform_3, window_bounds = array<i64: 64, 8>}, {pipeline_mode = #tpu.pipeline_mode<synchronous>, transform_indices = @transform_4, window_bounds = array<i64: 8, 64>}, {transform_indices = @transform_5, window_bounds = array<i64: 1, 256, 64>}]} {
    %c0 = arith.constant 0 : index
    %c0_0 = arith.constant 0 : index
    %c0_1 = arith.constant 0 : index
    %0 = vector.load %arg1[%c0, %c0_0, %c0_1] : memref<1x256x64xf32, #tpu.memory_space<vmem>>, vector<1x256x64xf32>
    %1 = vector.shape_cast %0 : vector<1x256x64xf32> to vector<256x64xf32>
    %cst = arith.constant 1.000000e+00 : f32
    %2 = vector.broadcast %cst : f32 to vector<1x256xf32>
    %cst_2 = arith.constant dense<0.000000e+00> : vector<1x64xf32>
    %3 = tpu.matmul %2, %1, %cst_2 {dimension_numbers = #tpu.dot_dimension_numbers<[1], [0], [0], [1], [0, 0, 1, 1], [], []>} : vector<1x256xf32>, vector<256x64xf32>, vector<1x64xf32> -> vector<1x64xf32>
    %4 = arith.mulf %1, %1 : vector<256x64xf32>
    %cst_3 = arith.constant dense<0.000000e+00> : vector<1x64xf32>
    %5 = tpu.matmul %2, %4, %cst_3 {dimension_numbers = #tpu.dot_dimension_numbers<[1], [0], [0], [1], [0, 0, 1, 1], [], []>} : vector<1x256xf32>, vector<256x64xf32>, vector<1x64xf32> -> vector<1x64xf32>
    %c0_4 = arith.constant 0 : index
    %c0_5 = arith.constant 0 : index
    %6 = vector.load %arg4[%c0_4, %c0_5] : memref<64x8xf32, #tpu.memory_space<vmem>>, vector<64x8xf32>
    %cst_6 = arith.constant dense<0.000000e+00> : vector<1x8xf32>
    %7 = tpu.matmul %3, %6, %cst_6 {dimension_numbers = #tpu.dot_dimension_numbers<[1], [0], [0], [1], [0, 0, 1, 1], [], []>} : vector<1x64xf32>, vector<64x8xf32>, vector<1x8xf32> -> vector<1x8xf32>
    %c0_7 = arith.constant 0 : index
    %c0_8 = arith.constant 0 : index
    %8 = vector.load %arg4[%c0_7, %c0_8] : memref<64x8xf32, #tpu.memory_space<vmem>>, vector<64x8xf32>
    %cst_9 = arith.constant dense<0.000000e+00> : vector<1x8xf32>
    %9 = tpu.matmul %5, %8, %cst_9 {dimension_numbers = #tpu.dot_dimension_numbers<[1], [0], [0], [1], [0, 0, 1, 1], [], []>} : vector<1x64xf32>, vector<64x8xf32>, vector<1x8xf32> -> vector<1x8xf32>
    %cst_10 = arith.constant 2.048000e+03 : f32
    %10 = vector.broadcast %cst_10 : f32 to vector<1x8xf32>
    %11 = arith.divf %7, %10 : vector<1x8xf32>
    %cst_11 = arith.constant 2.048000e+03 : f32
    %12 = vector.broadcast %cst_11 : f32 to vector<1x8xf32>
    %13 = arith.divf %9, %12 : vector<1x8xf32>
    %14 = arith.mulf %11, %11 : vector<1x8xf32>
    %15 = arith.subf %13, %14 : vector<1x8xf32>
    %c0_12 = arith.constant 0 : index
    %c0_13 = arith.constant 0 : index
    %16 = vector.load %arg5[%c0_12, %c0_13] : memref<8x64xf32, #tpu.memory_space<vmem>>, vector<8x64xf32>
    %cst_14 = arith.constant dense<0.000000e+00> : vector<1x64xf32>
    %17 = tpu.matmul %11, %16, %cst_14 {dimension_numbers = #tpu.dot_dimension_numbers<[1], [0], [0], [1], [0, 0, 1, 1], [], []>} : vector<1x8xf32>, vector<8x64xf32>, vector<1x64xf32> -> vector<1x64xf32>
    %c0_15 = arith.constant 0 : index
    %c0_16 = arith.constant 0 : index
    %18 = vector.load %arg5[%c0_15, %c0_16] : memref<8x64xf32, #tpu.memory_space<vmem>>, vector<8x64xf32>
    %cst_17 = arith.constant dense<0.000000e+00> : vector<1x64xf32>
    %19 = tpu.matmul %15, %18, %cst_17 {dimension_numbers = #tpu.dot_dimension_numbers<[1], [0], [0], [1], [0, 0, 1, 1], [], []>} : vector<1x8xf32>, vector<8x64xf32>, vector<1x64xf32> -> vector<1x64xf32>
    %cst_18 = arith.constant 9.99999974E-6 : f32
    %20 = vector.broadcast %cst_18 : f32 to vector<1x64xf32>
    %21 = arith.addf %19, %20 : vector<1x64xf32>
    %22 = math.rsqrt %21 : vector<1x64xf32>
    %23 = vector.broadcast %17 : vector<1x64xf32> to vector<256x64xf32>
    %24 = arith.subf %1, %23 : vector<256x64xf32>
    %c0_19 = arith.constant 0 : index
    %c0_20 = arith.constant 0 : index
    %25 = vector.load %arg2[%c0_19, %c0_20] : memref<1x64xf32, #tpu.memory_space<vmem>>, vector<1x64xf32>
    %26 = arith.mulf %22, %25 : vector<1x64xf32>
    %27 = vector.broadcast %26 : vector<1x64xf32> to vector<256x64xf32>
    %28 = arith.mulf %24, %27 : vector<256x64xf32>
    %c0_21 = arith.constant 0 : index
    %c0_22 = arith.constant 0 : index
    %29 = vector.load %arg3[%c0_21, %c0_22] : memref<1x64xf32, #tpu.memory_space<vmem>>, vector<1x64xf32>
    %30 = vector.broadcast %29 : vector<1x64xf32> to vector<256x64xf32>
    %31 = arith.addf %28, %30 : vector<256x64xf32>
    %32 = arith.negf %31 : vector<256x64xf32>
    %33 = math.exp %32 : vector<256x64xf32>
    %cst_23 = arith.constant 1.000000e+00 : f32
    %34 = vector.broadcast %cst_23 : f32 to vector<256x64xf32>
    %35 = arith.addf %34, %33 : vector<256x64xf32>
    %36 = arith.divf %34, %35 : vector<256x64xf32>
    %37 = arith.mulf %31, %36 : vector<256x64xf32>
    %c0_24 = arith.constant 0 : index
    %c0_25 = arith.constant 0 : index
    %c0_26 = arith.constant 0 : index
    %38 = vector.load %arg6[%c0_24, %c0_25, %c0_26] : memref<1x256x64xf32, #tpu.memory_space<vmem>>, vector<1x256x64xf32>
    %39 = vector.shape_cast %38 : vector<1x256x64xf32> to vector<256x64xf32>
    %40 = vector.shape_cast %37 : vector<256x64xf32> to vector<1x256x64xf32>
    tpu.vector_store %arg6[%c0_24, %c0_25, %c0_26], %40 {strides = array<i32>} : memref<1x256x64xf32, #tpu.memory_space<vmem>>, vector<1x256x64xf32>,
    return
  }
  func.func @transform_0(%arg0: i32) -> (i32, i32, i32) {
    %c0_i32 = arith.constant 0 : i32
    %c0_i32_0 = arith.constant 0 : i32
    %c0_i32_1 = arith.constant 0 : i32
    return %arg0, %c0_i32, %c0_i32_0 : i32, i32, i32
  }
  func.func @transform_1(%arg0: i32) -> (i32, i32) {
    %c0_i32 = arith.constant 0 : i32
    %c0_i32_0 = arith.constant 0 : i32
    %c0_i32_1 = arith.constant 0 : i32
    return %c0_i32, %c0_i32_0 : i32, i32
  }
  func.func @transform_2(%arg0: i32) -> (i32, i32) {
    %c0_i32 = arith.constant 0 : i32
    %c0_i32_0 = arith.constant 0 : i32
    %c0_i32_1 = arith.constant 0 : i32
    return %c0_i32, %c0_i32_0 : i32, i32
  }
  func.func @transform_3(%arg0: i32) -> (i32, i32) {
    %c0_i32 = arith.constant 0 : i32
    %c0_i32_0 = arith.constant 0 : i32
    %c0_i32_1 = arith.constant 0 : i32
    return %c0_i32, %c0_i32_0 : i32, i32
  }
  func.func @transform_4(%arg0: i32) -> (i32, i32) {
    %c0_i32 = arith.constant 0 : i32
    %c0_i32_0 = arith.constant 0 : i32
    %c0_i32_1 = arith.constant 0 : i32
    return %c0_i32, %c0_i32_0 : i32, i32
  }
  func.func @transform_5(%arg0: i32) -> (i32, i32, i32) {
    %c0_i32 = arith.constant 0 : i32
    %c0_i32_0 = arith.constant 0 : i32
    %c0_i32_1 = arith.constant 0 : i32
    return %arg0, %c0_i32, %c0_i32_0 : i32, i32, i32
  }
}

module attributes {stable_mosaic.version = 11 : i64} {
  func.func @_conv3x3_tap_kernel(%arg0: i32, %arg1: i32, %arg2: i32, %arg3: i32, %arg4: memref<1x16x192xbf16, #tpu.memory_space<vmem>>, %arg5: memref<1x192x128xbf16, #tpu.memory_space<vmem>>, %arg6: memref<1x128xf32, #tpu.memory_space<vmem>>, %arg7: memref<1x16x128xf32, #tpu.memory_space<vmem>>, %arg8: memref<1x16x128xf32, #tpu.memory_space<vmem>>, %arg9: memref<16x128xf32, #tpu.memory_space<vmem>>) attributes {dimension_semantics = [#tpu.dimension_semantics<parallel>, #tpu.dimension_semantics<parallel>, #tpu.dimension_semantics<parallel>, #tpu.dimension_semantics<arbitrary>], iteration_bounds = array<i64: 2, 16, 1, 3>, scalar_prefetch = 0 : i64, scratch_operands = 1 : i64, tpu.core_type = #tpu.core_type<tc>, window_params = [{transform_indices = @transform_0, window_bounds = array<i64: 1, 16, 192>}, {transform_indices = @transform_1, window_bounds = array<i64: 1, 192, 128>}, {transform_indices = @transform_2, window_bounds = array<i64: 1, 128>}, {transform_indices = @transform_3, window_bounds = array<i64: 1, 16, 128>}, {transform_indices = @transform_4, window_bounds = array<i64: 1, 16, 128>}]} {
    %c0_i32 = arith.constant 0 : i32
    %0 = arith.cmpi eq, %arg3, %c0_i32 : i32
    %1 = arith.extui %0 : i1 to i32
    %c0_i32_0 = arith.constant 0 : i32
    %2 = arith.cmpi ne, %1, %c0_i32_0 : i32
    scf.if %2 {
      %cst_11 = arith.constant 0.000000e+00 : f32
      %14 = vector.broadcast %cst_11 : f32 to vector<16x128xf32>
      %c0_12 = arith.constant 0 : index
      %c0_13 = arith.constant 0 : index
      %15 = vector.load %arg9[%c0_12, %c0_13] : memref<16x128xf32, #tpu.memory_space<vmem>>, vector<16x128xf32>
      tpu.vector_store %arg9[%c0_12, %c0_13], %14 {strides = array<i32>} : memref<16x128xf32, #tpu.memory_space<vmem>>, vector<16x128xf32>,
    } else {
    }
    %c0 = arith.constant 0 : index
    %c0_1 = arith.constant 0 : index
    %3 = vector.load %arg9[%c0, %c0_1] : memref<16x128xf32, #tpu.memory_space<vmem>>, vector<16x128xf32>
    %c0_2 = arith.constant 0 : index
    %c0_3 = arith.constant 0 : index
    %c0_4 = arith.constant 0 : index
    %4 = vector.load %arg4[%c0_2, %c0_3, %c0_4] : memref<1x16x192xbf16, #tpu.memory_space<vmem>>, vector<1x16x192xbf16>
    %5 = vector.shape_cast %4 : vector<1x16x192xbf16> to vector<16x192xbf16>
    %c0_5 = arith.constant 0 : index
    %c0_6 = arith.constant 0 : index
    %c0_7 = arith.constant 0 : index
    %6 = vector.load %arg5[%c0_5, %c0_6, %c0_7] : memref<1x192x128xbf16, #tpu.memory_space<vmem>>, vector<1x192x128xbf16>
    %7 = vector.shape_cast %6 : vector<1x192x128xbf16> to vector<192x128xbf16>
    %cst = arith.constant dense<0.000000e+00> : vector<16x128xf32>
    %8 = tpu.matmul %5, %7, %cst {dimension_numbers = #tpu.dot_dimension_numbers<[1], [0], [0], [1], [0, 0, 1, 1], [], []>} : vector<16x192xbf16>, vector<192x128xbf16>, vector<16x128xf32> -> vector<16x128xf32>
    %9 = arith.addf %3, %8 : vector<16x128xf32>
    %c0_8 = arith.constant 0 : index
    %c0_9 = arith.constant 0 : index
    %10 = vector.load %arg9[%c0_8, %c0_9] : memref<16x128xf32, #tpu.memory_space<vmem>>, vector<16x128xf32>
    tpu.vector_store %arg9[%c0_8, %c0_9], %9 {strides = array<i32>} : memref<16x128xf32, #tpu.memory_space<vmem>>, vector<16x128xf32>,
    %c2_i32 = arith.constant 2 : i32
    %11 = arith.cmpi eq, %arg3, %c2_i32 : i32
    %12 = arith.extui %11 : i1 to i32
    %c0_i32_10 = arith.constant 0 : i32
    %13 = arith.cmpi ne, %12, %c0_i32_10 : i32
    scf.if %13 {
      %c0_11 = arith.constant 0 : index
      %c0_12 = arith.constant 0 : index
      %14 = vector.load %arg9[%c0_11, %c0_12] : memref<16x128xf32, #tpu.memory_space<vmem>>, vector<16x128xf32>
      %c0_13 = arith.constant 0 : index
      %c0_14 = arith.constant 0 : index
      %15 = vector.load %arg6[%c0_13, %c0_14] : memref<1x128xf32, #tpu.memory_space<vmem>>, vector<1x128xf32>
      %16 = vector.broadcast %15 : vector<1x128xf32> to vector<16x128xf32>
      %17 = arith.addf %14, %16 : vector<16x128xf32>
      %c0_15 = arith.constant 0 : index
      %c0_16 = arith.constant 0 : index
      %c0_17 = arith.constant 0 : index
      %18 = vector.load %arg7[%c0_15, %c0_16, %c0_17] : memref<1x16x128xf32, #tpu.memory_space<vmem>>, vector<1x16x128xf32>
      %19 = vector.shape_cast %18 : vector<1x16x128xf32> to vector<16x128xf32>
      %20 = arith.addf %17, %19 : vector<16x128xf32>
      %c0_18 = arith.constant 0 : index
      %c0_19 = arith.constant 0 : index
      %c0_20 = arith.constant 0 : index
      %21 = vector.load %arg8[%c0_18, %c0_19, %c0_20] : memref<1x16x128xf32, #tpu.memory_space<vmem>>, vector<1x16x128xf32>
      %22 = vector.shape_cast %21 : vector<1x16x128xf32> to vector<16x128xf32>
      %23 = vector.shape_cast %20 : vector<16x128xf32> to vector<1x16x128xf32>
      tpu.vector_store %arg8[%c0_18, %c0_19, %c0_20], %23 {strides = array<i32>} : memref<1x16x128xf32, #tpu.memory_space<vmem>>, vector<1x16x128xf32>,
    } else {
    }
    return
  }
  func.func @transform_0(%arg0: i32, %arg1: i32, %arg2: i32, %arg3: i32) -> (i32, i32, i32) {
    %c1_i32 = arith.constant 1 : i32
    %0 = arith.muli %arg3, %c1_i32 : i32
    %1 = arith.addi %arg1, %0 : i32
    %c0_i32 = arith.constant 0 : i32
    %c0_i32_0 = arith.constant 0 : i32
    return %arg0, %1, %c0_i32 : i32, i32, i32
  }
  func.func @transform_1(%arg0: i32, %arg1: i32, %arg2: i32, %arg3: i32) -> (i32, i32, i32) {
    %c0_i32 = arith.constant 0 : i32
    %c0_i32_0 = arith.constant 0 : i32
    return %arg3, %c0_i32, %arg2 : i32, i32, i32
  }
  func.func @transform_2(%arg0: i32, %arg1: i32, %arg2: i32, %arg3: i32) -> (i32, i32) {
    %c0_i32 = arith.constant 0 : i32
    %c0_i32_0 = arith.constant 0 : i32
    return %c0_i32, %arg2 : i32, i32
  }
  func.func @transform_3(%arg0: i32, %arg1: i32, %arg2: i32, %arg3: i32) -> (i32, i32, i32) {
    %c0_i32 = arith.constant 0 : i32
    return %arg0, %arg1, %arg2 : i32, i32, i32
  }
  func.func @transform_4(%arg0: i32, %arg1: i32, %arg2: i32, %arg3: i32) -> (i32, i32, i32) {
    %c0_i32 = arith.constant 0 : i32
    return %arg0, %arg1, %arg2 : i32, i32, i32
  }
}

module attributes {stable_mosaic.version = 11 : i64} {
  func.func @_group_norm_kernel(%arg0: i32, %arg1: memref<1x256x64xf32, #tpu.memory_space<vmem>>, %arg2: memref<1x64xf32, #tpu.memory_space<vmem>>, %arg3: memref<1x64xf32, #tpu.memory_space<vmem>>, %arg4: memref<64x8xf32, #tpu.memory_space<vmem>>, %arg5: memref<8x64xf32, #tpu.memory_space<vmem>>, %arg6: memref<1x256x64xf32, #tpu.memory_space<vmem>>) attributes {dimension_semantics = [#tpu.dimension_semantics<parallel>], iteration_bounds = array<i64: 2>, scalar_prefetch = 0 : i64, scratch_operands = 0 : i64, tpu.core_type = #tpu.core_type<tc>, window_params = [{transform_indices = @transform_0, window_bounds = array<i64: 1, 256, 64>}, {pipeline_mode = #tpu.pipeline_mode<synchronous>, transform_indices = @transform_1, window_bounds = array<i64: 1, 64>}, {pipeline_mode = #tpu.pipeline_mode<synchronous>, transform_indices = @transform_2, window_bounds = array<i64: 1, 64>}, {pipeline_mode = #tpu.pipeline_mode<synchronous>, transform_indices = @transform_3, window_bounds = array<i64: 64, 8>}, {pipeline_mode = #tpu.pipeline_mode<synchronous>, transform_indices = @transform_4, window_bounds = array<i64: 8, 64>}, {transform_indices = @transform_5, window_bounds = array<i64: 1, 256, 64>}]} {
    %c0 = arith.constant 0 : index
    %c0_0 = arith.constant 0 : index
    %c0_1 = arith.constant 0 : index
    %0 = vector.load %arg1[%c0, %c0_0, %c0_1] : memref<1x256x64xf32, #tpu.memory_space<vmem>>, vector<1x256x64xf32>
    %1 = vector.shape_cast %0 : vector<1x256x64xf32> to vector<256x64xf32>
    %cst = arith.constant 1.000000e+00 : f32
    %2 = vector.broadcast %cst : f32 to vector<1x256xf32>
    %cst_2 = arith.constant dense<0.000000e+00> : vector<1x64xf32>
    %3 = tpu.matmul %2, %1, %cst_2 {dimension_numbers = #tpu.dot_dimension_numbers<[1], [0], [0], [1], [0, 0, 1, 1], [], []>} : vector<1x256xf32>, vector<256x64xf32>, vector<1x64xf32> -> vector<1x64xf32>
    %4 = arith.mulf %1, %1 : vector<256x64xf32>
    %cst_3 = arith.constant dense<0.000000e+00> : vector<1x64xf32>
    %5 = tpu.matmul %2, %4, %cst_3 {dimension_numbers = #tpu.dot_dimension_numbers<[1], [0], [0], [1], [0, 0, 1, 1], [], []>} : vector<1x256xf32>, vector<256x64xf32>, vector<1x64xf32> -> vector<1x64xf32>
    %c0_4 = arith.constant 0 : index
    %c0_5 = arith.constant 0 : index
    %6 = vector.load %arg4[%c0_4, %c0_5] : memref<64x8xf32, #tpu.memory_space<vmem>>, vector<64x8xf32>
    %cst_6 = arith.constant dense<0.000000e+00> : vector<1x8xf32>
    %7 = tpu.matmul %3, %6, %cst_6 {dimension_numbers = #tpu.dot_dimension_numbers<[1], [0], [0], [1], [0, 0, 1, 1], [], []>} : vector<1x64xf32>, vector<64x8xf32>, vector<1x8xf32> -> vector<1x8xf32>
    %c0_7 = arith.constant 0 : index
    %c0_8 = arith.constant 0 : index
    %8 = vector.load %arg4[%c0_7, %c0_8] : memref<64x8xf32, #tpu.memory_space<vmem>>, vector<64x8xf32>
    %cst_9 = arith.constant dense<0.000000e+00> : vector<1x8xf32>
    %9 = tpu.matmul %5, %8, %cst_9 {dimension_numbers = #tpu.dot_dimension_numbers<[1], [0], [0], [1], [0, 0, 1, 1], [], []>} : vector<1x64xf32>, vector<64x8xf32>, vector<1x8xf32> -> vector<1x8xf32>
    %cst_10 = arith.constant 2.048000e+03 : f32
    %10 = vector.broadcast %cst_10 : f32 to vector<1x8xf32>
    %11 = arith.divf %7, %10 : vector<1x8xf32>
    %cst_11 = arith.constant 2.048000e+03 : f32
    %12 = vector.broadcast %cst_11 : f32 to vector<1x8xf32>
    %13 = arith.divf %9, %12 : vector<1x8xf32>
    %14 = arith.mulf %11, %11 : vector<1x8xf32>
    %15 = arith.subf %13, %14 : vector<1x8xf32>
    %c0_12 = arith.constant 0 : index
    %c0_13 = arith.constant 0 : index
    %16 = vector.load %arg5[%c0_12, %c0_13] : memref<8x64xf32, #tpu.memory_space<vmem>>, vector<8x64xf32>
    %cst_14 = arith.constant dense<0.000000e+00> : vector<1x64xf32>
    %17 = tpu.matmul %11, %16, %cst_14 {dimension_numbers = #tpu.dot_dimension_numbers<[1], [0], [0], [1], [0, 0, 1, 1], [], []>} : vector<1x8xf32>, vector<8x64xf32>, vector<1x64xf32> -> vector<1x64xf32>
    %c0_15 = arith.constant 0 : index
    %c0_16 = arith.constant 0 : index
    %18 = vector.load %arg5[%c0_15, %c0_16] : memref<8x64xf32, #tpu.memory_space<vmem>>, vector<8x64xf32>
    %cst_17 = arith.constant dense<0.000000e+00> : vector<1x64xf32>
    %19 = tpu.matmul %15, %18, %cst_17 {dimension_numbers = #tpu.dot_dimension_numbers<[1], [0], [0], [1], [0, 0, 1, 1], [], []>} : vector<1x8xf32>, vector<8x64xf32>, vector<1x64xf32> -> vector<1x64xf32>
    %cst_18 = arith.constant 9.99999974E-6 : f32
    %20 = vector.broadcast %cst_18 : f32 to vector<1x64xf32>
    %21 = arith.addf %19, %20 : vector<1x64xf32>
    %22 = math.rsqrt %21 : vector<1x64xf32>
    %23 = vector.broadcast %17 : vector<1x64xf32> to vector<256x64xf32>
    %24 = arith.subf %1, %23 : vector<256x64xf32>
    %c0_19 = arith.constant 0 : index
    %c0_20 = arith.constant 0 : index
    %25 = vector.load %arg2[%c0_19, %c0_20] : memref<1x64xf32, #tpu.memory_space<vmem>>, vector<1x64xf32>
    %26 = arith.mulf %22, %25 : vector<1x64xf32>
    %27 = vector.broadcast %26 : vector<1x64xf32> to vector<256x64xf32>
    %28 = arith.mulf %24, %27 : vector<256x64xf32>
    %c0_21 = arith.constant 0 : index
    %c0_22 = arith.constant 0 : index
    %29 = vector.load %arg3[%c0_21, %c0_22] : memref<1x64xf32, #tpu.memory_space<vmem>>, vector<1x64xf32>
    %30 = vector.broadcast %29 : vector<1x64xf32> to vector<256x64xf32>
    %31 = arith.addf %28, %30 : vector<256x64xf32>
    %c0_23 = arith.constant 0 : index
    %c0_24 = arith.constant 0 : index
    %c0_25 = arith.constant 0 : index
    %32 = vector.load %arg6[%c0_23, %c0_24, %c0_25] : memref<1x256x64xf32, #tpu.memory_space<vmem>>, vector<1x256x64xf32>
    %33 = vector.shape_cast %32 : vector<1x256x64xf32> to vector<256x64xf32>
    %34 = vector.shape_cast %31 : vector<256x64xf32> to vector<1x256x64xf32>
    tpu.vector_store %arg6[%c0_23, %c0_24, %c0_25], %34 {strides = array<i32>} : memref<1x256x64xf32, #tpu.memory_space<vmem>>, vector<1x256x64xf32>,
    return
  }
  func.func @transform_0(%arg0: i32) -> (i32, i32, i32) {
    %c0_i32 = arith.constant 0 : i32
    %c0_i32_0 = arith.constant 0 : i32
    %c0_i32_1 = arith.constant 0 : i32
    return %arg0, %c0_i32, %c0_i32_0 : i32, i32, i32
  }
  func.func @transform_1(%arg0: i32) -> (i32, i32) {
    %c0_i32 = arith.constant 0 : i32
    %c0_i32_0 = arith.constant 0 : i32
    %c0_i32_1 = arith.constant 0 : i32
    return %c0_i32, %c0_i32_0 : i32, i32
  }
  func.func @transform_2(%arg0: i32) -> (i32, i32) {
    %c0_i32 = arith.constant 0 : i32
    %c0_i32_0 = arith.constant 0 : i32
    %c0_i32_1 = arith.constant 0 : i32
    return %c0_i32, %c0_i32_0 : i32, i32
  }
  func.func @transform_3(%arg0: i32) -> (i32, i32) {
    %c0_i32 = arith.constant 0 : i32
    %c0_i32_0 = arith.constant 0 : i32
    %c0_i32_1 = arith.constant 0 : i32
    return %c0_i32, %c0_i32_0 : i32, i32
  }
  func.func @transform_4(%arg0: i32) -> (i32, i32) {
    %c0_i32 = arith.constant 0 : i32
    %c0_i32_0 = arith.constant 0 : i32
    %c0_i32_1 = arith.constant 0 : i32
    return %c0_i32, %c0_i32_0 : i32, i32
  }
  func.func @transform_5(%arg0: i32) -> (i32, i32, i32) {
    %c0_i32 = arith.constant 0 : i32
    %c0_i32_0 = arith.constant 0 : i32
    %c0_i32_1 = arith.constant 0 : i32
    return %arg0, %c0_i32, %c0_i32_0 : i32, i32, i32
  }
}

module attributes {stable_mosaic.version = 11 : i64} {
  func.func @_matmul_kernel(%arg0: i32, %arg1: i32, %arg2: i32, %arg3: memref<256x64xbf16, #tpu.memory_space<vmem>>, %arg4: memref<64x256xbf16, #tpu.memory_space<vmem>>, %arg5: memref<1x256xf32, #tpu.memory_space<vmem>>, %arg6: memref<256x256xf32, #tpu.memory_space<vmem>>, %arg7: memref<256x256xf32, #tpu.memory_space<vmem>>) attributes {dimension_semantics = [#tpu.dimension_semantics<parallel>, #tpu.dimension_semantics<parallel>, #tpu.dimension_semantics<arbitrary>], iteration_bounds = array<i64: 2, 1, 1>, scalar_prefetch = 0 : i64, scratch_operands = 1 : i64, tpu.core_type = #tpu.core_type<tc>, window_params = [{transform_indices = @transform_0, window_bounds = array<i64: 256, 64>}, {transform_indices = @transform_1, window_bounds = array<i64: 64, 256>}, {transform_indices = @transform_2, window_bounds = array<i64: 1, 256>}, {transform_indices = @transform_3, window_bounds = array<i64: 256, 256>}]} {
    %c0_i32 = arith.constant 0 : i32
    %0 = arith.cmpi eq, %arg2, %c0_i32 : i32
    %1 = arith.extui %0 : i1 to i32
    %c0_i32_0 = arith.constant 0 : i32
    %2 = arith.cmpi ne, %1, %c0_i32_0 : i32
    scf.if %2 {
      %cst_10 = arith.constant 0.000000e+00 : f32
      %12 = vector.broadcast %cst_10 : f32 to vector<256x256xf32>
      %c0_11 = arith.constant 0 : index
      %c0_12 = arith.constant 0 : index
      %13 = vector.load %arg7[%c0_11, %c0_12] : memref<256x256xf32, #tpu.memory_space<vmem>>, vector<256x256xf32>
      tpu.vector_store %arg7[%c0_11, %c0_12], %12 {strides = array<i32>} : memref<256x256xf32, #tpu.memory_space<vmem>>, vector<256x256xf32>,
    } else {
    }
    %c0 = arith.constant 0 : index
    %c0_1 = arith.constant 0 : index
    %3 = vector.load %arg7[%c0, %c0_1] : memref<256x256xf32, #tpu.memory_space<vmem>>, vector<256x256xf32>
    %c0_2 = arith.constant 0 : index
    %c0_3 = arith.constant 0 : index
    %4 = vector.load %arg3[%c0_2, %c0_3] : memref<256x64xbf16, #tpu.memory_space<vmem>>, vector<256x64xbf16>
    %c0_4 = arith.constant 0 : index
    %c0_5 = arith.constant 0 : index
    %5 = vector.load %arg4[%c0_4, %c0_5] : memref<64x256xbf16, #tpu.memory_space<vmem>>, vector<64x256xbf16>
    %cst = arith.constant dense<0.000000e+00> : vector<256x256xf32>
    %6 = tpu.matmul %4, %5, %cst {dimension_numbers = #tpu.dot_dimension_numbers<[1], [0], [0], [1], [0, 0, 1, 1], [], []>} : vector<256x64xbf16>, vector<64x256xbf16>, vector<256x256xf32> -> vector<256x256xf32>
    %7 = arith.addf %3, %6 : vector<256x256xf32>
    %c0_6 = arith.constant 0 : index
    %c0_7 = arith.constant 0 : index
    %8 = vector.load %arg7[%c0_6, %c0_7] : memref<256x256xf32, #tpu.memory_space<vmem>>, vector<256x256xf32>
    tpu.vector_store %arg7[%c0_6, %c0_7], %7 {strides = array<i32>} : memref<256x256xf32, #tpu.memory_space<vmem>>, vector<256x256xf32>,
    %c0_i32_8 = arith.constant 0 : i32
    %9 = arith.cmpi eq, %arg2, %c0_i32_8 : i32
    %10 = arith.extui %9 : i1 to i32
    %c0_i32_9 = arith.constant 0 : i32
    %11 = arith.cmpi ne, %10, %c0_i32_9 : i32
    scf.if %11 {
      %c0_10 = arith.constant 0 : index
      %c0_11 = arith.constant 0 : index
      %12 = vector.load %arg7[%c0_10, %c0_11] : memref<256x256xf32, #tpu.memory_space<vmem>>, vector<256x256xf32>
      %c0_12 = arith.constant 0 : index
      %c0_13 = arith.constant 0 : index
      %13 = vector.load %arg5[%c0_12, %c0_13] : memref<1x256xf32, #tpu.memory_space<vmem>>, vector<1x256xf32>
      %14 = vector.broadcast %13 : vector<1x256xf32> to vector<256x256xf32>
      %15 = arith.addf %12, %14 : vector<256x256xf32>
      %c0_14 = arith.constant 0 : index
      %c0_15 = arith.constant 0 : index
      %16 = vector.load %arg6[%c0_14, %c0_15] : memref<256x256xf32, #tpu.memory_space<vmem>>, vector<256x256xf32>
      tpu.vector_store %arg6[%c0_14, %c0_15], %15 {strides = array<i32>} : memref<256x256xf32, #tpu.memory_space<vmem>>, vector<256x256xf32>,
    } else {
    }
    return
  }
  func.func @transform_0(%arg0: i32, %arg1: i32, %arg2: i32) -> (i32, i32) {
    %c0_i32 = arith.constant 0 : i32
    return %arg0, %arg2 : i32, i32
  }
  func.func @transform_1(%arg0: i32, %arg1: i32, %arg2: i32) -> (i32, i32) {
    %c0_i32 = arith.constant 0 : i32
    return %arg2, %arg1 : i32, i32
  }
  func.func @transform_2(%arg0: i32, %arg1: i32, %arg2: i32) -> (i32, i32) {
    %c0_i32 = arith.constant 0 : i32
    %c0_i32_0 = arith.constant 0 : i32
    return %c0_i32, %arg1 : i32, i32
  }
  func.func @transform_3(%arg0: i32, %arg1: i32, %arg2: i32) -> (i32, i32) {
    %c0_i32 = arith.constant 0 : i32
    return %arg0, %arg1 : i32, i32
  }
}

module attributes {stable_mosaic.version = 11 : i64} {
  func.func @_attention_kernel(%arg0: i32, %arg1: memref<1x256x64xbf16, #tpu.memory_space<vmem>>, %arg2: memref<1x256x64xbf16, #tpu.memory_space<vmem>>, %arg3: memref<1x256x64xbf16, #tpu.memory_space<vmem>>, %arg4: memref<1x256x64xf32, #tpu.memory_space<vmem>>) attributes {dimension_semantics = [#tpu.dimension_semantics<parallel>], iteration_bounds = array<i64: 2>, scalar_prefetch = 0 : i64, scratch_operands = 0 : i64, tpu.core_type = #tpu.core_type<tc>, window_params = [{transform_indices = @transform_0, window_bounds = array<i64: 1, 256, 64>}, {transform_indices = @transform_1, window_bounds = array<i64: 1, 256, 64>}, {transform_indices = @transform_2, window_bounds = array<i64: 1, 256, 64>}, {transform_indices = @transform_3, window_bounds = array<i64: 1, 256, 64>}]} {
    %c0 = arith.constant 0 : index
    %c0_0 = arith.constant 0 : index
    %c0_1 = arith.constant 0 : index
    %0 = vector.load %arg1[%c0, %c0_0, %c0_1] : memref<1x256x64xbf16, #tpu.memory_space<vmem>>, vector<1x256x64xbf16>
    %1 = vector.shape_cast %0 : vector<1x256x64xbf16> to vector<256x64xbf16>
    %c0_2 = arith.constant 0 : index
    %c0_3 = arith.constant 0 : index
    %c0_4 = arith.constant 0 : index
    %2 = vector.load %arg2[%c0_2, %c0_3, %c0_4] : memref<1x256x64xbf16, #tpu.memory_space<vmem>>, vector<1x256x64xbf16>
    %3 = vector.shape_cast %2 : vector<1x256x64xbf16> to vector<256x64xbf16>
    %c0_5 = arith.constant 0 : index
    %c0_6 = arith.constant 0 : index
    %c0_7 = arith.constant 0 : index
    %4 = vector.load %arg3[%c0_5, %c0_6, %c0_7] : memref<1x256x64xbf16, #tpu.memory_space<vmem>>, vector<1x256x64xbf16>
    %5 = vector.shape_cast %4 : vector<1x256x64xbf16> to vector<256x64xbf16>
    %cst = arith.constant dense<0.000000e+00> : vector<256x256xf32>
    %6 = tpu.matmul %1, %3, %cst {dimension_numbers = #tpu.dot_dimension_numbers<[1], [1], [0], [0], [0, 0, 1, 0], [], []>} : vector<256x64xbf16>, vector<256x64xbf16>, vector<256x256xf32> -> vector<256x256xf32>
    %cst_8 = arith.constant dense<0xFF800000> : vector<256xf32>
    %7 = vector.multi_reduction <maximumf>, %6, %cst_8 [1] : vector<256x256xf32> to vector<256xf32>
    %8 = vector.shape_cast %7 : vector<256xf32> to vector<256x1xf32>
    %9 = vector.broadcast %8 : vector<256x1xf32> to vector<256x256xf32>
    %10 = arith.subf %6, %9 : vector<256x256xf32>
    %11 = math.exp %10 : vector<256x256xf32>
    %cst_9 = arith.constant dense<0.000000e+00> : vector<256xf32>
    %12 = vector.multi_reduction <add>, %11, %cst_9 [1] : vector<256x256xf32> to vector<256xf32>
    %13 = vector.shape_cast %12 : vector<256xf32> to vector<256x1xf32>
    %14 = tpu.reciprocal %13 {approx = true} : vector<256x1xf32> -> vector<256x1xf32>
    %15 = vector.broadcast %14 : vector<256x1xf32> to vector<256x256xf32>
    %16 = arith.mulf %11, %15 : vector<256x256xf32>
    %17 = arith.truncf %16 : vector<256x256xf32> to vector<256x256xbf16>
    %cst_10 = arith.constant dense<0.000000e+00> : vector<256x64xf32>
    %18 = tpu.matmul %17, %5, %cst_10 {dimension_numbers = #tpu.dot_dimension_numbers<[1], [0], [0], [1], [0, 0, 1, 1], [], []>} : vector<256x256xbf16>, vector<256x64xbf16>, vector<256x64xf32> -> vector<256x64xf32>
    %c0_11 = arith.constant 0 : index
    %c0_12 = arith.constant 0 : index
    %c0_13 = arith.constant 0 : index
    %19 = vector.load %arg4[%c0_11, %c0_12, %c0_13] : memref<1x256x64xf32, #tpu.memory_space<vmem>>, vector<1x256x64xf32>
    %20 = vector.shape_cast %19 : vector<1x256x64xf32> to vector<256x64xf32>
    %21 = vector.shape_cast %18 : vector<256x64xf32> to vector<1x256x64xf32>
    tpu.vector_store %arg4[%c0_11, %c0_12, %c0_13], %21 {strides = array<i32>} : memref<1x256x64xf32, #tpu.memory_space<vmem>>, vector<1x256x64xf32>,
    return
  }
  func.func @transform_0(%arg0: i32) -> (i32, i32, i32) {
    %c0_i32 = arith.constant 0 : i32
    %c0_i32_0 = arith.constant 0 : i32
    %c0_i32_1 = arith.constant 0 : i32
    return %arg0, %c0_i32, %c0_i32_0 : i32, i32, i32
  }
  func.func @transform_1(%arg0: i32) -> (i32, i32, i32) {
    %c0_i32 = arith.constant 0 : i32
    %c0_i32_0 = arith.constant 0 : i32
    %c0_i32_1 = arith.constant 0 : i32
    return %arg0, %c0_i32, %c0_i32_0 : i32, i32, i32
  }
  func.func @transform_2(%arg0: i32) -> (i32, i32, i32) {
    %c0_i32 = arith.constant 0 : i32
    %c0_i32_0 = arith.constant 0 : i32
    %c0_i32_1 = arith.constant 0 : i32
    return %arg0, %c0_i32, %c0_i32_0 : i32, i32, i32
  }
  func.func @transform_3(%arg0: i32) -> (i32, i32, i32) {
    %c0_i32 = arith.constant 0 : i32
    %c0_i32_0 = arith.constant 0 : i32
    %c0_i32_1 = arith.constant 0 : i32
    return %arg0, %c0_i32, %c0_i32_0 : i32, i32, i32
  }
}

module attributes {stable_mosaic.version = 11 : i64} {
  func.func @_matmul_kernel(%arg0: i32, %arg1: i32, %arg2: i32, %arg3: memref<256x64xbf16, #tpu.memory_space<vmem>>, %arg4: memref<64x128xbf16, #tpu.memory_space<vmem>>, %arg5: memref<1x128xf32, #tpu.memory_space<vmem>>, %arg6: memref<256x128xf32, #tpu.memory_space<vmem>>, %arg7: memref<256x128xf32, #tpu.memory_space<vmem>>, %arg8: memref<256x128xf32, #tpu.memory_space<vmem>>) attributes {dimension_semantics = [#tpu.dimension_semantics<parallel>, #tpu.dimension_semantics<parallel>, #tpu.dimension_semantics<arbitrary>], iteration_bounds = array<i64: 2, 1, 1>, scalar_prefetch = 0 : i64, scratch_operands = 1 : i64, tpu.core_type = #tpu.core_type<tc>, window_params = [{transform_indices = @transform_0, window_bounds = array<i64: 256, 64>}, {transform_indices = @transform_1, window_bounds = array<i64: 64, 128>}, {transform_indices = @transform_2, window_bounds = array<i64: 1, 128>}, {transform_indices = @transform_3, window_bounds = array<i64: 256, 128>}, {transform_indices = @transform_4, window_bounds = array<i64: 256, 128>}]} {
    %c0_i32 = arith.constant 0 : i32
    %0 = arith.cmpi eq, %arg2, %c0_i32 : i32
    %1 = arith.extui %0 : i1 to i32
    %c0_i32_0 = arith.constant 0 : i32
    %2 = arith.cmpi ne, %1, %c0_i32_0 : i32
    scf.if %2 {
      %cst_10 = arith.constant 0.000000e+00 : f32
      %12 = vector.broadcast %cst_10 : f32 to vector<256x128xf32>
      %c0_11 = arith.constant 0 : index
      %c0_12 = arith.constant 0 : index
      %13 = vector.load %arg8[%c0_11, %c0_12] : memref<256x128xf32, #tpu.memory_space<vmem>>, vector<256x128xf32>
      tpu.vector_store %arg8[%c0_11, %c0_12], %12 {strides = array<i32>} : memref<256x128xf32, #tpu.memory_space<vmem>>, vector<256x128xf32>,
    } else {
    }
    %c0 = arith.constant 0 : index
    %c0_1 = arith.constant 0 : index
    %3 = vector.load %arg8[%c0, %c0_1] : memref<256x128xf32, #tpu.memory_space<vmem>>, vector<256x128xf32>
    %c0_2 = arith.constant 0 : index
    %c0_3 = arith.constant 0 : index
    %4 = vector.load %arg3[%c0_2, %c0_3] : memref<256x64xbf16, #tpu.memory_space<vmem>>, vector<256x64xbf16>
    %c0_4 = arith.constant 0 : index
    %c0_5 = arith.constant 0 : index
    %5 = vector.load %arg4[%c0_4, %c0_5] : memref<64x128xbf16, #tpu.memory_space<vmem>>, vector<64x128xbf16>
    %cst = arith.constant dense<0.000000e+00> : vector<256x128xf32>
    %6 = tpu.matmul %4, %5, %cst {dimension_numbers = #tpu.dot_dimension_numbers<[1], [0], [0], [1], [0, 0, 1, 1], [], []>} : vector<256x64xbf16>, vector<64x128xbf16>, vector<256x128xf32> -> vector<256x128xf32>
    %7 = arith.addf %3, %6 : vector<256x128xf32>
    %c0_6 = arith.constant 0 : index
    %c0_7 = arith.constant 0 : index
    %8 = vector.load %arg8[%c0_6, %c0_7] : memref<256x128xf32, #tpu.memory_space<vmem>>, vector<256x128xf32>
    tpu.vector_store %arg8[%c0_6, %c0_7], %7 {strides = array<i32>} : memref<256x128xf32, #tpu.memory_space<vmem>>, vector<256x128xf32>,
    %c0_i32_8 = arith.constant 0 : i32
    %9 = arith.cmpi eq, %arg2, %c0_i32_8 : i32
    %10 = arith.extui %9 : i1 to i32
    %c0_i32_9 = arith.constant 0 : i32
    %11 = arith.cmpi ne, %10, %c0_i32_9 : i32
    scf.if %11 {
      %c0_10 = arith.constant 0 : index
      %c0_11 = arith.constant 0 : index
      %12 = vector.load %arg8[%c0_10, %c0_11] : memref<256x128xf32, #tpu.memory_space<vmem>>, vector<256x128xf32>
      %c0_12 = arith.constant 0 : index
      %c0_13 = arith.constant 0 : index
      %13 = vector.load %arg5[%c0_12, %c0_13] : memref<1x128xf32, #tpu.memory_space<vmem>>, vector<1x128xf32>
      %14 = vector.broadcast %13 : vector<1x128xf32> to vector<256x128xf32>
      %15 = arith.addf %12, %14 : vector<256x128xf32>
      %c0_14 = arith.constant 0 : index
      %c0_15 = arith.constant 0 : index
      %16 = vector.load %arg6[%c0_14, %c0_15] : memref<256x128xf32, #tpu.memory_space<vmem>>, vector<256x128xf32>
      %17 = arith.addf %15, %16 : vector<256x128xf32>
      %c0_16 = arith.constant 0 : index
      %c0_17 = arith.constant 0 : index
      %18 = vector.load %arg7[%c0_16, %c0_17] : memref<256x128xf32, #tpu.memory_space<vmem>>, vector<256x128xf32>
      tpu.vector_store %arg7[%c0_16, %c0_17], %17 {strides = array<i32>} : memref<256x128xf32, #tpu.memory_space<vmem>>, vector<256x128xf32>,
    } else {
    }
    return
  }
  func.func @transform_0(%arg0: i32, %arg1: i32, %arg2: i32) -> (i32, i32) {
    %c0_i32 = arith.constant 0 : i32
    return %arg0, %arg2 : i32, i32
  }
  func.func @transform_1(%arg0: i32, %arg1: i32, %arg2: i32) -> (i32, i32) {
    %c0_i32 = arith.constant 0 : i32
    return %arg2, %arg1 : i32, i32
  }
  func.func @transform_2(%arg0: i32, %arg1: i32, %arg2: i32) -> (i32, i32) {
    %c0_i32 = arith.constant 0 : i32
    %c0_i32_0 = arith.constant 0 : i32
    return %c0_i32, %arg1 : i32, i32
  }
  func.func @transform_3(%arg0: i32, %arg1: i32, %arg2: i32) -> (i32, i32) {
    %c0_i32 = arith.constant 0 : i32
    return %arg0, %arg1 : i32, i32
  }
  func.func @transform_4(%arg0: i32, %arg1: i32, %arg2: i32) -> (i32, i32) {
    %c0_i32 = arith.constant 0 : i32
    return %arg0, %arg1 : i32, i32
  }
}

</mosaic_0001>

<bundles_post_ra>
// kernel: resblock_apply.10
= control target key start
LH: loop header
LB: loop body
LE: loop exit
PB: predicated region body
PF: predicated region fallthrough
CT: control target
= control target key end

     0   :  { %s748_s12 = smov 0   ;;  %s750_s13 = smov 0   ;;  %s841_s0 = inlined_call_operand.vmem [shape: bf16[2,288,96], index: 0, kind: input, shape index: {}]   ;;  %s842_s1 = inlined_call_operand.vmem [shape: bf16[3,96,128], index: 1, kind: input, shape index: {}]   ;;  %s843_s2 = inlined_call_operand.vmem [shape: f32[1,128], index: 2, kind: input, shape index: {}]   ;;  %s844_s3 = inlined_call_operand.vmem [shape: f32[2,256,128], index: 3, kind: output, shape index: {}]  }
   0x1   :  { %s752_s14 = smov 0   ;;  %s754_s15 = smov 0  }
   0x2   :  { %s756_s16 = smov 0   ;;  %s758_s17 = smov 0  }
   0x3   :  { %s760_s18 = smov 0  }
   0x4 LB: > { %s28_s19 = sadd.s32 1, %s711_s15  ;;  %s35_s20 = sadd.s32 1, %s715_s16  ;;  %s723_s18 = sphi %s760_s18, %s13_s18   ;;  %s719_s17 = sphi %s758_s17, %s850_s17   ;;  %s715_s16 = sphi %s756_s16, %s849_s16   ;;  %s711_s15 = sphi %s754_s15, %s848_s15   ;;  %s707_s14 = sphi %s752_s14, %s847_s14   ;;  %s703_s13 = sphi %s750_s13, %s846_s13   ;;  %s699_s12 = sphi %s748_s12, %s845_s12  }
   0x5   : > { %p29_p0 = scmp.ge.s32.totalorder %s28_s19, 3  ;;  %p558_p1 = scmp.ge.s32.totalorder %s723_s18, 1 }
   0x6   : > { %p201_p2 = scmp.lt.s32.totalorder %s723_s18, 97  ;;  %s39_s21 = sadd.s32 1, %s719_s17 }
   0x7   : > { %s852_s19 = smov (%p29_p0, %s28_s19), 0  ;;  %s854_s20 = smov (!%p29_p0, %s35_s20), %s715_s16 }
   0x8   : > { %p202_p3 = pnand %p558_p1, %p201_p2  ;;  %p37_p4 = scmp.ge.s32.totalorder %s854_s20, 16 }
   0x9   : > { %s248_s22 = sadd.s32 (!%p202_p3), %s699_s12, %s703_s13  ;;  %p250_p6 = scmp.lt.s32.totalorder (!%p202_p3), %s707_s14, 1 }
   0xa   : > { %s856_s20 = smov (%p37_p4, %s854_s20), 0  ;;  %s858_s21 = smov (!%p37_p4, %s39_s21), %s719_s17 }
   0xb   : > { %p41_p5 = scmp.ge.s32.totalorder %s858_s21, 2  ;;  %205 = sbr.rel (%p202_p3) target bundleno = 284 (0x11c), region = 32 }
   0xc   : > { %s559_s23 = sshll.u32 (!%p202_p3), %s248_s22, 1  ;;  %p260_p7 = scmp.lt.s32.totalorder (!%p202_p3), %s699_s12, 2 }
   0xd   : > { %s860_s21 = smov (%p41_p5, %s858_s21), 0  ;;  %p252_p8 = scmp.lt.s32.totalorder (!%p202_p3), %s559_s23, 35 }
   0xe   : > { %s562_s25 = sshll.u32 (!%p202_p3), %s703_s13, 1  ;;  %p565_p10 = scmp.ne.s32.totalorder (!%p202_p3), %s699_s12, 0 }
   0xf   : > { %p274_p9 = scmp.lt.s32.totalorder (!%p202_p3), %s562_s25, 31 }
  0x12   : > { %s862_s14 = smov (!%p250_p6, %s707_s14), 1  ;;  %s864_s23 = smov (!%p252_p8, %s559_s23), 35 }
  0x13   : > { %s601_s24 = smul.u32 36, %s862_s14  ;;  %s563_s9 = sshll.u32 %s862_s14, 5  ;;  %v725_v0 = vmov (!%p565_p10), 0.0  }
  0x14   : > { %s261_s26 = scalar_select %p260_p7, %s699_s12, 2 }
  0x15   : > { %s255_s27 = sadd.s32 %s601_s24, %s864_s23  ;;  %s866_s25 = smov (!%p274_p9, %s562_s25), 31  ;;  %289 = vst [vmem:[#allocation2] sm:$0xff] (!%p565_p10), %v725_v0  ;;  %290 = vst [vmem:[#allocation2 + $0x8] sm:$0xff] (!%p565_p10), %v725_v0 }
  0x16   : > { %s560_s28 = sshll.u32 %s255_s27, 2  ;;  %s602_s29 = smul.u32 48, %s261_s26 }
  0x17   : > { %s802_s5 = scalar_lea.vmem %s841_s0, %s560_s28  ;;  %s280_s10 = sadd.s32 %s563_s9, %s866_s25 }
  0x18   : > { %s267_s8 = scalar_lea.vmem %s842_s1, %s602_s29  ;;  %s564_s11 = sshll.u32 %s280_s10, 3 }
  0x19   : > { %s810_s23 = scalar_lea.vmem %s844_s3, %s564_s11  ;;  %288 = sbr.rel (%p565_p10) target bundleno = 32 (0x20), region = 36 }
  0x20 PF: > { %v662_v1 = vld [vmem:[%s267_s8] sm:$0xff]   ;;  %v726_v2 = vmov 0.0   ;;  %v663_v3 = vld [vmem:[%s267_s8 + $0x8] sm:$0xff]   ;;  %vm727_vm0 = vmmov 0   ;;  %v664_v4 = vld [vmem:[%s267_s8 + $0x10] sm:$0xff]   ;;  %vm348_vm1 = vcmask 785408  }
  0x21   : > { %585 = vmatprep.subr.bf16.mxu0 %v726_v2  ;;  %597 = vmatprep.mubr.msk.bf16.mxu0 %vm727_vm0, %v726_v2  ;;  %v665_v5 = vld [vmem:[%s267_s8 + $0x18] sm:$0xff]   ;;  %v666_v6 = vld [vmem:[%s267_s8 + $0x20] sm:$0xff]   ;;  %v667_v7 = vld [vmem:[%s267_s8 + $0x28] sm:$0xff]   ;;  %p574_p11 = scmp.ne.s32.totalorder %s699_s12, 2 }
  0x22   : > { %586 = vmatpush3.bf16.msra.mxu0 %v662_v1  ;;  %v668_v8 = vld [vmem:[%s802_s5] sm:$0xff]   ;;  %v292_v11 = vld [vmem:[#allocation2 + $0x8] sm:$0xff] }
  0x23   : > { %587 = vmatprep.subr.bf16.mxu0 %v726_v2  ;;  %v291_v9 = vld [vmem:[#allocation2] sm:$0xff] }
  0x24   : > { %v575_v18 = vld [vmem:[%s843_s2] ss:$0 sm:$0xff] (!%p574_p11) }
  0x26   : > { %588 = vmatpush3.bf16.msra.mxu0 %v663_v3 }
  0x27   : > { %589 = vmatprep.subr.bf16.mxu0 %v726_v2 }
  0x2a   : > { %590 = vmatpush3.bf16.msra.mxu0 %v664_v4 }
  0x2b   : > { %591 = vmatprep.subr.bf16.mxu0 %v726_v2 }
  0x2e   : > { %592 = vmatpush3.bf16.msra.mxu0 %v665_v5 }
  0x2f   : > { %593 = vmatprep.subr.bf16.mxu0 %v726_v2 }
  0x32   : > { %594 = vmatpush3.bf16.msra.mxu0 %v666_v6 }
  0x33   : > { %595 = vmatprep.subr.bf16.mxu0 %v726_v2 }
  0x36   : > { %596 = vmatpush3.bf16.msra.mxu0 %v667_v7 }
  0x39   : > { %598 = vmatmul.mubr.msk.bf16.vlgmr.msra.gmra.mrb[0].mxu0 %vm348_vm1, %v668_v8 }
 0x10b   : > { %400 = sbr.rel (%p574_p11) target bundleno = 284 (0x11c), region = 40 }
 0x10c   : > { %v386_v10 = vpop.f32.mrb[0].mxu0 }
 0x10d   : > { %v393_v12 = vadd.f32 %v386_v10, %v291_v9  ;;  %v599_v13 = vpop.f32.mrb[1].mxu0 }
 0x10e   : > { %v389_v14 = vpop.f32.mrb[2].mxu0 }
 0x10f   : > { %395 = vst [vmem:[#allocation2] sm:$0xff] %v393_v12  ;;  %v394_v15 = vadd.f32 %v389_v14, %v292_v11  ;;  %v600_v16 = vpop.f32.mrb[3].mxu0 }
 0x111   : > { %396 = vst [vmem:[#allocation2 + $0x8] sm:$0xff] %v394_v15 }
 0x116   : > { %v401_v17 = vld [vmem:[#allocation2] sm:$0xff] }
 0x117   : > { %v410_v20 = vadd.f32 %v575_v18, %v401_v17 }
 0x118   : > { %v402_v19 = vld [vmem:[#allocation2 + $0x8] sm:$0xff] }
 0x119   : > { %v411_v21 = vadd.f32 %v575_v18, %v402_v19  ;;  %412 = vst [vmem:[%s810_s23] sm:$0xff] %v410_v20 }
 0x11b   : > { %413 = vst [vmem:[%s810_s23 + $0x8] sm:$0xff] %v411_v21 }
 0x11c PF: > { %s13_s18 = sadd.s32 1, %s723_s18   ;;  %s845_s12 = smov %s711_s15 }
 0x11d   : > { %p10_p12 = scmp.ge.s32.totalorder %s13_s18, 98   ;;  %s846_s13 = smov %s715_s16 }
 0x11e   : > { %s847_s14 = smov %s719_s17  ;;  %s848_s15 = smov %s852_s19 }
 0x11f   : > { %s849_s16 = smov %s856_s20  ;;  %s850_s17 = smov %s860_s21 }
 0x120   :  { %12 = sbr.rel (!%p10_p12) target bundleno = 4 (0x4), region = 76 }

// kernel: resblock_apply.11
= control target key start
LH: loop header
LB: loop body
LE: loop exit
PB: predicated region body
PF: predicated region fallthrough
CT: control target
= control target key end

     0   :  { %s1624_s18 = smov 0   ;;  %s2269_s0 = inlined_call_operand.vmem [shape: f32[2,256,64], index: 0, kind: input, shape index: {}]   ;;  %s2270_s1 = inlined_call_operand.vmem [shape: f32[1,64], index: 1, kind: input, shape index: {}]   ;;  %s2271_s2 = inlined_call_operand.vmem [shape: f32[1,64], index: 2, kind: input, shape index: {}]   ;;  %s2272_s3 = inlined_call_operand.vmem [shape: f32[64,8], index: 3, kind: input, shape index: {}]   ;;  %s2273_s4 = inlined_call_operand.vmem [shape: f32[8,64], index: 4, kind: input, shape index: {}]   ;;  %s2274_s5 = inlined_call_operand.vmem [shape: f32[2,256,64], index: 5, kind: output, shape index: {}]  }
   0x1 LB: > { %s1162_s19 = sadd.s32 4294967295, %s1588_s18   ;;  %p1166_p0 = scmp.ge.s32.totalorder %s1588_s18, 1  ;;  %s1588_s18 = sphi %s1624_s18, %s15_s18  }
   0x2   : > { %p187_p1 = scmp.lt.s32.totalorder %s1588_s18, 3 }
   0x4   : > { %p188_p2 = pnand %p1166_p0, %p187_p1 }
   0x6   : > { %191 = sbr.rel (%p188_p2) target bundleno = 804 (0x324), region = 40 }
   0xd   : > { %p215_p3 = scmp.lt.s32.totalorder %s1162_s19, 1  ;;  %v1590_v0 = vmov 1.0   ;;  %vm1592_vm0 = vmmov 0   ;;  %vm437_vm1 = vcmask 523264   ;;  %vm590_vm2 = vcmask 64512  }
   0xe   : > { %321 = vmatprep.mubr.f32.mxu0 %v1590_v0  ;;  %423 = vmatprep.mubr.f32.mxu1 %v1590_v0 }
   0xf   : > { %s2279_s19 = smov (!%p215_p3, %s1162_s19), 1 }
  0x10   : > { %s1210_s20 = sshll.u32 %s2279_s19, 8 }
  0x11   : > { %s1642_s23 = scalar_lea.vmem %s2269_s0, %s1210_s20  ;;  %s2156_s26 = scalar_lea.vmem %s2274_s5, %s1210_s20 }
  0x12   : > { %v1645_v1 = vld [vmem:[%s1642_s23 + $0x80] sm:$0xff]  ;;  %v1648_v2 = vld [vmem:[%s1642_s23 + $0x88] sm:$0xff]  ;;  %v1665_v9 = vld [vmem:[%s1642_s23 + $0x90] sm:$0xff] }
  0x13   : > { %v1651_v3 = vld [vmem:[%s1642_s23] sm:$0xff]  ;;  %v1352_v4 = vpack.c.bf16 %v1648_v2, %v1645_v1  ;;  %v1656_v5 = vld [vmem:[%s1642_s23 + $0x8] sm:$0xff]  ;;  %v343_v6 = vmul.f32 %v1645_v1, %v1645_v1  ;;  %v344_v7 = vmul.f32 %v1648_v2, %v1648_v2  ;;  %v1668_v10 = vld [vmem:[%s1642_s23 + $0x98] sm:$0xff]  ;;  %v345_v16 = vmul.f32 %v1665_v9, %v1665_v9 }
  0x14   : > { %v327_v8 = vmul.f32 %v1651_v3, %v1651_v3  ;;  %v1354_v11 = vpack.c.bf16 %v1656_v5, %v1651_v3  ;;  %v328_v12 = vmul.f32 %v1656_v5, %v1656_v5  ;;  %v1356_v13 = vpack.c.bf16 %v1668_v10, %v1665_v9  ;;  %v1677_v14 = vld [vmem:[%s1642_s23 + $0x10] sm:$0xff]  ;;  %v1680_v15 = vld [vmem:[%s1642_s23 + $0x18] sm:$0xff]  ;;  %v1685_v17 = vld [vmem:[%s1642_s23 + $0xa0] sm:$0xff] }
  0x15   : > { %1353 = vmatprep.subr.bf16.mxu0 %v1352_v4  ;;  %v1384_v18 = vpack.c.bf16 %v344_v7, %v343_v6  ;;  %v346_v19 = vmul.f32 %v1668_v10, %v1668_v10  ;;  %v329_v20 = vmul.f32 %v1677_v14, %v1677_v14  ;;  %v1692_v21 = vld [vmem:[%s1642_s23 + $0xa8] sm:$0xff]  ;;  %v1695_v22 = vld [vmem:[%s1642_s23 + $0x20] sm:$0xff]  ;;  %v1358_v25 = vpack.c.bf16 %v1680_v15, %v1677_v14  ;;  %v1707_v28 = vld [vmem:[%s1642_s23 + $0xb0] sm:$0xff] }
  0x16   : > { %v1698_v23 = vld [vmem:[%s1642_s23 + $0x28] sm:$0xff]  ;;  %1355 = vmatpush3.bf16.msra.mxu0 %v1354_v11  ;;  %v1386_v24 = vpack.c.bf16 %v328_v12, %v327_v8  ;;  %v330_v26 = vmul.f32 %v1680_v15, %v1680_v15  ;;  %v1360_v27 = vpack.c.bf16 %v1692_v21, %v1685_v17  ;;  %v1710_v29 = vld [vmem:[%s1642_s23 + $0xb8] sm:$0xff]  ;;  %v347_v31 = vmul.f32 %v1685_v17, %v1685_v17  ;;  %v1721_v37 = vld [vmem:[%s1642_s23 + $0x30] sm:$0xff] }
  0x17   : > { %1385 = vmatprep.subr.bf16.mxu1 %v1384_v18  ;;  %1357 = vmatprep.subr.bf16.mxu0 %v1356_v13  ;;  %v1388_v30 = vpack.c.bf16 %v346_v19, %v345_v16  ;;  %v348_v32 = vmul.f32 %v1692_v21, %v1692_v21  ;;  %v331_v34 = vmul.f32 %v1695_v22, %v1695_v22  ;;  %v1724_v38 = vld [vmem:[%s1642_s23 + $0x38] sm:$0xff]  ;;  %v1733_v42 = vld [vmem:[%s1642_s23 + $0xc0] sm:$0xff]  ;;  %v1736_v43 = vld [vmem:[%s1642_s23 + $0xc8] sm:$0xff] }
  0x18   : > { %1387 = vmatpush3.bf16.msra.mxu1 %v1386_v24  ;;  %v1390_v33 = vpack.c.bf16 %v330_v26, %v329_v20  ;;  %v332_v35 = vmul.f32 %v1698_v23, %v1698_v23  ;;  %v349_v39 = vmul.f32 %v1707_v28, %v1707_v28  ;;  %v350_v40 = vmul.f32 %v1710_v29, %v1710_v29  ;;  %v1745_v49 = vld [vmem:[%s1642_s23 + $0x40] sm:$0xff]  ;;  %v1748_v50 = vld [vmem:[%s1642_s23 + $0x48] sm:$0xff]  ;;  %v1757_v54 = vld [vmem:[%s1642_s23 + $0xd0] sm:$0xff] }
  0x19   : > { %1389 = vmatprep.subr.bf16.mxu1 %v1388_v30  ;;  %v1392_v36 = vpack.c.bf16 %v348_v32, %v347_v31  ;;  %v1362_v41 = vpack.c.bf16 %v1698_v23, %v1695_v22  ;;  %v1364_v44 = vpack.c.bf16 %v1710_v29, %v1707_v28  ;;  %v333_v46 = vmul.f32 %v1721_v37, %v1721_v37  ;;  %v1760_v55 = vld [vmem:[%s1642_s23 + $0xd8] sm:$0xff]  ;;  %v1769_v61 = vld [vmem:[%s1642_s23 + $0x50] sm:$0xff]  ;;  %v1781_v7 = vld [vmem:[%s1642_s23 + $0xe0] sm:$0xff] }
  0x1a   : > { %1359 = vmatpush3.bf16.msra.mxu0 %v1358_v25  ;;  %v1394_v45 = vpack.c.bf16 %v332_v35, %v331_v34  ;;  %v334_v47 = vmul.f32 %v1724_v38, %v1724_v38  ;;  %v1396_v48 = vpack.c.bf16 %v350_v40, %v349_v39  ;;  %v351_v51 = vmul.f32 %v1733_v42, %v1733_v42  ;;  %v1772_v62 = vld [vmem:[%s1642_s23 + $0x58] sm:$0xff]  ;;  %v1784_v8 = vld [vmem:[%s1642_s23 + $0xe8] sm:$0xff]  ;;  %v1793_v19 = vld [vmem:[%s1642_s23 + $0x60] sm:$0xff] }
  0x1b   : > { %1361 = vmatprep.subr.bf16.mxu0 %v1360_v27  ;;  %v352_v52 = vmul.f32 %v1736_v43, %v1736_v43  ;;  %v1366_v53 = vpack.c.bf16 %v1724_v38, %v1721_v37  ;;  %v1368_v56 = vpack.c.bf16 %v1736_v43, %v1733_v42  ;;  %v335_v58 = vmul.f32 %v1745_v49, %v1745_v49  ;;  %v1796_v20 = vld [vmem:[%s1642_s23 + $0x68] sm:$0xff]  ;;  %v1805_v27 = vld [vmem:[%s1642_s23 + $0xf0] sm:$0xff]  ;;  %v1808_v30 = vld [vmem:[%s1642_s23 + $0xf8] sm:$0xff] }
  0x1c   : > { %1391 = vmatpush3.bf16.msra.mxu1 %v1390_v33  ;;  %v1398_v57 = vpack.c.bf16 %v334_v47, %v333_v46  ;;  %v336_v59 = vmul.f32 %v1748_v50, %v1748_v50  ;;  %v353_v63 = vmul.f32 %v1757_v54, %v1757_v54  ;;  %v354_v4 = vmul.f32 %v1760_v55, %v1760_v55  ;;  %v1820_v39 = vld [vmem:[%s1642_s23 + $0x78] sm:$0xff] }
  0x1d   : > { %1393 = vmatprep.subr.bf16.mxu1 %v1392_v36  ;;  %v1400_v60 = vpack.c.bf16 %v352_v52, %v351_v51  ;;  %v1370_v6 = vpack.c.bf16 %v1748_v50, %v1745_v49  ;;  %v1372_v11 = vpack.c.bf16 %v1760_v55, %v1757_v54  ;;  %v337_v13 = vmul.f32 %v1769_v61, %v1769_v61  ;;  %v1817_v36 = vld [vmem:[%s1642_s23 + $0x70] sm:$0xff] }
  0x1e   : > { %1363 = vmatpush3.bf16.msra.mxu0 %v1362_v41  ;;  %v1402_v12 = vpack.c.bf16 %v336_v59, %v335_v58  ;;  %v338_v16 = vmul.f32 %v1772_v62, %v1772_v62  ;;  %v1404_v18 = vpack.c.bf16 %v354_v4, %v353_v63  ;;  %v355_v24 = vmul.f32 %v1781_v7, %v1781_v7  ;;  %v432_v63 = vld [vmem:[%s2272_s3 + $0x18] sm:$0xff] }
  0x1f   : > { %1365 = vmatprep.subr.bf16.mxu0 %v1364_v44  ;;  %v356_v25 = vmul.f32 %v1784_v8, %v1784_v8  ;;  %v1374_v26 = vpack.c.bf16 %v1772_v62, %v1769_v61  ;;  %v1376_v31 = vpack.c.bf16 %v1784_v8, %v1781_v7  ;;  %v339_v33 = vmul.f32 %v1793_v19, %v1793_v19 }
  0x20   : > { %1395 = vmatpush3.bf16.msra.mxu1 %v1394_v45  ;;  %v1406_v32 = vpack.c.bf16 %v338_v16, %v337_v13  ;;  %v340_v34 = vmul.f32 %v1796_v20, %v1796_v20  ;;  %v357_v40 = vmul.f32 %v1805_v27, %v1805_v27  ;;  %v358_v41 = vmul.f32 %v1808_v30, %v1808_v30  ;;  %v436_v13 = vld [vmem:[%s2272_s3 + $0x38] sm:$0xff] }
  0x21   : > { %1397 = vmatprep.subr.bf16.mxu1 %v1396_v48  ;;  %v1408_v35 = vpack.c.bf16 %v356_v25, %v355_v24  ;;  %v1378_v44 = vpack.c.bf16 %v1796_v20, %v1793_v19  ;;  %v1380_v45 = vpack.c.bf16 %v1808_v30, %v1805_v27  ;;  %v341_v47 = vmul.f32 %v1817_v36, %v1817_v36 }
  0x22   : > { %1367 = vmatpush3.bf16.msra.mxu0 %v1366_v53  ;;  %v1410_v46 = vpack.c.bf16 %v340_v34, %v339_v33  ;;  %v342_v48 = vmul.f32 %v1820_v39, %v1820_v39  ;;  %v1412_v51 = vpack.c.bf16 %v358_v41, %v357_v40  ;;  %v1382_v52 = vpack.c.bf16 %v1820_v39, %v1817_v36  ;;  %v429_v53 = vld [vmem:[%s2272_s3] sm:$0xff] }
  0x23   : > { %1369 = vmatprep.subr.bf16.mxu0 %v1368_v56  ;;  %v430_v56 = vld [vmem:[%s2272_s3 + $0x8] sm:$0xff]  ;;  %v1591_v59 = vmov 0.0|0.0   ;;  %v589_v34 = vld [vmem:[%s2273_s4] sm:$0xff] }
  0x24   : > { %1399 = vmatpush3.bf16.msra.mxu1 %v1398_v57  ;;  %v1414_v57 = vpack.c.bf16 %v342_v48, %v341_v47  ;;  %v1417_v58 = vpack.c.bf16 %v430_v56, %v429_v53  ;;  %v738_v53 = vlaneseq }
  0x25   : > { %1401 = vmatprep.subr.bf16.mxu1 %v1400_v60  ;;  %v431_v60 = vld [vmem:[%s2272_s3 + $0x10] sm:$0xff] }
  0x26   : > { %1371 = vmatpush3.bf16.msra.mxu0 %v1370_v6  ;;  %v1420_v4 = vpack.c.bf16 %v432_v63, %v431_v60  ;;  %v433_v6 = vld [vmem:[%s2272_s3 + $0x20] sm:$0xff] }
  0x27   : > { %1373 = vmatprep.subr.bf16.mxu0 %v1372_v11  ;;  %v434_v11 = vld [vmem:[%s2272_s3 + $0x28] sm:$0xff] }
  0x28   : > { %1403 = vmatpush3.bf16.msra.mxu1 %v1402_v12  ;;  %v1423_v12 = vpack.c.bf16 %v434_v11, %v433_v6 }
  0x29   : > { %1405 = vmatprep.subr.bf16.mxu1 %v1404_v18  ;;  %v1593_v18 = vmov 0.0  }
  0x2a   : > { %1375 = vmatpush3.bf16.msra.mxu0 %v1374_v26 }
  0x2b   : > { %1377 = vmatprep.subr.bf16.mxu0 %v1376_v31 }
  0x2c   : > { %1407 = vmatpush3.bf16.msra.mxu1 %v1406_v32 }
  0x2d   : > { %1409 = vmatprep.subr.bf16.mxu1 %v1408_v35 }
  0x2e   : > { %1379 = vmatpush3.bf16.msra.mxu0 %v1378_v44 }
  0x2f   : > { %1381 = vmatprep.subr.bf16.mxu0 %v1380_v45 }
  0x30   : > { %1411 = vmatpush3.bf16.msra.mxu1 %v1410_v46 }
  0x31   : > { %1413 = vmatprep.subr.bf16.mxu1 %v1412_v51 }
  0x32   : > { %1383 = vmatpush3.bf16.msra.mxu0 %v1382_v52 }
  0x33   : > { %1416 = vmatprep.subr.bf16.mxu0 %v1591_v59 }
  0x34   : > { %1415 = vmatpush3.bf16.msra.mxu1 %v1414_v57 }
  0x35   : > { %322 = vmatmul.mubr.f32.vlgmr.msra.gmra.mrb[0].mxu0 %v1590_v0  ;;  %1428 = vmatprep.subr.bf16.mxu1 %v1591_v59 }
  0x36   : > { %1418 = vmatpush3.bf16.msra.mxu0 %v1417_v58  ;;  %1320 = vmatprep.mubr.msk.f32.mxu0 %vm1592_vm0, %v1593_v18 }
  0x37   : > { %424 = vmatmul.mubr.f32.vlgmr.msra.gmra.mrb[0].mxu1 %v1590_v0  ;;  %1419 = vmatprep.subr.bf16.mxu0 %v1591_v59  ;;  %v435_v0 = vld [vmem:[%s2272_s3 + $0x30] sm:$0xff] }
  0x38   : > { %1430 = vmatpush3.bf16.msra.mxu1 %v1417_v58  ;;  %v1426_v16 = vpack.c.bf16 %v436_v13, %v435_v0  ;;  %1339 = vmatprep.mubr.msk.f32.mxu1 %vm1592_vm0, %v1593_v18  ;;  %v739_v58 = vshrl.u32 %v738_v53, 7 }
  0x39   : > { %1431 = vmatprep.subr.bf16.mxu1 %v1591_v59 }
  0x3a   : > { %1421 = vmatpush3.bf16.msra.mxu0 %v1420_v4 }
  0x3b   : > { %1422 = vmatprep.subr.bf16.mxu0 %v1591_v59 }
  0x3c   : > { %1433 = vmatpush3.bf16.msra.mxu1 %v1420_v4 }
  0x3d   : > { %1434 = vmatprep.subr.bf16.mxu1 %v1591_v59 }
  0x3e   : > { %1424 = vmatpush3.bf16.msra.mxu0 %v1423_v12 }
  0x3f   : > { %1425 = vmatprep.subr.bf16.mxu0 %v1591_v59 }
  0x40   : > { %1436 = vmatpush3.bf16.msra.mxu1 %v1423_v12 }
  0x41   : > { %1437 = vmatprep.subr.bf16.mxu1 %v1591_v59  ;;  %v740_v59 = vsub.s32 0, %v739_v58 }
  0x42   : > { %1427 = vmatpush3.bf16.msra.mxu0 %v1426_v16 }
  0x43   : > { %1342 = vmatprep.subr.mxu0 %v1593_v18 }
  0x44   : > { %1439 = vmatpush3.bf16.msra.mxu1 %v1426_v16 }
  0x45   : > { %1347 = vmatprep.subr.mxu1 %v1593_v18 }
 0x108   : > { %v1244_v24 = vpop.f32.mrb[0].mxu0 }
 0x109   : > { %v1245_v25 = vpop.f32.mrb[1].mxu0 }
 0x10a   : > { %v1246_v26 = vadd.f32 %v1245_v25, %v1244_v24  ;;  %v1279_v31 = vpop.f32.mrb[0].mxu1 }
 0x10b   : > { %v1280_v32 = vpop.f32.mrb[1].mxu1 }
 0x10c   : > { %v1281_v33 = vadd.f32 %v1280_v32, %v1279_v31  ;;  %1321 = vmatmul.mubr.msk.f32.vlgmr.msra.gmra.mrb[2].mxu0 %vm437_vm1, %v1246_v26 }
 0x10d   : > { %1344 = vmatprep.mubr.msk.f32.mxu0 %vm1592_vm0, %v1593_v18  ;;  %1343 = vmatpush3.msra.mxu0 %v589_v34 }
 0x10e   : > { %1340 = vmatmul.mubr.msk.f32.vlgmr.msra.gmra.mrb[2].mxu1 %vm437_vm1, %v1281_v33 }
 0x10f   : > { %1349 = vmatprep.mubr.msk.f32.mxu1 %vm1592_vm0, %v1593_v18  ;;  %1348 = vmatpush3.msra.mxu1 %v589_v34 }
 0x1df   : > { %v507_v35 = vpop.f32.mrb[2].mxu0 }
 0x1e0   : > { %v585_v40 = vmul.f32 0.00048828125, %v507_v35  ;;  %v1322_v41 = vpop.f32.mrb[3].mxu0 }
 0x1e1   : > { %v580_v44 = vpop.f32.mrb[2].mxu1 }
 0x1e2   : > { %v587_v45 = vmul.f32 %v585_v40, %v585_v40  ;;  %v586_v46 = vmul.f32 0.00048828125, %v580_v44  ;;  %v1341_v47 = vpop.f32.mrb[3].mxu1  ;;  %1345 = vmatmul.mubr.msk.f32.vlgmr.msra.gmra.mrb[4].mxu0 %vm590_vm2, %v585_v40 }
 0x1e4   : > { %v588_v48 = vsub.f32 %v586_v46, %v587_v45 }
 0x1e6   : > { %1350 = vmatmul.mubr.msk.f32.vlgmr.msra.gmra.mrb[4].mxu1 %vm590_vm2, %v588_v48 }
 0x2b5   : > { %v660_v51 = vpop.f32.mrb[4].mxu0 }
 0x2b6   : > { %v1346_v52 = vpop.f32.mrb[5].mxu0  ;;  %v1871_v63 = vrot.slane %v660_v51, %v740_v59 }
 0x2b8   : > { %v742_v4 = vsub.f32 %v1651_v3, %v1871_v63  ;;  %v743_v6 = vsub.f32 %v1656_v5, %v1871_v63  ;;  %v744_v11 = vsub.f32 %v1677_v14, %v1871_v63  ;;  %v745_v12 = vsub.f32 %v1680_v15, %v1871_v63  ;;  %v774_v15 = vld [vmem:[%s2270_s1] sm:$0x1] }
 0x2b9   : > { %v733_v56 = vpop.f32.mrb[4].mxu1  ;;  %v746_v0 = vsub.f32 %v1695_v22, %v1871_v63  ;;  %v747_v13 = vsub.f32 %v1698_v23, %v1871_v63  ;;  %v748_v16 = vsub.f32 %v1721_v37, %v1871_v63  ;;  %v749_v3 = vsub.f32 %v1724_v38, %v1871_v63 }
 0x2ba   : > { %v1351_v57 = vpop.f32.mrb[5].mxu1  ;;  %v734_v60 = vadd.f32 1e-05, %v733_v56  ;;  %v750_v5 = vsub.f32 %v1745_v49, %v1871_v63  ;;  %v751_v14 = vsub.f32 %v1748_v50, %v1871_v63  ;;  %v752_v22 = vsub.f32 %v1769_v61, %v1871_v63 }
 0x2bb   : > { %v753_v23 = vsub.f32 %v1772_v62, %v1871_v63  ;;  %v754_v37 = vsub.f32 %v1793_v19, %v1871_v63  ;;  %v755_v38 = vsub.f32 %v1796_v20, %v1871_v63  ;;  %v756_v50 = vsub.f32 %v1817_v36, %v1871_v63 }
 0x2bc   : > { %1452 = vrsqrt.f32 %v734_v60  ;;  %v757_v18 = vsub.f32 %v1820_v39, %v1871_v63  ;;  %v758_v24 = vsub.f32 %v1645_v1, %v1871_v63  ;;  %v759_v61 = vsub.f32 %v1648_v2, %v1871_v63 }
 0x2bd   : > { %v760_v62 = vsub.f32 %v1665_v9, %v1871_v63  ;;  %v761_v19 = vsub.f32 %v1668_v10, %v1871_v63  ;;  %v762_v20 = vsub.f32 %v1685_v17, %v1871_v63  ;;  %v763_v36 = vsub.f32 %v1692_v21, %v1871_v63 }
 0x2be   : > { %v764_v39 = vsub.f32 %v1707_v28, %v1871_v63  ;;  %v765_v1 = vsub.f32 %v1710_v29, %v1871_v63  ;;  %v766_v2 = vsub.f32 %v1733_v42, %v1871_v63  ;;  %v767_v9 = vsub.f32 %v1736_v43, %v1871_v63 }
 0x2bf   : > { %v768_v10 = vsub.f32 %v1757_v54, %v1871_v63  ;;  %v769_v17 = vsub.f32 %v1760_v55, %v1871_v63  ;;  %v770_v21 = vsub.f32 %v1781_v7, %v1871_v63  ;;  %v771_v28 = vsub.f32 %v1784_v8, %v1871_v63 }
 0x2c0   : > { %v772_v29 = vsub.f32 %v1805_v27, %v1871_v63  ;;  %v773_v42 = vsub.f32 %v1808_v30, %v1871_v63 }
 0x2c6   : > { %v1453_v49 = vpop.eup %1452 }
 0x2c7   : > { %v775_v25 = vmul.f32 %v1453_v49, %v774_v15 }
 0x2c9   : > { %v779_v26 = vrot.slane %v775_v25, %v740_v59 }
 0x2cb   : > { %v780_v43 = vmul.f32 %v779_v26, %v742_v4  ;;  %v781_v31 = vmul.f32 %v779_v26, %v743_v6  ;;  %v782_v32 = vmul.f32 %v779_v26, %v744_v11  ;;  %v783_v54 = vmul.f32 %v779_v26, %v745_v12 }
 0x2cc   : > { %v784_v33 = vmul.f32 %v779_v26, %v746_v0  ;;  %v785_v34 = vmul.f32 %v779_v26, %v747_v13  ;;  %v786_v55 = vmul.f32 %v779_v26, %v748_v16  ;;  %v787_v35 = vmul.f32 %v779_v26, %v749_v3  ;;  %v1967_v0 = vld [vmem:[%s2271_s2] ss:$0 sm:$0xff] }
 0x2cd   : > { %v788_v40 = vmul.f32 %v779_v26, %v750_v5  ;;  %v789_v41 = vmul.f32 %v779_v26, %v751_v14  ;;  %v790_v7 = vmul.f32 %v779_v26, %v752_v22  ;;  %v791_v44 = vmul.f32 %v779_v26, %v753_v23 }
 0x2ce   : > { %v792_v45 = vmul.f32 %v779_v26, %v754_v37  ;;  %v793_v8 = vmul.f32 %v779_v26, %v755_v38  ;;  %v794_v46 = vmul.f32 %v779_v26, %v756_v50  ;;  %v795_v47 = vmul.f32 %v779_v26, %v757_v18 }
 0x2cf   : > { %v796_v27 = vmul.f32 %v779_v26, %v758_v24  ;;  %v797_v48 = vmul.f32 %v779_v26, %v759_v61  ;;  %v798_v51 = vmul.f32 %v779_v26, %v760_v62  ;;  %v799_v30 = vmul.f32 %v779_v26, %v761_v19 }
 0x2d0   : > { %v1940_v52 = vmul.f32 %v779_v26, %v762_v20  ;;  %v1942_v53 = vmul.f32 %v779_v26, %v763_v36  ;;  %v1944_v56 = vmul.f32 %v779_v26, %v764_v39  ;;  %v1946_v57 = vmul.f32 %v779_v26, %v765_v1 }
 0x2d1   : > { %v1948_v58 = vmul.f32 %v779_v26, %v766_v2  ;;  %v1950_v59 = vmul.f32 %v779_v26, %v767_v9  ;;  %v1952_v60 = vmul.f32 %v779_v26, %v768_v10  ;;  %v1954_v63 = vmul.f32 %v779_v26, %v769_v17 }
 0x2d2   : > { %v1956_v4 = vmul.f32 %v779_v26, %v770_v21  ;;  %v1958_v6 = vmul.f32 %v779_v26, %v771_v28  ;;  %v1960_v11 = vmul.f32 %v779_v26, %v772_v29  ;;  %v1962_v12 = vmul.f32 %v779_v26, %v773_v42 }
 0x2d3   : > { %v1970_v13 = vadd.f32 %v1967_v0, %v780_v43  ;;  %v1973_v16 = vadd.f32 %v1967_v0, %v781_v31  ;;  %v1976_v3 = vadd.f32 %v1967_v0, %v782_v32  ;;  %v1979_v5 = vadd.f32 %v1967_v0, %v783_v54 }
 0x2d4   : > { %v1982_v14 = vadd.f32 %v1967_v0, %v784_v33  ;;  %v1985_v15 = vadd.f32 %v1967_v0, %v785_v34  ;;  %v1988_v22 = vadd.f32 %v1967_v0, %v786_v55  ;;  %v1994_v49 = vadd.f32 %v1967_v0, %v787_v35 }
 0x2d5   : > { %v1176_v23 = vmul.f32 -1.442695, %v1970_v13  ;;  %v1177_v37 = vmul.f32 -1.442695, %v1973_v16  ;;  %v1178_v38 = vmul.f32 -1.442695, %v1976_v3  ;;  %v1998_v18 = vadd.f32 %v1967_v0, %v788_v40 }
 0x2d6   : > { %v1179_v50 = vmul.f32 -1.442695, %v1979_v5  ;;  %v1180_v24 = vmul.f32 -1.442695, %v1982_v14  ;;  %v2002_v61 = vadd.f32 %v1967_v0, %v789_v41  ;;  %v1181_v62 = vmul.f32 -1.442695, %v1985_v15 }
 0x2d7   : > { %1454 = vpow2.f32 %v1176_v23  ;;  %v2006_v19 = vadd.f32 %v1967_v0, %v790_v7  ;;  %v1182_v20 = vmul.f32 -1.442695, %v1988_v22  ;;  %v2010_v25 = vadd.f32 %v1967_v0, %v791_v44 }
 0x2d8   : > { %1456 = vpow2.f32 %v1177_v37  ;;  %v1183_v36 = vmul.f32 -1.442695, %v1994_v49  ;;  %v2014_v39 = vadd.f32 %v1967_v0, %v792_v45  ;;  %v1184_v1 = vmul.f32 -1.442695, %v1998_v18 }
 0x2d9   : > { %1458 = vpow2.f32 %v1178_v38  ;;  %v2018_v2 = vadd.f32 %v1967_v0, %v793_v8  ;;  %v1185_v9 = vmul.f32 -1.442695, %v2002_v61  ;;  %v2022_v10 = vadd.f32 %v1967_v0, %v794_v46 }
 0x2da   : > { %1460 = vpow2.f32 %v1179_v50  ;;  %v1186_v17 = vmul.f32 -1.442695, %v2006_v19  ;;  %v2026_v26 = vadd.f32 %v1967_v0, %v795_v47  ;;  %v1187_v21 = vmul.f32 -1.442695, %v2010_v25 }
 0x2db   : > { %1462 = vpow2.f32 %v1180_v24  ;;  %v2030_v28 = vadd.f32 %v1967_v0, %v796_v27  ;;  %v1188_v29 = vmul.f32 -1.442695, %v2014_v39  ;;  %v2034_v42 = vadd.f32 %v1967_v0, %v797_v48 }
 0x2dc   : > { %1464 = vpow2.f32 %v1181_v62  ;;  %v1189_v43 = vmul.f32 -1.442695, %v2018_v2  ;;  %v2040_v32 = vadd.f32 %v1967_v0, %v798_v51  ;;  %v1190_v54 = vmul.f32 -1.442695, %v2022_v10 }
 0x2dd   : > { %1466 = vpow2.f32 %v1182_v20  ;;  %v2046_v34 = vadd.f32 %v1967_v0, %v799_v30  ;;  %v1191_v55 = vmul.f32 -1.442695, %v2026_v26  ;;  %v2053_v40 = vadd.f32 %v1967_v0, %v1940_v52 }
 0x2de   : > { %1468 = vpow2.f32 %v1183_v36  ;;  %v1192_v41 = vmul.f32 -1.442695, %v2030_v28  ;;  %v2060_v44 = vadd.f32 %v1967_v0, %v1942_v53  ;;  %v1193_v45 = vmul.f32 -1.442695, %v2034_v42 }
 0x2df   : > { %1470 = vpow2.f32 %v1184_v1  ;;  %v2067_v46 = vadd.f32 %v1967_v0, %v1944_v56  ;;  %v1194_v47 = vmul.f32 -1.442695, %v2040_v32  ;;  %v2074_v48 = vadd.f32 %v1967_v0, %v1946_v57 }
 0x2e0   : > { %1472 = vpow2.f32 %v1185_v9  ;;  %v1195_v51 = vmul.f32 -1.442695, %v2046_v34  ;;  %v2079_v52 = vadd.f32 %v1967_v0, %v1948_v58  ;;  %v1196_v53 = vmul.f32 -1.442695, %v2053_v40 }
 0x2e1   : > { %v2037_v31 = vpop.eup %1454  ;;  %1474 = vpow2.f32 %v1186_v17  ;;  %v2084_v23 = vadd.f32 %v1967_v0, %v1950_v59  ;;  %v1197_v57 = vmul.f32 -1.442695, %v2060_v44  ;;  %v2089_v38 = vadd.f32 %v1967_v0, %v1952_v60 }
 0x2e2   : > { %v2043_v33 = vpop.eup %1456  ;;  %1476 = vpow2.f32 %v1187_v21  ;;  %v1198_v58 = vmul.f32 -1.442695, %v2067_v46  ;;  %v2094_v24 = vadd.f32 %v1967_v0, %v1954_v63  ;;  %v1199_v59 = vmul.f32 -1.442695, %v2074_v48 }
 0x2e3   : > { %v2049_v35 = vpop.eup %1458  ;;  %1478 = vpow2.f32 %v1188_v29  ;;  %v2099_v20 = vadd.f32 %v1967_v0, %v1956_v4  ;;  %v1200_v60 = vmul.f32 -1.442695, %v2079_v52  ;;  %v2104_v1 = vadd.f32 %v1967_v0, %v1958_v6 }
 0x2e4   : > { %v2056_v7 = vpop.eup %1460  ;;  %1480 = vpow2.f32 %v1189_v43  ;;  %v1201_v63 = vmul.f32 -1.442695, %v2084_v23  ;;  %v2109_v17 = vadd.f32 %v1967_v0, %v1960_v11  ;;  %v1202_v4 = vmul.f32 -1.442695, %v2089_v38 }
 0x2e5   : > { %v2063_v8 = vpop.eup %1462  ;;  %1482 = vpow2.f32 %v1190_v54  ;;  %v2114_v29 = vadd.f32 %v1967_v0, %v1962_v12  ;;  %v1203_v6 = vmul.f32 -1.442695, %v2094_v24  ;;  %v1204_v54 = vmul.f32 -1.442695, %v2099_v20 }
 0x2e6   : > { %v2070_v27 = vpop.eup %1464  ;;  %1484 = vpow2.f32 %v1191_v55  ;;  %v1205_v11 = vmul.f32 -1.442695, %v2104_v1 }
 0x2e7   : > { %v1467_v30 = vpop.eup %1466  ;;  %1486 = vpow2.f32 %v1192_v41  ;;  %2276 = vst [vmem:[#allocation2_spill] sm:$0xff] %v2114_v29  ;;  %v1207_v12 = vmul.f32 -1.442695, %v2114_v29 }
 0x2e8   : > { %v1469_v56 = vpop.eup %1468  ;;  %1488 = vpow2.f32 %v1193_v45  ;;  %v1206_v45 = vmul.f32 -1.442695, %v2109_v17 }
 0x2e9   : > { %v1471_v37 = vpop.eup %1470  ;;  %1490 = vpow2.f32 %v1194_v47 }
 0x2ea   : > { %v1473_v50 = vpop.eup %1472  ;;  %1492 = vpow2.f32 %v1195_v51  ;;  %v947_v51 = vadd.f32 1.0, %v2037_v31 }
 0x2eb   : > { %v1475_v62 = vpop.eup %1474  ;;  %1494 = vpow2.f32 %v1196_v53 }
 0x2ec   : > { %v1477_v36 = vpop.eup %1476  ;;  %1496 = vpow2.f32 %v1197_v57  ;;  %v948_v57 = vadd.f32 1.0, %v2043_v33 }
 0x2ed   : > { %v1479_v9 = vpop.eup %1478  ;;  %1498 = vpow2.f32 %v1198_v58 }
 0x2ee   : > { %v1481_v21 = vpop.eup %1480  ;;  %1500 = vpow2.f32 %v1199_v59  ;;  %v949_v59 = vadd.f32 1.0, %v2049_v35 }
 0x2ef   : > { %v1483_v43 = vpop.eup %1482  ;;  %1502 = vpow2.f32 %v1200_v60 }
 0x2f0   : > { %v1485_v55 = vpop.eup %1484  ;;  %1504 = vpow2.f32 %v1201_v63  ;;  %v950_v63 = vadd.f32 1.0, %v2056_v7  ;;  %v955_v7 = vadd.f32 1.0, %v1471_v37  ;;  %v960_v37 = vadd.f32 1.0, %v1481_v21 }
 0x2f1   : > { %v1487_v41 = vpop.eup %1486  ;;  %1506 = vpow2.f32 %v1202_v4 }
 0x2f2   : > { %v1489_v47 = vpop.eup %1488  ;;  %1508 = vpow2.f32 %v1203_v6  ;;  %v951_v6 = vadd.f32 1.0, %v2063_v8  ;;  %v956_v8 = vadd.f32 1.0, %v1473_v50  ;;  %v961_v50 = vadd.f32 1.0, %v1483_v43 }
 0x2f3   : > { %v1491_v0 = vpop.eup %1490  ;;  %1510 = vpow2.f32 %v1204_v54  ;;  %v952_v54 = vadd.f32 1.0, %v2070_v27  ;;  %v957_v27 = vadd.f32 1.0, %v1475_v62 }
 0x2f4   : > { %v1493_v53 = vpop.eup %1492  ;;  %1512 = vpow2.f32 %v1205_v11  ;;  %v953_v11 = vadd.f32 1.0, %v1467_v30  ;;  %v958_v30 = vadd.f32 1.0, %v1477_v36  ;;  %v962_v36 = vadd.f32 1.0, %v1485_v55 }
 0x2f5   : > { %v2123_v58 = vpop.eup %1494  ;;  %1514 = vpow2.f32 %v1206_v45  ;;  %v954_v45 = vadd.f32 1.0, %v1469_v56  ;;  %v959_v56 = vadd.f32 1.0, %v1479_v9  ;;  %v965_v55 = vadd.f32 1.0, %v1491_v0 }
 0x2f6   : > { %v2126_v60 = vpop.eup %1496  ;;  %1516 = vpow2.f32 %v1207_v12 }
 0x2f7   : > { %v2129_v4 = vpop.eup %1498  ;;  %1518 = vrcp.f32 %v947_v51 }
 0x2f8   : > { %v2132_v31 = vpop.eup %1500  ;;  %1520 = vrcp.f32 %v948_v57 }
 0x2f9   : > { %v2135_v33 = vpop.eup %1502  ;;  %1522 = vrcp.f32 %v949_v59 }
 0x2fa   : > { %v2137_v35 = vpop.eup %1504  ;;  %1524 = vrcp.f32 %v950_v63 }
 0x2fb   : > { %v2139_v12 = vpop.eup %1506  ;;  %1526 = vrcp.f32 %v951_v6 }
 0x2fc   : > { %v2141_v29 = vpop.eup %1508  ;;  %1528 = vrcp.f32 %v952_v54 }
 0x2fd   : > { %v2143_v51 = vpop.eup %1510  ;;  %1530 = vrcp.f32 %v953_v11  ;;  %v963_v11 = vadd.f32 1.0, %v1487_v41  ;;  %v966_v41 = vadd.f32 1.0, %v1493_v53 }
 0x2fe   : > { %v2145_v57 = vpop.eup %1512  ;;  %1532 = vrcp.f32 %v954_v45 }
 0x2ff   : > { %v2147_v59 = vpop.eup %1514  ;;  %1534 = vrcp.f32 %v955_v7  ;;  %v964_v7 = vadd.f32 1.0, %v1489_v47  ;;  %v967_v47 = vadd.f32 1.0, %v2123_v58 }
 0x300   : > { %v2149_v63 = vpop.eup %1516  ;;  %1536 = vrcp.f32 %v956_v8 }
 0x301   : > { %v1519_v6 = vpop.eup %1518  ;;  %1538 = vrcp.f32 %v957_v27 }
 0x302   : > { %v1521_v62 = vpop.eup %1520  ;;  %1540 = vrcp.f32 %v958_v30  ;;  %v1043_v9 = vmul.f32 %v1519_v6, %v1970_v13  ;;  %v968_v30 = vadd.f32 1.0, %v2126_v60  ;;  %v971_v6 = vadd.f32 1.0, %v2135_v33 }
 0x303   : > { %v1523_v54 = vpop.eup %1522  ;;  %1542 = vrcp.f32 %v959_v56  ;;  %v1044_v21 = vmul.f32 %v1521_v62, %v1973_v16  ;;  %v969_v56 = vadd.f32 1.0, %v2129_v4  ;;  %v973_v62 = vadd.f32 1.0, %v2139_v12 }
 0x304   : > { %v1525_v45 = vpop.eup %1524  ;;  %1544 = vrcp.f32 %v960_v37  ;;  %v1045_v8 = vmul.f32 %v1523_v54, %v1976_v3  ;;  %1075 = vst.msk [vmem:[%s2156_s26] sm:$0xff] %vm437_vm1, %v1043_v9  ;;  %v970_v37 = vadd.f32 1.0, %v2132_v31  ;;  %v975_v9 = vadd.f32 1.0, %v2143_v51 }
 0x305   : > { %v1527_v43 = vpop.eup %1526  ;;  %1546 = vrcp.f32 %v961_v50  ;;  %v1046_v27 = vmul.f32 %v1525_v45, %v1979_v5  ;;  %1076 = vst.msk [vmem:[%s2156_s26 + $0x8] sm:$0xff] %vm437_vm1, %v1044_v21  ;;  %v972_v50 = vadd.f32 1.0, %v2137_v35  ;;  %v976_v54 = vadd.f32 1.0, %v2145_v57 }
 0x306   : > { %v1529_v13 = vpop.eup %1528  ;;  %1548 = vrcp.f32 %v962_v36  ;;  %v1047_v16 = vmul.f32 %v1527_v43, %v1982_v14  ;;  %1077 = vst.msk [vmem:[%s2156_s26 + $0x10] sm:$0xff] %vm437_vm1, %v1045_v8  ;;  %v974_v36 = vadd.f32 1.0, %v2141_v29  ;;  %v978_v21 = vadd.f32 1.0, %v2149_v63 }
 0x307   : > { %v1531_v3 = vpop.eup %1530  ;;  %1550 = vrcp.f32 %v963_v11  ;;  %v1048_v0 = vmul.f32 %v1529_v13, %v1985_v15  ;;  %1078 = vst.msk [vmem:[%s2156_s26 + $0x18] sm:$0xff] %vm437_vm1, %v1046_v27  ;;  %v977_v11 = vadd.f32 1.0, %v2147_v59 }
 0x308   : > { %v1533_v5 = vpop.eup %1532  ;;  %1552 = vrcp.f32 %v964_v7  ;;  %v1049_v53 = vmul.f32 %v1531_v3, %v1988_v22  ;;  %1079 = vst.msk [vmem:[%s2156_s26 + $0x20] sm:$0xff] %vm437_vm1, %v1047_v16 }
 0x309   : > { %v1535_v14 = vpop.eup %1534  ;;  %1554 = vrcp.f32 %v965_v55  ;;  %v1050_v58 = vmul.f32 %v1533_v5, %v1994_v49  ;;  %1080 = vst.msk [vmem:[%s2156_s26 + $0x28] sm:$0xff] %vm437_vm1, %v1048_v0 }
 0x30a   : > { %v1537_v15 = vpop.eup %1536  ;;  %1556 = vrcp.f32 %v966_v41  ;;  %v1051_v60 = vmul.f32 %v1535_v14, %v1998_v18  ;;  %1081 = vst.msk [vmem:[%s2156_s26 + $0x30] sm:$0xff] %vm437_vm1, %v1049_v53 }
 0x30b   : > { %v1539_v22 = vpop.eup %1538  ;;  %1558 = vrcp.f32 %v967_v47  ;;  %v1052_v4 = vmul.f32 %v1537_v15, %v2002_v61  ;;  %1082 = vst.msk [vmem:[%s2156_s26 + $0x38] sm:$0xff] %vm437_vm1, %v1050_v58 }
 0x30c   : > { %v1541_v49 = vpop.eup %1540  ;;  %1560 = vrcp.f32 %v968_v30  ;;  %v1053_v31 = vmul.f32 %v1539_v22, %v2006_v19  ;;  %1083 = vst.msk [vmem:[%s2156_s26 + $0x40] sm:$0xff] %vm437_vm1, %v1051_v60  ;;  %v2277_v30 = vld [vmem:[#allocation2_spill] sm:$0xff] }
 0x30d   : > { %v1543_v18 = vpop.eup %1542  ;;  %1562 = vrcp.f32 %v969_v56  ;;  %v1054_v33 = vmul.f32 %v1541_v49, %v2010_v25  ;;  %1084 = vst.msk [vmem:[%s2156_s26 + $0x48] sm:$0xff] %vm437_vm1, %v1052_v4 }
 0x30e   : > { %v1545_v61 = vpop.eup %1544  ;;  %1564 = vrcp.f32 %v970_v37  ;;  %v1055_v35 = vmul.f32 %v1543_v18, %v2014_v39  ;;  %1085 = vst.msk [vmem:[%s2156_s26 + $0x50] sm:$0xff] %vm437_vm1, %v1053_v31 }
 0x30f   : > { %v1547_v19 = vpop.eup %1546  ;;  %1566 = vrcp.f32 %v971_v6  ;;  %v1056_v12 = vmul.f32 %v1545_v61, %v2018_v2  ;;  %1086 = vst.msk [vmem:[%s2156_s26 + $0x58] sm:$0xff] %vm437_vm1, %v1054_v33 }
 0x310   : > { %v1549_v25 = vpop.eup %1548  ;;  %1568 = vrcp.f32 %v972_v50  ;;  %v1057_v29 = vmul.f32 %v1547_v19, %v2022_v10  ;;  %1087 = vst.msk [vmem:[%s2156_s26 + $0x60] sm:$0xff] %vm437_vm1, %v1055_v35 }
 0x311   : > { %v1551_v39 = vpop.eup %1550  ;;  %1570 = vrcp.f32 %v973_v62  ;;  %v1058_v51 = vmul.f32 %v1549_v25, %v2026_v26  ;;  %1088 = vst.msk [vmem:[%s2156_s26 + $0x68] sm:$0xff] %vm437_vm1, %v1056_v12 }
 0x312   : > { %v1553_v2 = vpop.eup %1552  ;;  %1572 = vrcp.f32 %v974_v36  ;;  %v1059_v57 = vmul.f32 %v1551_v39, %v2030_v28  ;;  %1089 = vst.msk [vmem:[%s2156_s26 + $0x70] sm:$0xff] %vm437_vm1, %v1057_v29 }
 0x313   : > { %v1555_v10 = vpop.eup %1554  ;;  %1574 = vrcp.f32 %v975_v9  ;;  %v1060_v59 = vmul.f32 %v1553_v2, %v2034_v42  ;;  %1090 = vst.msk [vmem:[%s2156_s26 + $0x78] sm:$0xff] %vm437_vm1, %v1058_v51 }
 0x314   : > { %v1557_v26 = vpop.eup %1556  ;;  %1576 = vrcp.f32 %v976_v54  ;;  %v1061_v45 = vmul.f32 %v1555_v10, %v2040_v32  ;;  %1091 = vst.msk [vmem:[%s2156_s26 + $0x80] sm:$0xff] %vm437_vm1, %v1059_v57 }
 0x315   : > { %v1559_v63 = vpop.eup %1558  ;;  %1578 = vrcp.f32 %v977_v11  ;;  %v1062_v28 = vmul.f32 %v1557_v26, %v2046_v34  ;;  %1092 = vst.msk [vmem:[%s2156_s26 + $0x88] sm:$0xff] %vm437_vm1, %v1060_v59 }
 0x316   : > { %v1561_v7 = vpop.eup %1560  ;;  %1580 = vrcp.f32 %v978_v21  ;;  %v1063_v42 = vmul.f32 %v1559_v63, %v2053_v40  ;;  %1093 = vst.msk [vmem:[%s2156_s26 + $0x90] sm:$0xff] %vm437_vm1, %v1061_v45 }
 0x317   : > { %v1563_v8 = vpop.eup %1562  ;;  %v1064_v32 = vmul.f32 %v1561_v7, %v2060_v44  ;;  %1094 = vst.msk [vmem:[%s2156_s26 + $0x98] sm:$0xff] %vm437_vm1, %v1062_v28 }
 0x318   : > { %v1565_v43 = vpop.eup %1564  ;;  %v1065_v55 = vmul.f32 %v1563_v8, %v2067_v46  ;;  %1095 = vst.msk [vmem:[%s2156_s26 + $0xa0] sm:$0xff] %vm437_vm1, %v1063_v42 }
 0x319   : > { %v1567_v34 = vpop.eup %1566  ;;  %v1066_v27 = vmul.f32 %v1565_v43, %v2074_v48  ;;  %1096 = vst.msk [vmem:[%s2156_s26 + $0xa8] sm:$0xff] %vm437_vm1, %v1064_v32 }
 0x31a   : > { %v1569_v40 = vpop.eup %1568  ;;  %v1067_v13 = vmul.f32 %v1567_v34, %v2079_v52  ;;  %1097 = vst.msk [vmem:[%s2156_s26 + $0xb0] sm:$0xff] %vm437_vm1, %v1065_v55 }
 0x31b   : > { %v1571_v44 = vpop.eup %1570  ;;  %v1068_v41 = vmul.f32 %v1569_v40, %v2084_v23  ;;  %1098 = vst.msk [vmem:[%s2156_s26 + $0xb8] sm:$0xff] %vm437_vm1, %v1066_v27 }
 0x31c   : > { %v1573_v46 = vpop.eup %1572  ;;  %v1069_v16 = vmul.f32 %v1571_v44, %v2089_v38  ;;  %1099 = vst.msk [vmem:[%s2156_s26 + $0xc0] sm:$0xff] %vm437_vm1, %v1067_v13 }
 0x31d   : > { %v1575_v48 = vpop.eup %1574  ;;  %v1070_v52 = vmul.f32 %v1573_v46, %v2094_v24  ;;  %1100 = vst.msk [vmem:[%s2156_s26 + $0xc8] sm:$0xff] %vm437_vm1, %v1068_v41 }
 0x31e   : > { %v1577_v3 = vpop.eup %1576  ;;  %v1071_v47 = vmul.f32 %v1575_v48, %v2099_v20  ;;  %1101 = vst.msk [vmem:[%s2156_s26 + $0xd0] sm:$0xff] %vm437_vm1, %v1069_v16 }
 0x31f   : > { %v1579_v23 = vpop.eup %1578  ;;  %v1072_v0 = vmul.f32 %v1577_v3, %v2104_v1  ;;  %1102 = vst.msk [vmem:[%s2156_s26 + $0xd8] sm:$0xff] %vm437_vm1, %v1070_v52 }
 0x320   : > { %v1581_v38 = vpop.eup %1580  ;;  %v1073_v5 = vmul.f32 %v1579_v23, %v2109_v17  ;;  %1103 = vst.msk [vmem:[%s2156_s26 + $0xe0] sm:$0xff] %vm437_vm1, %v1071_v47 }
 0x321   : > { %v1074_v53 = vmul.f32 %v1581_v38, %v2277_v30  ;;  %1104 = vst.msk [vmem:[%s2156_s26 + $0xe8] sm:$0xff] %vm437_vm1, %v1072_v0 }
 0x322   : > { %1105 = vst.msk [vmem:[%s2156_s26 + $0xf0] sm:$0xff] %vm437_vm1, %v1073_v5 }
 0x323   : > { %1106 = vst.msk [vmem:[%s2156_s26 + $0xf8] sm:$0xff] %vm437_vm1, %v1074_v53 }
 0x324 PF: > { %s15_s18 = sadd.s32 1, %s1588_s18  }
 0x325   : > { %p12_p4 = scmp.ge.s32.totalorder %s15_s18, 4  }
 0x327   :  { %14 = sbr.rel (!%p12_p4) target bundleno = 1 (0x1), region = 70 }

// kernel: resblock_apply.12
= control target key start
LH: loop header
LB: loop body
LE: loop exit
PB: predicated region body
PF: predicated region fallthrough
CT: control target
= control target key end

     0   :  { %s1139_s12 = smov 0   ;;  %s1141_s13 = smov 0   ;;  %s1287_s0 = inlined_call_operand.vmem [shape: bf16[512,32], index: 0, kind: input, shape index: {}]   ;;  %s1288_s1 = inlined_call_operand.vmem [shape: bf16[32,128], index: 1, kind: input, shape index: {}]   ;;  %s1289_s2 = inlined_call_operand.vmem [shape: f32[1,128], index: 2, kind: input, shape index: {}]   ;;  %s1290_s3 = inlined_call_operand.vmem [shape: f32[512,128], index: 3, kind: output, shape index: {}]  }
   0x1   :  { %s1143_s14 = smov 0  }
   0x2 LB: > { %s32_s15 = sadd.s32 1, %s1113_s13  ;;  %p953_p0 = scmp.ge.s32.totalorder %s1117_s14, 1  ;;  %s1117_s14 = sphi %s1143_s14, %s13_s14   ;;  %s1113_s13 = sphi %s1141_s13, %s1292_s13   ;;  %s1109_s12 = sphi %s1139_s12, %s1291_s12  }
   0x3   : > { %p34_p1 = scmp.ge.s32.totalorder %s32_s15, 2  ;;  %p188_p2 = scmp.lt.s32.totalorder %s1117_s14, 3 }
   0x5   : > { %s1294_s15 = smov (%p34_p1, %s32_s15), 0  ;;  %p189_p3 = pnand %p953_p0, %p188_p2 }
   0x6   : > { %v1077_v0 = vld [vmem:[%s1288_s1] sm:$0xff] (!%p189_p3)   ;;  %s954_s18 = sshll.u32 (!%p189_p3), %s1109_s12, 5  ;;  %v1078_v1 = vld [vmem:[%s1288_s1 + $0x8] sm:$0xff] (!%p189_p3)   ;;  %vm456_vm0 = vcmask (!%p189_p3), 261120  }
   0x7   : > { %192 = sbr.rel (%p189_p3) target bundleno = 262 (0x106), region = 32  ;;  %p230_p4 = scmp.lt.s32.totalorder (!%p189_p3), %s954_s18, 63  ;;  %1013 = vmatprep.subr.bf16.mxu0 (!%p189_p3), %v1077_v0  ;;  %1049 = vmatprep.subr.bf16.mxu1 (!%p189_p3), %v1077_v0  ;;  %v1207_v18 = vld [vmem:[%s1289_s2] ss:$0 sm:$0xff] (!%p189_p3) }
   0x8   : > { %1014 = vmatpush3.bf16.msra.mxu0 (!%p189_p3), %v1077_v0  ;;  %1051 = vmatpush3.bf16.msra.mxu1 (!%p189_p3), %v1077_v0 }
   0x9   : > { %1015 = vmatprep.subr.bf16.mxu0 (!%p189_p3), %v1078_v1  ;;  %1050 = vmatprep.subr.bf16.mxu1 (!%p189_p3), %v1078_v1 }
   0xc   : > { %1016 = vmatpush3.bf16.msra.mxu0 (!%p189_p3), %v1078_v1  ;;  %1052 = vmatpush3.bf16.msra.mxu1 (!%p189_p3), %v1078_v1 }
   0xe   : > { %s1296_s18 = smov (!%p230_p4, %s954_s18), 63 }
   0xf   : > { %s955_s21 = sshll.u32 %s1296_s18, 2  ;;  %s957_s25 = sshll.u32 %s1296_s18, 3 }
  0x10   : > { %s1169_s24 = scalar_lea.vmem %s1287_s0, %s955_s21  ;;  %s1212_s30 = scalar_lea.vmem %s1290_s3, %s957_s25 }
  0x11   : > { %v1079_v2 = vld [vmem:[%s1169_s24] sm:$0xff]   ;;  %v1081_v4 = vld [vmem:[%s1169_s24 + $0x8] sm:$0xff]   ;;  %v1083_v6 = vld [vmem:[%s1169_s24 + $0x10] sm:$0xff]  }
  0x12   : > { %v1080_v3 = vld [vmem:[%s1169_s24 + $0x40] sm:$0xff]   ;;  %1017 = vmatprep.mubr.msk.bf16.mxu0 %vm456_vm0, %v1079_v2  ;;  %v1082_v5 = vld [vmem:[%s1169_s24 + $0x48] sm:$0xff]   ;;  %v1084_v7 = vld [vmem:[%s1169_s24 + $0x50] sm:$0xff]  }
  0x13   : > { %1033 = vmatprep.mubr.msk.bf16.mxu1 %vm456_vm0, %v1080_v3  ;;  %1018 = vmatmul.mubr.msk.bf16.vlgmr.msra.gmra.mrb[0].mxu0 %vm456_vm0, %v1081_v4  ;;  %v1085_v8 = vld [vmem:[%s1169_s24 + $0x18] sm:$0xff]   ;;  %v1087_v10 = vld [vmem:[%s1169_s24 + $0x20] sm:$0xff]   ;;  %v1089_v12 = vld [vmem:[%s1169_s24 + $0x28] sm:$0xff]  }
  0x14   : > { %1034 = vmatmul.mubr.msk.bf16.vlgmr.msra.gmra.mrb[0].mxu1 %vm456_vm0, %v1082_v5  ;;  %1021 = vmatprep.mubr.msk.bf16.mxu0 %vm456_vm0, %v1083_v6  ;;  %v1086_v9 = vld [vmem:[%s1169_s24 + $0x58] sm:$0xff]   ;;  %v1088_v11 = vld [vmem:[%s1169_s24 + $0x60] sm:$0xff]   ;;  %v1090_v13 = vld [vmem:[%s1169_s24 + $0x68] sm:$0xff]  }
  0x15   : > { %1037 = vmatprep.mubr.msk.bf16.mxu1 %vm456_vm0, %v1084_v7  ;;  %v1091_v14 = vld [vmem:[%s1169_s24 + $0x30] sm:$0xff]   ;;  %v1093_v16 = vld [vmem:[%s1169_s24 + $0x38] sm:$0xff]  }
  0x16   : > { %v1092_v15 = vld [vmem:[%s1169_s24 + $0x70] sm:$0xff]   ;;  %v1094_v17 = vld [vmem:[%s1169_s24 + $0x78] sm:$0xff]  }
  0x1b   : > { %1022 = vmatmul.mubr.msk.bf16.gmra.mrb[4].mxu0 %vm456_vm0, %v1085_v8 }
  0x1c   : > { %1038 = vmatmul.mubr.msk.bf16.gmra.mrb[4].mxu1 %vm456_vm0, %v1086_v9  ;;  %1025 = vmatprep.mubr.msk.bf16.mxu0 %vm456_vm0, %v1087_v10 }
  0x1d   : > { %1041 = vmatprep.mubr.msk.bf16.mxu1 %vm456_vm0, %v1088_v11 }
  0x23   : > { %1026 = vmatmul.mubr.msk.bf16.gmra.mrb[8].mxu0 %vm456_vm0, %v1089_v12 }
  0x24   : > { %1042 = vmatmul.mubr.msk.bf16.gmra.mrb[8].mxu1 %vm456_vm0, %v1090_v13  ;;  %1029 = vmatprep.mubr.msk.bf16.mxu0 %vm456_vm0, %v1091_v14 }
  0x25   : > { %1045 = vmatprep.mubr.msk.bf16.mxu1 %vm456_vm0, %v1092_v15 }
  0x2b   : > { %1030 = vmatmul.mubr.msk.bf16.gmra.mrb[12].mxu0 %vm456_vm0, %v1093_v16 }
  0x2c   : > { %1046 = vmatmul.mubr.msk.bf16.gmra.mrb[12].mxu1 %vm456_vm0, %v1094_v17 }
  0xe6   : > { %v1019_v19 = vpop.f32.mrb[0].mxu0 }
  0xe7   : > { %v774_v20 = vadd.f32 %v1019_v19, %v1207_v18  ;;  %v1035_v21 = vpop.f32.mrb[0].mxu1  ;;  %v539_v22 = vpop.f32.mrb[1].mxu0 }
  0xe8   : > { %v790_v23 = vadd.f32 %v1035_v21, %v1207_v18  ;;  %v772_v24 = vadd.f32 %v1207_v18, %v539_v22  ;;  %v603_v25 = vpop.f32.mrb[1].mxu1  ;;  %v1020_v26 = vpop.f32.mrb[2].mxu0 }
  0xe9   : > { %806 = vst [vmem:[%s1212_s30 + $0x10] sm:$0xff] %v774_v20  ;;  %v788_v27 = vadd.f32 %v1207_v18, %v603_v25  ;;  %v775_v28 = vadd.f32 %v1020_v26, %v1207_v18  ;;  %v1036_v29 = vpop.f32.mrb[2].mxu1  ;;  %v542_v30 = vpop.f32.mrb[3].mxu0 }
  0xea   : > { %822 = vst [vmem:[%s1212_s30 + $0x90] sm:$0xff] %v790_v23  ;;  %804 = vst [vmem:[%s1212_s30] sm:$0xff] %v772_v24  ;;  %v791_v31 = vadd.f32 %v1036_v29, %v1207_v18  ;;  %v773_v32 = vadd.f32 %v1207_v18, %v542_v30  ;;  %v606_v33 = vpop.f32.mrb[3].mxu1 }
  0xeb   : > { %820 = vst [vmem:[%s1212_s30 + $0x80] sm:$0xff] %v788_v27  ;;  %807 = vst [vmem:[%s1212_s30 + $0x18] sm:$0xff] %v775_v28  ;;  %v789_v34 = vadd.f32 %v1207_v18, %v606_v33 }
  0xec   : > { %823 = vst [vmem:[%s1212_s30 + $0x98] sm:$0xff] %v791_v31  ;;  %805 = vst [vmem:[%s1212_s30 + $0x8] sm:$0xff] %v773_v32 }
  0xed   : > { %821 = vst [vmem:[%s1212_s30 + $0x88] sm:$0xff] %v789_v34 }
  0xee   : > { %v1023_v35 = vpop.f32.mrb[4].mxu0 }
  0xef   : > { %v778_v36 = vadd.f32 %v1023_v35, %v1207_v18  ;;  %v1039_v37 = vpop.f32.mrb[4].mxu1  ;;  %v555_v38 = vpop.f32.mrb[5].mxu0 }
  0xf0   : > { %v794_v39 = vadd.f32 %v1039_v37, %v1207_v18  ;;  %v776_v40 = vadd.f32 %v1207_v18, %v555_v38  ;;  %v619_v41 = vpop.f32.mrb[5].mxu1  ;;  %v1024_v42 = vpop.f32.mrb[6].mxu0 }
  0xf1   : > { %810 = vst [vmem:[%s1212_s30 + $0x30] sm:$0xff] %v778_v36  ;;  %v792_v43 = vadd.f32 %v1207_v18, %v619_v41  ;;  %v779_v44 = vadd.f32 %v1024_v42, %v1207_v18  ;;  %v1040_v45 = vpop.f32.mrb[6].mxu1  ;;  %v558_v46 = vpop.f32.mrb[7].mxu0 }
  0xf2   : > { %826 = vst [vmem:[%s1212_s30 + $0xb0] sm:$0xff] %v794_v39  ;;  %808 = vst [vmem:[%s1212_s30 + $0x20] sm:$0xff] %v776_v40  ;;  %v795_v47 = vadd.f32 %v1040_v45, %v1207_v18  ;;  %v777_v48 = vadd.f32 %v1207_v18, %v558_v46  ;;  %v622_v49 = vpop.f32.mrb[7].mxu1 }
  0xf3   : > { %824 = vst [vmem:[%s1212_s30 + $0xa0] sm:$0xff] %v792_v43  ;;  %811 = vst [vmem:[%s1212_s30 + $0x38] sm:$0xff] %v779_v44  ;;  %v793_v50 = vadd.f32 %v1207_v18, %v622_v49 }
  0xf4   : > { %827 = vst [vmem:[%s1212_s30 + $0xb8] sm:$0xff] %v795_v47  ;;  %809 = vst [vmem:[%s1212_s30 + $0x28] sm:$0xff] %v777_v48 }
  0xf5   : > { %825 = vst [vmem:[%s1212_s30 + $0xa8] sm:$0xff] %v793_v50 }
  0xf6   : > { %v1027_v51 = vpop.f32.mrb[8].mxu0 }
  0xf7   : > { %v782_v52 = vadd.f32 %v1027_v51, %v1207_v18  ;;  %v1043_v53 = vpop.f32.mrb[8].mxu1  ;;  %v571_v54 = vpop.f32.mrb[9].mxu0 }
  0xf8   : > { %v798_v55 = vadd.f32 %v1043_v53, %v1207_v18  ;;  %v780_v56 = vadd.f32 %v1207_v18, %v571_v54  ;;  %v635_v57 = vpop.f32.mrb[9].mxu1  ;;  %v1028_v58 = vpop.f32.mrb[10].mxu0 }
  0xf9   : > { %814 = vst [vmem:[%s1212_s30 + $0x50] sm:$0xff] %v782_v52  ;;  %v796_v59 = vadd.f32 %v1207_v18, %v635_v57  ;;  %v783_v60 = vadd.f32 %v1028_v58, %v1207_v18  ;;  %v1044_v61 = vpop.f32.mrb[10].mxu1  ;;  %v574_v62 = vpop.f32.mrb[11].mxu0 }
  0xfa   : > { %830 = vst [vmem:[%s1212_s30 + $0xd0] sm:$0xff] %v798_v55  ;;  %812 = vst [vmem:[%s1212_s30 + $0x40] sm:$0xff] %v780_v56  ;;  %v799_v63 = vadd.f32 %v1044_v61, %v1207_v18  ;;  %v781_v0 = vadd.f32 %v1207_v18, %v574_v62  ;;  %v638_v1 = vpop.f32.mrb[11].mxu1 }
  0xfb   : > { %828 = vst [vmem:[%s1212_s30 + $0xc0] sm:$0xff] %v796_v59  ;;  %815 = vst [vmem:[%s1212_s30 + $0x58] sm:$0xff] %v783_v60  ;;  %v797_v2 = vadd.f32 %v1207_v18, %v638_v1 }
  0xfc   : > { %831 = vst [vmem:[%s1212_s30 + $0xd8] sm:$0xff] %v799_v63  ;;  %813 = vst [vmem:[%s1212_s30 + $0x48] sm:$0xff] %v781_v0 }
  0xfd   : > { %829 = vst [vmem:[%s1212_s30 + $0xc8] sm:$0xff] %v797_v2 }
  0xfe   : > { %v1031_v3 = vpop.f32.mrb[12].mxu0 }
  0xff   : > { %v786_v4 = vadd.f32 %v1031_v3, %v1207_v18  ;;  %v1047_v5 = vpop.f32.mrb[12].mxu1  ;;  %v587_v6 = vpop.f32.mrb[13].mxu0 }
 0x100   : > { %v802_v7 = vadd.f32 %v1047_v5, %v1207_v18  ;;  %v784_v8 = vadd.f32 %v1207_v18, %v587_v6  ;;  %v651_v9 = vpop.f32.mrb[13].mxu1  ;;  %v1032_v10 = vpop.f32.mrb[14].mxu0 }
 0x101   : > { %818 = vst [vmem:[%s1212_s30 + $0x70] sm:$0xff] %v786_v4  ;;  %v800_v11 = vadd.f32 %v1207_v18, %v651_v9  ;;  %v787_v12 = vadd.f32 %v1032_v10, %v1207_v18  ;;  %v1048_v13 = vpop.f32.mrb[14].mxu1  ;;  %v590_v14 = vpop.f32.mrb[15].mxu0 }
 0x102   : > { %834 = vst [vmem:[%s1212_s30 + $0xf0] sm:$0xff] %v802_v7  ;;  %816 = vst [vmem:[%s1212_s30 + $0x60] sm:$0xff] %v784_v8  ;;  %v803_v15 = vadd.f32 %v1048_v13, %v1207_v18  ;;  %v785_v16 = vadd.f32 %v1207_v18, %v590_v14  ;;  %v654_v17 = vpop.f32.mrb[15].mxu1 }
 0x103   : > { %832 = vst [vmem:[%s1212_s30 + $0xe0] sm:$0xff] %v800_v11  ;;  %819 = vst [vmem:[%s1212_s30 + $0x78] sm:$0xff] %v787_v12  ;;  %v801_v19 = vadd.f32 %v1207_v18, %v654_v17 }
 0x104   : > { %835 = vst [vmem:[%s1212_s30 + $0xf8] sm:$0xff] %v803_v15  ;;  %817 = vst [vmem:[%s1212_s30 + $0x68] sm:$0xff] %v785_v16 }
 0x105   : > { %833 = vst [vmem:[%s1212_s30 + $0xe8] sm:$0xff] %v801_v19 }
 0x106 PF: > { %s13_s14 = sadd.s32 1, %s1117_s14   ;;  %s1291_s12 = smov %s1113_s13 }
 0x107   : > { %p10_p5 = scmp.ge.s32.totalorder %s13_s14, 4   ;;  %s1292_s13 = smov %s1294_s15 }
 0x109   :  { %12 = sbr.rel (!%p10_p5) target bundleno = 2 (0x2), region = 76 }

// kernel: resblock_apply.9
= control target key start
LH: loop header
LB: loop body
LE: loop exit
PB: predicated region body
PF: predicated region fallthrough
CT: control target
= control target key end

     0   :  { %s1584_s18 = smov 0   ;;  %s2217_s0 = inlined_call_operand.vmem [shape: f32[2,256,32], index: 0, kind: input, shape index: {}]   ;;  %s2218_s1 = inlined_call_operand.vmem [shape: f32[1,32], index: 1, kind: input, shape index: {}]   ;;  %s2219_s2 = inlined_call_operand.vmem [shape: f32[1,32], index: 2, kind: input, shape index: {}]   ;;  %s2220_s3 = inlined_call_operand.vmem [shape: f32[32,8], index: 3, kind: input, shape index: {}]   ;;  %s2221_s4 = inlined_call_operand.vmem [shape: f32[8,32], index: 4, kind: input, shape index: {}]   ;;  %s2222_s5 = inlined_call_operand.vmem [shape: f32[2,256,32], index: 5, kind: output, shape index: {}]  }
   0x1 LB: > { %s1158_s19 = sadd.s32 4294967295, %s1548_s18   ;;  %p1162_p0 = scmp.ge.s32.totalorder %s1548_s18, 1  ;;  %s1548_s18 = sphi %s1584_s18, %s15_s18  }
   0x2   : > { %p187_p1 = scmp.lt.s32.totalorder %s1548_s18, 3 }
   0x4   : > { %p188_p2 = pnand %p1162_p0, %p187_p1 }
   0x6   : > { %191 = sbr.rel (%p188_p2) target bundleno = 804 (0x324), region = 40 }
   0xd   : > { %p215_p3 = scmp.lt.s32.totalorder %s1158_s19, 1  ;;  %v1550_v0 = vmov 1.0   ;;  %vm1552_vm0 = vmmov 0   ;;  %vm433_vm1 = vcmask 261120   ;;  %vm586_vm2 = vcmask 64512  }
   0xe   : > { %321 = vmatprep.mubr.f32.mxu0 %v1550_v0  ;;  %423 = vmatprep.mubr.f32.mxu1 %v1550_v0 }
   0xf   : > { %s2227_s19 = smov (!%p215_p3, %s1158_s19), 1 }
  0x10   : > { %s1206_s20 = sshll.u32 %s2227_s19, 8 }
  0x11   : > { %s1602_s23 = scalar_lea.vmem %s2217_s0, %s1206_s20  ;;  %s2104_s15 = scalar_lea.vmem %s2222_s5, %s1206_s20 }
  0x12   : > { %v1605_v1 = vld [vmem:[%s1602_s23 + $0x80] sm:$0xff]  ;;  %v1608_v2 = vld [vmem:[%s1602_s23 + $0x88] sm:$0xff]  ;;  %v1625_v9 = vld [vmem:[%s1602_s23 + $0x90] sm:$0xff] }
  0x13   : > { %v1611_v3 = vld [vmem:[%s1602_s23] sm:$0xff]  ;;  %v1324_v4 = vpack.c.bf16 %v1608_v2, %v1605_v1  ;;  %v1616_v5 = vld [vmem:[%s1602_s23 + $0x8] sm:$0xff]  ;;  %v343_v6 = vmul.f32 %v1605_v1, %v1605_v1  ;;  %v344_v7 = vmul.f32 %v1608_v2, %v1608_v2  ;;  %v1628_v10 = vld [vmem:[%s1602_s23 + $0x98] sm:$0xff]  ;;  %v345_v16 = vmul.f32 %v1625_v9, %v1625_v9 }
  0x14   : > { %v327_v8 = vmul.f32 %v1611_v3, %v1611_v3  ;;  %v1326_v11 = vpack.c.bf16 %v1616_v5, %v1611_v3  ;;  %v328_v12 = vmul.f32 %v1616_v5, %v1616_v5  ;;  %v1328_v13 = vpack.c.bf16 %v1628_v10, %v1625_v9  ;;  %v1637_v14 = vld [vmem:[%s1602_s23 + $0x10] sm:$0xff]  ;;  %v1640_v15 = vld [vmem:[%s1602_s23 + $0x18] sm:$0xff]  ;;  %v1645_v17 = vld [vmem:[%s1602_s23 + $0xa0] sm:$0xff] }
  0x15   : > { %1325 = vmatprep.subr.bf16.mxu0 %v1324_v4  ;;  %v1356_v18 = vpack.c.bf16 %v344_v7, %v343_v6  ;;  %v346_v19 = vmul.f32 %v1628_v10, %v1628_v10  ;;  %v329_v20 = vmul.f32 %v1637_v14, %v1637_v14  ;;  %v1652_v21 = vld [vmem:[%s1602_s23 + $0xa8] sm:$0xff]  ;;  %v1655_v22 = vld [vmem:[%s1602_s23 + $0x20] sm:$0xff]  ;;  %v1330_v25 = vpack.c.bf16 %v1640_v15, %v1637_v14  ;;  %v1667_v28 = vld [vmem:[%s1602_s23 + $0xb0] sm:$0xff] }
  0x16   : > { %v1658_v23 = vld [vmem:[%s1602_s23 + $0x28] sm:$0xff]  ;;  %1327 = vmatpush3.bf16.msra.mxu0 %v1326_v11  ;;  %v1358_v24 = vpack.c.bf16 %v328_v12, %v327_v8  ;;  %v330_v26 = vmul.f32 %v1640_v15, %v1640_v15  ;;  %v1332_v27 = vpack.c.bf16 %v1652_v21, %v1645_v17  ;;  %v1670_v29 = vld [vmem:[%s1602_s23 + $0xb8] sm:$0xff]  ;;  %v347_v31 = vmul.f32 %v1645_v17, %v1645_v17  ;;  %v1681_v37 = vld [vmem:[%s1602_s23 + $0x30] sm:$0xff] }
  0x17   : > { %1357 = vmatprep.subr.bf16.mxu1 %v1356_v18  ;;  %1329 = vmatprep.subr.bf16.mxu0 %v1328_v13  ;;  %v1360_v30 = vpack.c.bf16 %v346_v19, %v345_v16  ;;  %v348_v32 = vmul.f32 %v1652_v21, %v1652_v21  ;;  %v331_v34 = vmul.f32 %v1655_v22, %v1655_v22  ;;  %v1684_v38 = vld [vmem:[%s1602_s23 + $0x38] sm:$0xff]  ;;  %v1693_v42 = vld [vmem:[%s1602_s23 + $0xc0] sm:$0xff]  ;;  %v1696_v43 = vld [vmem:[%s1602_s23 + $0xc8] sm:$0xff] }
  0x18   : > { %1359 = vmatpush3.bf16.msra.mxu1 %v1358_v24  ;;  %v1362_v33 = vpack.c.bf16 %v330_v26, %v329_v20  ;;  %v332_v35 = vmul.f32 %v1658_v23, %v1658_v23  ;;  %v349_v39 = vmul.f32 %v1667_v28, %v1667_v28  ;;  %v350_v40 = vmul.f32 %v1670_v29, %v1670_v29  ;;  %v1705_v49 = vld [vmem:[%s1602_s23 + $0x40] sm:$0xff]  ;;  %v1708_v50 = vld [vmem:[%s1602_s23 + $0x48] sm:$0xff]  ;;  %v1717_v54 = vld [vmem:[%s1602_s23 + $0xd0] sm:$0xff] }
  0x19   : > { %1361 = vmatprep.subr.bf16.mxu1 %v1360_v30  ;;  %v1364_v36 = vpack.c.bf16 %v348_v32, %v347_v31  ;;  %v1334_v41 = vpack.c.bf16 %v1658_v23, %v1655_v22  ;;  %v1336_v44 = vpack.c.bf16 %v1670_v29, %v1667_v28  ;;  %v333_v46 = vmul.f32 %v1681_v37, %v1681_v37  ;;  %v1720_v55 = vld [vmem:[%s1602_s23 + $0xd8] sm:$0xff]  ;;  %v1729_v61 = vld [vmem:[%s1602_s23 + $0x50] sm:$0xff]  ;;  %v1741_v7 = vld [vmem:[%s1602_s23 + $0xe0] sm:$0xff] }
  0x1a   : > { %1331 = vmatpush3.bf16.msra.mxu0 %v1330_v25  ;;  %v1366_v45 = vpack.c.bf16 %v332_v35, %v331_v34  ;;  %v334_v47 = vmul.f32 %v1684_v38, %v1684_v38  ;;  %v1368_v48 = vpack.c.bf16 %v350_v40, %v349_v39  ;;  %v351_v51 = vmul.f32 %v1693_v42, %v1693_v42  ;;  %v1732_v62 = vld [vmem:[%s1602_s23 + $0x58] sm:$0xff]  ;;  %v1744_v8 = vld [vmem:[%s1602_s23 + $0xe8] sm:$0xff]  ;;  %v1753_v19 = vld [vmem:[%s1602_s23 + $0x60] sm:$0xff] }
  0x1b   : > { %1333 = vmatprep.subr.bf16.mxu0 %v1332_v27  ;;  %v352_v52 = vmul.f32 %v1696_v43, %v1696_v43  ;;  %v1338_v53 = vpack.c.bf16 %v1684_v38, %v1681_v37  ;;  %v1340_v56 = vpack.c.bf16 %v1696_v43, %v1693_v42  ;;  %v335_v58 = vmul.f32 %v1705_v49, %v1705_v49  ;;  %v1756_v20 = vld [vmem:[%s1602_s23 + $0x68] sm:$0xff]  ;;  %v1765_v27 = vld [vmem:[%s1602_s23 + $0xf0] sm:$0xff]  ;;  %v1768_v30 = vld [vmem:[%s1602_s23 + $0xf8] sm:$0xff] }
  0x1c   : > { %1363 = vmatpush3.bf16.msra.mxu1 %v1362_v33  ;;  %v1370_v57 = vpack.c.bf16 %v334_v47, %v333_v46  ;;  %v336_v59 = vmul.f32 %v1708_v50, %v1708_v50  ;;  %v353_v63 = vmul.f32 %v1717_v54, %v1717_v54  ;;  %v354_v4 = vmul.f32 %v1720_v55, %v1720_v55  ;;  %v1780_v39 = vld [vmem:[%s1602_s23 + $0x78] sm:$0xff] }
  0x1d   : > { %1365 = vmatprep.subr.bf16.mxu1 %v1364_v36  ;;  %v1372_v60 = vpack.c.bf16 %v352_v52, %v351_v51  ;;  %v1342_v6 = vpack.c.bf16 %v1708_v50, %v1705_v49  ;;  %v1344_v11 = vpack.c.bf16 %v1720_v55, %v1717_v54  ;;  %v337_v13 = vmul.f32 %v1729_v61, %v1729_v61  ;;  %v1777_v36 = vld [vmem:[%s1602_s23 + $0x70] sm:$0xff] }
  0x1e   : > { %1335 = vmatpush3.bf16.msra.mxu0 %v1334_v41  ;;  %v1374_v12 = vpack.c.bf16 %v336_v59, %v335_v58  ;;  %v338_v16 = vmul.f32 %v1732_v62, %v1732_v62  ;;  %v1376_v18 = vpack.c.bf16 %v354_v4, %v353_v63  ;;  %v355_v24 = vmul.f32 %v1741_v7, %v1741_v7  ;;  %v432_v63 = vld [vmem:[%s2220_s3 + $0x18] sm:$0xff] }
  0x1f   : > { %1337 = vmatprep.subr.bf16.mxu0 %v1336_v44  ;;  %v356_v25 = vmul.f32 %v1744_v8, %v1744_v8  ;;  %v1346_v26 = vpack.c.bf16 %v1732_v62, %v1729_v61  ;;  %v1348_v31 = vpack.c.bf16 %v1744_v8, %v1741_v7  ;;  %v339_v33 = vmul.f32 %v1753_v19, %v1753_v19 }
  0x20   : > { %1367 = vmatpush3.bf16.msra.mxu1 %v1366_v45  ;;  %v1378_v32 = vpack.c.bf16 %v338_v16, %v337_v13  ;;  %v340_v34 = vmul.f32 %v1756_v20, %v1756_v20  ;;  %v357_v40 = vmul.f32 %v1765_v27, %v1765_v27  ;;  %v358_v41 = vmul.f32 %v1768_v30, %v1768_v30 }
  0x21   : > { %1369 = vmatprep.subr.bf16.mxu1 %v1368_v48  ;;  %v1380_v35 = vpack.c.bf16 %v356_v25, %v355_v24  ;;  %v1350_v44 = vpack.c.bf16 %v1756_v20, %v1753_v19  ;;  %v1352_v45 = vpack.c.bf16 %v1768_v30, %v1765_v27  ;;  %v341_v47 = vmul.f32 %v1777_v36, %v1777_v36  ;;  %v585_v24 = vld [vmem:[%s2221_s4] sm:$0xff] }
  0x22   : > { %1339 = vmatpush3.bf16.msra.mxu0 %v1338_v53  ;;  %v1382_v46 = vpack.c.bf16 %v340_v34, %v339_v33  ;;  %v342_v48 = vmul.f32 %v1780_v39, %v1780_v39  ;;  %v1384_v51 = vpack.c.bf16 %v358_v41, %v357_v40  ;;  %v1354_v52 = vpack.c.bf16 %v1780_v39, %v1777_v36  ;;  %v429_v53 = vld [vmem:[%s2220_s3] sm:$0xff] }
  0x23   : > { %1341 = vmatprep.subr.bf16.mxu0 %v1340_v56  ;;  %v430_v56 = vld [vmem:[%s2220_s3 + $0x8] sm:$0xff]  ;;  %v1551_v59 = vmov 0.0|0.0  }
  0x24   : > { %1371 = vmatpush3.bf16.msra.mxu1 %v1370_v57  ;;  %v1386_v57 = vpack.c.bf16 %v342_v48, %v341_v47  ;;  %v1389_v58 = vpack.c.bf16 %v430_v56, %v429_v53 }
  0x25   : > { %1373 = vmatprep.subr.bf16.mxu1 %v1372_v60  ;;  %v431_v60 = vld [vmem:[%s2220_s3 + $0x10] sm:$0xff] }
  0x26   : > { %1343 = vmatpush3.bf16.msra.mxu0 %v1342_v6  ;;  %v1392_v4 = vpack.c.bf16 %v432_v63, %v431_v60  ;;  %v1553_v6 = vmov 0.0  }
  0x27   : > { %1345 = vmatprep.subr.bf16.mxu0 %v1344_v11 }
  0x28   : > { %1375 = vmatpush3.bf16.msra.mxu1 %v1374_v12 }
  0x29   : > { %1377 = vmatprep.subr.bf16.mxu1 %v1376_v18 }
  0x2a   : > { %1347 = vmatpush3.bf16.msra.mxu0 %v1346_v26 }
  0x2b   : > { %1349 = vmatprep.subr.bf16.mxu0 %v1348_v31 }
  0x2c   : > { %1379 = vmatpush3.bf16.msra.mxu1 %v1378_v32 }
  0x2d   : > { %1381 = vmatprep.subr.bf16.mxu1 %v1380_v35 }
  0x2e   : > { %1351 = vmatpush3.bf16.msra.mxu0 %v1350_v44 }
  0x2f   : > { %1353 = vmatprep.subr.bf16.mxu0 %v1352_v45  ;;  %v734_v45 = vlaneseq }
  0x30   : > { %1383 = vmatpush3.bf16.msra.mxu1 %v1382_v46 }
  0x31   : > { %1385 = vmatprep.subr.bf16.mxu1 %v1384_v51  ;;  %v735_v48 = vshrl.u32 %v734_v45, 7 }
  0x32   : > { %1355 = vmatpush3.bf16.msra.mxu0 %v1354_v52 }
  0x33   : > { %1388 = vmatprep.subr.bf16.mxu0 %v1551_v59  ;;  %v736_v51 = vsub.s32 0, %v735_v48 }
  0x34   : > { %1387 = vmatpush3.bf16.msra.mxu1 %v1386_v57 }
  0x35   : > { %322 = vmatmul.mubr.f32.vlgmr.msra.gmra.mrb[0].mxu0 %v1550_v0  ;;  %1394 = vmatprep.subr.bf16.mxu1 %v1551_v59 }
  0x36   : > { %1390 = vmatpush3.bf16.msra.mxu0 %v1389_v58  ;;  %1300 = vmatprep.mubr.msk.f32.mxu0 %vm1552_vm0, %v1553_v6 }
  0x37   : > { %424 = vmatmul.mubr.f32.vlgmr.msra.gmra.mrb[0].mxu1 %v1550_v0  ;;  %1391 = vmatprep.subr.bf16.mxu0 %v1551_v59 }
  0x38   : > { %1396 = vmatpush3.bf16.msra.mxu1 %v1389_v58  ;;  %1311 = vmatprep.mubr.msk.f32.mxu1 %vm1552_vm0, %v1553_v6 }
  0x39   : > { %1397 = vmatprep.subr.bf16.mxu1 %v1551_v59 }
  0x3a   : > { %1393 = vmatpush3.bf16.msra.mxu0 %v1392_v4 }
  0x3b   : > { %1314 = vmatprep.subr.mxu0 %v1553_v6 }
  0x3c   : > { %1399 = vmatpush3.bf16.msra.mxu1 %v1392_v4 }
  0x3d   : > { %1319 = vmatprep.subr.mxu1 %v1553_v6 }
 0x108   : > { %v1240_v0 = vpop.f32.mrb[0].mxu0 }
 0x109   : > { %v1241_v11 = vpop.f32.mrb[1].mxu0 }
 0x10a   : > { %v1242_v12 = vadd.f32 %v1241_v11, %v1240_v0  ;;  %v1275_v13 = vpop.f32.mrb[0].mxu1 }
 0x10b   : > { %v1276_v16 = vpop.f32.mrb[1].mxu1 }
 0x10c   : > { %v1277_v18 = vadd.f32 %v1276_v16, %v1275_v13  ;;  %1301 = vmatmul.mubr.msk.f32.vlgmr.msra.gmra.mrb[2].mxu0 %vm433_vm1, %v1242_v12 }
 0x10d   : > { %1316 = vmatprep.mubr.msk.f32.mxu0 %vm1552_vm0, %v1553_v6  ;;  %1315 = vmatpush3.msra.mxu0 %v585_v24 }
 0x10e   : > { %1312 = vmatmul.mubr.msk.f32.vlgmr.msra.gmra.mrb[2].mxu1 %vm433_vm1, %v1277_v18 }
 0x10f   : > { %1321 = vmatprep.mubr.msk.f32.mxu1 %vm1552_vm0, %v1553_v6  ;;  %1320 = vmatpush3.msra.mxu1 %v585_v24 }
 0x1df   : > { %v503_v25 = vpop.f32.mrb[2].mxu0 }
 0x1e0   : > { %v581_v26 = vmul.f32 0.0009765625, %v503_v25  ;;  %v1302_v31 = vpop.f32.mrb[3].mxu0 }
 0x1e1   : > { %v576_v32 = vpop.f32.mrb[2].mxu1 }
 0x1e2   : > { %v583_v33 = vmul.f32 %v581_v26, %v581_v26  ;;  %v582_v34 = vmul.f32 0.0009765625, %v576_v32  ;;  %v1313_v35 = vpop.f32.mrb[3].mxu1  ;;  %1317 = vmatmul.mubr.msk.f32.vlgmr.msra.gmra.mrb[4].mxu0 %vm586_vm2, %v581_v26 }
 0x1e4   : > { %v584_v40 = vsub.f32 %v582_v34, %v583_v33 }
 0x1e6   : > { %1322 = vmatmul.mubr.msk.f32.vlgmr.msra.gmra.mrb[4].mxu1 %vm586_vm2, %v584_v40 }
 0x2b5   : > { %v656_v41 = vpop.f32.mrb[4].mxu0 }
 0x2b6   : > { %v1318_v44 = vpop.f32.mrb[5].mxu0  ;;  %v1819_v53 = vrot.slane %v656_v41, %v736_v51 }
 0x2b8   : > { %v738_v56 = vsub.f32 %v1611_v3, %v1819_v53  ;;  %v739_v57 = vsub.f32 %v1616_v5, %v1819_v53  ;;  %v740_v58 = vsub.f32 %v1637_v14, %v1819_v53  ;;  %v741_v59 = vsub.f32 %v1640_v15, %v1819_v53  ;;  %v770_v15 = vld [vmem:[%s2218_s1] sm:$0x1] }
 0x2b9   : > { %v729_v46 = vpop.f32.mrb[4].mxu1  ;;  %v742_v60 = vsub.f32 %v1655_v22, %v1819_v53  ;;  %v743_v63 = vsub.f32 %v1658_v23, %v1819_v53  ;;  %v744_v4 = vsub.f32 %v1681_v37, %v1819_v53  ;;  %v745_v3 = vsub.f32 %v1684_v38, %v1819_v53 }
 0x2ba   : > { %v1323_v47 = vpop.f32.mrb[5].mxu1  ;;  %v730_v52 = vadd.f32 1e-05, %v729_v46  ;;  %v746_v5 = vsub.f32 %v1705_v49, %v1819_v53  ;;  %v747_v14 = vsub.f32 %v1708_v50, %v1819_v53  ;;  %v748_v22 = vsub.f32 %v1729_v61, %v1819_v53 }
 0x2bb   : > { %v749_v23 = vsub.f32 %v1732_v62, %v1819_v53  ;;  %v750_v37 = vsub.f32 %v1753_v19, %v1819_v53  ;;  %v751_v38 = vsub.f32 %v1756_v20, %v1819_v53  ;;  %v752_v50 = vsub.f32 %v1777_v36, %v1819_v53 }
 0x2bc   : > { %1412 = vrsqrt.f32 %v730_v52  ;;  %v753_v6 = vsub.f32 %v1780_v39, %v1819_v53  ;;  %v754_v0 = vsub.f32 %v1605_v1, %v1819_v53  ;;  %v755_v61 = vsub.f32 %v1608_v2, %v1819_v53 }
 0x2bd   : > { %v756_v62 = vsub.f32 %v1625_v9, %v1819_v53  ;;  %v757_v19 = vsub.f32 %v1628_v10, %v1819_v53  ;;  %v758_v20 = vsub.f32 %v1645_v17, %v1819_v53  ;;  %v759_v36 = vsub.f32 %v1652_v21, %v1819_v53 }
 0x2be   : > { %v760_v39 = vsub.f32 %v1667_v28, %v1819_v53  ;;  %v761_v1 = vsub.f32 %v1670_v29, %v1819_v53  ;;  %v762_v2 = vsub.f32 %v1693_v42, %v1819_v53  ;;  %v763_v9 = vsub.f32 %v1696_v43, %v1819_v53 }
 0x2bf   : > { %v764_v10 = vsub.f32 %v1717_v54, %v1819_v53  ;;  %v765_v17 = vsub.f32 %v1720_v55, %v1819_v53  ;;  %v766_v21 = vsub.f32 %v1741_v7, %v1819_v53  ;;  %v767_v28 = vsub.f32 %v1744_v8, %v1819_v53 }
 0x2c0   : > { %v768_v29 = vsub.f32 %v1765_v27, %v1819_v53  ;;  %v769_v42 = vsub.f32 %v1768_v30, %v1819_v53 }
 0x2c6   : > { %v1413_v49 = vpop.eup %1412 }
 0x2c7   : > { %v771_v11 = vmul.f32 %v1413_v49, %v770_v15 }
 0x2c9   : > { %v775_v12 = vrot.slane %v771_v11, %v736_v51 }
 0x2cb   : > { %v776_v43 = vmul.f32 %v775_v12, %v738_v56  ;;  %v777_v13 = vmul.f32 %v775_v12, %v739_v57  ;;  %v778_v16 = vmul.f32 %v775_v12, %v740_v58  ;;  %v779_v54 = vmul.f32 %v775_v12, %v741_v59 }
 0x2cc   : > { %v780_v18 = vmul.f32 %v775_v12, %v742_v60  ;;  %v781_v24 = vmul.f32 %v775_v12, %v743_v63  ;;  %v782_v55 = vmul.f32 %v775_v12, %v744_v4  ;;  %v783_v25 = vmul.f32 %v775_v12, %v745_v3  ;;  %v1915_v60 = vld [vmem:[%s2219_s2] ss:$0 sm:$0xff] }
 0x2cd   : > { %v784_v26 = vmul.f32 %v775_v12, %v746_v5  ;;  %v785_v31 = vmul.f32 %v775_v12, %v747_v14  ;;  %v786_v7 = vmul.f32 %v775_v12, %v748_v22  ;;  %v787_v32 = vmul.f32 %v775_v12, %v749_v23 }
 0x2ce   : > { %v788_v33 = vmul.f32 %v775_v12, %v750_v37  ;;  %v789_v8 = vmul.f32 %v775_v12, %v751_v38  ;;  %v790_v34 = vmul.f32 %v775_v12, %v752_v50  ;;  %v791_v35 = vmul.f32 %v775_v12, %v753_v6 }
 0x2cf   : > { %v792_v27 = vmul.f32 %v775_v12, %v754_v0  ;;  %v793_v40 = vmul.f32 %v775_v12, %v755_v61  ;;  %v794_v41 = vmul.f32 %v775_v12, %v756_v62  ;;  %v795_v30 = vmul.f32 %v775_v12, %v757_v19 }
 0x2d0   : > { %v1888_v44 = vmul.f32 %v775_v12, %v758_v20  ;;  %v1890_v45 = vmul.f32 %v775_v12, %v759_v36  ;;  %v1892_v46 = vmul.f32 %v775_v12, %v760_v39  ;;  %v1894_v47 = vmul.f32 %v775_v12, %v761_v1 }
 0x2d1   : > { %v1896_v48 = vmul.f32 %v775_v12, %v762_v2  ;;  %v1898_v51 = vmul.f32 %v775_v12, %v763_v9  ;;  %v1900_v52 = vmul.f32 %v775_v12, %v764_v10  ;;  %v1902_v53 = vmul.f32 %v775_v12, %v765_v17 }
 0x2d2   : > { %v1904_v56 = vmul.f32 %v775_v12, %v766_v21  ;;  %v1906_v57 = vmul.f32 %v775_v12, %v767_v28  ;;  %v1908_v58 = vmul.f32 %v775_v12, %v768_v29  ;;  %v1910_v59 = vmul.f32 %v775_v12, %v769_v42 }
 0x2d3   : > { %v1918_v63 = vadd.f32 %v1915_v60, %v776_v43  ;;  %v1921_v4 = vadd.f32 %v1915_v60, %v777_v13  ;;  %v1924_v3 = vadd.f32 %v1915_v60, %v778_v16  ;;  %v1927_v5 = vadd.f32 %v1915_v60, %v779_v54 }
 0x2d4   : > { %v1930_v14 = vadd.f32 %v1915_v60, %v780_v18  ;;  %v1933_v15 = vadd.f32 %v1915_v60, %v781_v24  ;;  %v1936_v22 = vadd.f32 %v1915_v60, %v782_v55  ;;  %v1942_v49 = vadd.f32 %v1915_v60, %v783_v25 }
 0x2d5   : > { %v1172_v23 = vmul.f32 -1.442695, %v1918_v63  ;;  %v1173_v37 = vmul.f32 -1.442695, %v1921_v4  ;;  %v1174_v38 = vmul.f32 -1.442695, %v1924_v3  ;;  %v1946_v6 = vadd.f32 %v1915_v60, %v784_v26 }
 0x2d6   : > { %v1175_v50 = vmul.f32 -1.442695, %v1927_v5  ;;  %v1176_v0 = vmul.f32 -1.442695, %v1930_v14  ;;  %v1950_v61 = vadd.f32 %v1915_v60, %v785_v31  ;;  %v1177_v62 = vmul.f32 -1.442695, %v1933_v15 }
 0x2d7   : > { %1414 = vpow2.f32 %v1172_v23  ;;  %v1954_v19 = vadd.f32 %v1915_v60, %v786_v7  ;;  %v1178_v20 = vmul.f32 -1.442695, %v1936_v22  ;;  %v1958_v11 = vadd.f32 %v1915_v60, %v787_v32 }
 0x2d8   : > { %1416 = vpow2.f32 %v1173_v37  ;;  %v1179_v36 = vmul.f32 -1.442695, %v1942_v49  ;;  %v1962_v39 = vadd.f32 %v1915_v60, %v788_v33  ;;  %v1180_v1 = vmul.f32 -1.442695, %v1946_v6 }
 0x2d9   : > { %1418 = vpow2.f32 %v1174_v38  ;;  %v1966_v2 = vadd.f32 %v1915_v60, %v789_v8  ;;  %v1181_v9 = vmul.f32 -1.442695, %v1950_v61  ;;  %v1970_v10 = vadd.f32 %v1915_v60, %v790_v34 }
 0x2da   : > { %1420 = vpow2.f32 %v1175_v50  ;;  %v1182_v17 = vmul.f32 -1.442695, %v1954_v19  ;;  %v1974_v12 = vadd.f32 %v1915_v60, %v791_v35  ;;  %v1183_v21 = vmul.f32 -1.442695, %v1958_v11 }
 0x2db   : > { %1422 = vpow2.f32 %v1176_v0  ;;  %v1978_v28 = vadd.f32 %v1915_v60, %v792_v27  ;;  %v1184_v29 = vmul.f32 -1.442695, %v1962_v39  ;;  %v1982_v42 = vadd.f32 %v1915_v60, %v793_v40 }
 0x2dc   : > { %1424 = vpow2.f32 %v1177_v62  ;;  %v1185_v43 = vmul.f32 -1.442695, %v1966_v2  ;;  %v1988_v16 = vadd.f32 %v1915_v60, %v794_v41  ;;  %v1186_v54 = vmul.f32 -1.442695, %v1970_v10 }
 0x2dd   : > { %1426 = vpow2.f32 %v1178_v20  ;;  %v1994_v24 = vadd.f32 %v1915_v60, %v795_v30  ;;  %v1187_v55 = vmul.f32 -1.442695, %v1974_v12  ;;  %v2001_v26 = vadd.f32 %v1915_v60, %v1888_v44 }
 0x2de   : > { %1428 = vpow2.f32 %v1179_v36  ;;  %v1188_v31 = vmul.f32 -1.442695, %v1978_v28  ;;  %v2008_v32 = vadd.f32 %v1915_v60, %v1890_v45  ;;  %v1189_v33 = vmul.f32 -1.442695, %v1982_v42 }
 0x2df   : > { %1430 = vpow2.f32 %v1180_v1  ;;  %v2015_v34 = vadd.f32 %v1915_v60, %v1892_v46  ;;  %v1190_v35 = vmul.f32 -1.442695, %v1988_v16  ;;  %v2022_v40 = vadd.f32 %v1915_v60, %v1894_v47 }
 0x2e0   : > { %1432 = vpow2.f32 %v1181_v9  ;;  %v1191_v41 = vmul.f32 -1.442695, %v1994_v24  ;;  %v2027_v44 = vadd.f32 %v1915_v60, %v1896_v48  ;;  %v1192_v45 = vmul.f32 -1.442695, %v2001_v26 }
 0x2e1   : > { %v1985_v13 = vpop.eup %1414  ;;  %1434 = vpow2.f32 %v1182_v17  ;;  %v2032_v23 = vadd.f32 %v1915_v60, %v1898_v51  ;;  %v1193_v47 = vmul.f32 -1.442695, %v2008_v32  ;;  %v2037_v38 = vadd.f32 %v1915_v60, %v1900_v52 }
 0x2e2   : > { %v1991_v18 = vpop.eup %1416  ;;  %1436 = vpow2.f32 %v1183_v21  ;;  %v1194_v48 = vmul.f32 -1.442695, %v2015_v34  ;;  %v2042_v0 = vadd.f32 %v1915_v60, %v1902_v53  ;;  %v1195_v51 = vmul.f32 -1.442695, %v2022_v40 }
 0x2e3   : > { %v1997_v25 = vpop.eup %1418  ;;  %1438 = vpow2.f32 %v1184_v29  ;;  %v2047_v20 = vadd.f32 %v1915_v60, %v1904_v56  ;;  %v1196_v52 = vmul.f32 -1.442695, %v2027_v44  ;;  %v2052_v1 = vadd.f32 %v1915_v60, %v1906_v57 }
 0x2e4   : > { %v2004_v7 = vpop.eup %1420  ;;  %1440 = vpow2.f32 %v1185_v43  ;;  %v1197_v53 = vmul.f32 -1.442695, %v2032_v23  ;;  %v2057_v17 = vadd.f32 %v1915_v60, %v1908_v58  ;;  %v1198_v56 = vmul.f32 -1.442695, %v2037_v38 }
 0x2e5   : > { %v2011_v8 = vpop.eup %1422  ;;  %1442 = vpow2.f32 %v1186_v54  ;;  %v2062_v29 = vadd.f32 %v1915_v60, %v1910_v59  ;;  %v1199_v57 = vmul.f32 -1.442695, %v2042_v0  ;;  %v1200_v54 = vmul.f32 -1.442695, %v2047_v20 }
 0x2e6   : > { %v2018_v27 = vpop.eup %1424  ;;  %1444 = vpow2.f32 %v1187_v55  ;;  %v1201_v58 = vmul.f32 -1.442695, %v2052_v1 }
 0x2e7   : > { %v1427_v30 = vpop.eup %1426  ;;  %1446 = vpow2.f32 %v1188_v31  ;;  %2224 = vst [vmem:[#allocation2_spill] sm:$0xff] %v2062_v29  ;;  %v1203_v59 = vmul.f32 -1.442695, %v2062_v29 }
 0x2e8   : > { %v1429_v46 = vpop.eup %1428  ;;  %1448 = vpow2.f32 %v1189_v33  ;;  %v1202_v33 = vmul.f32 -1.442695, %v2057_v17 }
 0x2e9   : > { %v1431_v37 = vpop.eup %1430  ;;  %1450 = vpow2.f32 %v1190_v35 }
 0x2ea   : > { %v1433_v50 = vpop.eup %1432  ;;  %1452 = vpow2.f32 %v1191_v41  ;;  %v943_v41 = vadd.f32 1.0, %v1985_v13 }
 0x2eb   : > { %v1435_v62 = vpop.eup %1434  ;;  %1454 = vpow2.f32 %v1192_v45 }
 0x2ec   : > { %v1437_v36 = vpop.eup %1436  ;;  %1456 = vpow2.f32 %v1193_v47  ;;  %v944_v47 = vadd.f32 1.0, %v1991_v18 }
 0x2ed   : > { %v1439_v9 = vpop.eup %1438  ;;  %1458 = vpow2.f32 %v1194_v48 }
 0x2ee   : > { %v1441_v21 = vpop.eup %1440  ;;  %1460 = vpow2.f32 %v1195_v51  ;;  %v945_v51 = vadd.f32 1.0, %v1997_v25 }
 0x2ef   : > { %v1443_v43 = vpop.eup %1442  ;;  %1462 = vpow2.f32 %v1196_v52 }
 0x2f0   : > { %v1445_v55 = vpop.eup %1444  ;;  %1464 = vpow2.f32 %v1197_v53  ;;  %v946_v53 = vadd.f32 1.0, %v2004_v7  ;;  %v951_v7 = vadd.f32 1.0, %v1431_v37  ;;  %v956_v37 = vadd.f32 1.0, %v1441_v21 }
 0x2f1   : > { %v1447_v31 = vpop.eup %1446  ;;  %1466 = vpow2.f32 %v1198_v56 }
 0x2f2   : > { %v1449_v35 = vpop.eup %1448  ;;  %1468 = vpow2.f32 %v1199_v57  ;;  %v947_v57 = vadd.f32 1.0, %v2011_v8  ;;  %v952_v8 = vadd.f32 1.0, %v1433_v50  ;;  %v957_v50 = vadd.f32 1.0, %v1443_v43 }
 0x2f3   : > { %v1451_v60 = vpop.eup %1450  ;;  %1470 = vpow2.f32 %v1200_v54  ;;  %v948_v54 = vadd.f32 1.0, %v2018_v27  ;;  %v953_v27 = vadd.f32 1.0, %v1435_v62 }
 0x2f4   : > { %v1453_v45 = vpop.eup %1452  ;;  %1472 = vpow2.f32 %v1201_v58  ;;  %v949_v58 = vadd.f32 1.0, %v1427_v30  ;;  %v954_v30 = vadd.f32 1.0, %v1437_v36  ;;  %v958_v36 = vadd.f32 1.0, %v1445_v55 }
 0x2f5   : > { %v2071_v48 = vpop.eup %1454  ;;  %1474 = vpow2.f32 %v1202_v33  ;;  %v950_v33 = vadd.f32 1.0, %v1429_v46  ;;  %v955_v46 = vadd.f32 1.0, %v1439_v9  ;;  %v961_v55 = vadd.f32 1.0, %v1451_v60 }
 0x2f6   : > { %v2074_v52 = vpop.eup %1456  ;;  %1476 = vpow2.f32 %v1203_v59 }
 0x2f7   : > { %v2077_v56 = vpop.eup %1458  ;;  %1478 = vrcp.f32 %v943_v41 }
 0x2f8   : > { %v2080_v13 = vpop.eup %1460  ;;  %1480 = vrcp.f32 %v944_v47 }
 0x2f9   : > { %v2083_v18 = vpop.eup %1462  ;;  %1482 = vrcp.f32 %v945_v51 }
 0x2fa   : > { %v2085_v25 = vpop.eup %1464  ;;  %1484 = vrcp.f32 %v946_v53 }
 0x2fb   : > { %v2087_v59 = vpop.eup %1466  ;;  %1486 = vrcp.f32 %v947_v57 }
 0x2fc   : > { %v2089_v29 = vpop.eup %1468  ;;  %1488 = vrcp.f32 %v948_v54 }
 0x2fd   : > { %v2091_v41 = vpop.eup %1470  ;;  %1490 = vrcp.f32 %v949_v58  ;;  %v959_v58 = vadd.f32 1.0, %v1447_v31  ;;  %v962_v31 = vadd.f32 1.0, %v1453_v45 }
 0x2fe   : > { %v2093_v47 = vpop.eup %1472  ;;  %1492 = vrcp.f32 %v950_v33 }
 0x2ff   : > { %v2095_v51 = vpop.eup %1474  ;;  %1494 = vrcp.f32 %v951_v7  ;;  %v960_v7 = vadd.f32 1.0, %v1449_v35  ;;  %v963_v35 = vadd.f32 1.0, %v2071_v48 }
 0x300   : > { %v2097_v53 = vpop.eup %1476  ;;  %1496 = vrcp.f32 %v952_v8 }
 0x301   : > { %v1479_v57 = vpop.eup %1478  ;;  %1498 = vrcp.f32 %v953_v27 }
 0x302   : > { %v1481_v62 = vpop.eup %1480  ;;  %1500 = vrcp.f32 %v954_v30  ;;  %v1039_v9 = vmul.f32 %v1479_v57, %v1918_v63  ;;  %v964_v30 = vadd.f32 1.0, %v2074_v52  ;;  %v967_v57 = vadd.f32 1.0, %v2083_v18 }
 0x303   : > { %v1483_v54 = vpop.eup %1482  ;;  %1502 = vrcp.f32 %v955_v46  ;;  %v1040_v21 = vmul.f32 %v1481_v62, %v1921_v4  ;;  %v965_v46 = vadd.f32 1.0, %v2077_v56  ;;  %v969_v62 = vadd.f32 1.0, %v2087_v59 }
 0x304   : > { %v1485_v33 = vpop.eup %1484  ;;  %1504 = vrcp.f32 %v956_v37  ;;  %v1041_v8 = vmul.f32 %v1483_v54, %v1924_v3  ;;  %1071 = vst.msk [vmem:[%s2104_s15] sm:$0xff] %vm433_vm1, %v1039_v9  ;;  %v966_v37 = vadd.f32 1.0, %v2080_v13  ;;  %v971_v9 = vadd.f32 1.0, %v2091_v41 }
 0x305   : > { %v1487_v43 = vpop.eup %1486  ;;  %1506 = vrcp.f32 %v957_v50  ;;  %v1042_v27 = vmul.f32 %v1485_v33, %v1927_v5  ;;  %1072 = vst.msk [vmem:[%s2104_s15 + $0x8] sm:$0xff] %vm433_vm1, %v1040_v21  ;;  %v968_v50 = vadd.f32 1.0, %v2085_v25  ;;  %v972_v54 = vadd.f32 1.0, %v2093_v47 }
 0x306   : > { %v1489_v63 = vpop.eup %1488  ;;  %1508 = vrcp.f32 %v958_v36  ;;  %v1043_v4 = vmul.f32 %v1487_v43, %v1930_v14  ;;  %1073 = vst.msk [vmem:[%s2104_s15 + $0x10] sm:$0xff] %vm433_vm1, %v1041_v8  ;;  %v970_v36 = vadd.f32 1.0, %v2089_v29  ;;  %v974_v21 = vadd.f32 1.0, %v2097_v53 }
 0x307   : > { %v1491_v3 = vpop.eup %1490  ;;  %1510 = vrcp.f32 %v959_v58  ;;  %v1044_v60 = vmul.f32 %v1489_v63, %v1933_v15  ;;  %1074 = vst.msk [vmem:[%s2104_s15 + $0x18] sm:$0xff] %vm433_vm1, %v1042_v27  ;;  %v973_v58 = vadd.f32 1.0, %v2095_v51 }
 0x308   : > { %v1493_v5 = vpop.eup %1492  ;;  %1512 = vrcp.f32 %v960_v7  ;;  %v1045_v45 = vmul.f32 %v1491_v3, %v1936_v22  ;;  %1075 = vst.msk [vmem:[%s2104_s15 + $0x20] sm:$0xff] %vm433_vm1, %v1043_v4 }
 0x309   : > { %v1495_v14 = vpop.eup %1494  ;;  %1514 = vrcp.f32 %v961_v55  ;;  %v1046_v48 = vmul.f32 %v1493_v5, %v1942_v49  ;;  %1076 = vst.msk [vmem:[%s2104_s15 + $0x28] sm:$0xff] %vm433_vm1, %v1044_v60 }
 0x30a   : > { %v1497_v15 = vpop.eup %1496  ;;  %1516 = vrcp.f32 %v962_v31  ;;  %v1047_v52 = vmul.f32 %v1495_v14, %v1946_v6  ;;  %1077 = vst.msk [vmem:[%s2104_s15 + $0x30] sm:$0xff] %vm433_vm1, %v1045_v45 }
 0x30b   : > { %v1499_v22 = vpop.eup %1498  ;;  %1518 = vrcp.f32 %v963_v35  ;;  %v1048_v56 = vmul.f32 %v1497_v15, %v1950_v61  ;;  %1078 = vst.msk [vmem:[%s2104_s15 + $0x38] sm:$0xff] %vm433_vm1, %v1046_v48 }
 0x30c   : > { %v1501_v49 = vpop.eup %1500  ;;  %1520 = vrcp.f32 %v964_v30  ;;  %v1049_v13 = vmul.f32 %v1499_v22, %v1954_v19  ;;  %1079 = vst.msk [vmem:[%s2104_s15 + $0x40] sm:$0xff] %vm433_vm1, %v1047_v52  ;;  %v2225_v30 = vld [vmem:[#allocation2_spill] sm:$0xff] }
 0x30d   : > { %v1503_v6 = vpop.eup %1502  ;;  %1522 = vrcp.f32 %v965_v46  ;;  %v1050_v18 = vmul.f32 %v1501_v49, %v1958_v11  ;;  %1080 = vst.msk [vmem:[%s2104_s15 + $0x48] sm:$0xff] %vm433_vm1, %v1048_v56 }
 0x30e   : > { %v1505_v61 = vpop.eup %1504  ;;  %1524 = vrcp.f32 %v966_v37  ;;  %v1051_v25 = vmul.f32 %v1503_v6, %v1962_v39  ;;  %1081 = vst.msk [vmem:[%s2104_s15 + $0x50] sm:$0xff] %vm433_vm1, %v1049_v13 }
 0x30f   : > { %v1507_v19 = vpop.eup %1506  ;;  %1526 = vrcp.f32 %v967_v57  ;;  %v1052_v59 = vmul.f32 %v1505_v61, %v1966_v2  ;;  %1082 = vst.msk [vmem:[%s2104_s15 + $0x58] sm:$0xff] %vm433_vm1, %v1050_v18 }
 0x310   : > { %v1509_v11 = vpop.eup %1508  ;;  %1528 = vrcp.f32 %v968_v50  ;;  %v1053_v29 = vmul.f32 %v1507_v19, %v1970_v10  ;;  %1083 = vst.msk [vmem:[%s2104_s15 + $0x60] sm:$0xff] %vm433_vm1, %v1051_v25 }
 0x311   : > { %v1511_v39 = vpop.eup %1510  ;;  %1530 = vrcp.f32 %v969_v62  ;;  %v1054_v41 = vmul.f32 %v1509_v11, %v1974_v12  ;;  %1084 = vst.msk [vmem:[%s2104_s15 + $0x68] sm:$0xff] %vm433_vm1, %v1052_v59 }
 0x312   : > { %v1513_v2 = vpop.eup %1512  ;;  %1532 = vrcp.f32 %v970_v36  ;;  %v1055_v47 = vmul.f32 %v1511_v39, %v1978_v28  ;;  %1085 = vst.msk [vmem:[%s2104_s15 + $0x70] sm:$0xff] %vm433_vm1, %v1053_v29 }
 0x313   : > { %v1515_v10 = vpop.eup %1514  ;;  %1534 = vrcp.f32 %v971_v9  ;;  %v1056_v51 = vmul.f32 %v1513_v2, %v1982_v42  ;;  %1086 = vst.msk [vmem:[%s2104_s15 + $0x78] sm:$0xff] %vm433_vm1, %v1054_v41 }
 0x314   : > { %v1517_v12 = vpop.eup %1516  ;;  %1536 = vrcp.f32 %v972_v54  ;;  %v1057_v33 = vmul.f32 %v1515_v10, %v1988_v16  ;;  %1087 = vst.msk [vmem:[%s2104_s15 + $0x80] sm:$0xff] %vm433_vm1, %v1055_v47 }
 0x315   : > { %v1519_v53 = vpop.eup %1518  ;;  %1538 = vrcp.f32 %v973_v58  ;;  %v1058_v28 = vmul.f32 %v1517_v12, %v1994_v24  ;;  %1088 = vst.msk [vmem:[%s2104_s15 + $0x88] sm:$0xff] %vm433_vm1, %v1056_v51 }
 0x316   : > { %v1521_v7 = vpop.eup %1520  ;;  %1540 = vrcp.f32 %v974_v21  ;;  %v1059_v42 = vmul.f32 %v1519_v53, %v2001_v26  ;;  %1089 = vst.msk [vmem:[%s2104_s15 + $0x90] sm:$0xff] %vm433_vm1, %v1057_v33 }
 0x317   : > { %v1523_v8 = vpop.eup %1522  ;;  %v1060_v16 = vmul.f32 %v1521_v7, %v2008_v32  ;;  %1090 = vst.msk [vmem:[%s2104_s15 + $0x98] sm:$0xff] %vm433_vm1, %v1058_v28 }
 0x318   : > { %v1525_v43 = vpop.eup %1524  ;;  %v1061_v55 = vmul.f32 %v1523_v8, %v2015_v34  ;;  %1091 = vst.msk [vmem:[%s2104_s15 + $0xa0] sm:$0xff] %vm433_vm1, %v1059_v42 }
 0x319   : > { %v1527_v24 = vpop.eup %1526  ;;  %v1062_v27 = vmul.f32 %v1525_v43, %v2022_v40  ;;  %1092 = vst.msk [vmem:[%s2104_s15 + $0xa8] sm:$0xff] %vm433_vm1, %v1060_v16 }
 0x31a   : > { %v1529_v26 = vpop.eup %1528  ;;  %v1063_v63 = vmul.f32 %v1527_v24, %v2027_v44  ;;  %1093 = vst.msk [vmem:[%s2104_s15 + $0xb0] sm:$0xff] %vm433_vm1, %v1061_v55 }
 0x31b   : > { %v1531_v32 = vpop.eup %1530  ;;  %v1064_v31 = vmul.f32 %v1529_v26, %v2032_v23  ;;  %1094 = vst.msk [vmem:[%s2104_s15 + $0xb8] sm:$0xff] %vm433_vm1, %v1062_v27 }
 0x31c   : > { %v1533_v34 = vpop.eup %1532  ;;  %v1065_v4 = vmul.f32 %v1531_v32, %v2037_v38  ;;  %1095 = vst.msk [vmem:[%s2104_s15 + $0xc0] sm:$0xff] %vm433_vm1, %v1063_v63 }
 0x31d   : > { %v1535_v40 = vpop.eup %1534  ;;  %v1066_v44 = vmul.f32 %v1533_v34, %v2042_v0  ;;  %1096 = vst.msk [vmem:[%s2104_s15 + $0xc8] sm:$0xff] %vm433_vm1, %v1064_v31 }
 0x31e   : > { %v1537_v3 = vpop.eup %1536  ;;  %v1067_v35 = vmul.f32 %v1535_v40, %v2047_v20  ;;  %1097 = vst.msk [vmem:[%s2104_s15 + $0xd0] sm:$0xff] %vm433_vm1, %v1065_v4 }
 0x31f   : > { %v1539_v23 = vpop.eup %1538  ;;  %v1068_v60 = vmul.f32 %v1537_v3, %v2052_v1  ;;  %1098 = vst.msk [vmem:[%s2104_s15 + $0xd8] sm:$0xff] %vm433_vm1, %v1066_v44 }
 0x320   : > { %v1541_v38 = vpop.eup %1540  ;;  %v1069_v5 = vmul.f32 %v1539_v23, %v2057_v17  ;;  %1099 = vst.msk [vmem:[%s2104_s15 + $0xe0] sm:$0xff] %vm433_vm1, %v1067_v35 }
 0x321   : > { %v1070_v45 = vmul.f32 %v1541_v38, %v2225_v30  ;;  %1100 = vst.msk [vmem:[%s2104_s15 + $0xe8] sm:$0xff] %vm433_vm1, %v1068_v60 }
 0x322   : > { %1101 = vst.msk [vmem:[%s2104_s15 + $0xf0] sm:$0xff] %vm433_vm1, %v1069_v5 }
 0x323   : > { %1102 = vst.msk [vmem:[%s2104_s15 + $0xf8] sm:$0xff] %vm433_vm1, %v1070_v45 }
 0x324 PF: > { %s15_s18 = sadd.s32 1, %s1548_s18  }
 0x325   : > { %p12_p4 = scmp.ge.s32.totalorder %s15_s18, 4  }
 0x327   :  { %14 = sbr.rel (!%p12_p4) target bundleno = 1 (0x1), region = 70 }

// kernel: resblock_apply.13
= control target key start
LH: loop header
LB: loop body
LE: loop exit
PB: predicated region body
PF: predicated region fallthrough
CT: control target
= control target key end

     0   :  { %s904_s15 = smov 0   ;;  %s906_s16 = smov 0   ;;  %s1019_s0 = inlined_call_operand.vmem [shape: bf16[2,288,192], index: 0, kind: input, shape index: {}]   ;;  %s1020_s1 = inlined_call_operand.vmem [shape: bf16[3,192,128], index: 1, kind: input, shape index: {}]   ;;  %s1021_s2 = inlined_call_operand.vmem [shape: f32[1,128], index: 2, kind: input, shape index: {}]   ;;  %s1022_s3 = inlined_call_operand.vmem [shape: f32[2,256,128], index: 3, kind: input, shape index: {}]   ;;  %s1023_s4 = inlined_call_operand.vmem [shape: f32[2,256,128], index: 4, kind: output, shape index: {}]  }
   0x1   :  { %s908_s17 = smov 0   ;;  %s910_s18 = smov 0  }
   0x2   :  { %s912_s19 = smov 0   ;;  %s914_s20 = smov 0  }
   0x3   :  { %s916_s21 = smov 0  }
   0x4 LB: > { %s29_s22 = sadd.s32 1, %s863_s18  ;;  %s36_s23 = sadd.s32 1, %s867_s19  ;;  %s875_s21 = sphi %s916_s21, %s14_s21   ;;  %s871_s20 = sphi %s914_s20, %s1031_s20   ;;  %s867_s19 = sphi %s912_s19, %s1030_s19   ;;  %s863_s18 = sphi %s910_s18, %s1029_s18   ;;  %s859_s17 = sphi %s908_s17, %s1028_s17   ;;  %s855_s16 = sphi %s906_s16, %s1027_s16   ;;  %s851_s15 = sphi %s904_s15, %s1026_s15  }
   0x5   : > { %p30_p0 = scmp.ge.s32.totalorder %s29_s22, 3  ;;  %p715_p1 = scmp.ge.s32.totalorder %s875_s21, 1 }
   0x6   : > { %p249_p2 = scmp.lt.s32.totalorder %s875_s21, 97  ;;  %s40_s24 = sadd.s32 1, %s871_s20 }
   0x7   : > { %s1033_s22 = smov (%p30_p0, %s29_s22), 0  ;;  %s1035_s23 = smov (!%p30_p0, %s36_s23), %s867_s19 }
   0x8   : > { %p250_p3 = pnand %p715_p1, %p249_p2  ;;  %p38_p4 = scmp.ge.s32.totalorder %s1035_s23, 16 }
   0x9   : > { %s311_s25 = sadd.s32 (!%p250_p3), %s851_s15, %s855_s16  ;;  %p313_p6 = scmp.lt.s32.totalorder (!%p250_p3), %s859_s17, 1 }
   0xa   : > { %s1037_s23 = smov (%p38_p4, %s1035_s23), 0  ;;  %s1039_s24 = smov (!%p38_p4, %s40_s24), %s871_s20 }
   0xb   : > { %p42_p5 = scmp.ge.s32.totalorder %s1039_s24, 2  ;;  %253 = sbr.rel (%p250_p3) target bundleno = 310 (0x136), region = 36 }
   0xc   : > { %s716_s26 = sshll.u32 (!%p250_p3), %s311_s25, 1  ;;  %p324_p7 = scmp.lt.s32.totalorder (!%p250_p3), %s851_s15, 2 }
   0xd   : > { %s1041_s24 = smov (%p42_p5, %s1039_s24), 0  ;;  %p315_p8 = scmp.lt.s32.totalorder (!%p250_p3), %s716_s26, 35 }
   0xe   : > { %1024 = sst [smem:[#allocation3_spill]] %s1041_s24  ;;  %s720_s28 = sshll.u32 (!%p250_p3), %s855_s16, 1 }
   0xf   : > { %p338_p9 = scmp.lt.s32.totalorder (!%p250_p3), %s720_s28, 31  ;;  %p726_p10 = scmp.ne.s32.totalorder (!%p250_p3), %s851_s15, 0 }
  0x12   : > { %s1043_s17 = smov (!%p313_p6, %s859_s17), 1  ;;  %s1045_s26 = smov (!%p315_p8, %s716_s26), 35 }
  0x13   : > { %s746_s27 = smul.u32 72, %s1043_s17  ;;  %s717_s30 = sshll.u32 %s1045_s26, 1  ;;  %v877_v0 = vmov (!%p726_p10), 0.0  }
  0x14   : > { %s325_s29 = scalar_select %p324_p7, %s851_s15, 2 }
  0x15   : > { %s319_s5 = sadd.s32 %s746_s27, %s717_s30  ;;  %s721_s8 = sshll.u32 %s1043_s17, 5  ;;  %366 = vst [vmem:[#allocation2] sm:$0xff] (!%p726_p10), %v877_v0  ;;  %367 = vst [vmem:[#allocation2 + $0x8] sm:$0xff] (!%p726_p10), %v877_v0 }
  0x16   : > { %s747_s6 = smul.u32 96, %s325_s29  ;;  %s718_s7 = sshll.u32 %s319_s5, 2 }
  0x17   : > { %s958_s11 = scalar_lea.vmem %s1019_s0, %s718_s7  ;;  %s1047_s28 = smov (!%p338_p9, %s720_s28), 31 }
  0x18   : > { %s963_s14 = scalar_lea.vmem %s1020_s1, %s747_s6  ;;  %s344_s16 = sadd.s32 %s721_s8, %s1047_s28 }
  0x19   : > { %s722_s25 = sshll.u32 %s344_s16, 3  ;;  %365 = sbr.rel (%p726_p10) target bundleno = 32 (0x20), region = 40 }
  0x1a   : > { %s968_s27 = scalar_lea.vmem %s1022_s3, %s722_s25  ;;  %s973_s30 = scalar_lea.vmem %s1023_s4, %s722_s25 }
  0x20 PF: > { %v806_v1 = vld [vmem:[%s963_s14] sm:$0xff]   ;;  %v878_v2 = vmov 0   ;;  %v807_v3 = vld [vmem:[%s963_s14 + $0x8] sm:$0xff]   ;;  %v808_v4 = vld [vmem:[%s963_s14 + $0x10] sm:$0xff]   ;;  %vm477_vm0 = vcmask 523264   ;;  %p742_p11 = scmp.ne.s32.totalorder %s851_s15, 2 }
  0x21   : > { %481 = vmatprep.subr.bf16.mxu0 %v878_v2  ;;  %v809_v5 = vld [vmem:[%s963_s14 + $0x18] sm:$0xff]   ;;  %v820_v6 = vld [vmem:[%s958_s11 + $0x4] ss:$8 sps:$4 sm:$0xff]   ;;  %v812_v9 = vld [vmem:[%s963_s14 + $0x30] sm:$0xff]  }
  0x22   : > { %482 = vmatpush1.bf16.msra.mxu0 %v806_v1  ;;  %v810_v7 = vld [vmem:[%s963_s14 + $0x20] sm:$0xff]   ;;  %741 = vmatprep.mubr.msk.bf16.mxu0 %vm477_vm0, %v820_v6  ;;  %v811_v8 = vld [vmem:[%s963_s14 + $0x28] sm:$0xff]   ;;  %v813_v10 = vld [vmem:[%s963_s14 + $0x38] sm:$0xff]  }
  0x23   : > { %483 = vmatprep.subr.bf16.mxu0 %v878_v2  ;;  %v814_v11 = vld [vmem:[%s963_s14 + $0x40] sm:$0xff]   ;;  %v815_v12 = vld [vmem:[%s963_s14 + $0x48] sm:$0xff]   ;;  %v816_v13 = vld [vmem:[%s963_s14 + $0x50] sm:$0xff]  }
  0x24   : > { %v817_v14 = vld [vmem:[%s963_s14 + $0x58] sm:$0xff]   ;;  %v818_v15 = vld [vmem:[%s958_s11] ss:$8 sps:$4 sm:$0xff]  }
  0x25   : > { %v368_v16 = vld [vmem:[#allocation2] sm:$0xff]  ;;  %v369_v18 = vld [vmem:[#allocation2 + $0x8] sm:$0xff] }
  0x26   : > { %484 = vmatpush1.bf16.msra.mxu0 %v807_v3  ;;  %v743_v25 = vld [vmem:[%s1021_s2] ss:$0 sm:$0xff] (!%p742_p11)  ;;  %v542_v29 = vld [vmem:[%s968_s27 + $0x8] sm:$0xff] (!%p742_p11) }
  0x27   : > { %485 = vmatprep.subr.bf16.mxu0 %v878_v2  ;;  %v541_v26 = vld [vmem:[%s968_s27] sm:$0xff] (!%p742_p11) }
  0x2a   : > { %486 = vmatpush1.bf16.msra.mxu0 %v808_v4 }
  0x2b   : > { %487 = vmatprep.subr.bf16.mxu0 %v878_v2 }
  0x2e   : > { %488 = vmatpush1.bf16.msra.mxu0 %v809_v5 }
  0x2f   : > { %489 = vmatprep.subr.bf16.mxu0 %v878_v2 }
  0x32   : > { %490 = vmatpush1.bf16.msra.mxu0 %v810_v7 }
  0x33   : > { %491 = vmatprep.subr.bf16.mxu0 %v878_v2 }
  0x36   : > { %492 = vmatpush1.bf16.msra.mxu0 %v811_v8 }
  0x37   : > { %493 = vmatprep.subr.bf16.mxu0 %v878_v2 }
  0x3a   : > { %494 = vmatpush1.bf16.msra.mxu0 %v812_v9 }
  0x3b   : > { %495 = vmatprep.subr.bf16.mxu0 %v878_v2 }
  0x3e   : > { %496 = vmatpush1.bf16.msra.mxu0 %v813_v10 }
  0x3f   : > { %497 = vmatprep.subr.bf16.mxu0 %v878_v2 }
  0x42   : > { %498 = vmatpush1.bf16.msra.mxu0 %v814_v11 }
  0x43   : > { %499 = vmatprep.subr.bf16.mxu0 %v878_v2 }
  0x46   : > { %500 = vmatpush1.bf16.msra.mxu0 %v815_v12 }
  0x47   : > { %501 = vmatprep.subr.bf16.mxu0 %v878_v2 }
  0x4a   : > { %502 = vmatpush1.bf16.msra.mxu0 %v816_v13 }
  0x4b   : > { %503 = vmatprep.subr.bf16.mxu0 %v878_v2 }
  0x4e   : > { %504 = vmatpush1.bf16.msra.mxu0 %v817_v14 }
  0x51   : > { %514 = vmatmul.mubr.bf16.vlgmr.msra.gmra.mrb[0].mxu0 %v818_v15 }
 0x123   : > { %529 = sbr.rel (%p742_p11) target bundleno = 310 (0x136), region = 44 }
 0x124   : > { %v515_v17 = vpop.f32.mrb[0].mxu0 }
 0x125   : > { %v522_v19 = vadd.f32 %v515_v17, %v368_v16  ;;  %v517_v20 = vpop.f32.mrb[1].mxu0 }
 0x126   : > { %v518_v21 = vpop.f32.mrb[2].mxu0 }
 0x127   : > { %524 = vst [vmem:[#allocation2] sm:$0xff] %v522_v19  ;;  %v523_v22 = vadd.f32 %v518_v21, %v369_v18  ;;  %v520_v23 = vpop.f32.mrb[3].mxu0 }
 0x129   : > { %525 = vst [vmem:[#allocation2 + $0x8] sm:$0xff] %v523_v22 }
 0x12e   : > { %v530_v24 = vld [vmem:[#allocation2] sm:$0xff] }
 0x12f   : > { %v539_v27 = vadd.f32 %v743_v25, %v530_v24 }
 0x130   : > { %v531_v28 = vld [vmem:[#allocation2 + $0x8] sm:$0xff] }
 0x131   : > { %v540_v30 = vadd.f32 %v743_v25, %v531_v28  ;;  %v543_v31 = vadd.f32 %v541_v26, %v539_v27 }
 0x133   : > { %v544_v32 = vadd.f32 %v542_v29, %v540_v30  ;;  %545 = vst [vmem:[%s973_s30] sm:$0xff] %v543_v31 }
 0x135   : > { %546 = vst [vmem:[%s973_s30 + $0x8] sm:$0xff] %v544_v32 }
 0x136 PF: > { %s14_s21 = sadd.s32 1, %s875_s21   ;;  %s1025_s5 = sld [smem:[#allocation3_spill]] }
 0x137   : > { %p11_p12 = scmp.ge.s32.totalorder %s14_s21, 98   ;;  %s1026_s15 = smov %s863_s18 }
 0x138   : > { %s1027_s16 = smov %s867_s19  ;;  %s1028_s17 = smov %s871_s20 }
 0x139   : > { %s1029_s18 = smov %s1033_s22  ;;  %s1030_s19 = smov %s1037_s23 }
 0x13a   :  { %13 = sbr.rel (!%p11_p12) target bundleno = 4 (0x4), region = 83 }
 0x13c   : > { %s1031_s20 = smov %s1025_s5 }

// kernel: resblock_apply.14
= control target key start
LH: loop header
LB: loop body
LE: loop exit
PB: predicated region body
PF: predicated region fallthrough
CT: control target
= control target key end

     0   :  { %s1240_s18 = smov 0   ;;  %s1633_s0 = inlined_call_operand.vmem [shape: f32[2,256,64], index: 0, kind: input, shape index: {}]   ;;  %s1634_s1 = inlined_call_operand.vmem [shape: f32[1,64], index: 1, kind: input, shape index: {}]   ;;  %s1635_s2 = inlined_call_operand.vmem [shape: f32[1,64], index: 2, kind: input, shape index: {}]   ;;  %s1636_s3 = inlined_call_operand.vmem [shape: f32[64,8], index: 3, kind: input, shape index: {}]   ;;  %s1637_s4 = inlined_call_operand.vmem [shape: f32[8,64], index: 4, kind: input, shape index: {}]   ;;  %s1638_s5 = inlined_call_operand.vmem [shape: f32[2,256,64], index: 5, kind: output, shape index: {}]  }
   0x1 LB: > { %s938_s19 = sadd.s32 4294967295, %s1204_s18   ;;  %p942_p0 = scmp.ge.s32.totalorder %s1204_s18, 1  ;;  %s1204_s18 = sphi %s1240_s18, %s15_s18  }
   0x2   : > { %p187_p1 = scmp.lt.s32.totalorder %s1204_s18, 3 }
   0x4   : > { %p188_p2 = pnand %p942_p0, %p187_p1 }
   0x5   : > { %p215_p3 = scmp.lt.s32.totalorder (!%p188_p2), %s938_s19, 1  ;;  %v1206_v0 = vmov (!%p188_p2), 1.0   ;;  %vm1208_vm0 = vmmov (!%p188_p2), 0   ;;  %vm437_vm1 = vcmask (!%p188_p2), 523264   ;;  %vm590_vm2 = vcmask (!%p188_p2), 64512  }
   0x6   : > { %191 = sbr.rel (%p188_p2) target bundleno = 740 (0x2e4), region = 40  ;;  %321 = vmatprep.mubr.f32.mxu0 (!%p188_p2), %v1206_v0  ;;  %423 = vmatprep.mubr.f32.mxu1 (!%p188_p2), %v1206_v0 }
   0xd   : > { %s1640_s19 = smov (!%p215_p3, %s938_s19), 1 }
   0xe   : > { %s954_s20 = sshll.u32 %s1640_s19, 8 }
   0xf   : > { %s1258_s23 = scalar_lea.vmem %s1633_s0, %s954_s20  ;;  %s1564_s26 = scalar_lea.vmem %s1638_s5, %s954_s20 }
  0x10   : > { %v1261_v1 = vld [vmem:[%s1258_s23 + $0x80] sm:$0xff]  ;;  %v1264_v2 = vld [vmem:[%s1258_s23 + $0x88] sm:$0xff]  ;;  %v1281_v9 = vld [vmem:[%s1258_s23 + $0x90] sm:$0xff] }
  0x11   : > { %v1267_v3 = vld [vmem:[%s1258_s23] sm:$0xff]  ;;  %v1096_v4 = vpack.c.bf16 %v1264_v2, %v1261_v1  ;;  %v1272_v5 = vld [vmem:[%s1258_s23 + $0x8] sm:$0xff]  ;;  %v343_v6 = vmul.f32 %v1261_v1, %v1261_v1  ;;  %v344_v7 = vmul.f32 %v1264_v2, %v1264_v2  ;;  %v1284_v10 = vld [vmem:[%s1258_s23 + $0x98] sm:$0xff]  ;;  %v345_v16 = vmul.f32 %v1281_v9, %v1281_v9 }
  0x12   : > { %v327_v8 = vmul.f32 %v1267_v3, %v1267_v3  ;;  %v1098_v11 = vpack.c.bf16 %v1272_v5, %v1267_v3  ;;  %v328_v12 = vmul.f32 %v1272_v5, %v1272_v5  ;;  %v1100_v13 = vpack.c.bf16 %v1284_v10, %v1281_v9  ;;  %v1293_v14 = vld [vmem:[%s1258_s23 + $0x10] sm:$0xff]  ;;  %v1296_v15 = vld [vmem:[%s1258_s23 + $0x18] sm:$0xff]  ;;  %v1301_v17 = vld [vmem:[%s1258_s23 + $0xa0] sm:$0xff] }
  0x13   : > { %1097 = vmatprep.subr.bf16.mxu0 %v1096_v4  ;;  %v1128_v18 = vpack.c.bf16 %v344_v7, %v343_v6  ;;  %v346_v19 = vmul.f32 %v1284_v10, %v1284_v10  ;;  %v329_v20 = vmul.f32 %v1293_v14, %v1293_v14  ;;  %v1308_v21 = vld [vmem:[%s1258_s23 + $0xa8] sm:$0xff]  ;;  %v1311_v22 = vld [vmem:[%s1258_s23 + $0x20] sm:$0xff]  ;;  %v1102_v25 = vpack.c.bf16 %v1296_v15, %v1293_v14  ;;  %v1323_v28 = vld [vmem:[%s1258_s23 + $0xb0] sm:$0xff] }
  0x14   : > { %v1314_v23 = vld [vmem:[%s1258_s23 + $0x28] sm:$0xff]  ;;  %1099 = vmatpush3.bf16.msra.mxu0 %v1098_v11  ;;  %v1130_v24 = vpack.c.bf16 %v328_v12, %v327_v8  ;;  %v330_v26 = vmul.f32 %v1296_v15, %v1296_v15  ;;  %v1104_v27 = vpack.c.bf16 %v1308_v21, %v1301_v17  ;;  %v1326_v29 = vld [vmem:[%s1258_s23 + $0xb8] sm:$0xff]  ;;  %v347_v31 = vmul.f32 %v1301_v17, %v1301_v17  ;;  %v1337_v37 = vld [vmem:[%s1258_s23 + $0x30] sm:$0xff] }
  0x15   : > { %1129 = vmatprep.subr.bf16.mxu1 %v1128_v18  ;;  %1101 = vmatprep.subr.bf16.mxu0 %v1100_v13  ;;  %v1132_v30 = vpack.c.bf16 %v346_v19, %v345_v16  ;;  %v348_v32 = vmul.f32 %v1308_v21, %v1308_v21  ;;  %v331_v34 = vmul.f32 %v1311_v22, %v1311_v22  ;;  %v1340_v38 = vld [vmem:[%s1258_s23 + $0x38] sm:$0xff]  ;;  %v1349_v42 = vld [vmem:[%s1258_s23 + $0xc0] sm:$0xff]  ;;  %v1352_v43 = vld [vmem:[%s1258_s23 + $0xc8] sm:$0xff] }
  0x16   : > { %1131 = vmatpush3.bf16.msra.mxu1 %v1130_v24  ;;  %v1134_v33 = vpack.c.bf16 %v330_v26, %v329_v20  ;;  %v332_v35 = vmul.f32 %v1314_v23, %v1314_v23  ;;  %v349_v39 = vmul.f32 %v1323_v28, %v1323_v28  ;;  %v350_v40 = vmul.f32 %v1326_v29, %v1326_v29  ;;  %v1361_v49 = vld [vmem:[%s1258_s23 + $0x40] sm:$0xff]  ;;  %v1364_v50 = vld [vmem:[%s1258_s23 + $0x48] sm:$0xff]  ;;  %v1373_v54 = vld [vmem:[%s1258_s23 + $0xd0] sm:$0xff] }
  0x17   : > { %1133 = vmatprep.subr.bf16.mxu1 %v1132_v30  ;;  %v1136_v36 = vpack.c.bf16 %v348_v32, %v347_v31  ;;  %v1106_v41 = vpack.c.bf16 %v1314_v23, %v1311_v22  ;;  %v1108_v44 = vpack.c.bf16 %v1326_v29, %v1323_v28  ;;  %v333_v46 = vmul.f32 %v1337_v37, %v1337_v37  ;;  %v1376_v55 = vld [vmem:[%s1258_s23 + $0xd8] sm:$0xff]  ;;  %v1385_v61 = vld [vmem:[%s1258_s23 + $0x50] sm:$0xff]  ;;  %v1397_v7 = vld [vmem:[%s1258_s23 + $0xe0] sm:$0xff] }
  0x18   : > { %1103 = vmatpush3.bf16.msra.mxu0 %v1102_v25  ;;  %v1138_v45 = vpack.c.bf16 %v332_v35, %v331_v34  ;;  %v334_v47 = vmul.f32 %v1340_v38, %v1340_v38  ;;  %v1140_v48 = vpack.c.bf16 %v350_v40, %v349_v39  ;;  %v351_v51 = vmul.f32 %v1349_v42, %v1349_v42  ;;  %v1388_v62 = vld [vmem:[%s1258_s23 + $0x58] sm:$0xff]  ;;  %v1400_v8 = vld [vmem:[%s1258_s23 + $0xe8] sm:$0xff]  ;;  %v1409_v19 = vld [vmem:[%s1258_s23 + $0x60] sm:$0xff] }
  0x19   : > { %1105 = vmatprep.subr.bf16.mxu0 %v1104_v27  ;;  %v352_v52 = vmul.f32 %v1352_v43, %v1352_v43  ;;  %v1110_v53 = vpack.c.bf16 %v1340_v38, %v1337_v37  ;;  %v1112_v56 = vpack.c.bf16 %v1352_v43, %v1349_v42  ;;  %v335_v58 = vmul.f32 %v1361_v49, %v1361_v49  ;;  %v1412_v20 = vld [vmem:[%s1258_s23 + $0x68] sm:$0xff]  ;;  %v1421_v27 = vld [vmem:[%s1258_s23 + $0xf0] sm:$0xff]  ;;  %v1424_v30 = vld [vmem:[%s1258_s23 + $0xf8] sm:$0xff] }
  0x1a   : > { %1135 = vmatpush3.bf16.msra.mxu1 %v1134_v33  ;;  %v1142_v57 = vpack.c.bf16 %v334_v47, %v333_v46  ;;  %v336_v59 = vmul.f32 %v1364_v50, %v1364_v50  ;;  %v353_v63 = vmul.f32 %v1373_v54, %v1373_v54  ;;  %v354_v4 = vmul.f32 %v1376_v55, %v1376_v55  ;;  %v1436_v39 = vld [vmem:[%s1258_s23 + $0x78] sm:$0xff] }
  0x1b   : > { %1137 = vmatprep.subr.bf16.mxu1 %v1136_v36  ;;  %v1144_v60 = vpack.c.bf16 %v352_v52, %v351_v51  ;;  %v1114_v6 = vpack.c.bf16 %v1364_v50, %v1361_v49  ;;  %v1116_v11 = vpack.c.bf16 %v1376_v55, %v1373_v54  ;;  %v337_v13 = vmul.f32 %v1385_v61, %v1385_v61  ;;  %v1433_v36 = vld [vmem:[%s1258_s23 + $0x70] sm:$0xff] }
  0x1c   : > { %1107 = vmatpush3.bf16.msra.mxu0 %v1106_v41  ;;  %v1146_v12 = vpack.c.bf16 %v336_v59, %v335_v58  ;;  %v338_v16 = vmul.f32 %v1388_v62, %v1388_v62  ;;  %v1148_v18 = vpack.c.bf16 %v354_v4, %v353_v63  ;;  %v355_v24 = vmul.f32 %v1397_v7, %v1397_v7  ;;  %v432_v63 = vld [vmem:[%s1636_s3 + $0x18] sm:$0xff] }
  0x1d   : > { %1109 = vmatprep.subr.bf16.mxu0 %v1108_v44  ;;  %v356_v25 = vmul.f32 %v1400_v8, %v1400_v8  ;;  %v1118_v26 = vpack.c.bf16 %v1388_v62, %v1385_v61  ;;  %v1120_v31 = vpack.c.bf16 %v1400_v8, %v1397_v7  ;;  %v339_v33 = vmul.f32 %v1409_v19, %v1409_v19 }
  0x1e   : > { %1139 = vmatpush3.bf16.msra.mxu1 %v1138_v45  ;;  %v1150_v32 = vpack.c.bf16 %v338_v16, %v337_v13  ;;  %v340_v34 = vmul.f32 %v1412_v20, %v1412_v20  ;;  %v357_v40 = vmul.f32 %v1421_v27, %v1421_v27  ;;  %v358_v41 = vmul.f32 %v1424_v30, %v1424_v30  ;;  %v436_v13 = vld [vmem:[%s1636_s3 + $0x38] sm:$0xff] }
  0x1f   : > { %1141 = vmatprep.subr.bf16.mxu1 %v1140_v48  ;;  %v1152_v35 = vpack.c.bf16 %v356_v25, %v355_v24  ;;  %v1122_v44 = vpack.c.bf16 %v1412_v20, %v1409_v19  ;;  %v1124_v45 = vpack.c.bf16 %v1424_v30, %v1421_v27  ;;  %v341_v47 = vmul.f32 %v1433_v36, %v1433_v36 }
  0x20   : > { %1111 = vmatpush3.bf16.msra.mxu0 %v1110_v53  ;;  %v1154_v46 = vpack.c.bf16 %v340_v34, %v339_v33  ;;  %v342_v48 = vmul.f32 %v1436_v39, %v1436_v39  ;;  %v1156_v51 = vpack.c.bf16 %v358_v41, %v357_v40  ;;  %v1126_v52 = vpack.c.bf16 %v1436_v39, %v1433_v36  ;;  %v429_v53 = vld [vmem:[%s1636_s3] sm:$0xff] }
  0x21   : > { %1113 = vmatprep.subr.bf16.mxu0 %v1112_v56  ;;  %v430_v56 = vld [vmem:[%s1636_s3 + $0x8] sm:$0xff]  ;;  %v1207_v59 = vmov 0.0|0.0   ;;  %v589_v34 = vld [vmem:[%s1637_s4] sm:$0xff] }
  0x22   : > { %1143 = vmatpush3.bf16.msra.mxu1 %v1142_v57  ;;  %v1158_v57 = vpack.c.bf16 %v342_v48, %v341_v47  ;;  %v1161_v58 = vpack.c.bf16 %v430_v56, %v429_v53  ;;  %v738_v53 = vlaneseq }
  0x23   : > { %1145 = vmatprep.subr.bf16.mxu1 %v1144_v60  ;;  %v431_v60 = vld [vmem:[%s1636_s3 + $0x10] sm:$0xff] }
  0x24   : > { %1115 = vmatpush3.bf16.msra.mxu0 %v1114_v6  ;;  %v1164_v4 = vpack.c.bf16 %v432_v63, %v431_v60  ;;  %v433_v6 = vld [vmem:[%s1636_s3 + $0x20] sm:$0xff] }
  0x25   : > { %1117 = vmatprep.subr.bf16.mxu0 %v1116_v11  ;;  %v434_v11 = vld [vmem:[%s1636_s3 + $0x28] sm:$0xff] }
  0x26   : > { %1147 = vmatpush3.bf16.msra.mxu1 %v1146_v12  ;;  %v1167_v12 = vpack.c.bf16 %v434_v11, %v433_v6 }
  0x27   : > { %1149 = vmatprep.subr.bf16.mxu1 %v1148_v18  ;;  %v1209_v18 = vmov 0.0  }
  0x28   : > { %1119 = vmatpush3.bf16.msra.mxu0 %v1118_v26 }
  0x29   : > { %1121 = vmatprep.subr.bf16.mxu0 %v1120_v31 }
  0x2a   : > { %1151 = vmatpush3.bf16.msra.mxu1 %v1150_v32 }
  0x2b   : > { %1153 = vmatprep.subr.bf16.mxu1 %v1152_v35 }
  0x2c   : > { %1123 = vmatpush3.bf16.msra.mxu0 %v1122_v44 }
  0x2d   : > { %1125 = vmatprep.subr.bf16.mxu0 %v1124_v45 }
  0x2e   : > { %1155 = vmatpush3.bf16.msra.mxu1 %v1154_v46 }
  0x2f   : > { %1157 = vmatprep.subr.bf16.mxu1 %v1156_v51 }
  0x30   : > { %1127 = vmatpush3.bf16.msra.mxu0 %v1126_v52 }
  0x31   : > { %1160 = vmatprep.subr.bf16.mxu0 %v1207_v59 }
  0x32   : > { %1159 = vmatpush3.bf16.msra.mxu1 %v1158_v57 }
  0x33   : > { %322 = vmatmul.mubr.f32.vlgmr.msra.gmra.mrb[0].mxu0 %v1206_v0  ;;  %1172 = vmatprep.subr.bf16.mxu1 %v1207_v59 }
  0x34   : > { %1162 = vmatpush3.bf16.msra.mxu0 %v1161_v58  ;;  %1064 = vmatprep.mubr.msk.f32.mxu0 %vm1208_vm0, %v1209_v18 }
  0x35   : > { %424 = vmatmul.mubr.f32.vlgmr.msra.gmra.mrb[0].mxu1 %v1206_v0  ;;  %1163 = vmatprep.subr.bf16.mxu0 %v1207_v59  ;;  %v435_v0 = vld [vmem:[%s1636_s3 + $0x30] sm:$0xff] }
  0x36   : > { %1174 = vmatpush3.bf16.msra.mxu1 %v1161_v58  ;;  %v1170_v16 = vpack.c.bf16 %v436_v13, %v435_v0  ;;  %1083 = vmatprep.mubr.msk.f32.mxu1 %vm1208_vm0, %v1209_v18  ;;  %v739_v58 = vshrl.u32 %v738_v53, 7 }
  0x37   : > { %1175 = vmatprep.subr.bf16.mxu1 %v1207_v59 }
  0x38   : > { %1165 = vmatpush3.bf16.msra.mxu0 %v1164_v4 }
  0x39   : > { %1166 = vmatprep.subr.bf16.mxu0 %v1207_v59 }
  0x3a   : > { %1177 = vmatpush3.bf16.msra.mxu1 %v1164_v4 }
  0x3b   : > { %1178 = vmatprep.subr.bf16.mxu1 %v1207_v59 }
  0x3c   : > { %1168 = vmatpush3.bf16.msra.mxu0 %v1167_v12 }
  0x3d   : > { %1169 = vmatprep.subr.bf16.mxu0 %v1207_v59 }
  0x3e   : > { %1180 = vmatpush3.bf16.msra.mxu1 %v1167_v12 }
  0x3f   : > { %1181 = vmatprep.subr.bf16.mxu1 %v1207_v59  ;;  %v740_v59 = vsub.s32 0, %v739_v58  ;;  %v951_v58 = vld [vmem:[%s1635_s2] ss:$0 sm:$0xff] }
  0x40   : > { %1171 = vmatpush3.bf16.msra.mxu0 %v1170_v16 }
  0x41   : > { %1086 = vmatprep.subr.mxu0 %v1209_v18 }
  0x42   : > { %1183 = vmatpush3.bf16.msra.mxu1 %v1170_v16 }
  0x43   : > { %1091 = vmatprep.subr.mxu1 %v1209_v18 }
 0x106   : > { %v988_v24 = vpop.f32.mrb[0].mxu0 }
 0x107   : > { %v989_v25 = vpop.f32.mrb[1].mxu0 }
 0x108   : > { %v990_v26 = vadd.f32 %v989_v25, %v988_v24  ;;  %v1023_v31 = vpop.f32.mrb[0].mxu1 }
 0x109   : > { %v1024_v32 = vpop.f32.mrb[1].mxu1 }
 0x10a   : > { %v1025_v33 = vadd.f32 %v1024_v32, %v1023_v31  ;;  %1065 = vmatmul.mubr.msk.f32.vlgmr.msra.gmra.mrb[2].mxu0 %vm437_vm1, %v990_v26 }
 0x10b   : > { %1088 = vmatprep.mubr.msk.f32.mxu0 %vm1208_vm0, %v1209_v18  ;;  %1087 = vmatpush3.msra.mxu0 %v589_v34 }
 0x10c   : > { %1084 = vmatmul.mubr.msk.f32.vlgmr.msra.gmra.mrb[2].mxu1 %vm437_vm1, %v1025_v33 }
 0x10d   : > { %1093 = vmatprep.mubr.msk.f32.mxu1 %vm1208_vm0, %v1209_v18  ;;  %1092 = vmatpush3.msra.mxu1 %v589_v34 }
 0x1dd   : > { %v507_v35 = vpop.f32.mrb[2].mxu0 }
 0x1de   : > { %v585_v40 = vmul.f32 0.00048828125, %v507_v35  ;;  %v1066_v41 = vpop.f32.mrb[3].mxu0 }
 0x1df   : > { %v580_v44 = vpop.f32.mrb[2].mxu1 }
 0x1e0   : > { %v587_v45 = vmul.f32 %v585_v40, %v585_v40  ;;  %v586_v46 = vmul.f32 0.00048828125, %v580_v44  ;;  %v1085_v47 = vpop.f32.mrb[3].mxu1  ;;  %1089 = vmatmul.mubr.msk.f32.vlgmr.msra.gmra.mrb[4].mxu0 %vm590_vm2, %v585_v40 }
 0x1e2   : > { %v588_v48 = vsub.f32 %v586_v46, %v587_v45 }
 0x1e4   : > { %1094 = vmatmul.mubr.msk.f32.vlgmr.msra.gmra.mrb[4].mxu1 %vm590_vm2, %v588_v48 }
 0x2b3   : > { %v660_v51 = vpop.f32.mrb[4].mxu0 }
 0x2b4   : > { %v1090_v52 = vpop.f32.mrb[5].mxu0  ;;  %v1487_v63 = vrot.slane %v660_v51, %v740_v59 }
 0x2b6   : > { %v742_v4 = vsub.f32 %v1267_v3, %v1487_v63  ;;  %v743_v6 = vsub.f32 %v1272_v5, %v1487_v63  ;;  %v744_v11 = vsub.f32 %v1293_v14, %v1487_v63  ;;  %v745_v12 = vsub.f32 %v1296_v15, %v1487_v63  ;;  %v774_v15 = vld [vmem:[%s1634_s1] sm:$0x1] }
 0x2b7   : > { %v733_v56 = vpop.f32.mrb[4].mxu1  ;;  %v746_v0 = vsub.f32 %v1311_v22, %v1487_v63  ;;  %v747_v13 = vsub.f32 %v1314_v23, %v1487_v63  ;;  %v748_v16 = vsub.f32 %v1337_v37, %v1487_v63  ;;  %v749_v3 = vsub.f32 %v1340_v38, %v1487_v63 }
 0x2b8   : > { %v1095_v57 = vpop.f32.mrb[5].mxu1  ;;  %v734_v60 = vadd.f32 1e-05, %v733_v56  ;;  %v750_v5 = vsub.f32 %v1361_v49, %v1487_v63  ;;  %v751_v14 = vsub.f32 %v1364_v50, %v1487_v63  ;;  %v752_v22 = vsub.f32 %v1385_v61, %v1487_v63 }
 0x2b9   : > { %v753_v23 = vsub.f32 %v1388_v62, %v1487_v63  ;;  %v754_v37 = vsub.f32 %v1409_v19, %v1487_v63  ;;  %v755_v38 = vsub.f32 %v1412_v20, %v1487_v63  ;;  %v756_v50 = vsub.f32 %v1433_v36, %v1487_v63 }
 0x2ba   : > { %1196 = vrsqrt.f32 %v734_v60  ;;  %v757_v18 = vsub.f32 %v1436_v39, %v1487_v63  ;;  %v758_v24 = vsub.f32 %v1261_v1, %v1487_v63  ;;  %v759_v61 = vsub.f32 %v1264_v2, %v1487_v63 }
 0x2bb   : > { %v760_v62 = vsub.f32 %v1281_v9, %v1487_v63  ;;  %v761_v19 = vsub.f32 %v1284_v10, %v1487_v63  ;;  %v762_v20 = vsub.f32 %v1301_v17, %v1487_v63  ;;  %v763_v36 = vsub.f32 %v1308_v21, %v1487_v63 }
 0x2bc   : > { %v764_v39 = vsub.f32 %v1323_v28, %v1487_v63  ;;  %v765_v1 = vsub.f32 %v1326_v29, %v1487_v63  ;;  %v766_v2 = vsub.f32 %v1349_v42, %v1487_v63  ;;  %v767_v9 = vsub.f32 %v1352_v43, %v1487_v63 }
 0x2bd   : > { %v768_v10 = vsub.f32 %v1373_v54, %v1487_v63  ;;  %v769_v17 = vsub.f32 %v1376_v55, %v1487_v63  ;;  %v770_v21 = vsub.f32 %v1397_v7, %v1487_v63  ;;  %v771_v28 = vsub.f32 %v1400_v8, %v1487_v63 }
 0x2be   : > { %v772_v29 = vsub.f32 %v1421_v27, %v1487_v63  ;;  %v773_v42 = vsub.f32 %v1424_v30, %v1487_v63 }
 0x2c4   : > { %v1197_v49 = vpop.eup %1196 }
 0x2c5   : > { %v775_v25 = vmul.f32 %v1197_v49, %v774_v15 }
 0x2c7   : > { %v779_v26 = vrot.slane %v775_v25, %v740_v59 }
 0x2c9   : > { %v780_v43 = vmul.f32 %v779_v26, %v742_v4  ;;  %v781_v31 = vmul.f32 %v779_v26, %v743_v6  ;;  %v782_v32 = vmul.f32 %v779_v26, %v744_v11  ;;  %v783_v54 = vmul.f32 %v779_v26, %v745_v12 }
 0x2ca   : > { %v784_v33 = vmul.f32 %v779_v26, %v746_v0  ;;  %v785_v34 = vmul.f32 %v779_v26, %v747_v13  ;;  %v786_v55 = vmul.f32 %v779_v26, %v748_v16  ;;  %v787_v35 = vmul.f32 %v779_v26, %v749_v3 }
 0x2cb   : > { %v788_v40 = vmul.f32 %v779_v26, %v750_v5  ;;  %v789_v41 = vmul.f32 %v779_v26, %v751_v14  ;;  %v790_v7 = vmul.f32 %v779_v26, %v752_v22  ;;  %v791_v44 = vmul.f32 %v779_v26, %v753_v23 }
 0x2cc   : > { %v792_v45 = vmul.f32 %v779_v26, %v754_v37  ;;  %v793_v8 = vmul.f32 %v779_v26, %v755_v38  ;;  %v794_v46 = vmul.f32 %v779_v26, %v756_v50  ;;  %v795_v27 = vmul.f32 %v779_v26, %v757_v18 }
 0x2cd   : > { %v796_v47 = vmul.f32 %v779_v26, %v758_v24  ;;  %v797_v48 = vmul.f32 %v779_v26, %v759_v61  ;;  %v798_v30 = vmul.f32 %v779_v26, %v760_v62  ;;  %v799_v51 = vmul.f32 %v779_v26, %v761_v19 }
 0x2ce   : > { %v800_v52 = vmul.f32 %v779_v26, %v762_v20  ;;  %v801_v53 = vmul.f32 %v779_v26, %v763_v36  ;;  %v802_v56 = vmul.f32 %v779_v26, %v764_v39  ;;  %v803_v57 = vmul.f32 %v779_v26, %v765_v1 }
 0x2cf   : > { %v804_v59 = vmul.f32 %v779_v26, %v766_v2  ;;  %v805_v60 = vmul.f32 %v779_v26, %v767_v9  ;;  %v806_v63 = vmul.f32 %v779_v26, %v768_v10  ;;  %v807_v4 = vmul.f32 %v779_v26, %v769_v17 }
 0x2d0   : > { %v808_v6 = vmul.f32 %v779_v26, %v770_v21  ;;  %v809_v11 = vmul.f32 %v779_v26, %v771_v28  ;;  %v810_v12 = vmul.f32 %v779_v26, %v772_v29  ;;  %v811_v0 = vmul.f32 %v779_v26, %v773_v42 }
 0x2d1   : > { %v819_v13 = vadd.f32 %v951_v58, %v780_v43  ;;  %v820_v16 = vadd.f32 %v951_v58, %v781_v31  ;;  %v821_v3 = vadd.f32 %v951_v58, %v782_v32  ;;  %v822_v5 = vadd.f32 %v951_v58, %v783_v54 }
 0x2d2   : > { %v823_v14 = vadd.f32 %v951_v58, %v784_v33  ;;  %v824_v15 = vadd.f32 %v951_v58, %v785_v34  ;;  %v825_v22 = vadd.f32 %v951_v58, %v786_v55  ;;  %v826_v23 = vadd.f32 %v951_v58, %v787_v35 }
 0x2d3   : > { %v827_v37 = vadd.f32 %v951_v58, %v788_v40  ;;  %v828_v38 = vadd.f32 %v951_v58, %v789_v41  ;;  %v829_v49 = vadd.f32 %v951_v58, %v790_v7  ;;  %v830_v50 = vadd.f32 %v951_v58, %v791_v44  ;;  %851 = vst.msk [vmem:[%s1564_s26] sm:$0xff] %vm437_vm1, %v819_v13 }
 0x2d4   : > { %852 = vst.msk [vmem:[%s1564_s26 + $0x8] sm:$0xff] %vm437_vm1, %v820_v16  ;;  %853 = vst.msk [vmem:[%s1564_s26 + $0x10] sm:$0xff] %vm437_vm1, %v821_v3  ;;  %v831_v18 = vadd.f32 %v951_v58, %v792_v45  ;;  %v832_v24 = vadd.f32 %v951_v58, %v793_v8  ;;  %v833_v61 = vadd.f32 %v951_v58, %v794_v46 }
 0x2d5   : > { %854 = vst.msk [vmem:[%s1564_s26 + $0x18] sm:$0xff] %vm437_vm1, %v822_v5  ;;  %v834_v62 = vadd.f32 %v951_v58, %v795_v27  ;;  %855 = vst.msk [vmem:[%s1564_s26 + $0x20] sm:$0xff] %vm437_vm1, %v823_v14  ;;  %v835_v19 = vadd.f32 %v951_v58, %v796_v47  ;;  %v836_v20 = vadd.f32 %v951_v58, %v797_v48 }
 0x2d6   : > { %856 = vst.msk [vmem:[%s1564_s26 + $0x28] sm:$0xff] %vm437_vm1, %v824_v15  ;;  %857 = vst.msk [vmem:[%s1564_s26 + $0x30] sm:$0xff] %vm437_vm1, %v825_v22  ;;  %v837_v25 = vadd.f32 %v951_v58, %v798_v30  ;;  %v838_v36 = vadd.f32 %v951_v58, %v799_v51  ;;  %v839_v39 = vadd.f32 %v951_v58, %v800_v52 }
 0x2d7   : > { %858 = vst.msk [vmem:[%s1564_s26 + $0x38] sm:$0xff] %vm437_vm1, %v826_v23  ;;  %859 = vst.msk [vmem:[%s1564_s26 + $0x40] sm:$0xff] %vm437_vm1, %v827_v37  ;;  %v840_v1 = vadd.f32 %v951_v58, %v801_v53  ;;  %v841_v2 = vadd.f32 %v951_v58, %v802_v56  ;;  %v842_v9 = vadd.f32 %v951_v58, %v803_v57 }
 0x2d8   : > { %860 = vst.msk [vmem:[%s1564_s26 + $0x48] sm:$0xff] %vm437_vm1, %v828_v38  ;;  %861 = vst.msk [vmem:[%s1564_s26 + $0x50] sm:$0xff] %vm437_vm1, %v829_v49  ;;  %v843_v10 = vadd.f32 %v951_v58, %v804_v59  ;;  %v844_v17 = vadd.f32 %v951_v58, %v805_v60  ;;  %v845_v26 = vadd.f32 %v951_v58, %v806_v63 }
 0x2d9   : > { %862 = vst.msk [vmem:[%s1564_s26 + $0x58] sm:$0xff] %vm437_vm1, %v830_v50  ;;  %863 = vst.msk [vmem:[%s1564_s26 + $0x60] sm:$0xff] %vm437_vm1, %v831_v18  ;;  %v846_v21 = vadd.f32 %v951_v58, %v807_v4  ;;  %v847_v28 = vadd.f32 %v951_v58, %v808_v6  ;;  %v848_v29 = vadd.f32 %v951_v58, %v809_v11 }
 0x2da   : > { %864 = vst.msk [vmem:[%s1564_s26 + $0x68] sm:$0xff] %vm437_vm1, %v832_v24  ;;  %865 = vst.msk [vmem:[%s1564_s26 + $0x70] sm:$0xff] %vm437_vm1, %v833_v61  ;;  %v849_v42 = vadd.f32 %v951_v58, %v810_v12  ;;  %v850_v43 = vadd.f32 %v951_v58, %v811_v0 }
 0x2db   : > { %866 = vst.msk [vmem:[%s1564_s26 + $0x78] sm:$0xff] %vm437_vm1, %v834_v62  ;;  %867 = vst.msk [vmem:[%s1564_s26 + $0x80] sm:$0xff] %vm437_vm1, %v835_v19 }
 0x2dc   : > { %868 = vst.msk [vmem:[%s1564_s26 + $0x88] sm:$0xff] %vm437_vm1, %v836_v20  ;;  %869 = vst.msk [vmem:[%s1564_s26 + $0x90] sm:$0xff] %vm437_vm1, %v837_v25 }
 0x2dd   : > { %870 = vst.msk [vmem:[%s1564_s26 + $0x98] sm:$0xff] %vm437_vm1, %v838_v36  ;;  %871 = vst.msk [vmem:[%s1564_s26 + $0xa0] sm:$0xff] %vm437_vm1, %v839_v39 }
 0x2de   : > { %872 = vst.msk [vmem:[%s1564_s26 + $0xa8] sm:$0xff] %vm437_vm1, %v840_v1  ;;  %873 = vst.msk [vmem:[%s1564_s26 + $0xb0] sm:$0xff] %vm437_vm1, %v841_v2 }
 0x2df   : > { %874 = vst.msk [vmem:[%s1564_s26 + $0xb8] sm:$0xff] %vm437_vm1, %v842_v9  ;;  %875 = vst.msk [vmem:[%s1564_s26 + $0xc0] sm:$0xff] %vm437_vm1, %v843_v10 }
 0x2e0   : > { %876 = vst.msk [vmem:[%s1564_s26 + $0xc8] sm:$0xff] %vm437_vm1, %v844_v17  ;;  %877 = vst.msk [vmem:[%s1564_s26 + $0xd0] sm:$0xff] %vm437_vm1, %v845_v26 }
 0x2e1   : > { %878 = vst.msk [vmem:[%s1564_s26 + $0xd8] sm:$0xff] %vm437_vm1, %v846_v21  ;;  %879 = vst.msk [vmem:[%s1564_s26 + $0xe0] sm:$0xff] %vm437_vm1, %v847_v28 }
 0x2e2   : > { %880 = vst.msk [vmem:[%s1564_s26 + $0xe8] sm:$0xff] %vm437_vm1, %v848_v29  ;;  %881 = vst.msk [vmem:[%s1564_s26 + $0xf0] sm:$0xff] %vm437_vm1, %v849_v42 }
 0x2e3   : > { %882 = vst.msk [vmem:[%s1564_s26 + $0xf8] sm:$0xff] %vm437_vm1, %v850_v43 }
 0x2e4 PF: > { %s15_s18 = sadd.s32 1, %s1204_s18  }
 0x2e5   : > { %p12_p4 = scmp.ge.s32.totalorder %s15_s18, 4  }
 0x2e7   :  { %14 = sbr.rel (!%p12_p4) target bundleno = 1 (0x1), region = 70 }

// kernel: resblock_apply.15
= control target key start
LH: loop header
LB: loop body
LE: loop exit
PB: predicated region body
PF: predicated region fallthrough
CT: control target
= control target key end

     0   :  { %s1431_s12 = smov 0   ;;  %s1433_s13 = smov 0   ;;  %s1679_s0 = inlined_call_operand.vmem [shape: bf16[512,64], index: 0, kind: input, shape index: {}]   ;;  %s1680_s1 = inlined_call_operand.vmem [shape: bf16[64,256], index: 1, kind: input, shape index: {}]   ;;  %s1681_s2 = inlined_call_operand.vmem [shape: f32[1,256], index: 2, kind: input, shape index: {}]   ;;  %s1682_s3 = inlined_call_operand.vmem [shape: f32[512,256], index: 3, kind: output, shape index: {}]  }
   0x1   :  { %s1435_s14 = smov 0  }
   0x2 LB: > { %s32_s15 = sadd.s32 1, %s1404_s13  ;;  %p1276_p0 = scmp.ge.s32.totalorder %s1408_s14, 1  ;;  %s1408_s14 = sphi %s1435_s14, %s13_s14   ;;  %s1404_s13 = sphi %s1433_s13, %s1684_s13   ;;  %s1400_s12 = sphi %s1431_s12, %s1683_s12  }
   0x3   : > { %p34_p1 = scmp.ge.s32.totalorder %s32_s15, 2  ;;  %p193_p2 = scmp.lt.s32.totalorder %s1408_s14, 3 }
   0x5   : > { %s1686_s15 = smov (%p34_p1, %s32_s15), 0  ;;  %p194_p3 = pnand %p1276_p0, %p193_p2 }
   0x6   : > { %v1358_v0 = vld [vmem:[%s1680_s1 + $0x4] ss:$8 sps:$4 sm:$0xff] (!%p194_p3)   ;;  %s1277_s18 = sshll.u32 (!%p194_p3), %s1400_s12, 5  ;;  %v1360_v1 = vld [vmem:[%s1680_s1] ss:$8 sps:$4 sm:$0xff] (!%p194_p3)   ;;  %v1410_v2 = vmov (!%p194_p3), 0   ;;  %v1009_v25 = vlaneseq (!%p194_p3) }
   0x7   : > { %197 = sbr.rel (%p194_p3) target bundleno = 298 (0x12a), region = 32  ;;  %651 = vmatprep.mubr.bf16.mxu0 (!%p194_p3), %v1410_v2  ;;  %731 = vmatprep.mubr.bf16.mxu1 (!%p194_p3), %v1410_v2  ;;  %p240_p4 = scmp.lt.s32.totalorder (!%p194_p3), %s1277_s18, 63  ;;  %v1361_v3 = vld [vmem:[%s1680_s1 + $0x14] ss:$8 sps:$4 sm:$0xff] (!%p194_p3)   ;;  %v1363_v4 = vld [vmem:[%s1680_s1 + $0x10] ss:$8 sps:$4 sm:$0xff] (!%p194_p3)  }
   0x8   : > { %619 = vmatprep.subr.bf16.mxu0 (!%p194_p3), %v1358_v0  ;;  %1325 = vmatprep.subr.bf16.mxu1 (!%p194_p3), %v1358_v0  ;;  %v1364_v5 = vld [vmem:[%s1680_s1 + $0x24] ss:$8 sps:$4 sm:$0xff] (!%p194_p3)   ;;  %v1366_v6 = vld [vmem:[%s1680_s1 + $0x20] ss:$8 sps:$4 sm:$0xff] (!%p194_p3)   ;;  %v1367_v7 = vld [vmem:[%s1680_s1 + $0x34] ss:$8 sps:$4 sm:$0xff] (!%p194_p3)  }
   0x9   : > { %620 = vmatpush1.bf16.msra.mxu0 (!%p194_p3), %v1360_v1  ;;  %1329 = vmatpush1.bf16.msra.mxu1 (!%p194_p3), %v1360_v1  ;;  %v1369_v8 = vld [vmem:[%s1680_s1 + $0x30] ss:$8 sps:$4 sm:$0xff] (!%p194_p3)   ;;  %vm570_vm0 = vcmask (!%p194_p3), 523264   ;;  %v1010_v26 = vshrl.u32 (!%p194_p3), %v1009_v25, 7  ;;  %v1007_v28 = vld [vmem:[%s1681_s2] sm:$0x3] (!%p194_p3) }
   0xa   : > { %621 = vmatprep.subr.bf16.mxu0 (!%p194_p3), %v1361_v3  ;;  %1326 = vmatprep.subr.bf16.mxu1 (!%p194_p3), %v1361_v3 }
   0xb   : > { %v1011_v27 = vsub.s32 (!%p194_p3), 0, %v1010_v26  ;;  %v1015_v29 = vsub.s32 (!%p194_p3), 1, %v1010_v26 }
   0xd   : > { %622 = vmatpush1.bf16.msra.mxu0 (!%p194_p3), %v1363_v4  ;;  %1330 = vmatpush1.bf16.msra.mxu1 (!%p194_p3), %v1363_v4  ;;  %v1533_v30 = vrot.slane (!%p194_p3), %v1007_v28, %v1011_v27  ;;  %v1535_v31 = vrot.slane (!%p194_p3), %v1007_v28, %v1015_v29 }
   0xe   : > { %s1688_s18 = smov (!%p240_p4, %s1277_s18), 63  ;;  %623 = vmatprep.subr.bf16.mxu0 %v1364_v5  ;;  %1327 = vmatprep.subr.bf16.mxu1 %v1364_v5 }
   0xf   : > { %s1278_s27 = sshll.u32 %s1688_s18, 2  ;;  %s1324_s12 = sshll.u32 %s1688_s18, 4 }
  0x10   : > { %s1472_s30 = scalar_lea.vmem %s1679_s0, %s1278_s27  ;;  %s1540_s19 = scalar_lea.vmem %s1682_s3, %s1324_s12 }
  0x11   : > { %624 = vmatpush1.bf16.msra.mxu0 %v1366_v6  ;;  %1331 = vmatpush1.bf16.msra.mxu1 %v1366_v6  ;;  %v1370_v9 = vld [vmem:[%s1472_s30] sm:$0xff]   ;;  %v1372_v11 = vld [vmem:[%s1472_s30 + $0x8] sm:$0xff]   ;;  %v1374_v13 = vld [vmem:[%s1472_s30 + $0x10] sm:$0xff]  }
  0x12   : > { %625 = vmatprep.subr.bf16.mxu0 %v1367_v7  ;;  %1328 = vmatprep.subr.bf16.mxu1 %v1367_v7  ;;  %v1371_v10 = vld [vmem:[%s1472_s30 + $0x40] sm:$0xff]   ;;  %v1373_v12 = vld [vmem:[%s1472_s30 + $0x48] sm:$0xff]   ;;  %v1375_v14 = vld [vmem:[%s1472_s30 + $0x50] sm:$0xff]  }
  0x13   : > { %v1376_v15 = vld [vmem:[%s1472_s30 + $0x18] sm:$0xff]   ;;  %v1378_v17 = vld [vmem:[%s1472_s30 + $0x20] sm:$0xff]   ;;  %v1380_v19 = vld [vmem:[%s1472_s30 + $0x28] sm:$0xff]  }
  0x14   : > { %v1377_v16 = vld [vmem:[%s1472_s30 + $0x58] sm:$0xff]   ;;  %v1379_v18 = vld [vmem:[%s1472_s30 + $0x60] sm:$0xff]   ;;  %v1381_v20 = vld [vmem:[%s1472_s30 + $0x68] sm:$0xff]  }
  0x15   : > { %626 = vmatpush1.bf16.msra.mxu0 %v1369_v8  ;;  %1332 = vmatpush1.bf16.msra.mxu1 %v1369_v8  ;;  %v1382_v21 = vld [vmem:[%s1472_s30 + $0x30] sm:$0xff]   ;;  %v1384_v23 = vld [vmem:[%s1472_s30 + $0x38] sm:$0xff]  }
  0x16   : > { %v1383_v22 = vld [vmem:[%s1472_s30 + $0x70] sm:$0xff]   ;;  %v1385_v24 = vld [vmem:[%s1472_s30 + $0x78] sm:$0xff]  }
  0x18   : > { %1306 = vmatmul.mubr.msk.bf16.vlgmr.msra.gmra.mrb[0].mxu0 %vm570_vm0, %v1370_v9  ;;  %1314 = vmatmul.mubr.msk.bf16.vlgmr.msra.gmra.mrb[0].mxu1 %vm570_vm0, %v1371_v10 }
  0x19   : > { %661 = vmatprep.mubr.bf16.mxu0 %v1410_v2  ;;  %741 = vmatprep.mubr.bf16.mxu1 %v1410_v2 }
  0x20   : > { %1307 = vmatmul.mubr.msk.bf16.gmra.mrb[4].mxu0 %vm570_vm0, %v1372_v11  ;;  %1315 = vmatmul.mubr.msk.bf16.gmra.mrb[4].mxu1 %vm570_vm0, %v1373_v12 }
  0x21   : > { %671 = vmatprep.mubr.bf16.mxu0 %v1410_v2  ;;  %751 = vmatprep.mubr.bf16.mxu1 %v1410_v2 }
  0x28   : > { %1308 = vmatmul.mubr.msk.bf16.gmra.mrb[8].mxu0 %vm570_vm0, %v1374_v13  ;;  %1316 = vmatmul.mubr.msk.bf16.gmra.mrb[8].mxu1 %vm570_vm0, %v1375_v14 }
  0x29   : > { %681 = vmatprep.mubr.bf16.mxu0 %v1410_v2  ;;  %761 = vmatprep.mubr.bf16.mxu1 %v1410_v2 }
  0x30   : > { %1309 = vmatmul.mubr.msk.bf16.gmra.mrb[12].mxu0 %vm570_vm0, %v1376_v15  ;;  %1317 = vmatmul.mubr.msk.bf16.gmra.mrb[12].mxu1 %vm570_vm0, %v1377_v16 }
  0x31   : > { %691 = vmatprep.mubr.bf16.mxu0 %v1410_v2  ;;  %771 = vmatprep.mubr.bf16.mxu1 %v1410_v2 }
  0x38   : > { %1310 = vmatmul.mubr.msk.bf16.gmra.mrb[16].mxu0 %vm570_vm0, %v1378_v17  ;;  %1318 = vmatmul.mubr.msk.bf16.gmra.mrb[16].mxu1 %vm570_vm0, %v1379_v18 }
  0x39   : > { %701 = vmatprep.mubr.bf16.mxu0 %v1410_v2  ;;  %781 = vmatprep.mubr.bf16.mxu1 %v1410_v2 }
  0x40   : > { %1311 = vmatmul.mubr.msk.bf16.gmra.mrb[20].mxu0 %vm570_vm0, %v1380_v19  ;;  %1319 = vmatmul.mubr.msk.bf16.gmra.mrb[20].mxu1 %vm570_vm0, %v1381_v20 }
  0x41   : > { %711 = vmatprep.mubr.bf16.mxu0 %v1410_v2  ;;  %791 = vmatprep.mubr.bf16.mxu1 %v1410_v2 }
  0x48   : > { %1312 = vmatmul.mubr.msk.bf16.gmra.mrb[24].mxu0 %vm570_vm0, %v1382_v21  ;;  %1320 = vmatmul.mubr.msk.bf16.gmra.mrb[24].mxu1 %vm570_vm0, %v1383_v22 }
  0x49   : > { %721 = vmatprep.mubr.bf16.mxu0 %v1410_v2  ;;  %801 = vmatprep.mubr.bf16.mxu1 %v1410_v2 }
  0x50   : > { %1313 = vmatmul.mubr.msk.bf16.gmra.mrb[28].mxu0 %vm570_vm0, %v1384_v23  ;;  %1321 = vmatmul.mubr.msk.bf16.gmra.mrb[28].mxu1 %vm570_vm0, %v1385_v24 }
  0xeb   : > { %v653_v32 = vpop.f32.mrb[0].mxu0  ;;  %v733_v33 = vpop.f32.mrb[0].mxu1 }
  0xec   : > { %v1019_v34 = vadd.f32 %v1533_v30, %v653_v32  ;;  %v1051_v35 = vadd.f32 %v1533_v30, %v733_v33  ;;  %v655_v36 = vpop.f32.mrb[1].mxu0  ;;  %v735_v37 = vpop.f32.mrb[1].mxu1 }
  0xed   : > { %v1020_v38 = vadd.f32 %v1535_v31, %v655_v36  ;;  %v1052_v39 = vadd.f32 %v1535_v31, %v735_v37  ;;  %v657_v40 = vpop.f32.mrb[2].mxu0  ;;  %v737_v41 = vpop.f32.mrb[2].mxu1 }
  0xee   : > { %1083 = vst [vmem:[%s1540_s19] sm:$0xff] %v1019_v34  ;;  %1115 = vst [vmem:[%s1540_s19 + $0x100] sm:$0xff] %v1051_v35  ;;  %v1021_v42 = vadd.f32 %v1533_v30, %v657_v40  ;;  %v1053_v43 = vadd.f32 %v1533_v30, %v737_v41  ;;  %v659_v44 = vpop.f32.mrb[3].mxu0  ;;  %v739_v45 = vpop.f32.mrb[3].mxu1 }
  0xef   : > { %1084 = vst [vmem:[%s1540_s19 + $0x8] sm:$0xff] %v1020_v38  ;;  %1116 = vst [vmem:[%s1540_s19 + $0x108] sm:$0xff] %v1052_v39  ;;  %v1022_v46 = vadd.f32 %v1535_v31, %v659_v44  ;;  %v1054_v47 = vadd.f32 %v1535_v31, %v739_v45 }
  0xf0   : > { %1085 = vst [vmem:[%s1540_s19 + $0x10] sm:$0xff] %v1021_v42  ;;  %1117 = vst [vmem:[%s1540_s19 + $0x110] sm:$0xff] %v1053_v43 }
  0xf1   : > { %1086 = vst [vmem:[%s1540_s19 + $0x18] sm:$0xff] %v1022_v46  ;;  %1118 = vst [vmem:[%s1540_s19 + $0x118] sm:$0xff] %v1054_v47 }
  0xf3   : > { %v663_v48 = vpop.f32.mrb[4].mxu0  ;;  %v743_v49 = vpop.f32.mrb[4].mxu1 }
  0xf4   : > { %v1023_v50 = vadd.f32 %v1533_v30, %v663_v48  ;;  %v1055_v51 = vadd.f32 %v1533_v30, %v743_v49  ;;  %v665_v52 = vpop.f32.mrb[5].mxu0  ;;  %v745_v53 = vpop.f32.mrb[5].mxu1 }
  0xf5   : > { %v1024_v54 = vadd.f32 %v1535_v31, %v665_v52  ;;  %v1056_v55 = vadd.f32 %v1535_v31, %v745_v53  ;;  %v667_v56 = vpop.f32.mrb[6].mxu0  ;;  %v747_v57 = vpop.f32.mrb[6].mxu1 }
  0xf6   : > { %1087 = vst [vmem:[%s1540_s19 + $0x20] sm:$0xff] %v1023_v50  ;;  %1119 = vst [vmem:[%s1540_s19 + $0x120] sm:$0xff] %v1055_v51  ;;  %v1025_v58 = vadd.f32 %v1533_v30, %v667_v56  ;;  %v1057_v59 = vadd.f32 %v1533_v30, %v747_v57  ;;  %v669_v60 = vpop.f32.mrb[7].mxu0  ;;  %v749_v61 = vpop.f32.mrb[7].mxu1 }
  0xf7   : > { %1088 = vst [vmem:[%s1540_s19 + $0x28] sm:$0xff] %v1024_v54  ;;  %1120 = vst [vmem:[%s1540_s19 + $0x128] sm:$0xff] %v1056_v55  ;;  %v1026_v62 = vadd.f32 %v1535_v31, %v669_v60  ;;  %v1058_v63 = vadd.f32 %v1535_v31, %v749_v61 }
  0xf8   : > { %1089 = vst [vmem:[%s1540_s19 + $0x30] sm:$0xff] %v1025_v58  ;;  %1121 = vst [vmem:[%s1540_s19 + $0x130] sm:$0xff] %v1057_v59 }
  0xf9   : > { %1090 = vst [vmem:[%s1540_s19 + $0x38] sm:$0xff] %v1026_v62  ;;  %1122 = vst [vmem:[%s1540_s19 + $0x138] sm:$0xff] %v1058_v63 }
  0xfb   : > { %v673_v0 = vpop.f32.mrb[8].mxu0  ;;  %v753_v1 = vpop.f32.mrb[8].mxu1 }
  0xfc   : > { %v1027_v2 = vadd.f32 %v1533_v30, %v673_v0  ;;  %v1059_v3 = vadd.f32 %v1533_v30, %v753_v1  ;;  %v675_v4 = vpop.f32.mrb[9].mxu0  ;;  %v755_v5 = vpop.f32.mrb[9].mxu1 }
  0xfd   : > { %v1028_v6 = vadd.f32 %v1535_v31, %v675_v4  ;;  %v1060_v7 = vadd.f32 %v1535_v31, %v755_v5  ;;  %v677_v8 = vpop.f32.mrb[10].mxu0  ;;  %v757_v9 = vpop.f32.mrb[10].mxu1 }
  0xfe   : > { %1091 = vst [vmem:[%s1540_s19 + $0x40] sm:$0xff] %v1027_v2  ;;  %1123 = vst [vmem:[%s1540_s19 + $0x140] sm:$0xff] %v1059_v3  ;;  %v1029_v10 = vadd.f32 %v1533_v30, %v677_v8  ;;  %v1061_v11 = vadd.f32 %v1533_v30, %v757_v9  ;;  %v679_v12 = vpop.f32.mrb[11].mxu0  ;;  %v759_v13 = vpop.f32.mrb[11].mxu1 }
  0xff   : > { %1092 = vst [vmem:[%s1540_s19 + $0x48] sm:$0xff] %v1028_v6  ;;  %1124 = vst [vmem:[%s1540_s19 + $0x148] sm:$0xff] %v1060_v7  ;;  %v1030_v14 = vadd.f32 %v1535_v31, %v679_v12  ;;  %v1062_v15 = vadd.f32 %v1535_v31, %v759_v13 }
 0x100   : > { %1093 = vst [vmem:[%s1540_s19 + $0x50] sm:$0xff] %v1029_v10  ;;  %1125 = vst [vmem:[%s1540_s19 + $0x150] sm:$0xff] %v1061_v11 }
 0x101   : > { %1094 = vst [vmem:[%s1540_s19 + $0x58] sm:$0xff] %v1030_v14  ;;  %1126 = vst [vmem:[%s1540_s19 + $0x158] sm:$0xff] %v1062_v15 }
 0x103   : > { %v683_v16 = vpop.f32.mrb[12].mxu0  ;;  %v763_v17 = vpop.f32.mrb[12].mxu1 }
 0x104   : > { %v1031_v18 = vadd.f32 %v1533_v30, %v683_v16  ;;  %v1063_v19 = vadd.f32 %v1533_v30, %v763_v17  ;;  %v685_v20 = vpop.f32.mrb[13].mxu0  ;;  %v765_v21 = vpop.f32.mrb[13].mxu1 }
 0x105   : > { %v1032_v22 = vadd.f32 %v1535_v31, %v685_v20  ;;  %v1064_v23 = vadd.f32 %v1535_v31, %v765_v21  ;;  %v687_v24 = vpop.f32.mrb[14].mxu0  ;;  %v767_v25 = vpop.f32.mrb[14].mxu1 }
 0x106   : > { %1095 = vst [vmem:[%s1540_s19 + $0x60] sm:$0xff] %v1031_v18  ;;  %1127 = vst [vmem:[%s1540_s19 + $0x160] sm:$0xff] %v1063_v19  ;;  %v1033_v26 = vadd.f32 %v1533_v30, %v687_v24  ;;  %v1065_v27 = vadd.f32 %v1533_v30, %v767_v25  ;;  %v689_v28 = vpop.f32.mrb[15].mxu0  ;;  %v769_v29 = vpop.f32.mrb[15].mxu1 }
 0x107   : > { %1096 = vst [vmem:[%s1540_s19 + $0x68] sm:$0xff] %v1032_v22  ;;  %1128 = vst [vmem:[%s1540_s19 + $0x168] sm:$0xff] %v1064_v23  ;;  %v1034_v32 = vadd.f32 %v1535_v31, %v689_v28  ;;  %v1066_v33 = vadd.f32 %v1535_v31, %v769_v29 }
 0x108   : > { %1097 = vst [vmem:[%s1540_s19 + $0x70] sm:$0xff] %v1033_v26  ;;  %1129 = vst [vmem:[%s1540_s19 + $0x170] sm:$0xff] %v1065_v27 }
 0x109   : > { %1098 = vst [vmem:[%s1540_s19 + $0x78] sm:$0xff] %v1034_v32  ;;  %1130 = vst [vmem:[%s1540_s19 + $0x178] sm:$0xff] %v1066_v33 }
 0x10b   : > { %v693_v34 = vpop.f32.mrb[16].mxu0  ;;  %v773_v35 = vpop.f32.mrb[16].mxu1 }
 0x10c   : > { %v1035_v36 = vadd.f32 %v1533_v30, %v693_v34  ;;  %v1067_v37 = vadd.f32 %v1533_v30, %v773_v35  ;;  %v695_v38 = vpop.f32.mrb[17].mxu0  ;;  %v775_v39 = vpop.f32.mrb[17].mxu1 }
 0x10d   : > { %v1036_v40 = vadd.f32 %v1535_v31, %v695_v38  ;;  %v1068_v41 = vadd.f32 %v1535_v31, %v775_v39  ;;  %v697_v42 = vpop.f32.mrb[18].mxu0  ;;  %v777_v43 = vpop.f32.mrb[18].mxu1 }
 0x10e   : > { %1099 = vst [vmem:[%s1540_s19 + $0x80] sm:$0xff] %v1035_v36  ;;  %1131 = vst [vmem:[%s1540_s19 + $0x180] sm:$0xff] %v1067_v37  ;;  %v1037_v44 = vadd.f32 %v1533_v30, %v697_v42  ;;  %v1069_v45 = vadd.f32 %v1533_v30, %v777_v43  ;;  %v699_v46 = vpop.f32.mrb[19].mxu0  ;;  %v779_v47 = vpop.f32.mrb[19].mxu1 }
 0x10f   : > { %1100 = vst [vmem:[%s1540_s19 + $0x88] sm:$0xff] %v1036_v40  ;;  %1132 = vst [vmem:[%s1540_s19 + $0x188] sm:$0xff] %v1068_v41  ;;  %v1038_v48 = vadd.f32 %v1535_v31, %v699_v46  ;;  %v1070_v49 = vadd.f32 %v1535_v31, %v779_v47 }
 0x110   : > { %1101 = vst [vmem:[%s1540_s19 + $0x90] sm:$0xff] %v1037_v44  ;;  %1133 = vst [vmem:[%s1540_s19 + $0x190] sm:$0xff] %v1069_v45 }
 0x111   : > { %1102 = vst [vmem:[%s1540_s19 + $0x98] sm:$0xff] %v1038_v48  ;;  %1134 = vst [vmem:[%s1540_s19 + $0x198] sm:$0xff] %v1070_v49 }
 0x113   : > { %v703_v50 = vpop.f32.mrb[20].mxu0  ;;  %v783_v51 = vpop.f32.mrb[20].mxu1 }
 0x114   : > { %v1039_v52 = vadd.f32 %v1533_v30, %v703_v50  ;;  %v1071_v53 = vadd.f32 %v1533_v30, %v783_v51  ;;  %v705_v54 = vpop.f32.mrb[21].mxu0  ;;  %v785_v55 = vpop.f32.mrb[21].mxu1 }
 0x115   : > { %v1040_v56 = vadd.f32 %v1535_v31, %v705_v54  ;;  %v1072_v57 = vadd.f32 %v1535_v31, %v785_v55  ;;  %v707_v58 = vpop.f32.mrb[22].mxu0  ;;  %v787_v59 = vpop.f32.mrb[22].mxu1 }
 0x116   : > { %1103 = vst [vmem:[%s1540_s19 + $0xa0] sm:$0xff] %v1039_v52  ;;  %1135 = vst [vmem:[%s1540_s19 + $0x1a0] sm:$0xff] %v1071_v53  ;;  %v1041_v60 = vadd.f32 %v1533_v30, %v707_v58  ;;  %v1073_v61 = vadd.f32 %v1533_v30, %v787_v59  ;;  %v709_v62 = vpop.f32.mrb[23].mxu0  ;;  %v789_v63 = vpop.f32.mrb[23].mxu1 }
 0x117   : > { %1104 = vst [vmem:[%s1540_s19 + $0xa8] sm:$0xff] %v1040_v56  ;;  %1136 = vst [vmem:[%s1540_s19 + $0x1a8] sm:$0xff] %v1072_v57  ;;  %v1042_v0 = vadd.f32 %v1535_v31, %v709_v62  ;;  %v1074_v1 = vadd.f32 %v1535_v31, %v789_v63 }
 0x118   : > { %1105 = vst [vmem:[%s1540_s19 + $0xb0] sm:$0xff] %v1041_v60  ;;  %1137 = vst [vmem:[%s1540_s19 + $0x1b0] sm:$0xff] %v1073_v61 }
 0x119   : > { %1106 = vst [vmem:[%s1540_s19 + $0xb8] sm:$0xff] %v1042_v0  ;;  %1138 = vst [vmem:[%s1540_s19 + $0x1b8] sm:$0xff] %v1074_v1 }
 0x11b   : > { %v713_v2 = vpop.f32.mrb[24].mxu0  ;;  %v793_v3 = vpop.f32.mrb[24].mxu1 }
 0x11c   : > { %v1043_v4 = vadd.f32 %v1533_v30, %v713_v2  ;;  %v1075_v5 = vadd.f32 %v1533_v30, %v793_v3  ;;  %v715_v6 = vpop.f32.mrb[25].mxu0  ;;  %v795_v7 = vpop.f32.mrb[25].mxu1 }
 0x11d   : > { %v1044_v8 = vadd.f32 %v1535_v31, %v715_v6  ;;  %v1076_v9 = vadd.f32 %v1535_v31, %v795_v7  ;;  %v717_v10 = vpop.f32.mrb[26].mxu0  ;;  %v797_v11 = vpop.f32.mrb[26].mxu1 }
 0x11e   : > { %1107 = vst [vmem:[%s1540_s19 + $0xc0] sm:$0xff] %v1043_v4  ;;  %1139 = vst [vmem:[%s1540_s19 + $0x1c0] sm:$0xff] %v1075_v5  ;;  %v1045_v12 = vadd.f32 %v1533_v30, %v717_v10  ;;  %v1077_v13 = vadd.f32 %v1533_v30, %v797_v11  ;;  %v719_v14 = vpop.f32.mrb[27].mxu0  ;;  %v799_v15 = vpop.f32.mrb[27].mxu1 }
 0x11f   : > { %1108 = vst [vmem:[%s1540_s19 + $0xc8] sm:$0xff] %v1044_v8  ;;  %1140 = vst [vmem:[%s1540_s19 + $0x1c8] sm:$0xff] %v1076_v9  ;;  %v1046_v16 = vadd.f32 %v1535_v31, %v719_v14  ;;  %v1078_v17 = vadd.f32 %v1535_v31, %v799_v15 }
 0x120   : > { %1109 = vst [vmem:[%s1540_s19 + $0xd0] sm:$0xff] %v1045_v12  ;;  %1141 = vst [vmem:[%s1540_s19 + $0x1d0] sm:$0xff] %v1077_v13 }
 0x121   : > { %1110 = vst [vmem:[%s1540_s19 + $0xd8] sm:$0xff] %v1046_v16  ;;  %1142 = vst [vmem:[%s1540_s19 + $0x1d8] sm:$0xff] %v1078_v17 }
 0x123   : > { %v723_v18 = vpop.f32.mrb[28].mxu0  ;;  %v803_v19 = vpop.f32.mrb[28].mxu1 }
 0x124   : > { %v1047_v20 = vadd.f32 %v1533_v30, %v723_v18  ;;  %v1079_v21 = vadd.f32 %v1533_v30, %v803_v19  ;;  %v725_v22 = vpop.f32.mrb[29].mxu0  ;;  %v805_v23 = vpop.f32.mrb[29].mxu1 }
 0x125   : > { %v1048_v24 = vadd.f32 %v1535_v31, %v725_v22  ;;  %v1080_v25 = vadd.f32 %v1535_v31, %v805_v23  ;;  %v727_v26 = vpop.f32.mrb[30].mxu0  ;;  %v807_v27 = vpop.f32.mrb[30].mxu1 }
 0x126   : > { %1111 = vst [vmem:[%s1540_s19 + $0xe0] sm:$0xff] %v1047_v20  ;;  %1143 = vst [vmem:[%s1540_s19 + $0x1e0] sm:$0xff] %v1079_v21  ;;  %v1049_v28 = vadd.f32 %v1533_v30, %v727_v26  ;;  %v1081_v29 = vadd.f32 %v1533_v30, %v807_v27  ;;  %v729_v32 = vpop.f32.mrb[31].mxu0  ;;  %v809_v33 = vpop.f32.mrb[31].mxu1 }
 0x127   : > { %1112 = vst [vmem:[%s1540_s19 + $0xe8] sm:$0xff] %v1048_v24  ;;  %1144 = vst [vmem:[%s1540_s19 + $0x1e8] sm:$0xff] %v1080_v25  ;;  %v1050_v34 = vadd.f32 %v1535_v31, %v729_v32  ;;  %v1082_v35 = vadd.f32 %v1535_v31, %v809_v33 }
 0x128   : > { %1113 = vst [vmem:[%s1540_s19 + $0xf0] sm:$0xff] %v1049_v28  ;;  %1145 = vst [vmem:[%s1540_s19 + $0x1f0] sm:$0xff] %v1081_v29 }
 0x129   : > { %1114 = vst [vmem:[%s1540_s19 + $0xf8] sm:$0xff] %v1050_v34  ;;  %1146 = vst [vmem:[%s1540_s19 + $0x1f8] sm:$0xff] %v1082_v35 }
 0x12a PF: > { %s13_s14 = sadd.s32 1, %s1408_s14   ;;  %s1683_s12 = smov %s1404_s13 }
 0x12b   : > { %p10_p5 = scmp.ge.s32.totalorder %s13_s14, 4   ;;  %s1684_s13 = smov %s1686_s15 }
 0x12d   :  { %12 = sbr.rel (!%p10_p5) target bundleno = 2 (0x2), region = 76 }

// kernel: resblock_apply.16
= control target key start
LH: loop header
LB: loop body
LE: loop exit
PB: predicated region body
PF: predicated region fallthrough
CT: control target
= control target key end

     0   :  { %s2165_s12 = smov 0   ;;  %s2901_s0 = inlined_call_operand.vmem [shape: bf16[2,256,64], index: 0, kind: input, shape index: {}]   ;;  %s2902_s1 = inlined_call_operand.vmem [shape: bf16[2,256,64], index: 1, kind: input, shape index: {}]   ;;  %s2903_s2 = inlined_call_operand.vmem [shape: bf16[2,256,64], index: 2, kind: input, shape index: {}]   ;;  %s2904_s3 = inlined_call_operand.vmem [shape: f32[2,256,64], index: 3, kind: output, shape index: {}]  }
   0x1 LB: > { %s1638_s13 = sadd.s32 4294967295, %s2143_s12   ;;  %p1642_p0 = scmp.ge.s32.totalorder %s2143_s12, 1  ;;  %s2143_s12 = sphi %s2165_s12, %s13_s12  }
   0x2   : > { %p157_p1 = scmp.lt.s32.totalorder %s2143_s12, 3 }
   0x4   : > { %p158_p2 = pnand %p1642_p0, %p157_p1 }
   0x6   : > { %161 = sbr.rel (%p158_p2) target bundleno = 1027 (0x403), region = 32 }
   0xd   : > { %p191_p3 = scmp.lt.s32.totalorder %s1638_s13, 1  ;;  %vm468_vm0 = vcmask 523264  }
   0xf   : > { %s2998_s13 = smov (!%p191_p3, %s1638_s13), 1 }
  0x10   : > { %s2176_s14 = sshll.u32 %s2998_s13, 7  ;;  %s1720_s24 = sshll.u32 %s2998_s13, 8 }
  0x11   : > { %s2182_s17 = scalar_lea.vmem %s2902_s1, %s2176_s14  ;;  %s2199_s20 = scalar_lea.vmem %s2901_s0, %s2176_s14 }
  0x12   : > { %v1897_v0 = vld [vmem:[%s2182_s17 + $0x40] sm:$0xff]   ;;  %v1899_v2 = vld [vmem:[%s2182_s17 + $0x48] sm:$0xff]   ;;  %v1901_v6 = vld [vmem:[%s2182_s17 + $0x50] sm:$0xff]   ;;  %s2466_s23 = scalar_lea.vmem %s2903_s2, %s2176_s14  ;;  %s2832_s27 = scalar_lea.vmem %s2904_s3, %s1720_s24 }
  0x13   : > { %v1898_v1 = vld [vmem:[%s2182_s17] sm:$0xff]   ;;  %1881 = vmatprep.subr.msk.bf16.mxu0 %vm468_vm0, %v1897_v0  ;;  %v1900_v4 = vld [vmem:[%s2182_s17 + $0x8] sm:$0xff]   ;;  %v1902_v7 = vld [vmem:[%s2182_s17 + $0x10] sm:$0xff]  }
  0x14   : > { %v518_v3 = vsel %vm468_vm0, %v1898_v1, 0  ;;  %v521_v5 = vsel %vm468_vm0, %v1900_v4, 0  ;;  %v1913_v8 = vld [vmem:[%s2199_s20] sm:$0xff]   ;;  %v524_v9 = vsel %vm468_vm0, %v1902_v7, 0  ;;  %v1903_v10 = vld [vmem:[%s2182_s17 + $0x58] sm:$0xff]   ;;  %v1907_v16 = vld [vmem:[%s2182_s17 + $0x68] sm:$0xff]  }
  0x15   : > { %1722 = vmatpush3.bf16.xpose.msra.mxu0 %v518_v3  ;;  %1737 = vmatprep.mubr.msk.bf16.mxu0 %vm468_vm0, %v1913_v8  ;;  %v1904_v11 = vld [vmem:[%s2182_s17 + $0x18] sm:$0xff]   ;;  %v1905_v13 = vld [vmem:[%s2182_s17 + $0x60] sm:$0xff]   ;;  %v1908_v17 = vld [vmem:[%s2182_s17 + $0x28] sm:$0xff]  }
  0x16   : > { %1882 = vmatprep.subr.msk.bf16.mxu0 %vm468_vm0, %v1899_v2  ;;  %v527_v12 = vsel %vm468_vm0, %v1904_v11, 0  ;;  %v1906_v14 = vld [vmem:[%s2182_s17 + $0x20] sm:$0xff]   ;;  %v533_v18 = vsel %vm468_vm0, %v1908_v17, 0  ;;  %v1909_v19 = vld [vmem:[%s2182_s17 + $0x70] sm:$0xff]   ;;  %v1911_v22 = vld [vmem:[%s2182_s17 + $0x78] sm:$0xff]  }
  0x17   : > { %v530_v15 = vsel %vm468_vm0, %v1906_v14, 0  ;;  %v1910_v20 = vld [vmem:[%s2182_s17 + $0x30] sm:$0xff]   ;;  %v1912_v23 = vld [vmem:[%s2182_s17 + $0x38] sm:$0xff]   ;;  %v1914_v25 = vld [vmem:[%s2199_s20 + $0x8] sm:$0xff]  }
  0x18   : > { %v536_v21 = vsel %vm468_vm0, %v1910_v20, 0  ;;  %v539_v24 = vsel %vm468_vm0, %v1912_v23, 0  ;;  %v1915_v26 = vld [vmem:[%s2199_s20 + $0x10] sm:$0xff]   ;;  %v1916_v27 = vld [vmem:[%s2199_s20 + $0x18] sm:$0xff]   ;;  %v1917_v28 = vld [vmem:[%s2199_s20 + $0x20] sm:$0xff]  }
  0x19   : > { %v1918_v29 = vld [vmem:[%s2199_s20 + $0x28] sm:$0xff]   ;;  %v1919_v30 = vld [vmem:[%s2199_s20 + $0x30] sm:$0xff]   ;;  %v1920_v31 = vld [vmem:[%s2199_s20 + $0x38] sm:$0xff]  }
  0x1a   : > { %v1921_v32 = vld [vmem:[%s2199_s20 + $0x40] sm:$0xff]   ;;  %v1922_v33 = vld [vmem:[%s2199_s20 + $0x48] sm:$0xff]   ;;  %v1923_v34 = vld [vmem:[%s2199_s20 + $0x50] sm:$0xff]  }
  0x1b   : > { %v1924_v35 = vld [vmem:[%s2199_s20 + $0x58] sm:$0xff]   ;;  %v1925_v36 = vld [vmem:[%s2199_s20 + $0x60] sm:$0xff]   ;;  %v1926_v37 = vld [vmem:[%s2199_s20 + $0x68] sm:$0xff]  }
  0x1c   : > { %v1927_v38 = vld [vmem:[%s2199_s20 + $0x70] sm:$0xff]   ;;  %v1928_v39 = vld [vmem:[%s2199_s20 + $0x78] sm:$0xff]  }
  0x1d   : > { %1724 = vmatpush3.bf16.xpose.msra.mxu0 %v521_v5 }
  0x1e   : > { %1883 = vmatprep.subr.msk.bf16.mxu0 %vm468_vm0, %v1901_v6 }
  0x25   : > { %1726 = vmatpush3.bf16.xpose.msra.mxu0 %v524_v9 }
  0x26   : > { %1884 = vmatprep.subr.msk.bf16.mxu0 %vm468_vm0, %v1903_v10 }
  0x2d   : > { %1728 = vmatpush3.bf16.xpose.msra.mxu0 %v527_v12 }
  0x2e   : > { %1885 = vmatprep.subr.msk.bf16.mxu0 %vm468_vm0, %v1905_v13 }
  0x35   : > { %1730 = vmatpush3.bf16.xpose.msra.mxu0 %v530_v15 }
  0x36   : > { %1886 = vmatprep.subr.msk.bf16.mxu0 %vm468_vm0, %v1907_v16 }
  0x3d   : > { %1732 = vmatpush3.bf16.xpose.msra.mxu0 %v533_v18 }
  0x3e   : > { %1887 = vmatprep.subr.msk.bf16.mxu0 %vm468_vm0, %v1909_v19 }
  0x45   : > { %1734 = vmatpush3.bf16.xpose.msra.mxu0 %v536_v21 }
  0x46   : > { %1888 = vmatprep.subr.msk.bf16.mxu0 %vm468_vm0, %v1911_v22 }
  0x4d   : > { %1736 = vmatpush3.bf16.xpose.msra.mxu0 %v539_v24 }
  0x54   : > { %1738 = vmatmul.mubr.msk.bf16.vlgmr.msra.gmra.mrb[0].mxu0 %vm468_vm0, %v1913_v8 }
  0x55   : > { %1739 = vmatprep.mubr.msk.bf16.mxu0 %vm468_vm0, %v1914_v25 }
  0x5c   : > { %1740 = vmatmul.mubr.msk.bf16.gmra.mrb[4].mxu0 %vm468_vm0, %v1914_v25 }
  0x5d   : > { %1741 = vmatprep.mubr.msk.bf16.mxu0 %vm468_vm0, %v1915_v26 }
  0x64   : > { %1742 = vmatmul.mubr.msk.bf16.gmra.mrb[8].mxu0 %vm468_vm0, %v1915_v26 }
  0x65   : > { %1743 = vmatprep.mubr.msk.bf16.mxu0 %vm468_vm0, %v1916_v27 }
  0x6c   : > { %1744 = vmatmul.mubr.msk.bf16.gmra.mrb[12].mxu0 %vm468_vm0, %v1916_v27 }
  0x6d   : > { %1745 = vmatprep.mubr.msk.bf16.mxu0 %vm468_vm0, %v1917_v28 }
  0x74   : > { %1746 = vmatmul.mubr.msk.bf16.gmra.mrb[16].mxu0 %vm468_vm0, %v1917_v28 }
  0x75   : > { %1747 = vmatprep.mubr.msk.bf16.mxu0 %vm468_vm0, %v1918_v29 }
  0x7c   : > { %1748 = vmatmul.mubr.msk.bf16.gmra.mrb[20].mxu0 %vm468_vm0, %v1918_v29 }
  0x7d   : > { %1749 = vmatprep.mubr.msk.bf16.mxu0 %vm468_vm0, %v1919_v30 }
  0x84   : > { %1750 = vmatmul.mubr.msk.bf16.gmra.mrb[24].mxu0 %vm468_vm0, %v1919_v30 }
  0x85   : > { %1751 = vmatprep.mubr.msk.bf16.mxu0 %vm468_vm0, %v1920_v31 }
  0x8c   : > { %1752 = vmatmul.mubr.msk.bf16.gmra.mrb[28].mxu0 %vm468_vm0, %v1920_v31 }
  0x8d   : > { %1753 = vmatprep.mubr.msk.bf16.mxu0 %vm468_vm0, %v1921_v32 }
  0x94   : > { %1754 = vmatmul.mubr.msk.bf16.gmra.mrb[32].mxu0 %vm468_vm0, %v1921_v32 }
  0x95   : > { %1755 = vmatprep.mubr.msk.bf16.mxu0 %vm468_vm0, %v1922_v33 }
  0x9c   : > { %1756 = vmatmul.mubr.msk.bf16.gmra.mrb[36].mxu0 %vm468_vm0, %v1922_v33 }
  0x9d   : > { %1757 = vmatprep.mubr.msk.bf16.mxu0 %vm468_vm0, %v1923_v34 }
  0xa4   : > { %1758 = vmatmul.mubr.msk.bf16.gmra.mrb[40].mxu0 %vm468_vm0, %v1923_v34 }
  0xa5   : > { %1759 = vmatprep.mubr.msk.bf16.mxu0 %vm468_vm0, %v1924_v35 }
  0xac   : > { %1760 = vmatmul.mubr.msk.bf16.gmra.mrb[44].mxu0 %vm468_vm0, %v1924_v35 }
  0xad   : > { %1761 = vmatprep.mubr.msk.bf16.mxu0 %vm468_vm0, %v1925_v36 }
  0xb4   : > { %1762 = vmatmul.mubr.msk.bf16.gmra.mrb[48].mxu0 %vm468_vm0, %v1925_v36 }
  0xb5   : > { %1763 = vmatprep.mubr.msk.bf16.mxu0 %vm468_vm0, %v1926_v37 }
  0xbc   : > { %1764 = vmatmul.mubr.msk.bf16.gmra.mrb[52].mxu0 %vm468_vm0, %v1926_v37 }
  0xbd   : > { %1765 = vmatprep.mubr.msk.bf16.mxu0 %vm468_vm0, %v1927_v38 }
  0xc4   : > { %1766 = vmatmul.mubr.msk.bf16.gmra.mrb[56].mxu0 %vm468_vm0, %v1927_v38 }
  0xc5   : > { %1767 = vmatprep.mubr.msk.bf16.mxu0 %vm468_vm0, %v1928_v39 }
  0xcc   : > { %1768 = vmatmul.mubr.msk.bf16.gmra.mrb[60].mxu0 %vm468_vm0, %v1928_v39 }
 0x127   : > { %v2270_v40 = vpop.f32.mrb[0].mxu0 }
 0x128   : > { %v2272_v41 = vpop.f32.mrb[1].mxu0 }
 0x129   : > { %v2274_v42 = vpop.f32.mrb[2].mxu0  ;;  %v758_v43 = vmax.f32 %v2270_v40, %v2272_v41 }
 0x12a   : > { %v2278_v44 = vpop.f32.mrb[3].mxu0 }
 0x12b   : > { %759 = vmax.xlane.f32.xlu0 %v758_v43  ;;  %v761_v45 = vmax.f32 %v2274_v42, %v2278_v44 }
 0x12f   : > { %762 = vmax.xlane.f32.xlu0 %v761_v45  ;;  %v2282_v46 = vpop.f32.mrb[4].mxu0 }
 0x130   : > { %v2284_v47 = vpop.f32.mrb[5].mxu0 }
 0x131   : > { %v2286_v48 = vpop.f32.mrb[6].mxu0  ;;  %v764_v49 = vmax.f32 %v2282_v46, %v2284_v47 }
 0x132   : > { %v2290_v50 = vpop.f32.mrb[7].mxu0 }
 0x133   : > { %765 = vmax.xlane.f32.xlu1 %v764_v49  ;;  %v767_v51 = vmax.f32 %v2286_v48, %v2290_v50 }
 0x137   : > { %768 = vmax.xlane.f32.xlu1 %v767_v51  ;;  %v2294_v52 = vpop.f32.mrb[8].mxu0 }
 0x138   : > { %v2296_v53 = vpop.f32.mrb[9].mxu0 }
 0x139   : > { %v2298_v54 = vpop.f32.mrb[10].mxu0  ;;  %v770_v55 = vmax.f32 %v2294_v52, %v2296_v53 }
 0x13a   : > { %v2302_v56 = vpop.f32.mrb[11].mxu0 }
 0x13b   : > { %771 = vmax.xlane.f32.xlu0 %v770_v55  ;;  %v773_v57 = vmax.f32 %v2298_v54, %v2302_v56 }
 0x13d   : > { %774 = vmax.xlane.f32.xlu1 %v773_v57 }
 0x13f   : > { %v2306_v58 = vpop.f32.mrb[12].mxu0 }
 0x140   : > { %v2308_v59 = vpop.f32.mrb[13].mxu0 }
 0x141   : > { %v2310_v60 = vpop.f32.mrb[14].mxu0  ;;  %v776_v61 = vmax.f32 %v2306_v58, %v2308_v59 }
 0x142   : > { %v2314_v62 = vpop.f32.mrb[15].mxu0 }
 0x143   : > { %777 = vmax.xlane.f32.xlu0 %v776_v61  ;;  %v779_v63 = vmax.f32 %v2310_v60, %v2314_v62 }
 0x145   : > { %780 = vmax.xlane.f32.xlu1 %v779_v63 }
 0x147   : > { %v2318_v0 = vpop.f32.mrb[16].mxu0 }
 0x148   : > { %v2320_v1 = vpop.f32.mrb[17].mxu0 }
 0x149   : > { %v2322_v2 = vpop.f32.mrb[18].mxu0  ;;  %v782_v3 = vmax.f32 %v2318_v0, %v2320_v1 }
 0x14a   : > { %v2326_v4 = vpop.f32.mrb[19].mxu0 }
 0x14b   : > { %783 = vmax.xlane.f32.xlu0 %v782_v3  ;;  %v785_v5 = vmax.f32 %v2322_v2, %v2326_v4 }
 0x14d   : > { %786 = vmax.xlane.f32.xlu1 %v785_v5 }
 0x14f   : > { %v2330_v6 = vpop.f32.mrb[20].mxu0 }
 0x150   : > { %v2332_v7 = vpop.f32.mrb[21].mxu0 }
 0x151   : > { %v2334_v8 = vpop.f32.mrb[22].mxu0  ;;  %v788_v9 = vmax.f32 %v2330_v6, %v2332_v7 }
 0x152   : > { %v2338_v10 = vpop.f32.mrb[23].mxu0 }
 0x153   : > { %789 = vmax.xlane.f32.xlu0 %v788_v9  ;;  %v791_v11 = vmax.f32 %v2334_v8, %v2338_v10 }
 0x155   : > { %792 = vmax.xlane.f32.xlu1 %v791_v11  ;;  %v1929_v11 = vld [vmem:[%s2466_s23 + $0x40] sm:$0xff]  }
 0x156   : > { %1769 = vmatprep.subr.bf16.mxu1 %v1929_v11 }
 0x157   : > { %v2342_v12 = vpop.f32.mrb[24].mxu0 }
 0x158   : > { %v2344_v13 = vpop.f32.mrb[25].mxu0 }
 0x159   : > { %v2346_v14 = vpop.f32.mrb[26].mxu0  ;;  %v794_v15 = vmax.f32 %v2342_v12, %v2344_v13 }
 0x15a   : > { %v2350_v16 = vpop.f32.mrb[27].mxu0 }
 0x15b   : > { %795 = vmax.xlane.f32.xlu0 %v794_v15  ;;  %v797_v17 = vmax.f32 %v2346_v14, %v2350_v16 }
 0x15d   : > { %798 = vmax.xlane.f32.xlu1 %v797_v17 }
 0x15f   : > { %v2354_v18 = vpop.f32.mrb[28].mxu0 }
 0x160   : > { %v2356_v19 = vpop.f32.mrb[29].mxu0 }
 0x161   : > { %v2358_v20 = vpop.f32.mrb[30].mxu0  ;;  %v800_v21 = vmax.f32 %v2354_v18, %v2356_v19 }
 0x162   : > { %v2362_v22 = vpop.f32.mrb[31].mxu0 }
 0x163   : > { %801 = vmax.xlane.f32.xlu0 %v800_v21  ;;  %v803_v23 = vmax.f32 %v2358_v20, %v2362_v22 }
 0x165   : > { %804 = vmax.xlane.f32.xlu1 %v803_v23 }
 0x167   : > { %v2366_v24 = vpop.f32.mrb[32].mxu0 }
 0x168   : > { %v2368_v25 = vpop.f32.mrb[33].mxu0 }
 0x169   : > { %v2370_v26 = vpop.f32.mrb[34].mxu0  ;;  %v806_v27 = vmax.f32 %v2366_v24, %v2368_v25 }
 0x16a   : > { %2933 = vst [vmem:[#allocation2_spill] sm:$0xff] %v2370_v26  ;;  %v2374_v28 = vpop.f32.mrb[35].mxu0 }
 0x16b   : > { %2934 = vst [vmem:[#allocation3_spill] sm:$0xff] %v2374_v28  ;;  %807 = vmax.xlane.f32.xlu0 %v806_v27  ;;  %v809_v29 = vmax.f32 %v2370_v26, %v2374_v28 }
 0x16d   : > { %810 = vmax.xlane.f32.xlu1 %v809_v29 }
 0x16f   : > { %v2378_v30 = vpop.f32.mrb[36].mxu0 }
 0x170   : > { %2935 = vst [vmem:[#allocation4_spill] sm:$0xff] %v2378_v30  ;;  %v2380_v31 = vpop.f32.mrb[37].mxu0 }
 0x171   : > { %2936 = vst [vmem:[#allocation5_spill] sm:$0xff] %v2380_v31  ;;  %v2382_v32 = vpop.f32.mrb[38].mxu0  ;;  %v812_v33 = vmax.f32 %v2378_v30, %v2380_v31 }
 0x172   : > { %2937 = vst [vmem:[#allocation6_spill] sm:$0xff] %v2382_v32  ;;  %v2386_v34 = vpop.f32.mrb[39].mxu0 }
 0x173   : > { %2938 = vst [vmem:[#allocation7_spill] sm:$0xff] %v2386_v34  ;;  %813 = vmax.xlane.f32.xlu0 %v812_v33  ;;  %v815_v35 = vmax.f32 %v2382_v32, %v2386_v34 }
 0x175   : > { %816 = vmax.xlane.f32.xlu1 %v815_v35  ;;  %v1931_v35 = vld [vmem:[%s2466_s23 + $0x48] sm:$0xff]  }
 0x177   : > { %v2390_v36 = vpop.f32.mrb[40].mxu0 }
 0x178   : > { %2939 = vst [vmem:[#allocation8_spill] sm:$0xff] %v2390_v36  ;;  %v2392_v37 = vpop.f32.mrb[41].mxu0 }
 0x179   : > { %2940 = vst [vmem:[#allocation9_spill] sm:$0xff] %v2392_v37  ;;  %v2394_v38 = vpop.f32.mrb[42].mxu0  ;;  %v818_v39 = vmax.f32 %v2390_v36, %v2392_v37 }
 0x17a   : > { %2941 = vst [vmem:[#allocation10_spill] sm:$0xff] %v2394_v38  ;;  %v2398_v43 = vpop.f32.mrb[43].mxu0 }
 0x17b   : > { %2942 = vst [vmem:[#allocation11_spill] sm:$0xff] %v2398_v43  ;;  %819 = vmax.xlane.f32.xlu0 %v818_v39  ;;  %v821_v45 = vmax.f32 %v2394_v38, %v2398_v43  ;;  %v1932_v43 = vld [vmem:[%s2466_s23 + $0x8] sm:$0xff]   ;;  %v1933_v38 = vld [vmem:[%s2466_s23 + $0x50] sm:$0xff]  }
 0x17d   : > { %822 = vmax.xlane.f32.xlu1 %v821_v45 }
 0x17f   : > { %v2402_v49 = vpop.f32.mrb[44].mxu0 }
 0x180   : > { %2943 = vst [vmem:[#allocation12_spill] sm:$0xff] %v2402_v49  ;;  %v2404_v51 = vpop.f32.mrb[45].mxu0 }
 0x181   : > { %2944 = vst [vmem:[#allocation13_spill] sm:$0xff] %v2404_v51  ;;  %v2406_v55 = vpop.f32.mrb[46].mxu0  ;;  %v824_v57 = vmax.f32 %v2402_v49, %v2404_v51  ;;  %v1934_v49 = vld [vmem:[%s2466_s23 + $0x10] sm:$0xff]  }
 0x182   : > { %2945 = vst [vmem:[#allocation14_spill] sm:$0xff] %v2406_v55  ;;  %v2410_v61 = vpop.f32.mrb[47].mxu0 }
 0x183   : > { %2946 = vst [vmem:[#allocation15_spill] sm:$0xff] %v2410_v61  ;;  %825 = vmax.xlane.f32.xlu0 %v824_v57  ;;  %v827_v63 = vmax.f32 %v2406_v55, %v2410_v61 }
 0x185   : > { %828 = vmax.xlane.f32.xlu1 %v827_v63  ;;  %v1930_v63 = vld [vmem:[%s2466_s23] sm:$0xff]  }
 0x186   : > { %1770 = vmatpush3.bf16.msra.mxu1 %v1930_v63 }
 0x187   : > { %v2414_v3 = vpop.f32.mrb[48].mxu0  ;;  %1771 = vmatprep.subr.bf16.mxu1 %v1931_v35 }
 0x188   : > { %v2416_v5 = vpop.f32.mrb[49].mxu0 }
 0x189   : > { %v2418_v9 = vpop.f32.mrb[50].mxu0 }
 0x18a   : > { %v2422_v15 = vpop.f32.mrb[51].mxu0  ;;  %1772 = vmatpush3.bf16.msra.mxu1 %v1932_v43 }
 0x18b   : > { %1773 = vmatprep.subr.bf16.mxu1 %v1933_v38 }
 0x18e   : > { %1774 = vmatpush3.bf16.msra.mxu1 %v1934_v49 }
 0x18f   : > { %v2426_v21 = vpop.f32.mrb[52].mxu0 }
 0x190   : > { %v2428_v23 = vpop.f32.mrb[53].mxu0 }
 0x191   : > { %v2430_v27 = vpop.f32.mrb[54].mxu0 }
 0x192   : > { %v2434_v33 = vpop.f32.mrb[55].mxu0 }
 0x197   : > { %v2438_v39 = vpop.f32.mrb[56].mxu0 }
 0x198   : > { %v2440_v45 = vpop.f32.mrb[57].mxu0 }
 0x199   : > { %v2442_v57 = vpop.f32.mrb[58].mxu0 }
 0x19a   : > { %v2446_v17 = vpop.f32.mrb[59].mxu0 }
 0x19f   : > { %v2450_v29 = vpop.f32.mrb[60].mxu0 }
 0x1a0   : > { %v2452_v61 = vpop.f32.mrb[61].mxu0 }
 0x1a1   : > { %v2454_v55 = vpop.f32.mrb[62].mxu0 }
 0x1a2   : > { %v2458_v51 = vpop.f32.mrb[63].mxu0 }
 0x1b8   : > { %v760_v37 = vpop.xlane.xlu0 %759 }
 0x1b9   : > { %v854_v36 = vsub.f32 %v2270_v40, %v760_v37  ;;  %v855_v34 = vsub.f32 %v2272_v41, %v760_v37 }
 0x1bb   : > { %v918_v32 = vmul.f32 1.442695, %v854_v36  ;;  %v920_v31 = vmul.f32 1.442695, %v855_v34 }
 0x1bc   : > { %v763_v30 = vpop.xlane.xlu0 %762 }
 0x1bd   : > { %1945 = vpow2.f32 %v918_v32  ;;  %v856_v11 = vsub.f32 %v2274_v42, %v763_v30  ;;  %v857_v63 = vsub.f32 %v2278_v44, %v763_v30 }
 0x1be   : > { %1947 = vpow2.f32 %v920_v31 }
 0x1bf   : > { %v922_v35 = vmul.f32 1.442695, %v856_v11  ;;  %v924_v28 = vmul.f32 1.442695, %v857_v63 }
 0x1c0   : > { %v766_v26 = vpop.xlane.xlu1 %765 }
 0x1c1   : > { %1949 = vpow2.f32 %v922_v35  ;;  %v858_v38 = vsub.f32 %v2282_v46, %v766_v26  ;;  %v859_v43 = vsub.f32 %v2284_v47, %v766_v26 }
 0x1c2   : > { %1951 = vpow2.f32 %v924_v28 }
 0x1c3   : > { %v926_v40 = vmul.f32 1.442695, %v858_v38  ;;  %v928_v41 = vmul.f32 1.442695, %v859_v43 }
 0x1c4   : > { %v769_v36 = vpop.xlane.xlu1 %768 }
 0x1c5   : > { %1953 = vpow2.f32 %v926_v40  ;;  %v860_v32 = vsub.f32 %v2286_v48, %v769_v36  ;;  %v861_v42 = vsub.f32 %v2290_v50, %v769_v36  ;;  %v2947_v40 = vmax.f32 %v2414_v3, %v2416_v5 }
 0x1c6   : > { %1955 = vpow2.f32 %v928_v41 }
 0x1c7   : > { %v2482_v44 = vpop.eup %1945  ;;  %v930_v30 = vmul.f32 1.442695, %v860_v32  ;;  %v932_v31 = vmul.f32 1.442695, %v861_v42 }
 0x1c8   : > { %v2484_v34 = vpop.eup %1947  ;;  %v772_v37 = vpop.xlane.xlu0 %771 }
 0x1c9   : > { %1957 = vpow2.f32 %v930_v30  ;;  %v862_v46 = vsub.f32 %v2294_v52, %v772_v37  ;;  %v863_v47 = vsub.f32 %v2296_v53, %v772_v37  ;;  %v1046_v26 = vadd.f32 %v2484_v34, %v2482_v44 }
 0x1ca   : > { %1959 = vpow2.f32 %v932_v31  ;;  %v775_v48 = vpop.xlane.xlu1 %774 }
 0x1cb   : > { %v2490_v28 = vpop.eup %1949  ;;  %v934_v50 = vmul.f32 1.442695, %v862_v46  ;;  %v936_v49 = vmul.f32 1.442695, %v863_v47  ;;  %v864_v11 = vsub.f32 %v2298_v54, %v775_v48  ;;  %v865_v63 = vsub.f32 %v2302_v56, %v775_v48  ;;  %1047 = vadd.xlane.f32.xlu0 %v1046_v26 }
 0x1cc   : > { %v2494_v35 = vpop.eup %1951  ;;  %v2948_v26 = vmax.f32 %v2418_v9, %v2422_v15 }
 0x1cd   : > { %1961 = vpow2.f32 %v934_v50  ;;  %v938_v52 = vmul.f32 1.442695, %v864_v11  ;;  %v940_v38 = vmul.f32 1.442695, %v865_v63  ;;  %v1049_v53 = vadd.f32 %v2494_v35, %v2490_v28  ;;  %v1935_v63 = vld [vmem:[%s2466_s23 + $0x58] sm:$0xff]  }
 0x1ce   : > { %1963 = vpow2.f32 %v936_v49  ;;  %1775 = vmatprep.subr.bf16.mxu1 %v1935_v63 }
 0x1cf   : > { %v2498_v43 = vpop.eup %1953  ;;  %1965 = vpow2.f32 %v938_v52  ;;  %1050 = vadd.xlane.f32.xlu1 %v1049_v53  ;;  %831 = vmax.xlane.f32.xlu0 %v2947_v40 }
 0x1d0   : > { %v2503_v54 = vpop.eup %1955  ;;  %1967 = vpow2.f32 %v940_v38  ;;  %v778_v56 = vpop.xlane.xlu0 %777 }
 0x1d1   : > { %v866_v41 = vsub.f32 %v2306_v58, %v778_v56  ;;  %v867_v36 = vsub.f32 %v2308_v59, %v778_v56  ;;  %v1052_v32 = vadd.f32 %v2503_v54, %v2498_v43  ;;  %v1936_v56 = vld [vmem:[%s2466_s23 + $0x18] sm:$0xff]  }
 0x1d2   : > { %v781_v42 = vpop.xlane.xlu1 %780  ;;  %1776 = vmatpush3.bf16.msra.mxu1 %v1936_v56 }
 0x1d3   : > { %v2509_v30 = vpop.eup %1957  ;;  %v942_v31 = vmul.f32 1.442695, %v866_v41  ;;  %v944_v37 = vmul.f32 1.442695, %v867_v36  ;;  %v868_v46 = vsub.f32 %v2310_v60, %v781_v42  ;;  %v869_v47 = vsub.f32 %v2314_v62, %v781_v42  ;;  %1053 = vadd.xlane.f32.xlu0 %v1052_v32  ;;  %834 = vmax.xlane.f32.xlu1 %v2948_v26 }
 0x1d4   : > { %v2516_v58 = vpop.eup %1959  ;;  %v2949_v60 = vmax.f32 %v2426_v21, %v2428_v23 }
 0x1d5   : > { %1969 = vpow2.f32 %v942_v31  ;;  %v946_v59 = vmul.f32 1.442695, %v868_v46  ;;  %v948_v48 = vmul.f32 1.442695, %v869_v47  ;;  %v1055_v50 = vadd.f32 %v2516_v58, %v2509_v30 }
 0x1d6   : > { %1971 = vpow2.f32 %v944_v37 }
 0x1d7   : > { %v2520_v49 = vpop.eup %1961  ;;  %1973 = vpow2.f32 %v946_v59  ;;  %1056 = vadd.xlane.f32.xlu1 %v1055_v50  ;;  %837 = vmax.xlane.f32.xlu0 %v2949_v60  ;;  %v1938_v59 = vld [vmem:[%s2466_s23 + $0x20] sm:$0xff]  }
 0x1d8   : > { %v2525_v62 = vpop.eup %1963  ;;  %1975 = vpow2.f32 %v948_v48  ;;  %v784_v11 = vpop.xlane.xlu0 %783 }
 0x1d9   : > { %v2528_v52 = vpop.eup %1965  ;;  %v870_v38 = vsub.f32 %v2318_v0, %v784_v11  ;;  %v871_v53 = vsub.f32 %v2320_v1, %v784_v11  ;;  %v1058_v40 = vadd.f32 %v2525_v62, %v2520_v49  ;;  %v2950_v0 = vmax.f32 %v2430_v27, %v2434_v33  ;;  %v1937_v1 = vld [vmem:[%s2466_s23 + $0x60] sm:$0xff]  }
 0x1da   : > { %v2535_v41 = vpop.eup %1967  ;;  %v787_v36 = vpop.xlane.xlu1 %786  ;;  %1777 = vmatprep.subr.bf16.mxu1 %v1937_v1 }
 0x1db   : > { %v950_v32 = vmul.f32 1.442695, %v870_v38  ;;  %v952_v42 = vmul.f32 1.442695, %v871_v53  ;;  %v872_v31 = vsub.f32 %v2322_v2, %v787_v36  ;;  %v873_v37 = vsub.f32 %v2326_v4, %v787_v36  ;;  %1059 = vadd.xlane.f32.xlu0 %v1058_v40  ;;  %840 = vmax.xlane.f32.xlu1 %v2950_v0  ;;  %v1939_v53 = vld [vmem:[%s2466_s23 + $0x68] sm:$0xff]  }
 0x1dc   : > { %v1061_v26 = vadd.f32 %v2535_v41, %v2528_v52  ;;  %v2951_v4 = vmax.f32 %v2438_v39, %v2440_v45  ;;  %1778 = vmatpush3.bf16.msra.mxu1 %v1938_v59  ;;  %v1940_v36 = vld [vmem:[%s2466_s23 + $0x28] sm:$0xff]  }
 0x1dd   : > { %1977 = vpow2.f32 %v950_v32  ;;  %v954_v46 = vmul.f32 1.442695, %v872_v31  ;;  %v956_v47 = vmul.f32 1.442695, %v873_v37  ;;  %1779 = vmatprep.subr.bf16.mxu1 %v1939_v53 }
 0x1de   : > { %1979 = vpow2.f32 %v952_v42 }
 0x1df   : > { %v2546_v2 = vpop.eup %1969  ;;  %1981 = vpow2.f32 %v954_v46  ;;  %1062 = vadd.xlane.f32.xlu1 %v1061_v26  ;;  %843 = vmax.xlane.f32.xlu0 %v2951_v4  ;;  %v1941_v46 = vld [vmem:[%s2466_s23 + $0x70] sm:$0xff]  }
 0x1e0   : > { %v2551_v48 = vpop.eup %1971  ;;  %1983 = vpow2.f32 %v956_v47  ;;  %v790_v50 = vpop.xlane.xlu0 %789  ;;  %1780 = vmatpush3.bf16.msra.mxu1 %v1940_v36  ;;  %v1942_v47 = vld [vmem:[%s2466_s23 + $0x30] sm:$0xff]   ;;  %v1944_v36 = vld [vmem:[%s2466_s23 + $0x38] sm:$0xff]  }
 0x1e1   : > { %v2553_v60 = vpop.eup %1973  ;;  %v874_v11 = vsub.f32 %v2330_v6, %v790_v50  ;;  %v875_v63 = vsub.f32 %v2332_v7, %v790_v50  ;;  %v1064_v38 = vadd.f32 %v2551_v48, %v2546_v2  ;;  %v2952_v6 = vmax.f32 %v2442_v57, %v2446_v17  ;;  %1781 = vmatprep.subr.bf16.mxu1 %v1941_v46 }
 0x1e2   : > { %v2560_v40 = vpop.eup %1975  ;;  %v793_v56 = vpop.xlane.xlu1 %792 }
 0x1e3   : > { %v958_v32 = vmul.f32 1.442695, %v874_v11  ;;  %v960_v42 = vmul.f32 1.442695, %v875_v63  ;;  %v876_v31 = vsub.f32 %v2334_v8, %v793_v56  ;;  %v877_v37 = vsub.f32 %v2338_v10, %v793_v56  ;;  %1065 = vadd.xlane.f32.xlu0 %v1064_v38  ;;  %846 = vmax.xlane.f32.xlu1 %v2952_v6  ;;  %v1943_v38 = vld [vmem:[%s2466_s23 + $0x78] sm:$0xff]  }
 0x1e4   : > { %v1067_v1 = vadd.f32 %v2560_v40, %v2553_v60  ;;  %v2953_v10 = vmax.f32 %v2450_v29, %v2452_v61  ;;  %1782 = vmatpush3.bf16.msra.mxu1 %v1942_v47 }
 0x1e5   : > { %1985 = vpow2.f32 %v958_v32  ;;  %v962_v7 = vmul.f32 1.442695, %v876_v31  ;;  %v964_v0 = vmul.f32 1.442695, %v877_v37  ;;  %1783 = vmatprep.subr.bf16.mxu1 %v1943_v38 }
 0x1e6   : > { %1987 = vpow2.f32 %v960_v42 }
 0x1e7   : > { %v2572_v8 = vpop.eup %1977  ;;  %1989 = vpow2.f32 %v962_v7  ;;  %1068 = vadd.xlane.f32.xlu1 %v1067_v1  ;;  %849 = vmax.xlane.f32.xlu0 %v2953_v10 }
 0x1e8   : > { %v2577_v26 = vpop.eup %1979  ;;  %1991 = vpow2.f32 %v964_v0  ;;  %v796_v59 = vpop.xlane.xlu0 %795  ;;  %1784 = vmatpush3.bf16.msra.mxu1 %v1944_v36 }
 0x1e9   : > { %v2579_v4 = vpop.eup %1981  ;;  %v878_v50 = vsub.f32 %v2342_v12, %v796_v59  ;;  %v879_v11 = vsub.f32 %v2344_v13, %v796_v59  ;;  %v1070_v63 = vadd.f32 %v2577_v26, %v2572_v8  ;;  %v2954_v12 = vmax.f32 %v2454_v55, %v2458_v51 }
 0x1ea   : > { %v2586_v53 = vpop.eup %1983  ;;  %v799_v56 = vpop.xlane.xlu1 %798 }
 0x1eb   : > { %v966_v32 = vmul.f32 1.442695, %v878_v50  ;;  %v968_v42 = vmul.f32 1.442695, %v879_v11  ;;  %v880_v31 = vsub.f32 %v2346_v14, %v799_v56  ;;  %v881_v37 = vsub.f32 %v2350_v16, %v799_v56  ;;  %1071 = vadd.xlane.f32.xlu0 %v1070_v63  ;;  %852 = vmax.xlane.f32.xlu1 %v2954_v12 }
 0x1ec   : > { %v1073_v7 = vadd.f32 %v2586_v53, %v2579_v4 }
 0x1ed   : > { %1993 = vpow2.f32 %v966_v32  ;;  %v970_v13 = vmul.f32 1.442695, %v880_v31  ;;  %v972_v6 = vmul.f32 1.442695, %v881_v37 }
 0x1ee   : > { %1995 = vpow2.f32 %v968_v42 }
 0x1ef   : > { %v2596_v0 = vpop.eup %1985  ;;  %1997 = vpow2.f32 %v970_v13  ;;  %1074 = vadd.xlane.f32.xlu1 %v1073_v7 }
 0x1f0   : > { %v2598_v14 = vpop.eup %1987  ;;  %1999 = vpow2.f32 %v972_v6  ;;  %v802_v16 = vpop.xlane.xlu0 %801 }
 0x1f1   : > { %v2600_v1 = vpop.eup %1989  ;;  %v882_v46 = vsub.f32 %v2354_v18, %v802_v16  ;;  %v883_v47 = vsub.f32 %v2356_v19, %v802_v16  ;;  %v1076_v10 = vadd.f32 %v2598_v14, %v2596_v0 }
 0x1f2   : > { %v2606_v59 = vpop.eup %1991  ;;  %v805_v50 = vpop.xlane.xlu1 %804 }
 0x1f3   : > { %v974_v11 = vmul.f32 1.442695, %v882_v46  ;;  %v976_v63 = vmul.f32 1.442695, %v883_v47  ;;  %v884_v38 = vsub.f32 %v2358_v20, %v805_v50  ;;  %v885_v56 = vsub.f32 %v2362_v22, %v805_v50  ;;  %1077 = vadd.xlane.f32.xlu0 %v1076_v10  ;;  %v2955_v46 = vld [vmem:[#allocation2_spill] sm:$0xff]  ;;  %v2956_v10 = vld [vmem:[#allocation3_spill] sm:$0xff] }
 0x1f4   : > { %v1079_v36 = vadd.f32 %v2606_v59, %v2600_v1 }
 0x1f5   : > { %2001 = vpow2.f32 %v974_v11  ;;  %v978_v18 = vmul.f32 1.442695, %v884_v38  ;;  %v980_v32 = vmul.f32 1.442695, %v885_v56 }
 0x1f6   : > { %2003 = vpow2.f32 %v976_v63  ;;  %1080 = vadd.xlane.f32.xlu1 %v1079_v36 }
 0x1f7   : > { %v2612_v19 = vpop.eup %1993  ;;  %2005 = vpow2.f32 %v978_v18  ;;  %v2959_v18 = vld [vmem:[#allocation4_spill] sm:$0xff] }
 0x1f8   : > { %v2614_v42 = vpop.eup %1995  ;;  %2007 = vpow2.f32 %v980_v32  ;;  %v808_v31 = vpop.xlane.xlu0 %807 }
 0x1f9   : > { %v2616_v37 = vpop.eup %1997  ;;  %v886_v20 = vsub.f32 %v2366_v24, %v808_v31  ;;  %v887_v22 = vsub.f32 %v2368_v25, %v808_v31  ;;  %v1082_v12 = vadd.f32 %v2614_v42, %v2612_v19  ;;  %v2960_v31 = vld [vmem:[#allocation5_spill] sm:$0xff] }
 0x1fa   : > { %v2622_v13 = vpop.eup %1999  ;;  %v811_v6 = vpop.xlane.xlu1 %810 }
 0x1fb   : > { %v982_v7 = vmul.f32 1.442695, %v886_v20  ;;  %v984_v16 = vmul.f32 1.442695, %v887_v22  ;;  %v888_v47 = vsub.f32 %v2955_v46, %v811_v6  ;;  %v889_v50 = vsub.f32 %v2956_v10, %v811_v6  ;;  %1083 = vadd.xlane.f32.xlu0 %v1082_v12  ;;  %v2962_v46 = vld [vmem:[#allocation6_spill] sm:$0xff]  ;;  %v2963_v10 = vld [vmem:[#allocation7_spill] sm:$0xff] }
 0x1fc   : > { %v1085_v11 = vadd.f32 %v2622_v13, %v2616_v37 }
 0x1fd   : > { %2009 = vpow2.f32 %v982_v7  ;;  %v986_v24 = vmul.f32 1.442695, %v888_v47  ;;  %v988_v63 = vmul.f32 1.442695, %v889_v50 }
 0x1fe   : > { %2011 = vpow2.f32 %v984_v16  ;;  %1086 = vadd.xlane.f32.xlu1 %v1085_v11 }
 0x1ff   : > { %v2628_v25 = vpop.eup %2001  ;;  %2013 = vpow2.f32 %v986_v24 }
 0x200   : > { %2957 = vst [vmem:[#allocation2_spill] sm:$0xff] %v2628_v25  ;;  %v2630_v38 = vpop.eup %2003  ;;  %2015 = vpow2.f32 %v988_v63  ;;  %v814_v56 = vpop.xlane.xlu0 %813 }
 0x201   : > { %v2632_v36 = vpop.eup %2005  ;;  %v890_v32 = vsub.f32 %v2959_v18, %v814_v56  ;;  %v891_v20 = vsub.f32 %v2960_v31, %v814_v56  ;;  %v1088_v22 = vadd.f32 %v2630_v38, %v2628_v25  ;;  %v2971_v25 = vld [vmem:[#allocation11_spill] sm:$0xff] }
 0x202   : > { %2958 = vst [vmem:[#allocation3_spill] sm:$0xff] %v2632_v36  ;;  %v2638_v12 = vpop.eup %2007  ;;  %v817_v6 = vpop.xlane.xlu1 %816 }
 0x203   : > { %2961 = vst [vmem:[#allocation4_spill] sm:$0xff] %v2638_v12  ;;  %v990_v7 = vmul.f32 1.442695, %v890_v32  ;;  %v992_v16 = vmul.f32 1.442695, %v891_v20  ;;  %v892_v47 = vsub.f32 %v2962_v46, %v817_v6  ;;  %v893_v50 = vsub.f32 %v2963_v10, %v817_v6  ;;  %1089 = vadd.xlane.f32.xlu0 %v1088_v22  ;;  %v2967_v20 = vld [vmem:[#allocation8_spill] sm:$0xff] }
 0x204   : > { %v1091_v11 = vadd.f32 %v2638_v12, %v2632_v36  ;;  %v2968_v22 = vld [vmem:[#allocation9_spill] sm:$0xff] }
 0x205   : > { %2017 = vpow2.f32 %v990_v7  ;;  %v994_v24 = vmul.f32 1.442695, %v892_v47  ;;  %v996_v63 = vmul.f32 1.442695, %v893_v50 }
 0x206   : > { %2019 = vpow2.f32 %v992_v16  ;;  %1092 = vadd.xlane.f32.xlu1 %v1091_v11  ;;  %v2970_v11 = vld [vmem:[#allocation10_spill] sm:$0xff] }
 0x207   : > { %v2644_v56 = vpop.eup %2009  ;;  %2021 = vpow2.f32 %v994_v24 }
 0x208   : > { %2964 = vst [vmem:[#allocation5_spill] sm:$0xff] %v2644_v56  ;;  %v2646_v18 = vpop.eup %2011  ;;  %2023 = vpow2.f32 %v996_v63  ;;  %v820_v32 = vpop.xlane.xlu0 %819 }
 0x209   : > { %2965 = vst [vmem:[#allocation6_spill] sm:$0xff] %v2646_v18  ;;  %v2648_v31 = vpop.eup %2013  ;;  %v894_v6 = vsub.f32 %v2967_v20, %v820_v32  ;;  %v895_v46 = vsub.f32 %v2968_v22, %v820_v32  ;;  %v1094_v7 = vadd.f32 %v2646_v18, %v2644_v56  ;;  %v2974_v56 = vld [vmem:[#allocation14_spill] sm:$0xff] }
 0x20a   : > { %2966 = vst [vmem:[#allocation7_spill] sm:$0xff] %v2648_v31  ;;  %v2654_v47 = vpop.eup %2015  ;;  %v823_v16 = vpop.xlane.xlu1 %822 }
 0x20b   : > { %2969 = vst [vmem:[#allocation8_spill] sm:$0xff] %v2654_v47  ;;  %v998_v10 = vmul.f32 1.442695, %v894_v6  ;;  %v1000_v50 = vmul.f32 1.442695, %v895_v46  ;;  %v896_v24 = vsub.f32 %v2970_v11, %v823_v16  ;;  %v897_v36 = vsub.f32 %v2971_v25, %v823_v16  ;;  %1095 = vadd.xlane.f32.xlu0 %v1094_v7  ;;  %v2972_v11 = vld [vmem:[#allocation12_spill] sm:$0xff] }
 0x20c   : > { %v1097_v63 = vadd.f32 %v2654_v47, %v2648_v31  ;;  %v2973_v7 = vld [vmem:[#allocation13_spill] sm:$0xff]  ;;  %v2975_v31 = vld [vmem:[#allocation15_spill] sm:$0xff] }
 0x20d   : > { %2025 = vpow2.f32 %v998_v10  ;;  %v1002_v20 = vmul.f32 1.442695, %v896_v24  ;;  %v1004_v12 = vmul.f32 1.442695, %v897_v36 }
 0x20e   : > { %2027 = vpow2.f32 %v1000_v50  ;;  %1098 = vadd.xlane.f32.xlu1 %v1097_v63 }
 0x20f   : > { %v2660_v32 = vpop.eup %2017  ;;  %2029 = vpow2.f32 %v1002_v20 }
 0x210   : > { %v2662_v22 = vpop.eup %2019  ;;  %2031 = vpow2.f32 %v1004_v12  ;;  %v826_v6 = vpop.xlane.xlu0 %825 }
 0x211   : > { %v2664_v46 = vpop.eup %2021  ;;  %v898_v25 = vsub.f32 %v2972_v11, %v826_v6  ;;  %v899_v16 = vsub.f32 %v2973_v7, %v826_v6  ;;  %v1100_v10 = vadd.f32 %v2662_v22, %v2660_v32 }
 0x212   : > { %v2670_v24 = vpop.eup %2023  ;;  %v829_v36 = vpop.xlane.xlu1 %828 }
 0x213   : > { %v1006_v50 = vmul.f32 1.442695, %v898_v25  ;;  %v1008_v63 = vmul.f32 1.442695, %v899_v16  ;;  %v900_v20 = vsub.f32 %v2974_v56, %v829_v36  ;;  %v901_v47 = vsub.f32 %v2975_v31, %v829_v36  ;;  %1101 = vadd.xlane.f32.xlu0 %v1100_v10 }
 0x214   : > { %v1103_v12 = vadd.f32 %v2670_v24, %v2664_v46 }
 0x215   : > { %2033 = vpow2.f32 %v1006_v50  ;;  %v1010_v11 = vmul.f32 1.442695, %v900_v20  ;;  %v1012_v18 = vmul.f32 1.442695, %v901_v47 }
 0x216   : > { %2035 = vpow2.f32 %v1008_v63  ;;  %1104 = vadd.xlane.f32.xlu1 %v1103_v12 }
 0x217   : > { %v2676_v6 = vpop.eup %2025  ;;  %2037 = vpow2.f32 %v1010_v11 }
 0x218   : > { %2976 = vst [vmem:[#allocation9_spill] sm:$0xff] %v2676_v6  ;;  %v2678_v7 = vpop.eup %2027  ;;  %2039 = vpow2.f32 %v1012_v18 }
 0x219   : > { %v2680_v25 = vpop.eup %2029  ;;  %v1106_v56 = vadd.f32 %v2678_v7, %v2676_v6 }
 0x21a   : > { %2977 = vst [vmem:[#allocation10_spill] sm:$0xff] %v2680_v25  ;;  %v2684_v31 = vpop.eup %2031 }
 0x21b   : > { %2978 = vst [vmem:[#allocation11_spill] sm:$0xff] %v2684_v31  ;;  %1107 = vadd.xlane.f32.xlu0 %v1106_v56  ;;  %v1109_v16 = vadd.f32 %v2684_v31, %v2680_v25 }
 0x21d   : > { %1110 = vadd.xlane.f32.xlu1 %v1109_v16 }
 0x21f   : > { %v2688_v47 = vpop.eup %2033 }
 0x220   : > { %2979 = vst [vmem:[#allocation12_spill] sm:$0xff] %v2688_v47  ;;  %v2690_v10 = vpop.eup %2035 }
 0x221   : > { %2980 = vst [vmem:[#allocation13_spill] sm:$0xff] %v2690_v10  ;;  %v2692_v36 = vpop.eup %2037  ;;  %v1112_v18 = vadd.f32 %v2690_v10, %v2688_v47 }
 0x222   : > { %2981 = vst [vmem:[#allocation14_spill] sm:$0xff] %v2692_v36  ;;  %v2696_v50 = vpop.eup %2039 }
 0x223   : > { %2982 = vst [vmem:[#allocation15_spill] sm:$0xff] %v2696_v50  ;;  %1113 = vadd.xlane.f32.xlu0 %v1112_v18  ;;  %v1115_v63 = vadd.f32 %v2696_v50, %v2692_v36 }
 0x225   : > { %1116 = vadd.xlane.f32.xlu1 %v1115_v63 }
 0x258   : > { %v1048_v20 = vpop.xlane.xlu0 %1047 }
 0x259   : > { %2041 = vrcp.f32 %v1048_v20 }
 0x25c   : > { %v1051_v12 = vpop.xlane.xlu1 %1050  ;;  %v832_v11 = vpop.xlane.xlu0 %831 }
 0x25d   : > { %2043 = vrcp.f32 %v1051_v12  ;;  %v902_v56 = vsub.f32 %v2414_v3, %v832_v11  ;;  %v903_v16 = vsub.f32 %v2416_v5, %v832_v11 }
 0x25f   : > { %v1014_v6 = vmul.f32 1.442695, %v902_v56  ;;  %v1016_v25 = vmul.f32 1.442695, %v903_v16 }
 0x260   : > { %v1054_v31 = vpop.xlane.xlu0 %1053  ;;  %v835_v47 = vpop.xlane.xlu1 %834 }
 0x261   : > { %2045 = vpow2.f32 %v1014_v6  ;;  %v904_v18 = vsub.f32 %v2418_v9, %v835_v47  ;;  %v905_v10 = vsub.f32 %v2422_v15, %v835_v47 }
 0x262   : > { %2047 = vpow2.f32 %v1016_v25 }
 0x263   : > { %2049 = vrcp.f32 %v1054_v31  ;;  %v1018_v63 = vmul.f32 1.442695, %v904_v18  ;;  %v1020_v20 = vmul.f32 1.442695, %v905_v10  ;;  %v2042_v12 = vpop.eup %2041 }
 0x264   : > { %v1057_v36 = vpop.xlane.xlu1 %1056  ;;  %v838_v50 = vpop.xlane.xlu0 %837  ;;  %v1175_v15 = vmul.f32 %v2042_v12, %v2484_v34  ;;  %v1174_v31 = vmul.f32 %v2042_v12, %v2482_v44 }
 0x265   : > { %2051 = vpow2.f32 %v1018_v63  ;;  %v906_v3 = vsub.f32 %v2426_v21, %v838_v50  ;;  %v907_v5 = vsub.f32 %v2428_v23, %v838_v50 }
 0x266   : > { %2053 = vpow2.f32 %v1020_v20 }
 0x267   : > { %v2044_v11 = vpop.eup %2043  ;;  %2055 = vrcp.f32 %v1057_v36  ;;  %v1022_v6 = vmul.f32 1.442695, %v906_v3  ;;  %v1024_v56 = vmul.f32 1.442695, %v907_v5 }
 0x268   : > { %v1060_v9 = vpop.xlane.xlu0 %1059  ;;  %v841_v16 = vpop.xlane.xlu1 %840  ;;  %v1177_v25 = vmul.f32 %v2044_v11, %v2494_v35  ;;  %v1176_v47 = vmul.f32 %v2044_v11, %v2490_v28 }
 0x269   : > { %2057 = vpow2.f32 %v1022_v6  ;;  %v908_v21 = vsub.f32 %v2430_v27, %v841_v16  ;;  %v909_v23 = vsub.f32 %v2434_v33, %v841_v16 }
 0x26a   : > { %2059 = vpow2.f32 %v1024_v56  ;;  %v1239_v10 = vpack.c.bf16 %v1177_v25, %v1175_v15  ;;  %v1238_v36 = vpack.c.bf16 %v1176_v47, %v1174_v31 }
 0x26b   : > { %v2712_v50 = vpop.eup %2045  ;;  %2061 = vrcp.f32 %v1060_v9  ;;  %v1026_v18 = vmul.f32 1.442695, %v908_v21  ;;  %v1028_v63 = vmul.f32 1.442695, %v909_v23 }
 0x26c   : > { %v2714_v34 = vpop.eup %2047  ;;  %1398 = vmatprep.mubr.bf16.mxu1 %v1239_v10  ;;  %v1063_v35 = vpop.xlane.xlu1 %1062 }
 0x26d   : > { %v844_v44 = vpop.xlane.xlu0 %843  ;;  %v2050_v20 = vpop.eup %2049  ;;  %2063 = vpow2.f32 %v1026_v18  ;;  %1399 = vmatmul.mubr.bf16.vlgmr.msra.gmra.mrb[0].mxu1 %v1238_v36  ;;  %v1118_v33 = vadd.f32 %v2714_v34, %v2712_v50 }
 0x26e   : > { %v910_v28 = vsub.f32 %v2438_v39, %v844_v44  ;;  %v911_v27 = vsub.f32 %v2440_v45, %v844_v44  ;;  %2065 = vpow2.f32 %v1028_v63  ;;  %v1179_v9 = vmul.f32 %v2050_v20, %v2503_v54 }
 0x26f   : > { %v2720_v12 = vpop.eup %2051  ;;  %2067 = vrcp.f32 %v1063_v35  ;;  %1119 = vadd.xlane.f32.xlu0 %v1118_v33  ;;  %v1178_v31 = vmul.f32 %v2050_v20, %v2498_v43 }
 0x270   : > { %v1030_v3 = vmul.f32 1.442695, %v910_v28  ;;  %v1032_v5 = vmul.f32 1.442695, %v911_v27  ;;  %v2722_v11 = vpop.eup %2053  ;;  %v847_v56 = vpop.xlane.xlu1 %846 }
 0x271   : > { %v1066_v6 = vpop.xlane.xlu0 %1065  ;;  %v2056_v39 = vpop.eup %2055  ;;  %v912_v45 = vsub.f32 %v2442_v57, %v847_v56  ;;  %v913_v16 = vsub.f32 %v2446_v17, %v847_v56  ;;  %v1121_v15 = vadd.f32 %v2722_v11, %v2720_v12 }
 0x272   : > { %2069 = vpow2.f32 %v1030_v3  ;;  %v1181_v25 = vmul.f32 %v2056_v39, %v2516_v58  ;;  %v1180_v47 = vmul.f32 %v2056_v39, %v2509_v30 }
 0x273   : > { %2071 = vpow2.f32 %v1032_v5  ;;  %v2732_v21 = vpop.eup %2057  ;;  %v1034_v23 = vmul.f32 1.442695, %v912_v45  ;;  %v1036_v54 = vmul.f32 1.442695, %v913_v16  ;;  %1122 = vadd.xlane.f32.xlu1 %v1121_v15 }
 0x274   : > { %v2734_v10 = vpop.eup %2059  ;;  %2073 = vrcp.f32 %v1066_v6  ;;  %v1241_v57 = vpack.c.bf16 %v1181_v25, %v1179_v9  ;;  %v1069_v17 = vpop.xlane.xlu1 %1068  ;;  %v1240_v18 = vpack.c.bf16 %v1180_v47, %v1178_v31 }
 0x275   : > { %v850_v36 = vpop.xlane.xlu0 %849  ;;  %v2062_v63 = vpop.eup %2061  ;;  %2075 = vpow2.f32 %v1034_v23  ;;  %v1124_v30 = vadd.f32 %v2734_v10, %v2732_v21 }
 0x276   : > { %v914_v58 = vsub.f32 %v2450_v29, %v850_v36  ;;  %v915_v43 = vsub.f32 %v2452_v61, %v850_v36  ;;  %2077 = vpow2.f32 %v1036_v54  ;;  %1406 = vmatprep.mubr.bf16.mxu1 %v1241_v57  ;;  %v1183_v33 = vmul.f32 %v2062_v63, %v2525_v62 }
 0x277   : > { %v2740_v35 = vpop.eup %2063  ;;  %2079 = vrcp.f32 %v1069_v17  ;;  %1407 = vmatmul.mubr.bf16.gmra.mrb[4].mxu1 %v1240_v18  ;;  %1125 = vadd.xlane.f32.xlu0 %v1124_v30  ;;  %v1182_v9 = vmul.f32 %v2062_v63, %v2520_v49 }
 0x278   : > { %v1038_v44 = vmul.f32 1.442695, %v914_v58  ;;  %v1040_v20 = vmul.f32 1.442695, %v915_v43  ;;  %v2742_v28 = vpop.eup %2065  ;;  %v853_v27 = vpop.xlane.xlu1 %852 }
 0x279   : > { %v2068_v29 = vpop.eup %2067  ;;  %v1072_v61 = vpop.xlane.xlu0 %1071  ;;  %v916_v3 = vsub.f32 %v2454_v55, %v853_v27  ;;  %v917_v5 = vsub.f32 %v2458_v51, %v853_v27  ;;  %v1127_v6 = vadd.f32 %v2742_v28, %v2740_v35 }
 0x27a   : > { %2081 = vpow2.f32 %v1038_v44  ;;  %v1185_v56 = vmul.f32 %v2068_v29, %v2535_v41  ;;  %v1184_v39 = vmul.f32 %v2068_v29, %v2528_v52 }
 0x27b   : > { %2083 = vpow2.f32 %v1040_v20  ;;  %v1042_v62 = vmul.f32 1.442695, %v916_v3  ;;  %v1044_v16 = vmul.f32 1.442695, %v917_v5  ;;  %1128 = vadd.xlane.f32.xlu1 %v1127_v6 }
 0x27c   : > { %v2752_v45 = vpop.eup %2069  ;;  %2085 = vrcp.f32 %v1072_v61  ;;  %v1243_v55 = vpack.c.bf16 %v1185_v56, %v1183_v33  ;;  %v1075_v51 = vpop.xlane.xlu1 %1074  ;;  %v1242_v25 = vpack.c.bf16 %v1184_v39, %v1182_v9 }
 0x27d   : > { %v2754_v15 = vpop.eup %2071  ;;  %2087 = vpow2.f32 %v1042_v62 }
 0x27e   : > { %v1130_v31 = vadd.f32 %v2754_v15, %v2752_v45  ;;  %v2074_v41 = vpop.eup %2073  ;;  %2089 = vpow2.f32 %v1044_v16  ;;  %1414 = vmatprep.mubr.bf16.mxu1 %v1243_v55 }
 0x27f   : > { %v2758_v49 = vpop.eup %2075  ;;  %2091 = vrcp.f32 %v1075_v51  ;;  %1415 = vmatmul.mubr.bf16.gmra.mrb[8].mxu1 %v1242_v25  ;;  %v1187_v57 = vmul.f32 %v2074_v41, %v2551_v48  ;;  %v1186_v36 = vmul.f32 %v2074_v41, %v2546_v2 }
 0x280   : > { %1131 = vadd.xlane.f32.xlu0 %v1130_v31  ;;  %v2760_v52 = vpop.eup %2077  ;;  %v1078_v47 = vpop.xlane.xlu0 %1077 }
 0x281   : > { %v2080_v23 = vpop.eup %2079  ;;  %v1133_v54 = vadd.f32 %v2760_v52, %v2758_v49  ;;  %2093 = vrcp.f32 %v1078_v47 }
 0x282   : > { %v1189_v17 = vmul.f32 %v2080_v23, %v2560_v40  ;;  %v1188_v18 = vmul.f32 %v2080_v23, %v2553_v60 }
 0x283   : > { %1134 = vadd.xlane.f32.xlu1 %v1133_v54  ;;  %v1081_v58 = vpop.xlane.xlu1 %1080 }
 0x284   : > { %v2768_v63 = vpop.eup %2081  ;;  %2095 = vrcp.f32 %v1081_v58  ;;  %v1245_v30 = vpack.c.bf16 %v1189_v17, %v1187_v57  ;;  %v1244_v44 = vpack.c.bf16 %v1188_v18, %v1186_v36  ;;  %v2983_v58 = vld [vmem:[#allocation4_spill] sm:$0xff] }
 0x285   : > { %v2770_v43 = vpop.eup %2083 }
 0x286   : > { %v1136_v20 = vadd.f32 %v2770_v43, %v2768_v63  ;;  %v2086_v48 = vpop.eup %2085  ;;  %1422 = vmatprep.mubr.bf16.mxu1 %v1245_v30 }
 0x287   : > { %v2774_v27 = vpop.eup %2087  ;;  %1423 = vmatmul.mubr.bf16.gmra.mrb[12].mxu1 %v1244_v44  ;;  %v1191_v29 = vmul.f32 %v2086_v48, %v2577_v26  ;;  %v1190_v3 = vmul.f32 %v2086_v48, %v2572_v8  ;;  %v2984_v44 = vld [vmem:[#allocation3_spill] sm:$0xff]  ;;  %v2985_v48 = vld [vmem:[#allocation2_spill] sm:$0xff] }
 0x288   : > { %1137 = vadd.xlane.f32.xlu0 %v1136_v20  ;;  %v2776_v2 = vpop.eup %2089  ;;  %v1084_v60 = vpop.xlane.xlu0 %1083 }
 0x289   : > { %v2092_v40 = vpop.eup %2091  ;;  %v1139_v33 = vadd.f32 %v2776_v2, %v2774_v27  ;;  %2097 = vrcp.f32 %v1084_v60 }
 0x28a   : > { %v1193_v61 = vmul.f32 %v2092_v40, %v2586_v53  ;;  %v1192_v5 = vmul.f32 %v2092_v40, %v2579_v4 }
 0x28b   : > { %1140 = vadd.xlane.f32.xlu1 %v1139_v33  ;;  %v1087_v6 = vpop.xlane.xlu1 %1086  ;;  %v2094_v56 = vpop.eup %2093 }
 0x28c   : > { %2099 = vrcp.f32 %v1087_v6  ;;  %v1247_v9 = vpack.c.bf16 %v1193_v61, %v1191_v29  ;;  %v1246_v39 = vpack.c.bf16 %v1192_v5, %v1190_v3  ;;  %v1195_v16 = vmul.f32 %v2094_v56, %v2598_v14  ;;  %v2986_v29 = vld [vmem:[#allocation6_spill] sm:$0xff]  ;;  %v2987_v3 = vld [vmem:[#allocation8_spill] sm:$0xff] }
 0x28d   : > { %v1194_v4 = vmul.f32 %v2094_v56, %v2596_v0  ;;  %v2988_v56 = vld [vmem:[#allocation7_spill] sm:$0xff] }
 0x28e   : > { %v2096_v62 = vpop.eup %2095  ;;  %1430 = vmatprep.mubr.bf16.mxu1 %v1247_v9 }
 0x28f   : > { %1431 = vmatmul.mubr.bf16.gmra.mrb[16].mxu1 %v1246_v39  ;;  %v1197_v26 = vmul.f32 %v2096_v62, %v2606_v59  ;;  %v1196_v53 = vmul.f32 %v2096_v62, %v2600_v1  ;;  %v2989_v62 = vld [vmem:[#allocation5_spill] sm:$0xff] }
 0x290   : > { %v1090_v55 = vpop.xlane.xlu0 %1089 }
 0x291   : > { %v1249_v51 = vpack.c.bf16 %v1197_v26, %v1195_v16  ;;  %2101 = vrcp.f32 %v1090_v55  ;;  %v1248_v31 = vpack.c.bf16 %v1196_v53, %v1194_v4 }
 0x293   : > { %1438 = vmatprep.mubr.bf16.mxu1 %v1249_v51  ;;  %v1093_v8 = vpop.xlane.xlu1 %1092  ;;  %v2098_v25 = vpop.eup %2097 }
 0x294   : > { %2103 = vrcp.f32 %v1093_v8  ;;  %v1199_v47 = vmul.f32 %v2098_v25, %v2614_v42  ;;  %v1198_v57 = vmul.f32 %v2098_v25, %v2612_v19 }
 0x296   : > { %v2100_v41 = vpop.eup %2099 }
 0x297   : > { %1439 = vmatmul.mubr.bf16.gmra.mrb[20].mxu1 %v1248_v31  ;;  %v1201_v14 = vmul.f32 %v2100_v41, %v2622_v13  ;;  %v1200_v54 = vmul.f32 %v2100_v41, %v2616_v37 }
 0x298   : > { %v1096_v23 = vpop.xlane.xlu0 %1095 }
 0x299   : > { %v1251_v59 = vpack.c.bf16 %v1201_v14, %v1199_v47  ;;  %2105 = vrcp.f32 %v1096_v23  ;;  %v1250_v0 = vpack.c.bf16 %v1200_v54, %v1198_v57 }
 0x29b   : > { %1446 = vmatprep.mubr.bf16.mxu1 %v1251_v59  ;;  %v1099_v1 = vpop.xlane.xlu1 %1098  ;;  %v2102_v17 = vpop.eup %2101 }
 0x29c   : > { %2107 = vrcp.f32 %v1099_v1  ;;  %v1203_v18 = vmul.f32 %v2102_v17, %v2630_v38  ;;  %v1202_v60 = vmul.f32 %v2102_v17, %v2985_v48  ;;  %v2990_v1 = vld [vmem:[#allocation11_spill] sm:$0xff] }
 0x29e   : > { %v2104_v36 = vpop.eup %2103 }
 0x29f   : > { %1447 = vmatmul.mubr.bf16.gmra.mrb[24].mxu1 %v1250_v0  ;;  %v1205_v42 = vmul.f32 %v2104_v36, %v2983_v58  ;;  %v1204_v20 = vmul.f32 %v2104_v36, %v2984_v44  ;;  %v2992_v36 = vld [vmem:[#allocation9_spill] sm:$0xff] }
 0x2a0   : > { %v1102_v30 = vpop.xlane.xlu0 %1101 }
 0x2a1   : > { %v1253_v13 = vpack.c.bf16 %v1205_v42, %v1203_v18  ;;  %2109 = vrcp.f32 %v1102_v30  ;;  %v1252_v19 = vpack.c.bf16 %v1204_v20, %v1202_v60  ;;  %v2993_v42 = vld [vmem:[#allocation13_spill] sm:$0xff]  ;;  %v2995_v20 = vld [vmem:[#allocation14_spill] sm:$0xff] }
 0x2a3   : > { %1454 = vmatprep.mubr.bf16.mxu1 %v1253_v13  ;;  %v1105_v37 = vpop.xlane.xlu1 %1104  ;;  %v2106_v40 = vpop.eup %2105  ;;  %v2994_v13 = vld [vmem:[#allocation15_spill] sm:$0xff] }
 0x2a4   : > { %2111 = vrcp.f32 %v1105_v37  ;;  %v1207_v61 = vmul.f32 %v2106_v40, %v2986_v29  ;;  %v1206_v16 = vmul.f32 %v2106_v40, %v2989_v62  ;;  %v2996_v37 = vld [vmem:[#allocation12_spill] sm:$0xff] }
 0x2a6   : > { %v2108_v33 = vpop.eup %2107 }
 0x2a7   : > { %1455 = vmatmul.mubr.bf16.gmra.mrb[28].mxu1 %v1252_v19  ;;  %v1209_v38 = vmul.f32 %v2108_v33, %v2987_v3  ;;  %v1208_v9 = vmul.f32 %v2108_v33, %v2988_v56 }
 0x2a8   : > { %v1108_v5 = vpop.xlane.xlu0 %1107 }
 0x2a9   : > { %2113 = vrcp.f32 %v1108_v5  ;;  %v1255_v6 = vpack.c.bf16 %v1209_v38, %v1207_v61  ;;  %v1254_v55 = vpack.c.bf16 %v1208_v9, %v1206_v16 }
 0x2aa   : > { %v1111_v39 = vpop.xlane.xlu1 %1110 }
 0x2ab   : > { %1462 = vmatprep.mubr.bf16.mxu1 %v1255_v6  ;;  %2115 = vrcp.f32 %v1111_v39  ;;  %v2110_v26 = vpop.eup %2109 }
 0x2ac   : > { %v1211_v53 = vmul.f32 %v2110_v26, %v2662_v22  ;;  %v1210_v14 = vmul.f32 %v2110_v26, %v2660_v32 }
 0x2ae   : > { %v2112_v51 = vpop.eup %2111 }
 0x2af   : > { %1463 = vmatmul.mubr.bf16.gmra.mrb[32].mxu1 %v1254_v55  ;;  %v1213_v8 = vmul.f32 %v2112_v51, %v2670_v24  ;;  %v1212_v31 = vmul.f32 %v2112_v51, %v2664_v46  ;;  %v2991_v24 = vld [vmem:[#allocation10_spill] sm:$0xff] }
 0x2b0   : > { %v1114_v4 = vpop.xlane.xlu0 %1113 }
 0x2b1   : > { %2117 = vrcp.f32 %v1114_v4  ;;  %v1257_v25 = vpack.c.bf16 %v1213_v8, %v1211_v53  ;;  %v1256_v59 = vpack.c.bf16 %v1212_v31, %v1210_v14 }
 0x2b2   : > { %v1117_v41 = vpop.xlane.xlu1 %1116 }
 0x2b3   : > { %v2114_v47 = vpop.eup %2113  ;;  %1470 = vmatprep.mubr.bf16.mxu1 %v1257_v25  ;;  %2119 = vrcp.f32 %v1117_v41 }
 0x2b4   : > { %v1215_v54 = vmul.f32 %v2114_v47, %v2678_v7  ;;  %v1214_v46 = vmul.f32 %v2114_v47, %v2992_v36 }
 0x2b5   : > { %v2116_v23 = vpop.eup %2115 }
 0x2b6   : > { %v1217_v57 = vmul.f32 %v2116_v23, %v2990_v1  ;;  %v1216_v17 = vmul.f32 %v2116_v23, %v2991_v24 }
 0x2b7   : > { %1471 = vmatmul.mubr.bf16.gmra.mrb[36].mxu1 %v1256_v59 }
 0x2b8   : > { %v1259_v22 = vpack.c.bf16 %v1217_v57, %v1215_v54  ;;  %v1258_v58 = vpack.c.bf16 %v1216_v17, %v1214_v46 }
 0x2ba   : > { %1478 = vmatprep.mubr.bf16.mxu1 %v1259_v22 }
 0x2bb   : > { %v2118_v0 = vpop.eup %2117 }
 0x2bc   : > { %v1219_v30 = vmul.f32 %v2118_v0, %v2993_v42  ;;  %v1218_v48 = vmul.f32 %v2118_v0, %v2996_v37 }
 0x2bd   : > { %v2120_v18 = vpop.eup %2119 }
 0x2be   : > { %v1221_v32 = vmul.f32 %v2120_v18, %v2994_v13  ;;  %v1220_v7 = vmul.f32 %v2120_v18, %v2995_v20 }
 0x2bf   : > { %1479 = vmatmul.mubr.bf16.gmra.mrb[40].mxu1 %v1258_v58 }
 0x2c0   : > { %v1261_v44 = vpack.c.bf16 %v1221_v32, %v1219_v30  ;;  %v1260_v60 = vpack.c.bf16 %v1220_v7, %v1218_v48 }
 0x2c2   : > { %1486 = vmatprep.mubr.bf16.mxu1 %v1261_v44 }
 0x2c7   : > { %1487 = vmatmul.mubr.bf16.gmra.mrb[44].mxu1 %v1260_v60 }
 0x2fc   : > { %v1120_v40 = vpop.xlane.xlu0 %1119 }
 0x2fd   : > { %2121 = vrcp.f32 %v1120_v40 }
 0x300   : > { %v1123_v19 = vpop.xlane.xlu1 %1122 }
 0x301   : > { %2123 = vrcp.f32 %v1123_v19 }
 0x304   : > { %v1126_v33 = vpop.xlane.xlu0 %1125 }
 0x305   : > { %2125 = vrcp.f32 %v1126_v33 }
 0x307   : > { %v2122_v61 = vpop.eup %2121 }
 0x308   : > { %v1129_v29 = vpop.xlane.xlu1 %1128  ;;  %v1223_v5 = vmul.f32 %v2122_v61, %v2714_v34  ;;  %v1222_v56 = vmul.f32 %v2122_v61, %v2712_v50 }
 0x309   : > { %2127 = vrcp.f32 %v1129_v29 }
 0x30b   : > { %v2124_v3 = vpop.eup %2123 }
 0x30c   : > { %v1225_v6 = vmul.f32 %v2124_v3, %v2722_v11  ;;  %v1224_v9 = vmul.f32 %v2124_v3, %v2720_v12 }
 0x30d   : > { %v1132_v38 = vpop.xlane.xlu0 %1131 }
 0x30e   : > { %v1263_v39 = vpack.c.bf16 %v1225_v6, %v1223_v5  ;;  %v1262_v62 = vpack.c.bf16 %v1224_v9, %v1222_v56  ;;  %2129 = vrcp.f32 %v1132_v38 }
 0x30f   : > { %v2126_v26 = vpop.eup %2125 }
 0x310   : > { %1494 = vmatprep.mubr.bf16.mxu1 %v1263_v39  ;;  %v1135_v16 = vpop.xlane.xlu1 %1134  ;;  %v1227_v53 = vmul.f32 %v2126_v26, %v2734_v10  ;;  %v1226_v11 = vmul.f32 %v2126_v26, %v2732_v21 }
 0x311   : > { %2131 = vrcp.f32 %v1135_v16  ;;  %1495 = vmatmul.mubr.bf16.gmra.mrb[48].mxu1 %v1262_v62 }
 0x313   : > { %v2128_v55 = vpop.eup %2127 }
 0x314   : > { %v1229_v34 = vmul.f32 %v2128_v55, %v2742_v28  ;;  %v1228_v50 = vmul.f32 %v2128_v55, %v2740_v35 }
 0x315   : > { %v1138_v51 = vpop.xlane.xlu0 %1137 }
 0x316   : > { %v1265_v8 = vpack.c.bf16 %v1229_v34, %v1227_v53  ;;  %v1264_v12 = vpack.c.bf16 %v1228_v50, %v1226_v11  ;;  %2133 = vrcp.f32 %v1138_v51 }
 0x318   : > { %1502 = vmatprep.mubr.bf16.mxu1 %v1265_v8  ;;  %v1141_v4 = vpop.xlane.xlu1 %1140  ;;  %v2130_v25 = vpop.eup %2129 }
 0x319   : > { %2135 = vrcp.f32 %v1141_v4  ;;  %1503 = vmatmul.mubr.bf16.gmra.mrb[52].mxu1 %v1264_v12  ;;  %v1231_v41 = vmul.f32 %v2130_v25, %v2754_v15  ;;  %v1230_v10 = vmul.f32 %v2130_v25, %v2752_v45 }
 0x31b   : > { %v2132_v31 = vpop.eup %2131 }
 0x31c   : > { %v1233_v47 = vmul.f32 %v2132_v31, %v2760_v52  ;;  %v1232_v21 = vmul.f32 %v2132_v31, %v2758_v49 }
 0x31e   : > { %v1267_v28 = vpack.c.bf16 %v1233_v47, %v1231_v41  ;;  %v1266_v35 = vpack.c.bf16 %v1232_v21, %v1230_v10 }
 0x320   : > { %1510 = vmatprep.mubr.bf16.mxu1 %v1267_v28  ;;  %v2134_v14 = vpop.eup %2133 }
 0x321   : > { %1511 = vmatmul.mubr.bf16.gmra.mrb[56].mxu1 %v1266_v35  ;;  %v1235_v59 = vmul.f32 %v2134_v14, %v2770_v43  ;;  %v1234_v1 = vmul.f32 %v2134_v14, %v2768_v63 }
 0x323   : > { %v2136_v23 = vpop.eup %2135 }
 0x324   : > { %v1237_v54 = vmul.f32 %v2136_v23, %v2776_v2  ;;  %v1236_v15 = vmul.f32 %v2136_v23, %v2774_v27 }
 0x326   : > { %v1269_v52 = vpack.c.bf16 %v1237_v54, %v1235_v59  ;;  %v1268_v57 = vpack.c.bf16 %v1236_v15, %v1234_v1 }
 0x328   : > { %1518 = vmatprep.mubr.bf16.mxu1 %v1269_v52 }
 0x329   : > { %1519 = vmatmul.mubr.bf16.gmra.mrb[60].mxu1 %v1268_v57 }
 0x340   : > { %v1785_v45 = vpop.f32.mrb[0].mxu1 }
 0x341   : > { %v1786_v49 = vpop.f32.mrb[1].mxu1 }
 0x342   : > { %v1787_v43 = vadd.f32 %v1786_v49, %v1785_v45  ;;  %v1788_v63 = vpop.f32.mrb[2].mxu1 }
 0x343   : > { %v1789_v2 = vpop.f32.mrb[3].mxu1 }
 0x344   : > { %1527 = vst.msk [vmem:[%s2832_s27] sm:$0xff] %vm468_vm0, %v1787_v43  ;;  %v1790_v27 = vadd.f32 %v1789_v2, %v1788_v63 }
 0x346   : > { %1528 = vst.msk [vmem:[%s2832_s27 + $0x8] sm:$0xff] %vm468_vm0, %v1790_v27 }
 0x34a   : > { %v1791_v22 = vpop.f32.mrb[4].mxu1 }
 0x34b   : > { %v1792_v24 = vpop.f32.mrb[5].mxu1 }
 0x34c   : > { %v1793_v17 = vadd.f32 %v1792_v24, %v1791_v22  ;;  %v1794_v0 = vpop.f32.mrb[6].mxu1 }
 0x34d   : > { %v1795_v36 = vpop.f32.mrb[7].mxu1 }
 0x34e   : > { %1529 = vst.msk [vmem:[%s2832_s27 + $0x10] sm:$0xff] %vm468_vm0, %v1793_v17  ;;  %v1796_v46 = vadd.f32 %v1795_v36, %v1794_v0 }
 0x350   : > { %1530 = vst.msk [vmem:[%s2832_s27 + $0x18] sm:$0xff] %vm468_vm0, %v1796_v46 }
 0x352   : > { %v1797_v18 = vpop.f32.mrb[8].mxu1 }
 0x353   : > { %v1798_v58 = vpop.f32.mrb[9].mxu1 }
 0x354   : > { %v1799_v42 = vadd.f32 %v1798_v58, %v1797_v18  ;;  %v1800_v30 = vpop.f32.mrb[10].mxu1 }
 0x355   : > { %v1801_v13 = vpop.f32.mrb[11].mxu1 }
 0x356   : > { %1531 = vst.msk [vmem:[%s2832_s27 + $0x20] sm:$0xff] %vm468_vm0, %v1799_v42  ;;  %v1802_v32 = vadd.f32 %v1801_v13, %v1800_v30 }
 0x358   : > { %1532 = vst.msk [vmem:[%s2832_s27 + $0x28] sm:$0xff] %vm468_vm0, %v1802_v32 }
 0x35a   : > { %v1803_v44 = vpop.f32.mrb[12].mxu1 }
 0x35b   : > { %v1804_v20 = vpop.f32.mrb[13].mxu1 }
 0x35c   : > { %v1805_v7 = vadd.f32 %v1804_v20, %v1803_v44  ;;  %v1806_v37 = vpop.f32.mrb[14].mxu1 }
 0x35d   : > { %v1807_v48 = vpop.f32.mrb[15].mxu1 }
 0x35e   : > { %1533 = vst.msk [vmem:[%s2832_s27 + $0x30] sm:$0xff] %vm468_vm0, %v1805_v7  ;;  %v1808_v60 = vadd.f32 %v1807_v48, %v1806_v37 }
 0x360   : > { %1534 = vst.msk [vmem:[%s2832_s27 + $0x38] sm:$0xff] %vm468_vm0, %v1808_v60 }
 0x362   : > { %v1809_v40 = vpop.f32.mrb[16].mxu1 }
 0x363   : > { %v1810_v19 = vpop.f32.mrb[17].mxu1 }
 0x364   : > { %v1811_v33 = vadd.f32 %v1810_v19, %v1809_v40  ;;  %v1812_v29 = vpop.f32.mrb[18].mxu1 }
 0x365   : > { %v1813_v61 = vpop.f32.mrb[19].mxu1 }
 0x366   : > { %1535 = vst.msk [vmem:[%s2832_s27 + $0x40] sm:$0xff] %vm468_vm0, %v1811_v33  ;;  %v1814_v3 = vadd.f32 %v1813_v61, %v1812_v29 }
 0x368   : > { %1536 = vst.msk [vmem:[%s2832_s27 + $0x48] sm:$0xff] %vm468_vm0, %v1814_v3 }
 0x36a   : > { %v1815_v38 = vpop.f32.mrb[20].mxu1 }
 0x36b   : > { %v1816_v5 = vpop.f32.mrb[21].mxu1 }
 0x36c   : > { %v1817_v6 = vadd.f32 %v1816_v5, %v1815_v38  ;;  %v1818_v56 = vpop.f32.mrb[22].mxu1 }
 0x36d   : > { %v1819_v9 = vpop.f32.mrb[23].mxu1 }
 0x36e   : > { %1537 = vst.msk [vmem:[%s2832_s27 + $0x50] sm:$0xff] %vm468_vm0, %v1817_v6  ;;  %v1820_v39 = vadd.f32 %v1819_v9, %v1818_v56 }
 0x370   : > { %1538 = vst.msk [vmem:[%s2832_s27 + $0x58] sm:$0xff] %vm468_vm0, %v1820_v39 }
 0x372   : > { %v1821_v62 = vpop.f32.mrb[24].mxu1 }
 0x373   : > { %v1822_v16 = vpop.f32.mrb[25].mxu1 }
 0x374   : > { %v1823_v26 = vadd.f32 %v1822_v16, %v1821_v62  ;;  %v1824_v55 = vpop.f32.mrb[26].mxu1 }
 0x375   : > { %v1825_v51 = vpop.f32.mrb[27].mxu1 }
 0x376   : > { %1539 = vst.msk [vmem:[%s2832_s27 + $0x60] sm:$0xff] %vm468_vm0, %v1823_v26  ;;  %v1826_v53 = vadd.f32 %v1825_v51, %v1824_v55 }
 0x378   : > { %1540 = vst.msk [vmem:[%s2832_s27 + $0x68] sm:$0xff] %vm468_vm0, %v1826_v53 }
 0x37a   : > { %v1827_v34 = vpop.f32.mrb[28].mxu1 }
 0x37b   : > { %v1828_v11 = vpop.f32.mrb[29].mxu1 }
 0x37c   : > { %v1829_v50 = vadd.f32 %v1828_v11, %v1827_v34  ;;  %v1830_v8 = vpop.f32.mrb[30].mxu1 }
 0x37d   : > { %v1831_v12 = vpop.f32.mrb[31].mxu1 }
 0x37e   : > { %1541 = vst.msk [vmem:[%s2832_s27 + $0x70] sm:$0xff] %vm468_vm0, %v1829_v50  ;;  %v1832_v4 = vadd.f32 %v1831_v12, %v1830_v8 }
 0x380   : > { %1542 = vst.msk [vmem:[%s2832_s27 + $0x78] sm:$0xff] %vm468_vm0, %v1832_v4 }
 0x382   : > { %v1833_v25 = vpop.f32.mrb[32].mxu1 }
 0x383   : > { %v1834_v31 = vpop.f32.mrb[33].mxu1 }
 0x384   : > { %v1835_v41 = vadd.f32 %v1834_v31, %v1833_v25  ;;  %v1836_v47 = vpop.f32.mrb[34].mxu1 }
 0x385   : > { %v1837_v10 = vpop.f32.mrb[35].mxu1 }
 0x386   : > { %1543 = vst.msk [vmem:[%s2832_s27 + $0x80] sm:$0xff] %vm468_vm0, %v1835_v41  ;;  %v1838_v21 = vadd.f32 %v1837_v10, %v1836_v47 }
 0x388   : > { %1544 = vst.msk [vmem:[%s2832_s27 + $0x88] sm:$0xff] %vm468_vm0, %v1838_v21 }
 0x38a   : > { %v1839_v28 = vpop.f32.mrb[36].mxu1 }
 0x38b   : > { %v1840_v35 = vpop.f32.mrb[37].mxu1 }
 0x38c   : > { %v1841_v14 = vadd.f32 %v1840_v35, %v1839_v28  ;;  %v1842_v23 = vpop.f32.mrb[38].mxu1 }
 0x38d   : > { %v1843_v59 = vpop.f32.mrb[39].mxu1 }
 0x38e   : > { %1545 = vst.msk [vmem:[%s2832_s27 + $0x90] sm:$0xff] %vm468_vm0, %v1841_v14  ;;  %v1844_v54 = vadd.f32 %v1843_v59, %v1842_v23 }
 0x390   : > { %1546 = vst.msk [vmem:[%s2832_s27 + $0x98] sm:$0xff] %vm468_vm0, %v1844_v54 }
 0x392   : > { %v1845_v1 = vpop.f32.mrb[40].mxu1 }
 0x393   : > { %v1846_v15 = vpop.f32.mrb[41].mxu1 }
 0x394   : > { %v1847_v52 = vadd.f32 %v1846_v15, %v1845_v1  ;;  %v1848_v57 = vpop.f32.mrb[42].mxu1 }
 0x395   : > { %v1849_v45 = vpop.f32.mrb[43].mxu1 }
 0x396   : > { %1547 = vst.msk [vmem:[%s2832_s27 + $0xa0] sm:$0xff] %vm468_vm0, %v1847_v52  ;;  %v1850_v49 = vadd.f32 %v1849_v45, %v1848_v57 }
 0x398   : > { %1548 = vst.msk [vmem:[%s2832_s27 + $0xa8] sm:$0xff] %vm468_vm0, %v1850_v49 }
 0x39a   : > { %v1851_v43 = vpop.f32.mrb[44].mxu1 }
 0x39b   : > { %v1852_v63 = vpop.f32.mrb[45].mxu1 }
 0x39c   : > { %v1853_v2 = vadd.f32 %v1852_v63, %v1851_v43  ;;  %v1854_v27 = vpop.f32.mrb[46].mxu1 }
 0x39d   : > { %v1855_v22 = vpop.f32.mrb[47].mxu1 }
 0x39e   : > { %1549 = vst.msk [vmem:[%s2832_s27 + $0xb0] sm:$0xff] %vm468_vm0, %v1853_v2  ;;  %v1856_v24 = vadd.f32 %v1855_v22, %v1854_v27 }
 0x3a0   : > { %1550 = vst.msk [vmem:[%s2832_s27 + $0xb8] sm:$0xff] %vm468_vm0, %v1856_v24 }
 0x3e4   : > { %v1857_v17 = vpop.f32.mrb[48].mxu1 }
 0x3e5   : > { %v1858_v0 = vpop.f32.mrb[49].mxu1 }
 0x3e6   : > { %v1859_v36 = vadd.f32 %v1858_v0, %v1857_v17  ;;  %v1860_v46 = vpop.f32.mrb[50].mxu1 }
 0x3e7   : > { %v1861_v18 = vpop.f32.mrb[51].mxu1 }
 0x3e8   : > { %1551 = vst.msk [vmem:[%s2832_s27 + $0xc0] sm:$0xff] %vm468_vm0, %v1859_v36  ;;  %v1862_v58 = vadd.f32 %v1861_v18, %v1860_v46 }
 0x3ea   : > { %1552 = vst.msk [vmem:[%s2832_s27 + $0xc8] sm:$0xff] %vm468_vm0, %v1862_v58 }
 0x3ec   : > { %v1863_v42 = vpop.f32.mrb[52].mxu1 }
 0x3ed   : > { %v1864_v30 = vpop.f32.mrb[53].mxu1 }
 0x3ee   : > { %v1865_v13 = vadd.f32 %v1864_v30, %v1863_v42  ;;  %v1866_v32 = vpop.f32.mrb[54].mxu1 }
 0x3ef   : > { %v1867_v44 = vpop.f32.mrb[55].mxu1 }
 0x3f0   : > { %1553 = vst.msk [vmem:[%s2832_s27 + $0xd0] sm:$0xff] %vm468_vm0, %v1865_v13  ;;  %v1868_v20 = vadd.f32 %v1867_v44, %v1866_v32 }
 0x3f2   : > { %1554 = vst.msk [vmem:[%s2832_s27 + $0xd8] sm:$0xff] %vm468_vm0, %v1868_v20 }
 0x3f4   : > { %v1869_v7 = vpop.f32.mrb[56].mxu1 }
 0x3f5   : > { %v1870_v37 = vpop.f32.mrb[57].mxu1 }
 0x3f6   : > { %v1871_v48 = vadd.f32 %v1870_v37, %v1869_v7  ;;  %v1872_v60 = vpop.f32.mrb[58].mxu1 }
 0x3f7   : > { %v1873_v40 = vpop.f32.mrb[59].mxu1 }
 0x3f8   : > { %1555 = vst.msk [vmem:[%s2832_s27 + $0xe0] sm:$0xff] %vm468_vm0, %v1871_v48  ;;  %v1874_v19 = vadd.f32 %v1873_v40, %v1872_v60 }
 0x3fa   : > { %1556 = vst.msk [vmem:[%s2832_s27 + $0xe8] sm:$0xff] %vm468_vm0, %v1874_v19 }
 0x3fc   : > { %v1875_v33 = vpop.f32.mrb[60].mxu1 }
 0x3fd   : > { %v1876_v29 = vpop.f32.mrb[61].mxu1 }
 0x3fe   : > { %v1877_v61 = vadd.f32 %v1876_v29, %v1875_v33  ;;  %v1878_v3 = vpop.f32.mrb[62].mxu1 }
 0x3ff   : > { %v1879_v38 = vpop.f32.mrb[63].mxu1 }
 0x400   : > { %1557 = vst.msk [vmem:[%s2832_s27 + $0xf0] sm:$0xff] %vm468_vm0, %v1877_v61  ;;  %v1880_v5 = vadd.f32 %v1879_v38, %v1878_v3 }
 0x402   : > { %1558 = vst.msk [vmem:[%s2832_s27 + $0xf8] sm:$0xff] %vm468_vm0, %v1880_v5 }
 0x403 PF: > { %s13_s12 = sadd.s32 1, %s2143_s12  }
 0x404   : > { %p10_p4 = scmp.ge.s32.totalorder %s13_s12, 4  }
 0x406   :  { %12 = sbr.rel (!%p10_p4) target bundleno = 1 (0x1), region = 68 }

// kernel: resblock_apply.17
= control target key start
LH: loop header
LB: loop body
LE: loop exit
PB: predicated region body
PF: predicated region fallthrough
CT: control target
= control target key end

     0   :  { %9 = vsyncpa [#allocation4], 0  ;;  %s1691_s0 = inlined_call_operand.vmem [shape: bf16[512,64], index: 0, kind: input, shape index: {}]   ;;  %s1692_s1 = inlined_call_operand.vmem [shape: bf16[64,128], index: 1, kind: input, shape index: {}]   ;;  %s1693_s2 = inlined_call_operand.vmem [shape: f32[1,128], index: 2, kind: input, shape index: {}]   ;;  %s1694_s3 = inlined_call_operand.vmem [shape: f32[512,128], index: 3, kind: input, shape index: {}]   ;;  %s1695_s4 = inlined_call_operand.hbm [shape: f32[512,128], index: 4, kind: output, shape index: {}]  }
   0x1   :  { %11 = vsyncpa [#allocation4 + $0x1], 0  ;;  %s1414_s15 = smov 0   ;;  %s1416_s16 = smov 0  }
   0x2   :  { %s1418_s17 = smov 0   ;;  %s1420_s18 = smov 0  }
   0x3   :  { %s1422_s19 = smov 0   ;;  %s1424_s20 = smov 0  }
   0x4 LB: > { %s1106_s21 = sadd.s32 4294967295, %s1384_s20   ;;  %s1107_s22 = sadd.s32 4294967294, %s1384_s20   ;;  %s1384_s20 = sphi %s1424_s20, %s17_s20   ;;  %s1380_s19 = sphi %s1422_s19, %s1702_s19   ;;  %s1376_s18 = sphi %s1420_s18, %s1701_s18   ;;  %s1372_s17 = sphi %s1418_s17, %s1700_s17   ;;  %s1368_s16 = sphi %s1416_s16, %s1699_s16   ;;  %s1364_s15 = sphi %s1414_s15, %s1698_s15  }
   0x5   : > { %s36_s23 = sadd.s32 1, %s1380_s19  ;;  %s155_s24 = sadd.s32 1, %s1372_s17 }
   0x6   : > { %p38_p0 = scmp.ge.s32.totalorder %s36_s23, 2  ;;  %p165_p1 = scmp.ne.s32.totalorder %s1372_s17, %s1368_s16 }
   0x7   : > { %p166_p2 = scmp.eq.s32.totalorder %s1106_s21, 1  ;;  %p171_p3 = scmp.ne.s32.totalorder %s1368_s16, %s1364_s15 }
   0x8   : > { %s1704_s23 = smov (%p38_p0, %s36_s23), 0  ;;  %p172_p5 = scmp.eq.s32.totalorder %s1107_s22, 1 }
   0x9   : > { %p1454_p4 = por %p166_p2, %p165_p1  ;;  %s150_s26 = ssub.s32 %s1380_s19, %s1704_s23 }
   0xa   : > { %p1112_p6 = scmp.ge.s32.totalorder %s1384_s20, 1  ;;  %p153_p7 = scmp.eq.s32.totalorder %s150_s26, 0 }
   0xb   : > { %p1461_p8 = por %p172_p5, %p171_p3  ;;  %p232_p9 = scmp.lt.s32.totalorder %s1384_s20, 3 }
   0xc   : > { %s1467_s28 = scalar_select %p153_p7, %s1372_s17, %s155_s24  }
   0xd   : > { %p233_p10 = pnand %p1112_p6, %p232_p9 }
   0xe   : > { %v1286_v0 = vld [vmem:[%s1692_s1] sm:$0xff] (!%p233_p10)   ;;  %s1114_s5 = sshll.u32 (!%p233_p10), %s1376_s18, 5  ;;  %v1287_v1 = vld [vmem:[%s1692_s1 + $0x8] sm:$0xff] (!%p233_p10)   ;;  %v1288_v2 = vld [vmem:[%s1692_s1 + $0x10] sm:$0xff] (!%p233_p10)   ;;  %vm524_vm0 = vcmask (!%p233_p10), 523264   ;;  %s277_s24 = sand.u32 (!%p233_p10), 1, %s1368_s16  }
   0xf   : > { %236 = sbr.rel (%p233_p10) target bundleno = 289 (0x121), region = 36  ;;  %p281_p11 = scmp.lt.s32.totalorder (!%p233_p10), %s1114_s5, 63  ;;  %1181 = vmatprep.subr.bf16.mxu0 (!%p233_p10), %v1286_v0  ;;  %1221 = vmatprep.subr.bf16.mxu1 (!%p233_p10), %v1286_v0  ;;  %v1289_v3 = vld [vmem:[%s1692_s1 + $0x18] sm:$0xff] (!%p233_p10)   ;;  %v1532_v20 = vld [vmem:[%s1693_s2] ss:$0 sm:$0xff] (!%p233_p10) }
  0x10   : > { %1182 = vmatpush3.bf16.msra.mxu0 (!%p233_p10), %v1286_v0  ;;  %1225 = vmatpush3.bf16.msra.mxu1 (!%p233_p10), %v1286_v0  ;;  %s1113_s8 = sshll.u32 (!%p233_p10), %s277_s24, 8  ;;  %s1160_s9 = sshll.u32 (!%p233_p10), %s1376_s18, 12 }
  0x11   : > { %1183 = vmatprep.subr.bf16.mxu0 (!%p233_p10), %v1287_v1  ;;  %1222 = vmatprep.subr.bf16.mxu1 (!%p233_p10), %v1287_v1  ;;  %s1633_s12 = scalar_lea.hbm (!%p233_p10), %s1695_s4, %s1160_s9  ;;  %s1645_s13 = scalar_lea.sflag (!%p233_p10), [#allocation4], %s277_s24 }
  0x14   : > { %1184 = vmatpush3.bf16.msra.mxu0 (!%p233_p10), %v1287_v1  ;;  %1226 = vmatpush3.bf16.msra.mxu1 (!%p233_p10), %v1287_v1 }
  0x15   : > { %1185 = vmatprep.subr.bf16.mxu0 (!%p233_p10), %v1288_v2  ;;  %1223 = vmatprep.subr.bf16.mxu1 (!%p233_p10), %v1288_v2 }
  0x16   : > { %s1706_s5 = smov (!%p281_p11, %s1114_s5), 63 }
  0x17   : > { %s1115_s10 = sshll.u32 %s1706_s5, 2  ;;  %s1117_s22 = sshll.u32 %s1706_s5, 3 }
  0x18   : > { %s1488_s21 = scalar_lea.vmem %s1691_s0, %s1115_s10  ;;  %1186 = vmatpush3.bf16.msra.mxu0 %v1288_v2  ;;  %1227 = vmatpush3.bf16.msra.mxu1 %v1288_v2  ;;  %s1527_s30 = scalar_lea.vmem %s1694_s3, %s1117_s22 }
  0x19   : > { %v1290_v4 = vld [vmem:[%s1488_s21] sm:$0xff]   ;;  %1187 = vmatprep.subr.bf16.mxu0 %v1289_v3  ;;  %1224 = vmatprep.subr.bf16.mxu1 %v1289_v3  ;;  %v1292_v6 = vld [vmem:[%s1488_s21 + $0x8] sm:$0xff]   ;;  %v1294_v8 = vld [vmem:[%s1488_s21 + $0x10] sm:$0xff]   ;;  %s1552_s5 = scalar_lea.vmem [#allocation3], %s1113_s8 }
  0x1a   : > { %v1291_v5 = vld [vmem:[%s1488_s21 + $0x40] sm:$0xff]   ;;  %1189 = vmatprep.mubr.msk.bf16.mxu0 %vm524_vm0, %v1290_v4  ;;  %v1293_v7 = vld [vmem:[%s1488_s21 + $0x48] sm:$0xff]   ;;  %v1295_v9 = vld [vmem:[%s1488_s21 + $0x50] sm:$0xff]   ;;  %s983_s10 = sshll.u32 %s1552_s5, 4  ;;  %s1635_s10 = int_to_ptr.vmem [resolvable:$true] %s983_s10 }
  0x1b   : > { %1205 = vmatprep.mubr.msk.bf16.mxu1 %vm524_vm0, %v1291_v5  ;;  %v1296_v10 = vld [vmem:[%s1488_s21 + $0x18] sm:$0xff]   ;;  %v1298_v12 = vld [vmem:[%s1488_s21 + $0x20] sm:$0xff]   ;;  %v1300_v14 = vld [vmem:[%s1488_s21 + $0x28] sm:$0xff]   ;;  %s1306_s14 = scalar_lea.vmem %s1635_s10, 4096 }
  0x1c   : > { %1188 = vmatpush3.bf16.msra.mxu0 %v1289_v3  ;;  %1228 = vmatpush3.bf16.msra.mxu1 %v1289_v3  ;;  %v1297_v11 = vld [vmem:[%s1488_s21 + $0x58] sm:$0xff]   ;;  %v1299_v13 = vld [vmem:[%s1488_s21 + $0x60] sm:$0xff]   ;;  %v1301_v15 = vld [vmem:[%s1488_s21 + $0x68] sm:$0xff]   ;;  %p1307_p12 = scmp.ne.s32.totalorder %s1635_s10, %s1306_s14 }
  0x1d   : > { %v1302_v16 = vld [vmem:[%s1488_s21 + $0x30] sm:$0xff]   ;;  %v1304_v18 = vld [vmem:[%s1488_s21 + $0x38] sm:$0xff]   ;;  %v872_v28 = vld [vmem:[%s1527_s30] sm:$0xff] }
  0x1e   : > { %v1303_v17 = vld [vmem:[%s1488_s21 + $0x70] sm:$0xff]   ;;  %v1305_v19 = vld [vmem:[%s1488_s21 + $0x78] sm:$0xff]   ;;  %v888_v30 = vld [vmem:[%s1527_s30 + $0x80] sm:$0xff]  ;;  %p1308_p13 = pnand %p1307_p12, %p1454_p4  ;;  %s1386_s21 = smov [#allocation3]  }
  0x1f   : > { %1190 = vmatmul.mubr.msk.bf16.vlgmr.msra.gmra.mrb[0].mxu0 %vm524_vm0, %v1292_v6  ;;  %1206 = vmatmul.mubr.msk.bf16.vlgmr.msra.gmra.mrb[0].mxu1 %vm524_vm0, %v1293_v7  ;;  %v874_v22 = vld [vmem:[%s1527_s30 + $0x10] sm:$0xff]  ;;  %v875_v34 = vld [vmem:[%s1527_s30 + $0x18] sm:$0xff]  ;;  %v873_v42 = vld [vmem:[%s1527_s30 + $0x8] sm:$0xff]  ;;  %s1310_s22 = sshll.u32 %s1386_s21, 4  ;;  %s1311_s22 = int_to_ptr.vmem [resolvable:$false] %s1310_s22 }
  0x20   : > { %1193 = vmatprep.mubr.msk.bf16.mxu0 %vm524_vm0, %v1294_v8  ;;  %1209 = vmatprep.mubr.msk.bf16.mxu1 %vm524_vm0, %v1295_v9  ;;  %v890_v24 = vld [vmem:[%s1527_s30 + $0x90] sm:$0xff]  ;;  %v891_v36 = vld [vmem:[%s1527_s30 + $0x98] sm:$0xff]  ;;  %v889_v44 = vld [vmem:[%s1527_s30 + $0x88] sm:$0xff]  ;;  %p1309_p0 = pneg %p1308_p13  ;;  %s1312_s26 = scalar_lea.vmem %s1311_s22, 8192 }
  0x21   : > { %v878_v54 = vld [vmem:[%s1527_s30 + $0x30] sm:$0xff]  ;;  %v876_v60 = vld [vmem:[%s1527_s30 + $0x20] sm:$0xff]  ;;  %v879_v2 = vld [vmem:[%s1527_s30 + $0x38] sm:$0xff]  ;;  %p1313_p1 = scmp.lt.s32.totalorder %s1635_s10, %s1311_s22  ;;  %p1314_p2 = scmp.lt.s32.totalorder %s1312_s26, %s1306_s14 }
  0x22   : > { %v894_v56 = vld [vmem:[%s1527_s30 + $0xb0] sm:$0xff]  ;;  %v892_v62 = vld [vmem:[%s1527_s30 + $0xa0] sm:$0xff]  ;;  %v895_v4 = vld [vmem:[%s1527_s30 + $0xb8] sm:$0xff] }
  0x23   : > { %p1315_p3 = por %p1314_p2, %p1313_p1 }
  0x25   : > { %p1316_p5 = pnand %p1315_p3, %p1309_p0 }
  0x27   : > { %1194 = vmatmul.mubr.msk.bf16.gmra.mrb[4].mxu0 %vm524_vm0, %v1296_v10  ;;  %1210 = vmatmul.mubr.msk.bf16.gmra.mrb[4].mxu1 %vm524_vm0, %v1297_v11  ;;  %v877_v10 = vld [vmem:[%s1527_s30 + $0x28] sm:$0xff] }
  0x28   : > { %1197 = vmatprep.mubr.msk.bf16.mxu0 %vm524_vm0, %v1298_v12  ;;  %1213 = vmatprep.mubr.msk.bf16.mxu1 %vm524_vm0, %v1299_v13  ;;  %v893_v12 = vld [vmem:[%s1527_s30 + $0xa8] sm:$0xff] }
  0x2f   : > { %1198 = vmatmul.mubr.msk.bf16.gmra.mrb[8].mxu0 %vm524_vm0, %v1300_v14  ;;  %1214 = vmatmul.mubr.msk.bf16.gmra.mrb[8].mxu1 %vm524_vm0, %v1301_v15 }
  0x30   : > { %1201 = vmatprep.mubr.msk.bf16.mxu0 %vm524_vm0, %v1302_v16  ;;  %1217 = vmatprep.mubr.msk.bf16.mxu1 %vm524_vm0, %v1303_v17 }
  0x37   : > { %1202 = vmatmul.mubr.msk.bf16.gmra.mrb[12].mxu0 %vm524_vm0, %v1304_v18  ;;  %1218 = vmatmul.mubr.msk.bf16.gmra.mrb[12].mxu1 %vm524_vm0, %v1305_v19 }
  0xf2   : > { %v1191_v21 = vpop.f32.mrb[0].mxu0  ;;  %v1207_v23 = vpop.f32.mrb[0].mxu1 }
  0xf3   : > { %v842_v25 = vadd.f32 %v1191_v21, %v1532_v20  ;;  %v858_v26 = vadd.f32 %v1207_v23, %v1532_v20  ;;  %v607_v27 = vpop.f32.mrb[1].mxu0  ;;  %v671_v29 = vpop.f32.mrb[1].mxu1  ;;  %v882_v23 = vld [vmem:[%s1527_s30 + $0x50] sm:$0xff] }
  0xf4   : > { %v840_v31 = vadd.f32 %v1532_v20, %v607_v27  ;;  %v856_v32 = vadd.f32 %v1532_v20, %v671_v29  ;;  %v1192_v33 = vpop.f32.mrb[2].mxu0  ;;  %v1208_v35 = vpop.f32.mrb[2].mxu1  ;;  %v880_v29 = vld [vmem:[%s1527_s30 + $0x40] sm:$0xff] }
  0xf5   : > { %v906_v37 = vadd.f32 %v874_v22, %v842_v25  ;;  %v922_v38 = vadd.f32 %v890_v24, %v858_v26  ;;  %v843_v39 = vadd.f32 %v1192_v33, %v1532_v20  ;;  %v859_v40 = vadd.f32 %v1208_v35, %v1532_v20  ;;  %v610_v41 = vpop.f32.mrb[3].mxu0  ;;  %v674_v43 = vpop.f32.mrb[3].mxu1  ;;  %v898_v25 = vld [vmem:[%s1527_s30 + $0xd0] sm:$0xff]  ;;  %v883_v35 = vld [vmem:[%s1527_s30 + $0x58] sm:$0xff] }
  0xf6   : > { %v904_v45 = vadd.f32 %v872_v28, %v840_v31  ;;  %v920_v46 = vadd.f32 %v888_v30, %v856_v32  ;;  %v841_v47 = vadd.f32 %v1532_v20, %v610_v41  ;;  %v857_v48 = vadd.f32 %v1532_v20, %v674_v43  ;;  %v896_v31 = vld [vmem:[%s1527_s30 + $0xc0] sm:$0xff]  ;;  %v881_v43 = vld [vmem:[%s1527_s30 + $0x48] sm:$0xff] }
  0xf7   : > { %938 = vst [vmem:[%s1552_s5 + $0x10] sm:$0xff] %v906_v37  ;;  %954 = vst [vmem:[%s1552_s5 + $0x90] sm:$0xff] %v922_v38  ;;  %v907_v49 = vadd.f32 %v875_v34, %v843_v39  ;;  %v923_v50 = vadd.f32 %v891_v36, %v859_v40  ;;  %v899_v37 = vld [vmem:[%s1527_s30 + $0xd8] sm:$0xff] }
  0xf8   : > { %936 = vst [vmem:[%s1552_s5] sm:$0xff] %v904_v45  ;;  %952 = vst [vmem:[%s1552_s5 + $0x80] sm:$0xff] %v920_v46  ;;  %v905_v51 = vadd.f32 %v873_v42, %v841_v47  ;;  %v921_v52 = vadd.f32 %v889_v44, %v857_v48  ;;  %v897_v45 = vld [vmem:[%s1527_s30 + $0xc8] sm:$0xff] }
  0xf9   : > { %939 = vst [vmem:[%s1552_s5 + $0x18] sm:$0xff] %v907_v49  ;;  %955 = vst [vmem:[%s1552_s5 + $0x98] sm:$0xff] %v923_v50 }
  0xfa   : > { %937 = vst [vmem:[%s1552_s5 + $0x8] sm:$0xff] %v905_v51  ;;  %953 = vst [vmem:[%s1552_s5 + $0x88] sm:$0xff] %v921_v52  ;;  %v1195_v53 = vpop.f32.mrb[4].mxu0  ;;  %v1211_v55 = vpop.f32.mrb[4].mxu1 }
  0xfb   : > { %v846_v57 = vadd.f32 %v1195_v53, %v1532_v20  ;;  %v862_v58 = vadd.f32 %v1211_v55, %v1532_v20  ;;  %v623_v59 = vpop.f32.mrb[5].mxu0  ;;  %v687_v61 = vpop.f32.mrb[5].mxu1  ;;  %v886_v55 = vld [vmem:[%s1527_s30 + $0x70] sm:$0xff] }
  0xfc   : > { %v844_v63 = vadd.f32 %v1532_v20, %v623_v59  ;;  %v860_v0 = vadd.f32 %v1532_v20, %v687_v61  ;;  %v1196_v1 = vpop.f32.mrb[6].mxu0  ;;  %v1212_v3 = vpop.f32.mrb[6].mxu1  ;;  %v884_v61 = vld [vmem:[%s1527_s30 + $0x60] sm:$0xff] }
  0xfd   : > { %v910_v5 = vadd.f32 %v878_v54, %v846_v57  ;;  %v926_v6 = vadd.f32 %v894_v56, %v862_v58  ;;  %v847_v7 = vadd.f32 %v1196_v1, %v1532_v20  ;;  %v863_v8 = vadd.f32 %v1212_v3, %v1532_v20  ;;  %v626_v9 = vpop.f32.mrb[7].mxu0  ;;  %v690_v11 = vpop.f32.mrb[7].mxu1  ;;  %v902_v57 = vld [vmem:[%s1527_s30 + $0xf0] sm:$0xff]  ;;  %v887_v3 = vld [vmem:[%s1527_s30 + $0x78] sm:$0xff] }
  0xfe   : > { %v908_v13 = vadd.f32 %v876_v60, %v844_v63  ;;  %v924_v14 = vadd.f32 %v892_v62, %v860_v0  ;;  %v845_v15 = vadd.f32 %v1532_v20, %v626_v9  ;;  %v861_v16 = vadd.f32 %v1532_v20, %v690_v11  ;;  %v900_v63 = vld [vmem:[%s1527_s30 + $0xe0] sm:$0xff]  ;;  %v885_v11 = vld [vmem:[%s1527_s30 + $0x68] sm:$0xff] }
  0xff   : > { %942 = vst [vmem:[%s1552_s5 + $0x30] sm:$0xff] %v910_v5  ;;  %958 = vst [vmem:[%s1552_s5 + $0xb0] sm:$0xff] %v926_v6  ;;  %v911_v17 = vadd.f32 %v879_v2, %v847_v7  ;;  %v927_v18 = vadd.f32 %v895_v4, %v863_v8  ;;  %v903_v5 = vld [vmem:[%s1527_s30 + $0xf8] sm:$0xff] }
 0x100   : > { %940 = vst [vmem:[%s1552_s5 + $0x20] sm:$0xff] %v908_v13  ;;  %956 = vst [vmem:[%s1552_s5 + $0xa0] sm:$0xff] %v924_v14  ;;  %v909_v19 = vadd.f32 %v877_v10, %v845_v15  ;;  %v925_v21 = vadd.f32 %v893_v12, %v861_v16  ;;  %v901_v13 = vld [vmem:[%s1527_s30 + $0xe8] sm:$0xff] }
 0x101   : > { %943 = vst [vmem:[%s1552_s5 + $0x38] sm:$0xff] %v911_v17  ;;  %959 = vst [vmem:[%s1552_s5 + $0xb8] sm:$0xff] %v927_v18 }
 0x102   : > { %941 = vst [vmem:[%s1552_s5 + $0x28] sm:$0xff] %v909_v19  ;;  %957 = vst [vmem:[%s1552_s5 + $0xa8] sm:$0xff] %v925_v21  ;;  %v1199_v22 = vpop.f32.mrb[8].mxu0  ;;  %v1215_v24 = vpop.f32.mrb[8].mxu1 }
 0x103   : > { %v850_v26 = vadd.f32 %v1199_v22, %v1532_v20  ;;  %v866_v27 = vadd.f32 %v1215_v24, %v1532_v20  ;;  %v639_v28 = vpop.f32.mrb[9].mxu0  ;;  %v703_v30 = vpop.f32.mrb[9].mxu1 }
 0x104   : > { %v848_v32 = vadd.f32 %v1532_v20, %v639_v28  ;;  %v864_v33 = vadd.f32 %v1532_v20, %v703_v30  ;;  %v1200_v34 = vpop.f32.mrb[10].mxu0  ;;  %v1216_v36 = vpop.f32.mrb[10].mxu1 }
 0x105   : > { %v914_v38 = vadd.f32 %v882_v23, %v850_v26  ;;  %v930_v39 = vadd.f32 %v898_v25, %v866_v27  ;;  %v851_v40 = vadd.f32 %v1200_v34, %v1532_v20  ;;  %v867_v41 = vadd.f32 %v1216_v36, %v1532_v20  ;;  %v642_v42 = vpop.f32.mrb[11].mxu0  ;;  %v706_v44 = vpop.f32.mrb[11].mxu1 }
 0x106   : > { %v912_v46 = vadd.f32 %v880_v29, %v848_v32  ;;  %v928_v47 = vadd.f32 %v896_v31, %v864_v33  ;;  %v849_v48 = vadd.f32 %v1532_v20, %v642_v42  ;;  %v865_v49 = vadd.f32 %v1532_v20, %v706_v44 }
 0x107   : > { %946 = vst [vmem:[%s1552_s5 + $0x50] sm:$0xff] %v914_v38  ;;  %962 = vst [vmem:[%s1552_s5 + $0xd0] sm:$0xff] %v930_v39  ;;  %v915_v50 = vadd.f32 %v883_v35, %v851_v40  ;;  %v931_v51 = vadd.f32 %v899_v37, %v867_v41 }
 0x108   : > { %944 = vst [vmem:[%s1552_s5 + $0x40] sm:$0xff] %v912_v46  ;;  %960 = vst [vmem:[%s1552_s5 + $0xc0] sm:$0xff] %v928_v47  ;;  %v913_v52 = vadd.f32 %v881_v43, %v849_v48  ;;  %v929_v53 = vadd.f32 %v897_v45, %v865_v49 }
 0x109   : > { %947 = vst [vmem:[%s1552_s5 + $0x58] sm:$0xff] %v915_v50  ;;  %963 = vst [vmem:[%s1552_s5 + $0xd8] sm:$0xff] %v931_v51 }
 0x10a   : > { %945 = vst [vmem:[%s1552_s5 + $0x48] sm:$0xff] %v913_v52  ;;  %961 = vst [vmem:[%s1552_s5 + $0xc8] sm:$0xff] %v929_v53  ;;  %v1203_v54 = vpop.f32.mrb[12].mxu0  ;;  %v1219_v56 = vpop.f32.mrb[12].mxu1 }
 0x10b   : > { %v854_v58 = vadd.f32 %v1203_v54, %v1532_v20  ;;  %v870_v59 = vadd.f32 %v1219_v56, %v1532_v20  ;;  %v655_v60 = vpop.f32.mrb[13].mxu0  ;;  %v719_v62 = vpop.f32.mrb[13].mxu1 }
 0x10c   : > { %v852_v0 = vadd.f32 %v1532_v20, %v655_v60  ;;  %v868_v1 = vadd.f32 %v1532_v20, %v719_v62  ;;  %v1204_v2 = vpop.f32.mrb[14].mxu0  ;;  %v1220_v4 = vpop.f32.mrb[14].mxu1 }
 0x10d   : > { %v918_v6 = vadd.f32 %v886_v55, %v854_v58  ;;  %v934_v7 = vadd.f32 %v902_v57, %v870_v59  ;;  %v855_v8 = vadd.f32 %v1204_v2, %v1532_v20  ;;  %v871_v9 = vadd.f32 %v1220_v4, %v1532_v20  ;;  %v658_v10 = vpop.f32.mrb[15].mxu0  ;;  %v722_v12 = vpop.f32.mrb[15].mxu1 }
 0x10e   : > { %v916_v14 = vadd.f32 %v884_v61, %v852_v0  ;;  %v932_v15 = vadd.f32 %v900_v63, %v868_v1  ;;  %v853_v16 = vadd.f32 %v1532_v20, %v658_v10  ;;  %v869_v17 = vadd.f32 %v1532_v20, %v722_v12 }
 0x10f   : > { %950 = vst [vmem:[%s1552_s5 + $0x70] sm:$0xff] %v918_v6  ;;  %966 = vst [vmem:[%s1552_s5 + $0xf0] sm:$0xff] %v934_v7  ;;  %v919_v18 = vadd.f32 %v887_v3, %v855_v8  ;;  %v935_v19 = vadd.f32 %v903_v5, %v871_v9 }
 0x110   : > { %948 = vst [vmem:[%s1552_s5 + $0x60] sm:$0xff] %v916_v14  ;;  %964 = vst [vmem:[%s1552_s5 + $0xe0] sm:$0xff] %v932_v15  ;;  %v917_v21 = vadd.f32 %v885_v11, %v853_v16  ;;  %v933_v22 = vadd.f32 %v901_v13, %v869_v17 }
 0x111   : > { %951 = vst [vmem:[%s1552_s5 + $0x78] sm:$0xff] %v919_v18  ;;  %967 = vst [vmem:[%s1552_s5 + $0xf8] sm:$0xff] %v935_v19 }
 0x112   : > { %949 = vst [vmem:[%s1552_s5 + $0x68] sm:$0xff] %v917_v21  ;;  %965 = vst [vmem:[%s1552_s5 + $0xe8] sm:$0xff] %v933_v22 }
 0x113   : > { %1319 = shalt.err (!%p1316_p5)
}
 0x114   : > { %s1320_s24 = scalar_lea.hbm %s1633_s12, 4096  ;;  %s1324_s6 = scalar_lea.hbm %s1695_s4, 8192 }
 0x115   : > { %p1321_p6 = scmp.ne.s32.totalorder %s1633_s12, %s1320_s24  ;;  %p1325_p10 = scmp.lt.u32.totalorder %s1633_s12, %s1695_s4 }
 0x116   : > { %p1326_p11 = scmp.lt.u32.totalorder %s1324_s6, %s1320_s24  ;;  %p1328_p13 = scmp.lt.u32.totalorder %s1320_s24, %s1633_s12 }
 0x117   : > { %p1322_p7 = pnand %p1321_p6, %p1454_p4 }
 0x118   : > { %p1327_p12 = por %p1326_p11, %p1325_p10 }
 0x119   : > { %p1323_p9 = pneg %p1322_p7 }
 0x11a   : > { %p1329_p0 = por %p1328_p13, %p1327_p12 }
 0x11c   : > { %p1330_p1 = pnand %p1329_p0, %p1323_p9 }
 0x11e   : > { %1333 = shalt.err (!%p1330_p1)
}
 0x11f   : > { %s1387_s5 = smov 128   ;;  %s1388_s9 = smov 8  }
 0x120   : > { %1229 = dma.vmem_to_hbm [thread:$0]  (%p1454_p4), %s1635_s10, 4096, %s1633_s12, %s1645_s13, %s1387_s5, %s1387_s5, %s1388_s9  }
 0x121 PF: > { %p1235_p2 = scmp.ge.s32.totalorder %s1384_s20, 2  ;;  %s998_s18 = sand.u32 1, %s1364_s15  }
 0x122   : > { %s999_s11 = scalar_lea.sflag [#allocation4], %s998_s18 }
 0x123   : > { %p1232_p3 = pnand %p1235_p2, %p1461_p8 }
 0x125   : > { %1359 = dma.done.wait (!%p1232_p3), %s999_s11, 4096  }
 0x126   : > { %1361 = vsyncadd (!%p1232_p3), %s999_s11, 4294963200  ;;  %s17_s20 = sadd.s32 1, %s1384_s20   ;;  %s1698_s15 = smov %s1368_s16 }
 0x127   : > { %p14_p5 = scmp.ge.s32.totalorder %s17_s20, 4   ;;  %s1699_s16 = smov %s1372_s17 }
 0x128   : > { %s1700_s17 = smov %s1467_s28  ;;  %s1701_s18 = smov %s1380_s19 }
 0x129   : > { %s1702_s19 = smov %s1704_s23  ;;  %16 = sbr.rel (!%p14_p5) target bundleno = 4 (0x4), region = 88 }
 0x130   :  { %1004 = vsyncpa [#allocation4], 1 }
 0x131   :  { %1006 = vsyncpa [#allocation4 + $0x1], 1 }

</bundles_post_ra>
